<compile_context>
chip_gen: v5e
topology: v5e:2x2
jax: 0.10.0
libtpu: 0.0.40
codegen_flags: <defaults>
</compile_context>

<pallas_src>
import jax
import jax.numpy as jnp
from jax.experimental import pallas as pl
from jax.experimental.pallas import tpu as pltpu

BT = 32            # images per grid step
W = 28             # image width
LANES = BT * W     # 896 lanes per step


def _shift_left(x, k):
    # result[:, l] = x[:, l + k]   (circular; image-boundary lanes are masked by caller)
    return pltpu.roll(x, (-k) % LANES, axis=1)


def _shift_right(x, k):
    # result[:, l] = x[:, l - k]
    return pltpu.roll(x, k % LANES, axis=1)


# ---------------------------------------------------------------------------
# Fused kernel: BT images per grid step, feature maps (rows, 28*BT lanes).
# ---------------------------------------------------------------------------
def cnn_kernel(x_ref, a1_ref, b1_ref, a2_ref, b2_ref,
               re1_ref, ro1_ref, re2_ref, ro2_ref,
               w3_ref, b3_ref, m_ref, out_ref):
    f32 = jnp.float32
    x1 = x_ref[...]                                  # (30, L) height-padded input
    m_w_ne_0 = m_ref[0]                              # (1, L) masks (lane % 28 tests)
    m_w_ne_27 = m_ref[1]
    m_w_ge_2 = m_ref[2]
    m_w_lt_26 = m_ref[3]

    # ---- stage 1: Conv2d(1->4, 3x3, pad=1) + ReLU -------------------------------
    xl = _shift_right(x1, 1) * m_w_ne_0              # value at width w-1 (0 at w==0)
    xr = _shift_left(x1, 1) * m_w_ne_27              # value at width w+1 (0 at w==27)
    acc1 = jnp.dot(a1_ref[0], xl, preferred_element_type=f32)
    acc1 = acc1 + jnp.dot(a1_ref[1], x1, preferred_element_type=f32)
    acc1 = acc1 + jnp.dot(a1_ref[2], xr, preferred_element_type=f32)
    h1 = jnp.maximum(acc1 + b1_ref[...], 0.0)        # (112, L)

    # ---- 2x2 max pool #1 ---------------------------------------------------------
    # height: selector matmuls emitting rows directly in conv2's zero-padded layout
    r1 = jnp.maximum(jnp.dot(re1_ref[...], h1, preferred_element_type=f32),
                     jnp.dot(ro1_ref[...], h1, preferred_element_type=f32))   # (64, L)
    # width: max with the right neighbour; valid results land at even w (dilated layout)
    p1 = jnp.maximum(r1, _shift_left(r1, 1))

    # ---- stage 2: Conv2d(4->8, 3x3, pad=1) + ReLU (width taps are +-2 lanes) -----
    pl2 = _shift_right(p1, 2) * m_w_ge_2
    pr2 = _shift_left(p1, 2) * m_w_lt_26
    acc2 = jnp.dot(a2_ref[0], pl2, preferred_element_type=f32)
    acc2 = acc2 + jnp.dot(a2_ref[1], p1, preferred_element_type=f32)
    acc2 = acc2 + jnp.dot(a2_ref[2], pr2, preferred_element_type=f32)
    h2 = jnp.maximum(acc2 + b2_ref[...], 0.0)        # (112, L)

    # ---- 2x2 max pool #2 ---------------------------------------------------------
    r2 = jnp.maximum(jnp.dot(re2_ref[...], h2, preferred_element_type=f32),
                     jnp.dot(ro2_ref[...], h2, preferred_element_type=f32))   # (56, L)
    p2 = jnp.maximum(r2, _shift_left(r2, 2))         # valid at lanes with w % 4 == 0

    # ---- Linear(392 -> 10): one matmul + roll-align over the 7 width positions ---
    q = jnp.dot(w3_ref[...], p2, preferred_element_type=f32)    # (112, L)
    s = q[0:16, :]
    for j in range(1, 7):
        s = s + _shift_left(q[16 * j:16 * (j + 1), :], 4 * j)
    # per-image logits now live at lane b*28 (other lanes are junk, sliced off outside)
    out_ref[...] = s[0:10, :] + b3_ref[...]


# ---------------------------------------------------------------------------
# Wrapper-side (pure JAX) parameter preprocessing.
# ---------------------------------------------------------------------------
def _conv_band_matrices(w, H):
    """w: (Cout, Cin, 3, 3) -> (3, Cout*H, Cin*(H+2)); A[dj] is the banded block matrix
    applying kernel column dj to a channel-stacked, height-padded feature map."""
    Cout, Cin, _, _ = w.shape
    Hp = H + 2
    oc, ic, di, h = jnp.meshgrid(jnp.arange(Cout), jnp.arange(Cin),
                                 jnp.arange(3), jnp.arange(H), indexing="ij")
    rows = oc * H + h
    cols = ic * Hp + h + di
    A = jnp.zeros((3, Cout * H, Cin * Hp), jnp.float32)
    wf = w.astype(jnp.float32)
    for dj in range(3):
        A = A.at[dj, rows, cols].set(wf[oc, ic, di, dj])
    return A


def _row_pool_selectors(C, Hin, rows_per_c, row_off):
    """Even/odd height-pool selectors (C*rows_per_c, C*Hin).  Output row
    c*rows_per_c + row_off + i picks input row c*Hin + 2i (odd variant: +1), so
    rows_per_c=Hin/2+2, row_off=1 emits directly into the next conv's padded layout."""
    half = Hin // 2
    c, i = jnp.meshgrid(jnp.arange(C), jnp.arange(half), indexing="ij")
    re = jnp.zeros((C * rows_per_c, C * Hin), jnp.float32)
    ro = jnp.zeros((C * rows_per_c, C * Hin), jnp.float32)
    re = re.at[c * rows_per_c + row_off + i, c * Hin + 2 * i].set(1.0)
    ro = ro.at[c * rows_per_c + row_off + i, c * Hin + 2 * i + 1].set(1.0)
    return re, ro


def cnn_forward(x, params):
    """Matches CNN.forward.  x: (B, 1, 28, 28) -> (B, 10)."""
    w1, b1, w2, b2, w3, b3 = params
    f32 = jnp.float32
    B = x.shape[0]
    Bpad = ((B + BT - 1) // BT) * BT
    nsteps = Bpad // BT

    # Input: pad height 28->30 (zeros), pad batch to Bpad, lay out as (30, Bpad*28)
    # with lane index = b*28 + w.
    xi = jnp.pad(x.reshape(B, 28, 28).astype(f32), ((0, Bpad - B), (1, 1), (0, 0)))
    X1 = xi.transpose(1, 0, 2).reshape(30, Bpad * W)

    A1 = _conv_band_matrices(w1, 28)                        # (3, 112, 30)
    A2 = _conv_band_matrices(w2, 14)                        # (3, 112, 64)
    b1c = jnp.repeat(b1.astype(f32), 28).reshape(-1, 1)     # (112, 1)
    b2c = jnp.repeat(b2.astype(f32), 14).reshape(-1, 1)     # (112, 1)
    re1, ro1 = _row_pool_selectors(4, 28, 16, 1)            # (64, 112) padded rows
    re2, ro2 = _row_pool_selectors(8, 14, 7, 0)             # (56, 112)
    # Linear weight: row 16*j + o holds w3[o, c2*49 + i*7 + j] at column c2*7 + i.
    w3blk = w3.astype(f32).reshape(10, 8, 7, 7).transpose(3, 0, 1, 2).reshape(7, 10, 56)
    W3all = jnp.pad(w3blk, ((0, 0), (0, 6), (0, 0))).reshape(112, 56)
    b3c = b3.astype(f32).reshape(10, 1)
    # Image-boundary masks for the width rotations (pattern repeats every 28 lanes).
    wlane = jnp.arange(LANES) % W
    masks = jnp.stack([(wlane != 0), (wlane != W - 1),
                       (wlane >= 2), (wlane < W - 2)]).astype(f32).reshape(4, 1, LANES)

    consts = [A1, b1c, A2, b2c, re1, ro1, re2, ro2, W3all, b3c, masks]

    def const_spec(a):
        nd = a.ndim
        return pl.BlockSpec(a.shape, lambda s, _nd=nd: (0,) * _nd)

    out = pl.pallas_call(
        cnn_kernel,
        out_shape=jax.ShapeDtypeStruct((10, Bpad * W), f32),
        grid=(nsteps,),
        in_specs=[pl.BlockSpec((30, LANES), lambda s: (0, s))]
                 + [const_spec(c) for c in consts],
        out_specs=pl.BlockSpec((10, LANES), lambda s: (0, s)),
        compiler_params=pltpu.CompilerParams(dimension_semantics=("parallel",)),
    )(X1, *consts)

    # One valid lane per image (lane b*28); the HBM store itself was lane-dense.
    return out[:, ::W][:, :B].T                              # (B, 10)


# ---------------------------------------------------------------------------
# Pure-JAX reference (high precision) for the sanity check.
# ---------------------------------------------------------------------------
def reference_forward(x, params):
    w1, b1, w2, b2, w3, b3 = params

    def conv(x, w, b):
        y = jax.lax.conv_general_dilated(
            x, w, window_strides=(1, 1), padding=((1, 1), (1, 1)),
            dimension_numbers=("NCHW", "OIHW", "NCHW"),
            precision=jax.lax.Precision.HIGHEST,
        )
        return y + b.reshape(1, -1, 1, 1)

    def pool(x):
        return jax.lax.reduce_window(x, -jnp.inf, jax.lax.max,
                                     (1, 1, 2, 2), (1, 1, 2, 2), "VALID")

    h = pool(jnp.maximum(conv(x, w1, b1), 0.0))
    h = pool(jnp.maximum(conv(h, w2, b2), 0.0))
    flat = h.reshape(x.shape[0], -1)
    return jnp.dot(flat, w3.T, precision=jax.lax.Precision.HIGHEST) + b3


if __name__ == "__main__":
    key = jax.random.PRNGKey(0)
    ks = jax.random.split(key, 7)
    B = 2
    # Input shape implied by the module (Linear(8*7*7, 10)): 1x28x28.
    x = jax.random.normal(ks[0], (B, 1, 28, 28), jnp.float32)

    # Deterministic synthetic parameters (shapes from CNN.__init__).
    w1 = jax.random.normal(ks[1], (4, 1, 3, 3), jnp.float32) * 0.3
    b1 = jax.random.normal(ks[2], (4,), jnp.float32) * 0.1
    w2 = jax.random.normal(ks[3], (8, 4, 3, 3), jnp.float32) * 0.1
    b2 = jax.random.normal(ks[4], (8,), jnp.float32) * 0.1
    w3 = jax.random.normal(ks[5], (10, 8 * 7 * 7), jnp.float32) * 0.05
    b3 = jax.random.normal(ks[6], (10,), jnp.float32) * 0.1
    params = (w1, b1, w2, b2, w3, b3)

    out = jax.block_until_ready(cnn_forward(x, params))
    assert out.shape == (B, 10) and out.dtype == jnp.float32

    ref = jax.block_until_ready(reference_forward(x, params))
    # Kernel matmuls run at TPU-default (single-pass bf16) MXU precision; the reference
    # is HIGHEST-precision f32, so allow a modest absolute tolerance.
    max_err = float(jnp.max(jnp.abs(out - ref)))
    assert max_err < 3e-2, f"mismatch vs reference, max abs err = {max_err}"

    print("KERNEL_OK")
</pallas_src>

<mosaic_0001>
module attributes {stable_mosaic.version = 11 : i64} {
  func.func @cnn_kernel(%arg0: i32, %arg1: memref<30x896xf32, #tpu.memory_space<vmem>>, %arg2: memref<3x112x30xf32, #tpu.memory_space<vmem>>, %arg3: memref<112x1xf32, #tpu.memory_space<vmem>>, %arg4: memref<3x112x64xf32, #tpu.memory_space<vmem>>, %arg5: memref<112x1xf32, #tpu.memory_space<vmem>>, %arg6: memref<64x112xf32, #tpu.memory_space<vmem>>, %arg7: memref<64x112xf32, #tpu.memory_space<vmem>>, %arg8: memref<56x112xf32, #tpu.memory_space<vmem>>, %arg9: memref<56x112xf32, #tpu.memory_space<vmem>>, %arg10: memref<112x56xf32, #tpu.memory_space<vmem>>, %arg11: memref<10x1xf32, #tpu.memory_space<vmem>>, %arg12: memref<4x1x896xf32, #tpu.memory_space<vmem>>, %arg13: memref<10x896xf32, #tpu.memory_space<vmem>>) attributes {dimension_semantics = [#tpu.dimension_semantics<parallel>], iteration_bounds = array<i64: 1>, scalar_prefetch = 0 : i64, scratch_operands = 0 : i64, tpu.core_type = #tpu.core_type<tc>, window_params = [{transform_indices = @transform_0, window_bounds = array<i64: 30, 896>}, {pipeline_mode = #tpu.pipeline_mode<synchronous>, transform_indices = @transform_1, window_bounds = array<i64: 3, 112, 30>}, {pipeline_mode = #tpu.pipeline_mode<synchronous>, transform_indices = @transform_2, window_bounds = array<i64: 112, 1>}, {pipeline_mode = #tpu.pipeline_mode<synchronous>, transform_indices = @transform_3, window_bounds = array<i64: 3, 112, 64>}, {pipeline_mode = #tpu.pipeline_mode<synchronous>, transform_indices = @transform_4, window_bounds = array<i64: 112, 1>}, {pipeline_mode = #tpu.pipeline_mode<synchronous>, transform_indices = @transform_5, window_bounds = array<i64: 64, 112>}, {pipeline_mode = #tpu.pipeline_mode<synchronous>, transform_indices = @transform_6, window_bounds = array<i64: 64, 112>}, {pipeline_mode = #tpu.pipeline_mode<synchronous>, transform_indices = @transform_7, window_bounds = array<i64: 56, 112>}, {pipeline_mode = #tpu.pipeline_mode<synchronous>, transform_indices = @transform_8, window_bounds = array<i64: 56, 112>}, {pipeline_mode = #tpu.pipeline_mode<synchronous>, transform_indices = @transform_9, window_bounds = array<i64: 112, 56>}, {pipeline_mode = #tpu.pipeline_mode<synchronous>, transform_indices = @transform_10, window_bounds = array<i64: 10, 1>}, {pipeline_mode = #tpu.pipeline_mode<synchronous>, transform_indices = @transform_11, window_bounds = array<i64: 4, 1, 896>}, {transform_indices = @transform_12, window_bounds = array<i64: 10, 896>}]} {
    %c0 = arith.constant 0 : index
    %c0_0 = arith.constant 0 : index
    %0 = vector.load %arg1[%c0, %c0_0] : memref<30x896xf32, #tpu.memory_space<vmem>>, vector<30x896xf32>
    %c0_1 = arith.constant 0 : index
    %c0_2 = arith.constant 0 : index
    %c0_3 = arith.constant 0 : index
    %1 = vector.load %arg12[%c0_1, %c0_2, %c0_3] : memref<4x1x896xf32, #tpu.memory_space<vmem>>, vector<1x1x896xf32>
    %2 = vector.shape_cast %1 : vector<1x1x896xf32> to vector<1x896xf32>
    %c1 = arith.constant 1 : index
    %c0_4 = arith.constant 0 : index
    %c0_5 = arith.constant 0 : index
    %3 = vector.load %arg12[%c1, %c0_4, %c0_5] : memref<4x1x896xf32, #tpu.memory_space<vmem>>, vector<1x1x896xf32>
    %4 = vector.shape_cast %3 : vector<1x1x896xf32> to vector<1x896xf32>
    %c2 = arith.constant 2 : index
    %c0_6 = arith.constant 0 : index
    %c0_7 = arith.constant 0 : index
    %5 = vector.load %arg12[%c2, %c0_6, %c0_7] : memref<4x1x896xf32, #tpu.memory_space<vmem>>, vector<1x1x896xf32>
    %6 = vector.shape_cast %5 : vector<1x1x896xf32> to vector<1x896xf32>
    %c3 = arith.constant 3 : index
    %c0_8 = arith.constant 0 : index
    %c0_9 = arith.constant 0 : index
    %7 = vector.load %arg12[%c3, %c0_8, %c0_9] : memref<4x1x896xf32, #tpu.memory_space<vmem>>, vector<1x1x896xf32>
    %8 = vector.shape_cast %7 : vector<1x1x896xf32> to vector<1x896xf32>
    %c1_i32 = arith.constant 1 : i32
    %9 = tpu.dynamic_rotate %0 by %c1_i32 dim 1 : vector<30x896xf32>, i32 -> vector<30x896xf32>
    %10 = vector.broadcast %2 : vector<1x896xf32> to vector<30x896xf32>
    %11 = arith.mulf %9, %10 : vector<30x896xf32>
    %c895_i32 = arith.constant 895 : i32
    %12 = tpu.dynamic_rotate %0 by %c895_i32 dim 1 : vector<30x896xf32>, i32 -> vector<30x896xf32>
    %13 = vector.broadcast %4 : vector<1x896xf32> to vector<30x896xf32>
    %14 = arith.mulf %12, %13 : vector<30x896xf32>
    %c0_10 = arith.constant 0 : index
    %c0_11 = arith.constant 0 : index
    %c0_12 = arith.constant 0 : index
    %15 = vector.load %arg2[%c0_10, %c0_11, %c0_12] : memref<3x112x30xf32, #tpu.memory_space<vmem>>, vector<1x112x30xf32>
    %16 = vector.shape_cast %15 : vector<1x112x30xf32> to vector<112x30xf32>
    %cst = arith.constant dense<0.000000e+00> : vector<112x896xf32>
    %17 = tpu.matmul %16, %11, %cst {dimension_numbers = #tpu.dot_dimension_numbers<[1], [0], [0], [1], [0, 0, 1, 1], [], []>} : vector<112x30xf32>, vector<30x896xf32>, vector<112x896xf32> -> vector<112x896xf32>
    %c1_13 = arith.constant 1 : index
    %c0_14 = arith.constant 0 : index
    %c0_15 = arith.constant 0 : index
    %18 = vector.load %arg2[%c1_13, %c0_14, %c0_15] : memref<3x112x30xf32, #tpu.memory_space<vmem>>, vector<1x112x30xf32>
    %19 = vector.shape_cast %18 : vector<1x112x30xf32> to vector<112x30xf32>
    %cst_16 = arith.constant dense<0.000000e+00> : vector<112x896xf32>
    %20 = tpu.matmul %19, %0, %cst_16 {dimension_numbers = #tpu.dot_dimension_numbers<[1], [0], [0], [1], [0, 0, 1, 1], [], []>} : vector<112x30xf32>, vector<30x896xf32>, vector<112x896xf32> -> vector<112x896xf32>
    %21 = arith.addf %17, %20 : vector<112x896xf32>
    %c2_17 = arith.constant 2 : index
    %c0_18 = arith.constant 0 : index
    %c0_19 = arith.constant 0 : index
    %22 = vector.load %arg2[%c2_17, %c0_18, %c0_19] : memref<3x112x30xf32, #tpu.memory_space<vmem>>, vector<1x112x30xf32>
    %23 = vector.shape_cast %22 : vector<1x112x30xf32> to vector<112x30xf32>
    %cst_20 = arith.constant dense<0.000000e+00> : vector<112x896xf32>
    %24 = tpu.matmul %23, %14, %cst_20 {dimension_numbers = #tpu.dot_dimension_numbers<[1], [0], [0], [1], [0, 0, 1, 1], [], []>} : vector<112x30xf32>, vector<30x896xf32>, vector<112x896xf32> -> vector<112x896xf32>
    %25 = arith.addf %21, %24 : vector<112x896xf32>
    %c0_21 = arith.constant 0 : index
    %c0_22 = arith.constant 0 : index
    %26 = vector.load %arg3[%c0_21, %c0_22] : memref<112x1xf32, #tpu.memory_space<vmem>>, vector<112x1xf32>
    %27 = vector.broadcast %26 : vector<112x1xf32> to vector<112x896xf32>
    %28 = arith.addf %25, %27 : vector<112x896xf32>
    %cst_23 = arith.constant 0.000000e+00 : f32
    %29 = vector.broadcast %cst_23 : f32 to vector<112x896xf32>
    %30 = arith.maximumf %28, %29 : vector<112x896xf32>
    %c0_24 = arith.constant 0 : index
    %c0_25 = arith.constant 0 : index
    %31 = vector.load %arg6[%c0_24, %c0_25] : memref<64x112xf32, #tpu.memory_space<vmem>>, vector<64x112xf32>
    %cst_26 = arith.constant dense<0.000000e+00> : vector<64x896xf32>
    %32 = tpu.matmul %31, %30, %cst_26 {dimension_numbers = #tpu.dot_dimension_numbers<[1], [0], [0], [1], [0, 0, 1, 1], [], []>} : vector<64x112xf32>, vector<112x896xf32>, vector<64x896xf32> -> vector<64x896xf32>
    %c0_27 = arith.constant 0 : index
    %c0_28 = arith.constant 0 : index
    %33 = vector.load %arg7[%c0_27, %c0_28] : memref<64x112xf32, #tpu.memory_space<vmem>>, vector<64x112xf32>
    %cst_29 = arith.constant dense<0.000000e+00> : vector<64x896xf32>
    %34 = tpu.matmul %33, %30, %cst_29 {dimension_numbers = #tpu.dot_dimension_numbers<[1], [0], [0], [1], [0, 0, 1, 1], [], []>} : vector<64x112xf32>, vector<112x896xf32>, vector<64x896xf32> -> vector<64x896xf32>
    %35 = arith.maximumf %32, %34 : vector<64x896xf32>
    %c895_i32_30 = arith.constant 895 : i32
    %36 = tpu.dynamic_rotate %35 by %c895_i32_30 dim 1 : vector<64x896xf32>, i32 -> vector<64x896xf32>
    %37 = arith.maximumf %35, %36 : vector<64x896xf32>
    %c2_i32 = arith.constant 2 : i32
    %38 = tpu.dynamic_rotate %37 by %c2_i32 dim 1 : vector<64x896xf32>, i32 -> vector<64x896xf32>
    %39 = vector.broadcast %6 : vector<1x896xf32> to vector<64x896xf32>
    %40 = arith.mulf %38, %39 : vector<64x896xf32>
    %c894_i32 = arith.constant 894 : i32
    %41 = tpu.dynamic_rotate %37 by %c894_i32 dim 1 : vector<64x896xf32>, i32 -> vector<64x896xf32>
    %42 = vector.broadcast %8 : vector<1x896xf32> to vector<64x896xf32>
    %43 = arith.mulf %41, %42 : vector<64x896xf32>
    %c0_31 = arith.constant 0 : index
    %c0_32 = arith.constant 0 : index
    %c0_33 = arith.constant 0 : index
    %44 = vector.load %arg4[%c0_31, %c0_32, %c0_33] : memref<3x112x64xf32, #tpu.memory_space<vmem>>, vector<1x112x64xf32>
    %45 = vector.shape_cast %44 : vector<1x112x64xf32> to vector<112x64xf32>
    %cst_34 = arith.constant dense<0.000000e+00> : vector<112x896xf32>
    %46 = tpu.matmul %45, %40, %cst_34 {dimension_numbers = #tpu.dot_dimension_numbers<[1], [0], [0], [1], [0, 0, 1, 1], [], []>} : vector<112x64xf32>, vector<64x896xf32>, vector<112x896xf32> -> vector<112x896xf32>
    %c1_35 = arith.constant 1 : index
    %c0_36 = arith.constant 0 : index
    %c0_37 = arith.constant 0 : index
    %47 = vector.load %arg4[%c1_35, %c0_36, %c0_37] : memref<3x112x64xf32, #tpu.memory_space<vmem>>, vector<1x112x64xf32>
    %48 = vector.shape_cast %47 : vector<1x112x64xf32> to vector<112x64xf32>
    %cst_38 = arith.constant dense<0.000000e+00> : vector<112x896xf32>
    %49 = tpu.matmul %48, %37, %cst_38 {dimension_numbers = #tpu.dot_dimension_numbers<[1], [0], [0], [1], [0, 0, 1, 1], [], []>} : vector<112x64xf32>, vector<64x896xf32>, vector<112x896xf32> -> vector<112x896xf32>
    %50 = arith.addf %46, %49 : vector<112x896xf32>
    %c2_39 = arith.constant 2 : index
    %c0_40 = arith.constant 0 : index
    %c0_41 = arith.constant 0 : index
    %51 = vector.load %arg4[%c2_39, %c0_40, %c0_41] : memref<3x112x64xf32, #tpu.memory_space<vmem>>, vector<1x112x64xf32>
    %52 = vector.shape_cast %51 : vector<1x112x64xf32> to vector<112x64xf32>
    %cst_42 = arith.constant dense<0.000000e+00> : vector<112x896xf32>
    %53 = tpu.matmul %52, %43, %cst_42 {dimension_numbers = #tpu.dot_dimension_numbers<[1], [0], [0], [1], [0, 0, 1, 1], [], []>} : vector<112x64xf32>, vector<64x896xf32>, vector<112x896xf32> -> vector<112x896xf32>
    %54 = arith.addf %50, %53 : vector<112x896xf32>
    %c0_43 = arith.constant 0 : index
    %c0_44 = arith.constant 0 : index
    %55 = vector.load %arg5[%c0_43, %c0_44] : memref<112x1xf32, #tpu.memory_space<vmem>>, vector<112x1xf32>
    %56 = vector.broadcast %55 : vector<112x1xf32> to vector<112x896xf32>
    %57 = arith.addf %54, %56 : vector<112x896xf32>
    %cst_45 = arith.constant 0.000000e+00 : f32
    %58 = vector.broadcast %cst_45 : f32 to vector<112x896xf32>
    %59 = arith.maximumf %57, %58 : vector<112x896xf32>
    %c0_46 = arith.constant 0 : index
    %c0_47 = arith.constant 0 : index
    %60 = vector.load %arg8[%c0_46, %c0_47] : memref<56x112xf32, #tpu.memory_space<vmem>>, vector<56x112xf32>
    %cst_48 = arith.constant dense<0.000000e+00> : vector<56x896xf32>
    %61 = tpu.matmul %60, %59, %cst_48 {dimension_numbers = #tpu.dot_dimension_numbers<[1], [0], [0], [1], [0, 0, 1, 1], [], []>} : vector<56x112xf32>, vector<112x896xf32>, vector<56x896xf32> -> vector<56x896xf32>
    %c0_49 = arith.constant 0 : index
    %c0_50 = arith.constant 0 : index
    %62 = vector.load %arg9[%c0_49, %c0_50] : memref<56x112xf32, #tpu.memory_space<vmem>>, vector<56x112xf32>
    %cst_51 = arith.constant dense<0.000000e+00> : vector<56x896xf32>
    %63 = tpu.matmul %62, %59, %cst_51 {dimension_numbers = #tpu.dot_dimension_numbers<[1], [0], [0], [1], [0, 0, 1, 1], [], []>} : vector<56x112xf32>, vector<112x896xf32>, vector<56x896xf32> -> vector<56x896xf32>
    %64 = arith.maximumf %61, %63 : vector<56x896xf32>
    %c894_i32_52 = arith.constant 894 : i32
    %65 = tpu.dynamic_rotate %64 by %c894_i32_52 dim 1 : vector<56x896xf32>, i32 -> vector<56x896xf32>
    %66 = arith.maximumf %64, %65 : vector<56x896xf32>
    %c0_53 = arith.constant 0 : index
    %c0_54 = arith.constant 0 : index
    %67 = vector.load %arg10[%c0_53, %c0_54] : memref<112x56xf32, #tpu.memory_space<vmem>>, vector<112x56xf32>
    %cst_55 = arith.constant dense<0.000000e+00> : vector<112x896xf32>
    %68 = tpu.matmul %67, %66, %cst_55 {dimension_numbers = #tpu.dot_dimension_numbers<[1], [0], [0], [1], [0, 0, 1, 1], [], []>} : vector<112x56xf32>, vector<56x896xf32>, vector<112x896xf32> -> vector<112x896xf32>
    %69 = vector.extract_strided_slice %68 {offsets = [0, 0], sizes = [16, 896], strides = [1, 1]} : vector<112x896xf32> to vector<16x896xf32>
    %70 = vector.extract_strided_slice %68 {offsets = [16, 0], sizes = [16, 896], strides = [1, 1]} : vector<112x896xf32> to vector<16x896xf32>
    %c892_i32 = arith.constant 892 : i32
    %71 = tpu.dynamic_rotate %70 by %c892_i32 dim 1 : vector<16x896xf32>, i32 -> vector<16x896xf32>
    %72 = arith.addf %69, %71 : vector<16x896xf32>
    %73 = vector.extract_strided_slice %68 {offsets = [32, 0], sizes = [16, 896], strides = [1, 1]} : vector<112x896xf32> to vector<16x896xf32>
    %c888_i32 = arith.constant 888 : i32
    %74 = tpu.dynamic_rotate %73 by %c888_i32 dim 1 : vector<16x896xf32>, i32 -> vector<16x896xf32>
    %75 = arith.addf %72, %74 : vector<16x896xf32>
    %76 = vector.extract_strided_slice %68 {offsets = [48, 0], sizes = [16, 896], strides = [1, 1]} : vector<112x896xf32> to vector<16x896xf32>
    %c884_i32 = arith.constant 884 : i32
    %77 = tpu.dynamic_rotate %76 by %c884_i32 dim 1 : vector<16x896xf32>, i32 -> vector<16x896xf32>
    %78 = arith.addf %75, %77 : vector<16x896xf32>
    %79 = vector.extract_strided_slice %68 {offsets = [64, 0], sizes = [16, 896], strides = [1, 1]} : vector<112x896xf32> to vector<16x896xf32>
    %c880_i32 = arith.constant 880 : i32
    %80 = tpu.dynamic_rotate %79 by %c880_i32 dim 1 : vector<16x896xf32>, i32 -> vector<16x896xf32>
    %81 = arith.addf %78, %80 : vector<16x896xf32>
    %82 = vector.extract_strided_slice %68 {offsets = [80, 0], sizes = [16, 896], strides = [1, 1]} : vector<112x896xf32> to vector<16x896xf32>
    %c876_i32 = arith.constant 876 : i32
    %83 = tpu.dynamic_rotate %82 by %c876_i32 dim 1 : vector<16x896xf32>, i32 -> vector<16x896xf32>
    %84 = arith.addf %81, %83 : vector<16x896xf32>
    %85 = vector.extract_strided_slice %68 {offsets = [96, 0], sizes = [16, 896], strides = [1, 1]} : vector<112x896xf32> to vector<16x896xf32>
    %c872_i32 = arith.constant 872 : i32
    %86 = tpu.dynamic_rotate %85 by %c872_i32 dim 1 : vector<16x896xf32>, i32 -> vector<16x896xf32>
    %87 = arith.addf %84, %86 : vector<16x896xf32>
    %88 = vector.extract_strided_slice %87 {offsets = [0, 0], sizes = [10, 896], strides = [1, 1]} : vector<16x896xf32> to vector<10x896xf32>
    %c0_56 = arith.constant 0 : index
    %c0_57 = arith.constant 0 : index
    %89 = vector.load %arg11[%c0_56, %c0_57] : memref<10x1xf32, #tpu.memory_space<vmem>>, vector<10x1xf32>
    %90 = vector.broadcast %89 : vector<10x1xf32> to vector<10x896xf32>
    %91 = arith.addf %88, %90 : vector<10x896xf32>
    %c0_58 = arith.constant 0 : index
    %c0_59 = arith.constant 0 : index
    %92 = vector.load %arg13[%c0_58, %c0_59] : memref<10x896xf32, #tpu.memory_space<vmem>>, vector<10x896xf32>
    tpu.vector_store %arg13[%c0_58, %c0_59], %91 {strides = array<i32>} : memref<10x896xf32, #tpu.memory_space<vmem>>, vector<10x896xf32>,
    return
  }
  func.func @transform_0(%arg0: i32) -> (i32, i32) {
    %c0_i32 = arith.constant 0 : i32
    %c0_i32_0 = arith.constant 0 : i32
    return %c0_i32, %arg0 : i32, i32
  }
  func.func @transform_1(%arg0: i32) -> (i32, i32, i32) {
    %c0_i32 = arith.constant 0 : i32
    %c0_i32_0 = arith.constant 0 : i32
    %c0_i32_1 = arith.constant 0 : i32
    %c0_i32_2 = arith.constant 0 : i32
    return %c0_i32, %c0_i32_0, %c0_i32_1 : i32, i32, i32
  }
  func.func @transform_2(%arg0: i32) -> (i32, i32) {
    %c0_i32 = arith.constant 0 : i32
    %c0_i32_0 = arith.constant 0 : i32
    %c0_i32_1 = arith.constant 0 : i32
    return %c0_i32, %c0_i32_0 : i32, i32
  }
  func.func @transform_3(%arg0: i32) -> (i32, i32, i32) {
    %c0_i32 = arith.constant 0 : i32
    %c0_i32_0 = arith.constant 0 : i32
    %c0_i32_1 = arith.constant 0 : i32
    %c0_i32_2 = arith.constant 0 : i32
    return %c0_i32, %c0_i32_0, %c0_i32_1 : i32, i32, i32
  }
  func.func @transform_4(%arg0: i32) -> (i32, i32) {
    %c0_i32 = arith.constant 0 : i32
    %c0_i32_0 = arith.constant 0 : i32
    %c0_i32_1 = arith.constant 0 : i32
    return %c0_i32, %c0_i32_0 : i32, i32
  }
  func.func @transform_5(%arg0: i32) -> (i32, i32) {
    %c0_i32 = arith.constant 0 : i32
    %c0_i32_0 = arith.constant 0 : i32
    %c0_i32_1 = arith.constant 0 : i32
    return %c0_i32, %c0_i32_0 : i32, i32
  }
  func.func @transform_6(%arg0: i32) -> (i32, i32) {
    %c0_i32 = arith.constant 0 : i32
    %c0_i32_0 = arith.constant 0 : i32
    %c0_i32_1 = arith.constant 0 : i32
    return %c0_i32, %c0_i32_0 : i32, i32
  }
  func.func @transform_7(%arg0: i32) -> (i32, i32) {
    %c0_i32 = arith.constant 0 : i32
    %c0_i32_0 = arith.constant 0 : i32
    %c0_i32_1 = arith.constant 0 : i32
    return %c0_i32, %c0_i32_0 : i32, i32
  }
  func.func @transform_8(%arg0: i32) -> (i32, i32) {
    %c0_i32 = arith.constant 0 : i32
    %c0_i32_0 = arith.constant 0 : i32
    %c0_i32_1 = arith.constant 0 : i32
    return %c0_i32, %c0_i32_0 : i32, i32
  }
  func.func @transform_9(%arg0: i32) -> (i32, i32) {
    %c0_i32 = arith.constant 0 : i32
    %c0_i32_0 = arith.constant 0 : i32
    %c0_i32_1 = arith.constant 0 : i32
    return %c0_i32, %c0_i32_0 : i32, i32
  }
  func.func @transform_10(%arg0: i32) -> (i32, i32) {
    %c0_i32 = arith.constant 0 : i32
    %c0_i32_0 = arith.constant 0 : i32
    %c0_i32_1 = arith.constant 0 : i32
    return %c0_i32, %c0_i32_0 : i32, i32
  }
  func.func @transform_11(%arg0: i32) -> (i32, i32, i32) {
    %c0_i32 = arith.constant 0 : i32
    %c0_i32_0 = arith.constant 0 : i32
    %c0_i32_1 = arith.constant 0 : i32
    %c0_i32_2 = arith.constant 0 : i32
    return %c0_i32, %c0_i32_0, %c0_i32_1 : i32, i32, i32
  }
  func.func @transform_12(%arg0: i32) -> (i32, i32) {
    %c0_i32 = arith.constant 0 : i32
    %c0_i32_0 = arith.constant 0 : i32
    return %c0_i32, %arg0 : i32, i32
  }
}

</mosaic_0001>

<bundles_post_ra>
// kernel: tpu_custom_call.1
= control target key start
LH: loop header
LB: loop body
LE: loop exit
PB: predicated region body
PF: predicated region fallthrough
CT: control target
= control target key end

     0   :  { %vm407_vm0 = vcmask 1045504   ;;  %s8241_s13 = smov 1   ;;  %vm364_vm1 = vcmask 244736   ;;  %s17556_s0 = inlined_call_operand.vmem [shape: f32[30,896], index: 0, kind: input, shape index: {}]   ;;  %s17557_s1 = inlined_call_operand.vmem [shape: f32[3,112,30], index: 1, kind: input, shape index: {}]   ;;  %s17558_s2 = inlined_call_operand.vmem [shape: f32[112,1], index: 2, kind: input, shape index: {}]   ;;  %s17559_s3 = inlined_call_operand.vmem [shape: f32[3,112,64], index: 3, kind: input, shape index: {}]   ;;  %s17560_s4 = inlined_call_operand.vmem [shape: f32[112,1], index: 4, kind: input, shape index: {}]   ;;  %s17561_s5 = inlined_call_operand.vmem [shape: f32[64,112], index: 5, kind: input, shape index: {}]   ;;  %s17562_s6 = inlined_call_operand.vmem [shape: f32[64,112], index: 6, kind: input, shape index: {}]   ;;  %s17563_s7 = inlined_call_operand.vmem [shape: f32[56,112], index: 7, kind: input, shape index: {}]   ;;  %s17564_s8 = inlined_call_operand.vmem [shape: f32[56,112], index: 8, kind: input, shape index: {}]   ;;  %s17565_s9 = inlined_call_operand.vmem [shape: f32[112,56], index: 9, kind: input, shape index: {}]   ;;  %s17566_s10 = inlined_call_operand.vmem [shape: f32[10,1], index: 10, kind: input, shape index: {}]   ;;  %s17567_s11 = inlined_call_operand.vmem [shape: f32[4,1,896], index: 11, kind: input, shape index: {}]   ;;  %s17568_s12 = inlined_call_operand.hbm [shape: f32[10,896], index: 12, kind: output, shape index: {}]  }
   0x1   :  { %v8323_v0 = vld [vmem:[%s17556_s0 + $0xb0] sm:$0x3f]  ;;  %v8328_v1 = vld [vmem:[%s17556_s0 + $0xb8] sm:$0x3f]  ;;  %v8337_v2 = vld [vmem:[%s17556_s0 + $0xa8] sm:$0x3f] }
   0x2   :  { %7109 = vmatpush.msk.msra.mxu1 %vm407_vm0, %v8323_v0  ;;  %8061 = vmatpush.msk.msra.mxu2 %vm407_vm0, %v8328_v1  ;;  %v8342_v3 = vld [vmem:[%s17556_s0 + $0x70] sm:$0xff]  ;;  %v8347_v4 = vld [vmem:[%s17556_s0 + $0x78] sm:$0xff]  ;;  %v8356_v5 = vld [vmem:[%s17556_s0 + $0x80] sm:$0xff] }
   0x3   :  { %83 = vrot.lane.b32.xlu0 %v8337_v2, %s8241_s13  ;;  %7094 = vmatpush.msk.msra.mxu0 %vm407_vm0, %v8337_v2  ;;  %v8361_v6 = vld [vmem:[%s17556_s0 + $0x40] sm:$0xff]  ;;  %v8369_v7 = vld [vmem:[%s17556_s0 + $0x38] sm:$0xff]  ;;  %v8374_v8 = vld [vmem:[%s17556_s0 + $0x48] sm:$0xff] }
   0x4   :  { %8053 = vmatpush.msk.msra.mxu3 %vm407_vm0, %v8337_v2  ;;  %501 = vmatpush.msra.mxu1 %v8347_v4  ;;  %v8381_v9 = vld [vmem:[%s17556_s0 + $0x8] sm:$0xff]  ;;  %v8388_v10 = vld [vmem:[%s17556_s0] sm:$0xff]  ;;  %v8393_v11 = vld [vmem:[%s17556_s0 + $0x10] sm:$0xff] }
   0x5   :  { %442 = vmatpush.msra.mxu0 %v8342_v3  ;;  %8062 = vmatpush.msra.mxu2 %v8356_v5  ;;  %v8400_v12 = vld [vmem:[%s17557_s1 + $0x70] sm:$0xff]  ;;  %v8419_v15 = vld [vmem:[%s17556_s0 + $0xd8] sm:$0x3f] }
   0x6   :  { %8054 = vmatpush.msra.mxu3 %v8342_v3  ;;  %502 = vmatpush.msra.mxu1 %v8361_v6  ;;  %v8407_v13 = vld [vmem:[%s17557_s1 + $0xd0] sm:$0xff] }
   0x7   :  { %443 = vmatpush.msra.mxu0 %v8369_v7  ;;  %8063 = vmatpush.msra.mxu2 %v8374_v8  ;;  %v8414_v14 = vld [vmem:[%s17557_s1 + $0x90] sm:$0xff] }
   0x8   :  { %8055 = vmatpush.msra.mxu3 %v8369_v7  ;;  %503 = vmatpush.msra.mxu1 %v8381_v9 }
   0x9   :  { %444 = vmatpush.msra.mxu0 %v8388_v10  ;;  %8064 = vmatpush.msra.mxu2 %v8393_v11 }
   0xa   :  { %8056 = vmatpush.msra.mxu3 %v8388_v10  ;;  %7095 = vmatmul.msk.f32.vlgmr.msra.gmra.mxu0 %vm364_vm1, %v8400_v12 }
   0xb   :  { %7107 = vmatmul.msk.f32.vlgmr.msra.gmra.mxu3 %vm364_vm1, %v8407_v13  ;;  %7110 = vmatmul.msk.f32.vlgmr.msra.gmra.mxu1 %vm364_vm1, %v8400_v12 }
   0xc   :  { %17 = vsyncpa [#allocation3], 0  ;;  %7129 = vmatmul.msk.f32.vlgmr.msra.gmra.mxu2 %vm364_vm1, %v8414_v14  ;;  %131 = vrot.lane.b32.xlu0 %v8419_v15, %s8241_s13  ;;  %v8443_v16 = vld [vmem:[%s17557_s1 + $0x78] sm:$0xff]  ;;  %v8448_v17 = vld [vmem:[%s17556_s0 + $0xa0] sm:$0xff]  ;;  %v133_v43 = vlaneseq  ;;  %vm2195_vm4 = vcmask 916480   ;;  %vm3615_vm5 = vcmask 523264  }
   0xd   :  { %81 = vrot.lane.b32.xlu1 %v8342_v3, %s8241_s13  ;;  %8057 = vmatpush.msk.msrb.mxu3 %vm407_vm0, %v8323_v0  ;;  %v8456_v18 = vld [vmem:[%s17557_s1 + $0xd8] sm:$0xff]  ;;  %v8468_v20 = vld [vmem:[%s17556_s0 + $0x68] sm:$0xff]  ;;  %v8481_v21 = vld [vmem:[%s17556_s0 + $0xc0] sm:$0x3f]  ;;  %s8245_s28 = smov 126   ;;  %vm6221_vm8 = vcmask 457728  }
   0xe   :  { %79 = vrot.lane.b32.xlu2 %v8369_v7, %s8241_s13  ;;  %7184 = vmatpush.msk.msrb.mxu2 %vm407_vm0, %v8419_v15  ;;  %v8462_v19 = vld [vmem:[%s17557_s1 + $0x98] sm:$0xff]  ;;  %v8493_v22 = vld [vmem:[%s17556_s0 + $0x88] sm:$0xff]  ;;  %v8498_v23 = vld [vmem:[%s17556_s0 + $0x30] sm:$0xff]  ;;  %v8774_v45 = vand.u32 127, %v133_v43  ;;  %s8249_s14 = smov 112   ;;  %s8250_s15 = smov 108  }
   0xf   :  { %8058 = vmatpush.msrb.mxu3 %v8347_v4  ;;  %7124 = vmatpush.msk.msrb.mxu1 %vm407_vm0, %v8328_v1  ;;  %v8507_v24 = vld [vmem:[%s17557_s1 + $0x80] sm:$0xff]  ;;  %v8512_v25 = vld [vmem:[%s17556_s0 + $0x50] sm:$0xff]  ;;  %v8529_v27 = vld [vmem:[%s17556_s0 + $0x18] sm:$0xff]  ;;  %s8251_s16 = smov 104   ;;  %s8253_s20 = smov 896  }
  0x10   :  { %796 = vmatpush.msrb.mxu2 %v8448_v17  ;;  %v8520_v26 = vld [vmem:[%s17557_s1 + $0xa0] sm:$0xff]  ;;  %v8547_v28 = vld [vmem:[%s17557_s1 + $0x88] sm:$0xff]  ;;  %v8567_v30 = vld [vmem:[%s17556_s0 + $0xd0] sm:$0x3f]  ;;  %17902 = vst [vmem:[#allocation5_spill] sm:$0xff] %v8774_v45  ;;  %vm135_vm2 = vcmp.lt.s32.totalorder %v8774_v45, 1 }
  0x11   :  { %8059 = vmatpush.msrb.mxu3 %v8361_v6  ;;  %560 = vmatpush.msrb.mxu1 %v8356_v5  ;;  %v8552_v29 = vld [vmem:[%s17557_s1 + $0xa8] sm:$0xff]  ;;  %v8578_v31 = vld [vmem:[%s17557_s1 + $0xb0] sm:$0xff]  ;;  %v8593_v32 = vld [vmem:[%s17556_s0 + $0x98] sm:$0xff]  ;;  %vm263_vm3 = vcmp.lt.s32.totalorder %v8774_v45, 127  ;;  %s8254_s21 = smov 56  }
  0x12   :  { %7096 = vmatmul.msk.f32.gmra.mxu0 %vm364_vm1, %v8443_v16  ;;  %797 = vmatpush.msrb.mxu2 %v8468_v20  ;;  %v8603_v33 = vld [vmem:[%s17557_s1 + $0xb8] sm:$0xff]  ;;  %v8618_v34 = vld [vmem:[%s17556_s0 + $0x60] sm:$0xff]  ;;  %v8633_v36 = vld [vmem:[%s17556_s0 + $0x90] sm:$0xff] }
  0x13   :  { %7108 = vmatmul.msk.f32.gmra.mxu3 %vm364_vm1, %v8456_v18  ;;  %7111 = vmatmul.msk.f32.gmra.mxu1 %vm364_vm1, %v8443_v16  ;;  %v8628_v35 = vld [vmem:[%s17557_s1 + $0xc0] sm:$0xff]  ;;  %v8648_v37 = vld [vmem:[%s17556_s0 + $0xc8] sm:$0x3f]  ;;  %v8681_v40 = vld [vmem:[%s17556_s0 + $0x58] sm:$0xff] }
  0x14   :  { %7130 = vmatmul.msk.f32.gmra.mxu2 %vm364_vm1, %v8462_v19  ;;  %77 = vrot.lane.b32.xlu0 %v8388_v10, %s8241_s13  ;;  %v8655_v38 = vld [vmem:[%s17556_s0 + $0x28] sm:$0xff]  ;;  %v8686_v41 = vld [vmem:[%s17556_s0 + $0x20] sm:$0xff]  ;;  %s8242_s0 = smov 127  }
  0x15   :  { %129 = vrot.lane.b32.xlu1 %v8448_v17, %s8241_s13  ;;  %8060 = vmatpush.msrb.mxu3 %v8381_v9  ;;  %v8666_v39 = vld [vmem:[%s17557_s1 + $0xc8] sm:$0xff]  ;;  %v8781_v47 = vld [vmem:[%s17567_s11] sm:$0xff] }
  0x16   :  { %127 = vrot.lane.b32.xlu2 %v8468_v20, %s8241_s13  ;;  %798 = vmatpush.msrb.mxu2 %v8498_v23  ;;  %v8786_v48 = vperm.slane %v8781_v47, 1  ;;  %v165_v52 = vperm.slane %v8781_v47, 0 }
  0x17   :  { %7139 = vmatpush.msk.msra.mxu3 %vm407_vm0, %v8481_v21  ;;  %561 = vmatpush.msrb.mxu1 %v8374_v8 }
  0x18   :  { %7154 = vmatpush.msk.msrb.mxu0 %vm407_vm0, %v8648_v37 }
  0x19   :  { %619 = vmatpush.msra.mxu3 %v8493_v22  ;;  %562 = vmatpush.msrb.mxu1 %v8393_v11 }
  0x1a   :  { %7097 = vmatmul.msk.f32.gmra.mxu0 %vm364_vm1, %v8507_v24 }
  0x1b   :  { %620 = vmatpush.msra.mxu3 %v8512_v25  ;;  %7112 = vmatmul.msk.f32.gmra.mxu1 %vm364_vm1, %v8507_v24 }
  0x1c   :  { %7123 = vmatmul.msk.f32.vlgmr.msrb.gmra.mxu3 %vm364_vm1, %v8456_v18  ;;  %7131 = vmatmul.msk.f32.gmra.mxu2 %vm364_vm1, %v8520_v26 }
  0x1d   :  { %99 = vrot.lane.b32.xlu0 %v8328_v1, %s8241_s13  ;;  %125 = vrot.lane.b32.xlu1 %v8498_v23, %s8241_s13 }
  0x1e   :  { %621 = vmatpush.msra.mxu3 %v8529_v27  ;;  %91 = vrot.lane.b32.xlu2 %v8323_v0, %s8241_s13 }
  0x1f   :  { %7169 = vmatpush.msk.msra.mxu1 %vm407_vm0, %v8567_v30  ;;  %678 = vmatpush.msrb.mxu0 %v8633_v36 }
  0x21   :  { %737 = vmatpush.msra.mxu1 %v8593_v32  ;;  %679 = vmatpush.msrb.mxu0 %v8681_v40 }
  0x22   :  { %7098 = vmatmul.msk.f32.gmra.mxu0 %vm364_vm1, %v8547_v28 }
  0x23   :  { %7113 = vmatmul.msk.f32.gmra.mxu1 %vm364_vm1, %v8547_v28  ;;  %680 = vmatpush.msrb.mxu0 %v8686_v41 }
  0x24   :  { %7140 = vmatmul.msk.f32.vlgmr.msra.gmra.mxu3 %vm364_vm1, %v8400_v12  ;;  %7132 = vmatmul.msk.f32.gmra.mxu2 %vm364_vm1, %v8552_v29 }
  0x25   :  { %97 = vrot.lane.b32.xlu0 %v8356_v5, %s8241_s13  ;;  %107 = vrot.lane.b32.xlu1 %v8481_v21, %s8241_s13 }
  0x26   :  { %89 = vrot.lane.b32.xlu2 %v8347_v4, %s8241_s13  ;;  %738 = vmatpush.msra.mxu1 %v8618_v34 }
  0x28   :  { %739 = vmatpush.msra.mxu1 %v8655_v38 }
  0x2a   :  { %7099 = vmatmul.msk.f32.gmra.mxu0 %vm364_vm1, %v8414_v14 }
  0x2b   :  { %7114 = vmatmul.msk.f32.gmra.mxu1 %vm364_vm1, %v8414_v14 }
  0x2c   :  { %7141 = vmatmul.msk.f32.gmra.mxu3 %vm364_vm1, %v8443_v16  ;;  %7133 = vmatmul.msk.f32.gmra.mxu2 %vm364_vm1, %v8578_v31 }
  0x2d   :  { %95 = vrot.lane.b32.xlu0 %v8374_v8, %s8241_s13  ;;  %105 = vrot.lane.b32.xlu1 %v8493_v22, %s8241_s13 }
  0x2e   :  { %87 = vrot.lane.b32.xlu2 %v8361_v6, %s8241_s13 }
  0x32   :  { %7100 = vmatmul.msk.f32.gmra.mxu0 %vm364_vm1, %v8462_v19 }
  0x33   :  { %7115 = vmatmul.msk.f32.gmra.mxu1 %vm364_vm1, %v8462_v19 }
  0x34   :  { %7142 = vmatmul.msk.f32.gmra.mxu3 %vm364_vm1, %v8507_v24  ;;  %7134 = vmatmul.msk.f32.gmra.mxu2 %vm364_vm1, %v8603_v33 }
  0x35   :  { %93 = vrot.lane.b32.xlu0 %v8393_v11, %s8241_s13  ;;  %103 = vrot.lane.b32.xlu1 %v8512_v25, %s8241_s13 }
  0x36   :  { %85 = vrot.lane.b32.xlu2 %v8381_v9, %s8241_s13 }
  0x3a   :  { %7101 = vmatmul.msk.f32.gmra.mxu0 %vm364_vm1, %v8520_v26 }
  0x3b   :  { %7116 = vmatmul.msk.f32.gmra.mxu1 %vm364_vm1, %v8520_v26 }
  0x3c   :  { %7143 = vmatmul.msk.f32.gmra.mxu3 %vm364_vm1, %v8547_v28  ;;  %7135 = vmatmul.msk.f32.gmra.mxu2 %vm364_vm1, %v8628_v35 }
  0x3d   :  { %113 = vrot.lane.b32.xlu0 %v8633_v36, %s8241_s13  ;;  %101 = vrot.lane.b32.xlu1 %v8529_v27, %s8241_s13 }
  0x3e   :  { %115 = vrot.lane.b32.xlu2 %v8648_v37, %s8241_s13 }
  0x42   :  { %7102 = vmatmul.msk.f32.gmra.mxu0 %vm364_vm1, %v8552_v29 }
  0x43   :  { %7117 = vmatmul.msk.f32.gmra.mxu1 %vm364_vm1, %v8552_v29 }
  0x44   :  { %7144 = vmatmul.msk.f32.gmra.mxu3 %vm364_vm1, %v8414_v14  ;;  %7136 = vmatmul.msk.f32.gmra.mxu2 %vm364_vm1, %v8666_v39 }
  0x45   :  { %123 = vrot.lane.b32.xlu0 %v8567_v30, %s8241_s13  ;;  %111 = vrot.lane.b32.xlu1 %v8681_v40, %s8241_s13 }
  0x46   :  { %109 = vrot.lane.b32.xlu2 %v8686_v41, %s8241_s13 }
  0x4a   :  { %7103 = vmatmul.msk.f32.gmra.mxu0 %vm364_vm1, %v8578_v31 }
  0x4b   :  { %7118 = vmatmul.msk.f32.gmra.mxu1 %vm364_vm1, %v8578_v31 }
  0x4c   :  { %7145 = vmatmul.msk.f32.gmra.mxu3 %vm364_vm1, %v8462_v19  ;;  %7137 = vmatmul.msk.f32.gmra.mxu2 %vm364_vm1, %v8407_v13 }
  0x4d   :  { %121 = vrot.lane.b32.xlu0 %v8593_v32, %s8241_s13  ;;  %213 = vrot.lane.b32.xlu1 %v8337_v2, %s8242_s0 }
  0x4e   :  { %221 = vrot.lane.b32.xlu2 %v8323_v0, %s8242_s0 }
  0x52   :  { %7104 = vmatmul.msk.f32.gmra.mxu0 %vm364_vm1, %v8603_v33 }
  0x53   :  { %7119 = vmatmul.msk.f32.gmra.mxu1 %vm364_vm1, %v8603_v33 }
  0x54   :  { %7146 = vmatmul.msk.f32.gmra.mxu3 %vm364_vm1, %v8520_v26  ;;  %7138 = vmatmul.msk.f32.gmra.mxu2 %vm364_vm1, %v8456_v18 }
  0x55   :  { %119 = vrot.lane.b32.xlu0 %v8618_v34, %s8241_s13  ;;  %211 = vrot.lane.b32.xlu1 %v8342_v3, %s8242_s0 }
  0x56   :  { %219 = vrot.lane.b32.xlu2 %v8347_v4, %s8242_s0 }
  0x5a   :  { %7105 = vmatmul.msk.f32.gmra.mxu0 %vm364_vm1, %v8628_v35 }
  0x5b   :  { %7120 = vmatmul.msk.f32.gmra.mxu1 %vm364_vm1, %v8628_v35 }
  0x5c   :  { %7147 = vmatmul.msk.f32.gmra.mxu3 %vm364_vm1, %v8552_v29  ;;  %7185 = vmatmul.msk.f32.vlgmr.msrb.gmra.mxu2 %vm364_vm1, %v8400_v12 }
  0x5d   :  { %117 = vrot.lane.b32.xlu0 %v8655_v38, %s8241_s13  ;;  %209 = vrot.lane.b32.xlu1 %v8369_v7, %s8242_s0  ;;  %v8860_v7 = vperm.slane %v8781_v47, 2  ;;  %s7065_s13 = sshll.u32 %s17568_s12, 4  ;;  %s7066_s13 = int_to_ptr.hbm [resolvable:$true] %s7065_s13 }
  0x5e   :  { %217 = vrot.lane.b32.xlu2 %v8361_v6, %s8242_s0 }
  0x62   :  { %7106 = vmatmul.msk.f32.gmra.mxu0 %vm364_vm1, %v8666_v39 }
  0x63   :  { %7121 = vmatmul.msk.f32.gmra.mxu1 %vm364_vm1, %v8666_v39 }
  0x64   :  { %7148 = vmatmul.msk.f32.gmra.mxu3 %vm364_vm1, %v8578_v31  ;;  %7186 = vmatmul.msk.f32.gmra.mxu2 %vm364_vm1, %v8443_v16 }
  0x65   :  { %229 = vrot.lane.b32.xlu0 %v8328_v1, %s8242_s0  ;;  %207 = vrot.lane.b32.xlu1 %v8388_v10, %s8242_s0 }
  0x66   :  { %215 = vrot.lane.b32.xlu2 %v8381_v9, %s8242_s0 }
  0x68   :  { %v80_v42 = vpop.permute.xlu2 %79 }
  0x6a   :  { %7155 = vmatmul.msk.f32.vlgmr.msrb.gmra.mxu0 %vm364_vm1, %v8400_v12 }
  0x6b   :  { %7122 = vmatmul.msk.f32.gmra.mxu1 %vm364_vm1, %v8407_v13 }
  0x6c   :  { %7149 = vmatmul.msk.f32.gmra.mxu3 %vm364_vm1, %v8603_v33  ;;  %7187 = vmatmul.msk.f32.gmra.mxu2 %vm364_vm1, %v8507_v24 }
  0x6d   :  { %223 = vrot.lane.b32.xlu0 %v8393_v11, %s8242_s0  ;;  %227 = vrot.lane.b32.xlu1 %v8356_v5, %s8242_s0 }
  0x6e   :  { %225 = vrot.lane.b32.xlu2 %v8374_v8, %s8242_s0 }
  0x70   :  { %v8764_v44 = vpop.permute.xlu2 %127 }
  0x71   :  { %v161_v62 = vsel %vm135_vm2, %v8764_v44, %v80_v42 }
  0x72   :  { %7156 = vmatmul.msk.f32.gmra.mxu0 %vm364_vm1, %v8443_v16  ;;  %v186_v5 = vmul.f32 %v165_v52, %v161_v62 }
  0x73   :  { %7125 = vmatmul.msk.f32.vlgmr.msrb.gmra.mxu1 %vm364_vm1, %v8400_v12 }
  0x74   :  { %7150 = vmatmul.msk.f32.gmra.mxu3 %vm364_vm1, %v8628_v35  ;;  %7188 = vmatmul.msk.f32.gmra.mxu2 %vm364_vm1, %v8547_v28 }
  0x75   :  { %253 = vrot.lane.b32.xlu0 %v8567_v30, %s8242_s0  ;;  %v84_v46 = vpop.permute.xlu0 %83  ;;  %237 = vrot.lane.b32.xlu1 %v8481_v21, %s8242_s0 }
  0x76   :  { %245 = vrot.lane.b32.xlu2 %v8648_v37, %s8242_s0 }
  0x78   :  { %v92_v49 = vpop.permute.xlu2 %91 }
  0x79   :  { %v159_v50 = vsel %vm135_vm2, %v84_v46, %v92_v49 }
  0x7a   :  { %7157 = vmatmul.msk.f32.gmra.mxu0 %vm364_vm1, %v8507_v24  ;;  %v201_v51 = vmul.f32 %v8786_v48, %v159_v50  ;;  %v8929_v50 = vld [vmem:[%s17557_s1 + $0x8] sm:$0xff] }
  0x7b   :  { %7126 = vmatmul.msk.f32.gmra.mxu1 %vm364_vm1, %v8443_v16 }
  0x7c   :  { %7151 = vmatmul.msk.f32.gmra.mxu3 %vm364_vm1, %v8666_v39  ;;  %7189 = vmatmul.msk.f32.gmra.mxu2 %vm364_vm1, %v8414_v14 }
  0x7d   :  { %7214 = vmatpush.msk.msra.mxu0 %vm407_vm0, %v201_v51  ;;  %235 = vrot.lane.b32.xlu1 %v8493_v22, %s8242_s0 }
  0x7e   :  { %251 = vrot.lane.b32.xlu0 %v8593_v32, %s8242_s0  ;;  %v8808_v53 = vpop.permute.xlu0 %131  ;;  %243 = vrot.lane.b32.xlu2 %v8633_v36, %s8242_s0 }
  0x7f   :  { %v163_v54 = vsel %vm135_vm2, %v8808_v53, %v84_v46  ;;  %v82_v55 = vpop.permute.xlu1 %81 }
  0x80   :  { %v200_v56 = vmul.f32 %v165_v52, %v163_v54  ;;  %v90_v57 = vpop.permute.xlu2 %89 }
  0x81   :  { %v158_v58 = vsel %vm135_vm2, %v82_v55, %v90_v57 }
  0x82   :  { %7158 = vmatmul.msk.f32.gmra.mxu0 %vm364_vm1, %v8547_v28  ;;  %7199 = vmatpush.msk.msrb.mxu3 %vm407_vm0, %v200_v56  ;;  %v194_v59 = vmul.f32 %v8786_v48, %v158_v58 }
  0x83   :  { %7127 = vmatmul.msk.f32.gmra.mxu1 %vm364_vm1, %v8507_v24 }
  0x84   :  { %7152 = vmatmul.msk.f32.gmra.mxu3 %vm364_vm1, %v8407_v13  ;;  %7190 = vmatmul.msk.f32.gmra.mxu2 %vm364_vm1, %v8462_v19 }
  0x85   :  { %977 = vmatpush.msra.mxu0 %v194_v59  ;;  %233 = vrot.lane.b32.xlu1 %v8512_v25, %s8242_s0 }
  0x86   :  { %v78_v60 = vpop.permute.xlu0 %77  ;;  %249 = vrot.lane.b32.xlu0 %v8618_v34, %s8242_s0  ;;  %241 = vrot.lane.b32.xlu2 %v8681_v40, %s8242_s0  ;;  %v8887_v34 = vld [vmem:[%s17557_s1] sm:$0xff]  ;;  %v8902_v40 = vperm.slane %v8781_v47, 3 }
  0x87   :  { %v8833_v61 = vpop.permute.xlu1 %129  ;;  %v8838_v63 = vpop.f32.mrf.mxu0 }
  0x88   :  { %v162_v0 = vsel %vm135_vm2, %v8833_v61, %v82_v55  ;;  %v8843_v1 = vpop.f32.mrf.mxu1  ;;  %v8845_v2 = vpop.permute.xlu2 %87 }
  0x89   :  { %17903 = vst [vmem:[#allocation6_spill] sm:$0xff] %v8843_v1  ;;  %v193_v3 = vmul.f32 %v165_v52, %v162_v0  ;;  %v157_v4 = vsel %vm135_vm2, %v80_v42, %v8845_v2 }
  0x8a   :  { %7159 = vmatmul.msk.f32.gmra.mxu0 %vm364_vm1, %v8414_v14  ;;  %v187_v6 = vmul.f32 %v8786_v48, %v157_v4 }
  0x8b   :  { %7128 = vmatmul.msk.f32.gmra.mxu1 %vm364_vm1, %v8547_v28  ;;  %918 = vmatpush.msrb.mxu3 %v193_v3 }
  0x8c   :  { %7153 = vmatmul.msk.f32.gmra.mxu3 %vm364_vm1, %v8456_v18  ;;  %7191 = vmatmul.msk.f32.gmra.mxu2 %vm364_vm1, %v8520_v26 }
  0x8d   :  { %978 = vmatpush.msra.mxu0 %v187_v6  ;;  %231 = vrot.lane.b32.xlu1 %v8529_v27, %s8242_s0 }
  0x8e   :  { %v8864_v9 = vpop.f32.mrf.mxu3  ;;  %919 = vmatpush.msrb.mxu3 %v186_v5  ;;  %247 = vrot.lane.b32.xlu0 %v8655_v38, %s8242_s0 }
  0x8f   :  { %v100_v8 = vpop.permute.xlu0 %99  ;;  %v8868_v10 = vpop.permute.xlu1 %125  ;;  %239 = vrot.lane.b32.xlu2 %v8686_v41, %s8242_s0 }
  0x90   :  { %v8870_v11 = vpop.f32.mrf.mxu2  ;;  %v155_v21 = vsel %vm135_vm2, %v92_v49, %v100_v8  ;;  %v160_v22 = vsel %vm135_vm2, %v8868_v10, %v78_v60  ;;  %v8880_v27 = vpop.f32.mrf.mxu0 }
  0x91   :  { %17904 = vst [vmem:[#allocation7_spill] sm:$0xff] %v8870_v11  ;;  %v202_v25 = vmul.f32 %v8860_v7, %v155_v21  ;;  %v8882_v30 = vpop.f32.mrf.mxu1  ;;  %v179_v32 = vmul.f32 %v165_v52, %v160_v22  ;;  %v86_v36 = vpop.permute.xlu2 %85  ;;  %v8993_v21 = vld [vmem:[%s17557_s1 + $0x18] sm:$0xff]  ;;  %v9233_v11 = vld [vmem:[%s17567_s11 + $0x7] sm:$0xff] }
  0x92   :  { %17905 = vst [vmem:[#allocation8_spill] sm:$0xff] %v8882_v30  ;;  %7160 = vmatmul.msk.f32.gmra.mxu0 %vm364_vm1, %v8462_v19  ;;  %v156_v37 = vsel %vm135_vm2, %v78_v60, %v86_v36 }
  0x93   :  { %7229 = vmatpush.msk.msrb.mxu1 %vm407_vm0, %v202_v25  ;;  %920 = vmatpush.msrb.mxu3 %v179_v32  ;;  %v180_v38 = vmul.f32 %v8786_v48, %v156_v37 }
  0x94   :  { %7170 = vmatmul.msk.f32.vlgmr.msra.gmra.mxu1 %vm364_vm1, %v8400_v12  ;;  %7192 = vmatmul.msk.f32.gmra.mxu2 %vm364_vm1, %v8552_v29 }
  0x95   :  { %7200 = vmatmul.msk.f32.vlgmr.msrb.gmra.mxu3 %vm364_vm1, %v8887_v34  ;;  %979 = vmatpush.msra.mxu0 %v180_v38 }
  0x96   :  { %261 = vrot.lane.b32.xlu1 %v8419_v15, %s8242_s0  ;;  %v8906_v42 = vpop.f32.mrf.mxu3  ;;  %257 = vrot.lane.b32.xlu0 %v8468_v20, %s8242_s0 }
  0x97   :  { %v98_v41 = vpop.permute.xlu0 %97  ;;  %v8914_v46 = vpop.permute.xlu1 %107  ;;  %259 = vrot.lane.b32.xlu2 %v8448_v17, %s8242_s0 }
  0x98   :  { %v8910_v12 = vpop.f32.mrf.mxu2  ;;  %v154_v43 = vsel %vm135_vm2, %v90_v57, %v98_v41  ;;  %v8918_v48 = vpop.f32.mrf.mxu0  ;;  %v151_v15 = vsel %vm135_vm2, %v100_v8, %v8914_v46 }
  0x99   :  { %17906 = vst [vmem:[#allocation9_spill] sm:$0xff] %v8910_v12  ;;  %v8920_v49 = vpop.f32.mrf.mxu1  ;;  %v195_v20 = vmul.f32 %v8860_v7, %v154_v43  ;;  %v203_v51 = vmul.f32 %v8902_v40, %v151_v15  ;;  %v9034_v15 = vperm.slane %v8781_v47, 6 }
  0x9a   :  { %17907 = vst [vmem:[#allocation10_spill] sm:$0xff] %v8920_v49  ;;  %7161 = vmatmul.msk.f32.gmra.mxu0 %vm364_vm1, %v8520_v26 }
  0x9b   :  { %1036 = vmatpush.msrb.mxu1 %v195_v20  ;;  %7244 = vmatpush.msk.msra.mxu2 %vm407_vm0, %v203_v51 }
  0x9c   :  { %7171 = vmatmul.msk.f32.gmra.mxu1 %vm364_vm1, %v8443_v16  ;;  %7193 = vmatmul.msk.f32.gmra.mxu2 %vm364_vm1, %v8578_v31 }
  0x9d   :  { %7201 = vmatmul.msk.f32.gmra.mxu3 %vm364_vm1, %v8929_v50 }
  0x9e   :  { %255 = vrot.lane.b32.xlu1 %v8498_v23, %s8242_s0  ;;  %v8960_v23 = vld [vmem:[%s17557_s1 + $0x10] sm:$0xff] }
  0x9f   :  { %v96_v17 = vpop.permute.xlu0 %95  ;;  %v8943_v52 = vpop.f32.mrf.mxu3 }
  0xa0   :  { %17908 = vst [vmem:[#allocation11_spill] sm:$0xff] %v8943_v52  ;;  %v8945_v54 = vpop.f32.mrf.mxu2  ;;  %v153_v16 = vsel %vm135_vm2, %v8845_v2, %v96_v17  ;;  %v8950_v55 = vpop.permute.xlu1 %105 }
  0xa1   :  { %17909 = vst [vmem:[#allocation12_spill] sm:$0xff] %v8945_v54  ;;  %v8952_v56 = vpop.f32.mrf.mxu0  ;;  %v8954_v57 = vpop.f32.mrf.mxu1  ;;  %v188_v58 = vmul.f32 %v8860_v7, %v153_v16  ;;  %v150_v59 = vsel %vm135_vm2, %v98_v41, %v8950_v55  ;;  %v9022_v41 = vld [vmem:[%s17557_s1 + $0x20] sm:$0xff]  ;;  %v9047_v16 = vperm.slane %v8781_v47, 5 }
  0xa2   :  { %17910 = vst [vmem:[#allocation13_spill] sm:$0xff] %v8954_v57  ;;  %7162 = vmatmul.msk.f32.gmra.mxu0 %vm364_vm1, %v8552_v29  ;;  %v196_v60 = vmul.f32 %v8902_v40, %v150_v59 }
  0xa3   :  { %1037 = vmatpush.msrb.mxu1 %v188_v58  ;;  %v116_v58 = vpop.permute.xlu2 %115 }
  0xa4   :  { %7172 = vmatmul.msk.f32.gmra.mxu1 %vm364_vm1, %v8507_v24  ;;  %7194 = vmatmul.msk.f32.gmra.mxu2 %vm364_vm1, %v8603_v33 }
  0xa5   :  { %7202 = vmatmul.msk.f32.gmra.mxu3 %vm364_vm1, %v8960_v23  ;;  %1095 = vmatpush.msra.mxu2 %v196_v60 }
  0xa7   :  { %v94_v62 = vpop.permute.xlu0 %93  ;;  %v8974_v0 = vpop.f32.mrf.mxu3 }
  0xa8   :  { %17911 = vst [vmem:[#allocation14_spill] sm:$0xff] %v8974_v0  ;;  %v8976_v2 = vpop.f32.mrf.mxu2  ;;  %v152_v3 = vsel %vm135_vm2, %v86_v36, %v94_v62  ;;  %v8980_v4 = vpop.permute.xlu1 %103 }
  0xa9   :  { %17912 = vst [vmem:[#allocation15_spill] sm:$0xff] %v8976_v2  ;;  %v8982_v24 = vpop.f32.mrf.mxu0  ;;  %v8984_v5 = vpop.f32.mrf.mxu1  ;;  %v181_v6 = vmul.f32 %v8860_v7, %v152_v3  ;;  %v149_v8 = vsel %vm135_vm2, %v96_v17, %v8980_v4  ;;  %v9243_v2 = vperm.slane %v9233_v11, 0 }
  0xaa   :  { %17913 = vst [vmem:[#allocation16_spill] sm:$0xff] %v8982_v24  ;;  %v189_v22 = vmul.f32 %v8902_v40, %v149_v8  ;;  %7163 = vmatmul.msk.f32.gmra.mxu0 %vm364_vm1, %v8578_v31 }
  0xab   :  { %17914 = vst [vmem:[#allocation17_spill] sm:$0xff] %v8984_v5  ;;  %1038 = vmatpush.msrb.mxu1 %v181_v6  ;;  %v9062_v6 = vld [vmem:[%s17557_s1 + $0x28] sm:$0xff]  ;;  %v9155_v0 = vpop.permute.xlu2 %109 }
  0xac   :  { %7173 = vmatmul.msk.f32.gmra.mxu1 %vm364_vm1, %v8547_v28  ;;  %1096 = vmatpush.msra.mxu2 %v189_v22 }
  0xad   :  { %7195 = vmatmul.msk.f32.gmra.mxu2 %vm364_vm1, %v8628_v35  ;;  %7203 = vmatmul.msk.f32.gmra.mxu3 %vm364_vm1, %v8993_v21 }
  0xaf   :  { %v9004_v7 = vpop.permute.xlu0 %113  ;;  %v9006_v25 = vpop.f32.mrf.mxu3 }
  0xb0   :  { %17915 = vst [vmem:[#allocation18_spill] sm:$0xff] %v9006_v25  ;;  %v9008_v32 = vpop.f32.mrf.mxu2  ;;  %v9010_v36 = vpop.permute.xlu1 %101 }
  0xb1   :  { %17916 = vst [vmem:[#allocation19_spill] sm:$0xff] %v9008_v32  ;;  %v9012_v37 = vpop.f32.mrf.mxu0  ;;  %v9014_v38 = vpop.f32.mrf.mxu1  ;;  %v148_v28 = vsel %vm135_vm2, %v94_v62, %v9010_v36 }
  0xb2   :  { %17917 = vst [vmem:[#allocation20_spill] sm:$0xff] %v9012_v37  ;;  %v182_v43 = vmul.f32 %v8902_v40, %v148_v28  ;;  %7164 = vmatmul.msk.f32.gmra.mxu0 %vm364_vm1, %v8603_v33 }
  0xb3   :  { %17918 = vst [vmem:[#allocation21_spill] sm:$0xff] %v9014_v38 }
  0xb4   :  { %7174 = vmatmul.msk.f32.gmra.mxu1 %vm364_vm1, %v8414_v14  ;;  %1097 = vmatpush.msra.mxu2 %v182_v43  ;;  %v9044_v14 = vperm.slane %v8781_v47, 4  ;;  %v146_v43 = vsel %vm135_vm2, %v8950_v55, %v9004_v7 }
  0xb5   :  { %7196 = vmatmul.msk.f32.gmra.mxu2 %vm364_vm1, %v8666_v39  ;;  %7204 = vmatmul.msk.f32.gmra.mxu3 %vm364_vm1, %v9022_v41 }
  0xb7   :  { %v124_v20 = vpop.permute.xlu0 %123  ;;  %v9036_v51 = vpop.f32.mrf.mxu3 }
  0xb8   :  { %17919 = vst [vmem:[#allocation22_spill] sm:$0xff] %v9036_v51  ;;  %v9038_v40 = vpop.f32.mrf.mxu2  ;;  %v139_v17 = vsel %vm135_vm2, %v124_v20, %v8808_v53  ;;  %v143_v3 = vsel %vm135_vm2, %v116_v58, %v124_v20  ;;  %v147_v53 = vsel %vm135_vm2, %v8914_v46, %v116_v58 }
  0xb9   :  { %17920 = vst [vmem:[#allocation23_spill] sm:$0xff] %v9038_v40  ;;  %v206_v59 = vmul.f32 %v9034_v15, %v139_v17  ;;  %v9050_v60 = vpop.f32.mrf.mxu0  ;;  %v9052_v62 = vpop.f32.mrf.mxu1  ;;  %v204_v47 = vmul.f32 %v9044_v14, %v147_v53  ;;  %v205_v8 = vmul.f32 %v9047_v16, %v143_v3 }
  0xba   :  { %17921 = vst [vmem:[#allocation24_spill] sm:$0xff] %v9050_v60  ;;  %7165 = vmatmul.msk.f32.gmra.mxu0 %vm364_vm1, %v8628_v35  ;;  %v9817_v60 = vld [vmem:[%s17557_s1 + $0x128] sm:$0xff] }
  0xbb   :  { %17922 = vst [vmem:[#allocation25_spill] sm:$0xff] %v9052_v62  ;;  %7289 = vmatpush.msk.msra.mxu1 %vm407_vm0, %v206_v59  ;;  %7259 = vmatpush.msk.msra.mxu3 %vm407_vm0, %v204_v47  ;;  %v9099_v59 = vld [vmem:[%s17557_s1 + $0x30] sm:$0xff]  ;;  %v9120_v47 = vpop.permute.xlu1 %111 }
  0xbc   :  { %7175 = vmatmul.msk.f32.gmra.mxu1 %vm364_vm1, %v8462_v19  ;;  %7274 = vmatpush.msk.msrb.mxu0 %vm407_vm0, %v205_v8 }
  0xbd   :  { %7197 = vmatmul.msk.f32.gmra.mxu2 %vm364_vm1, %v8407_v13  ;;  %7205 = vmatmul.msk.f32.gmra.mxu3 %vm364_vm1, %v9062_v6 }
  0xbf   :  { %v9077_v46 = vpop.permute.xlu0 %121  ;;  %v9079_v22 = vpop.f32.mrf.mxu3 }
  0xc0   :  { %17923 = vst [vmem:[#allocation26_spill] sm:$0xff] %v9079_v22  ;;  %v9081_v28 = vpop.f32.mrf.mxu2  ;;  %v138_v19 = vsel %vm135_vm2, %v9077_v46, %v8833_v61  ;;  %v197_v61 = vmul.f32 %v9044_v14, %v146_v43  ;;  %v9169_v22 = vld [vmem:[%s17557_s1 + $0x40] sm:$0xff] }
  0xc1   :  { %17924 = vst [vmem:[#allocation27_spill] sm:$0xff] %v9081_v28  ;;  %v9091_v20 = vpop.f32.mrf.mxu0  ;;  %v9093_v17 = vpop.f32.mrf.mxu1  ;;  %v199_v58 = vmul.f32 %v9034_v15, %v138_v19 }
  0xc2   :  { %17925 = vst [vmem:[#allocation28_spill] sm:$0xff] %v9091_v20  ;;  %7166 = vmatmul.msk.f32.gmra.mxu0 %vm364_vm1, %v8666_v39  ;;  %1154 = vmatpush.msra.mxu3 %v197_v61  ;;  %v9134_v61 = vld [vmem:[%s17557_s1 + $0x38] sm:$0xff] }
  0xc3   :  { %17926 = vst [vmem:[#allocation29_spill] sm:$0xff] %v9093_v17  ;;  %1272 = vmatpush.msra.mxu1 %v199_v58  ;;  %v145_v58 = vsel %vm135_vm2, %v8980_v4, %v9120_v47 }
  0xc4   :  { %7176 = vmatmul.msk.f32.gmra.mxu1 %vm364_vm1, %v8520_v26 }
  0xc5   :  { %7198 = vmatmul.msk.f32.gmra.mxu2 %vm364_vm1, %v8456_v18  ;;  %7206 = vmatmul.msk.f32.gmra.mxu3 %vm364_vm1, %v9099_v59 }
  0xc7   :  { %v9110_v55 = vpop.permute.xlu0 %119  ;;  %v9112_v3 = vpop.f32.mrf.mxu3 }
  0xc8   :  { %17927 = vst [vmem:[#allocation30_spill] sm:$0xff] %v9112_v3  ;;  %v9114_v53 = vpop.f32.mrf.mxu2  ;;  %v137_v26 = vsel %vm135_vm2, %v9110_v55, %v8764_v44  ;;  %v190_v44 = vmul.f32 %v9044_v14, %v145_v58 }
  0xc9   :  { %17928 = vst [vmem:[#allocation31_spill] sm:$0xff] %v9114_v53  ;;  %v9122_v8 = vpop.f32.mrf.mxu0  ;;  %v9124_v19 = vpop.f32.mrf.mxu1  ;;  %v192_v43 = vmul.f32 %v9034_v15, %v137_v26 }
  0xca   :  { %17929 = vst [vmem:[#allocation32_spill] sm:$0xff] %v9122_v8  ;;  %7167 = vmatmul.msk.f32.gmra.mxu0 %vm364_vm1, %v8407_v13  ;;  %1155 = vmatpush.msra.mxu3 %v190_v44  ;;  %v144_v44 = vsel %vm135_vm2, %v9010_v36, %v9155_v0 }
  0xcb   :  { %17930 = vst [vmem:[#allocation33_spill] sm:$0xff] %v9124_v19  ;;  %1273 = vmatpush.msra.mxu1 %v192_v43 }
  0xcc   :  { %7177 = vmatmul.msk.f32.gmra.mxu1 %vm364_vm1, %v8552_v29 }
  0xcd   :  { %7207 = vmatmul.msk.f32.gmra.mxu3 %vm364_vm1, %v9134_v61  ;;  %7245 = vmatmul.msk.f32.vlgmr.msra.gmra.mxu2 %vm364_vm1, %v8887_v34 }
  0xcf   :  { %v9145_v4 = vpop.permute.xlu0 %117  ;;  %v9147_v26 = vpop.f32.mrf.mxu3 }
  0xd0   :  { %17931 = vst [vmem:[#allocation34_spill] sm:$0xff] %v9147_v26  ;;  %v9149_v43 = vpop.f32.mrf.mxu2  ;;  %v136_v29 = vsel %vm135_vm2, %v9145_v4, %v8868_v10  ;;  %v183_v10 = vmul.f32 %v9044_v14, %v144_v44  ;;  %v9201_v14 = vpop.permute.xlu1 %213 }
  0xd1   :  { %17932 = vst [vmem:[#allocation35_spill] sm:$0xff] %v9149_v43  ;;  %v9157_v58 = vpop.f32.mrf.mxu0  ;;  %v9159_v25 = vpop.f32.mrf.mxu1  ;;  %v185_v51 = vmul.f32 %v9034_v15, %v136_v29 }
  0xd2   :  { %17933 = vst [vmem:[#allocation36_spill] sm:$0xff] %v9159_v25  ;;  %7168 = vmatmul.msk.f32.gmra.mxu0 %vm364_vm1, %v8456_v18  ;;  %1156 = vmatpush.msra.mxu3 %v183_v10 }
  0xd3   :  { %1274 = vmatpush.msra.mxu1 %v185_v51 }
  0xd4   :  { %7178 = vmatmul.msk.f32.gmra.mxu1 %vm364_vm1, %v8578_v31  ;;  %v9191_v31 = vld [vmem:[%s17557_s1 + $0x48] sm:$0xff] }
  0xd5   :  { %7208 = vmatmul.msk.f32.gmra.mxu3 %vm364_vm1, %v9169_v22  ;;  %7246 = vmatmul.msk.f32.gmra.mxu2 %vm364_vm1, %v8929_v50 }
  0xd7   :  { %v9180_v36 = vpop.f32.mrf.mxu3 }
  0xd8   :  { %17934 = vst [vmem:[#allocation37_spill] sm:$0xff] %v9180_v36  ;;  %v9182_v15 = vpop.f32.mrf.mxu2 }
  0xd9   :  { %17935 = vst [vmem:[#allocation38_spill] sm:$0xff] %v9182_v15  ;;  %v9184_v51 = vpop.f32.mrf.mxu0  ;;  %v9186_v29 = vpop.f32.mrf.mxu1 }
  0xda   :  { %17936 = vst [vmem:[#allocation39_spill] sm:$0xff] %v9186_v29  ;;  %7215 = vmatmul.msk.f32.vlgmr.msra.gmra.mxu0 %vm364_vm1, %v8887_v34 }
  0xdc   :  { %7179 = vmatmul.msk.f32.gmra.mxu1 %vm364_vm1, %v8603_v33  ;;  %v9214_v33 = vld [vmem:[%s17557_s1 + $0x50] sm:$0xff] }
  0xdd   :  { %7209 = vmatmul.msk.f32.gmra.mxu3 %vm364_vm1, %v9191_v31  ;;  %7247 = vmatmul.msk.f32.gmra.mxu2 %vm364_vm1, %v8960_v23 }
  0xdf   :  { %v9203_v44 = vpop.f32.mrf.mxu3 }
  0xe0   :  { %17937 = vst [vmem:[#allocation40_spill] sm:$0xff] %v9203_v44  ;;  %v9205_v10 = vpop.f32.mrf.mxu2 }
  0xe1   :  { %17938 = vst [vmem:[#allocation41_spill] sm:$0xff] %v9205_v10  ;;  %v9207_v3 = vpop.f32.mrf.mxu0  ;;  %v9209_v26 = vpop.f32.mrf.mxu1 }
  0xe2   :  { %17939 = vst [vmem:[#allocation42_spill] sm:$0xff] %v9209_v26  ;;  %7216 = vmatmul.msk.f32.gmra.mxu0 %vm364_vm1, %v8929_v50  ;;  %v9224_v10 = vpop.permute.xlu1 %211 }
  0xe4   :  { %7180 = vmatmul.msk.f32.gmra.mxu1 %vm364_vm1, %v8628_v35  ;;  %v9236_v35 = vpop.permute.xlu2 %221 }
  0xe5   :  { %7210 = vmatmul.msk.f32.gmra.mxu3 %vm364_vm1, %v9214_v33  ;;  %7248 = vmatmul.msk.f32.gmra.mxu2 %vm364_vm1, %v8993_v21 }
  0xe7   :  { %v9226_v36 = vpop.f32.mrf.mxu3 }
  0xe8   :  { %17940 = vst [vmem:[#allocation43_spill] sm:$0xff] %v9226_v36  ;;  %v9228_v44 = vpop.f32.mrf.mxu2  ;;  %v9252_v36 = vld [vmem:[%s17557_s1 + $0x58] sm:$0xff] }
  0xe9   :  { %17941 = vst [vmem:[#allocation44_spill] sm:$0xff] %v9228_v44  ;;  %v9238_v12 = vpop.f32.mrf.mxu1  ;;  %v9240_v54 = vpop.f32.mrf.mxu0  ;;  %v287_v44 = vsel %vm263_vm3, %v9201_v14, %v9236_v35 }
  0xea   :  { %17942 = vst [vmem:[#allocation45_spill] sm:$0xff] %v9238_v12  ;;  %7217 = vmatmul.msk.f32.gmra.mxu0 %vm364_vm1, %v8960_v23  ;;  %v328_v32 = vmul.f32 %v9243_v2, %v287_v44 }
  0xeb   :  { %17943 = vst [vmem:[#allocation46_spill] sm:$0xff] %v9240_v54  ;;  %v9263_v54 = vpop.permute.xlu1 %209 }
  0xec   :  { %7181 = vmatmul.msk.f32.gmra.mxu1 %vm364_vm1, %v8666_v39  ;;  %7318 = vmatpush.msk.msrb.mxu2 %vm407_vm0, %v328_v32  ;;  %v9270_v15 = vpop.permute.xlu2 %219  ;;  %v9279_v39 = vld [vmem:[%s17557_s1 + $0x60] sm:$0xff] }
  0xed   :  { %7211 = vmatmul.msk.f32.gmra.mxu3 %vm364_vm1, %v9252_v36  ;;  %7249 = vmatmul.msk.f32.gmra.mxu2 %vm364_vm1, %v9022_v41 }
  0xef   :  { %v9266_v40 = vpop.f32.mrf.mxu3 }
  0xf0   :  { %17944 = vst [vmem:[#allocation47_spill] sm:$0xff] %v9266_v40  ;;  %v9268_v28 = vpop.f32.mrf.mxu2 }
  0xf1   :  { %17945 = vst [vmem:[#allocation48_spill] sm:$0xff] %v9268_v28  ;;  %v9272_v44 = vpop.f32.mrf.mxu1  ;;  %v9274_v53 = vpop.f32.mrf.mxu0 }
  0xf2   :  { %17946 = vst [vmem:[#allocation49_spill] sm:$0xff] %v9272_v44  ;;  %7218 = vmatmul.msk.f32.gmra.mxu0 %vm364_vm1, %v8993_v21 }
  0xf3   :  { %17947 = vst [vmem:[#allocation50_spill] sm:$0xff] %v9274_v53  ;;  %v9293_v40 = vpop.permute.xlu1 %207 }
  0xf4   :  { %7182 = vmatmul.msk.f32.gmra.mxu1 %vm364_vm1, %v8407_v13  ;;  %v9302_v13 = vld [vmem:[%s17557_s1 + $0x68] sm:$0xff]  ;;  %v9304_v43 = vpop.permute.xlu2 %217 }
  0xf5   :  { %7212 = vmatmul.msk.f32.gmra.mxu3 %vm364_vm1, %v9279_v39  ;;  %7250 = vmatmul.msk.f32.gmra.mxu2 %vm364_vm1, %v9062_v6 }
  0xf7   :  { %v9289_v32 = vpop.f32.mrf.mxu3 }
  0xf8   :  { %17948 = vst [vmem:[#allocation51_spill] sm:$0xff] %v9289_v32  ;;  %v9291_v28 = vpop.f32.mrf.mxu2  ;;  %v141_v32 = vsel %vm135_vm2, %v9120_v47, %v9110_v55 }
  0xf9   :  { %17949 = vst [vmem:[#allocation52_spill] sm:$0xff] %v9291_v28  ;;  %v9295_v44 = vpop.f32.mrf.mxu1  ;;  %v9297_v53 = vpop.f32.mrf.mxu0  ;;  %v142_v28 = vsel %vm135_vm2, %v9004_v7, %v9077_v46  ;;  %v140_v7 = vsel %vm135_vm2, %v9155_v0, %v9145_v4  ;;  %v191_v49 = vmul.f32 %v9047_v16, %v141_v32 }
  0xfa   :  { %17950 = vst [vmem:[#allocation53_spill] sm:$0xff] %v9295_v44  ;;  %7219 = vmatmul.msk.f32.gmra.mxu0 %vm364_vm1, %v9022_v41  ;;  %v198_v1 = vmul.f32 %v9047_v16, %v142_v28  ;;  %v184_v28 = vmul.f32 %v9047_v16, %v140_v7  ;;  %v9361_v16 = vperm.slane %v9233_v11, 2 }
  0xfb   :  { %17951 = vst [vmem:[#allocation54_spill] sm:$0xff] %v9297_v53 }
  0xfc   :  { %7183 = vmatmul.msk.f32.gmra.mxu1 %vm364_vm1, %v8456_v18  ;;  %v9326_v18 = vpop.permute.xlu1 %227  ;;  %v9338_v55 = vpop.permute.xlu2 %215  ;;  %1213 = vmatpush.msrb.mxu0 %v198_v1 }
  0xfd   :  { %7213 = vmatmul.msk.f32.gmra.mxu3 %vm364_vm1, %v9302_v13  ;;  %7251 = vmatmul.msk.f32.gmra.mxu2 %vm364_vm1, %v9099_v59 }
  0xfe   :  { %1214 = vmatpush.msrb.mxu0 %v191_v49  ;;  %v9358_v49 = vperm.slane %v9233_v11, 1 }
  0xff   :  { %v9322_v44 = vpop.f32.mrf.mxu3 }
 0x100   :  { %17952 = vst [vmem:[#allocation55_spill] sm:$0xff] %v9322_v44  ;;  %v9324_v53 = vpop.f32.mrf.mxu2  ;;  %1215 = vmatpush.msrb.mxu0 %v184_v28 }
 0x101   :  { %17953 = vst [vmem:[#allocation56_spill] sm:$0xff] %v9324_v53  ;;  %v9333_v46 = vpop.f32.mrf.mxu1  ;;  %v9335_v30 = vpop.f32.mrf.mxu0 }
 0x102   :  { %17954 = vst [vmem:[#allocation57_spill] sm:$0xff] %v9333_v46  ;;  %7220 = vmatmul.msk.f32.gmra.mxu0 %vm364_vm1, %v9062_v6  ;;  %v230_v53 = vpop.permute.xlu0 %229  ;;  %v8243_v46 = vmov 0  }
 0x103   :  { %17955 = vst [vmem:[#allocation58_spill] sm:$0xff] %v9335_v30  ;;  %8081 = vset.pattern.permute.xlu1 %v8243_v46  ;;  %8080 = vset.pattern.permute.xlu0 %v8243_v46 }
 0x104   :  { %7230 = vmatmul.msk.f32.vlgmr.msrb.gmra.mxu1 %vm364_vm1, %v8887_v34  ;;  %v238_v1 = vpop.permute.xlu1 %237  ;;  %v9363_v7 = vpop.permute.xlu2 %225  ;;  %8079 = vset.pattern.permute.xlu2 %v8243_v46 }
 0x105   :  { %7252 = vmatmul.msk.f32.gmra.mxu2 %vm364_vm1, %v9134_v61  ;;  %7260 = vmatmul.msk.f32.vlgmr.msra.gmra.mxu3 %vm364_vm1, %v8887_v34  ;;  %v279_v28 = vsel %vm263_vm3, %v230_v53, %v238_v1 }
 0x107   :  { %v9349_v0 = vpop.f32.mrf.mxu3 }
 0x108   :  { %17956 = vst [vmem:[#allocation59_spill] sm:$0xff] %v9349_v0  ;;  %v9351_v47 = vpop.f32.mrf.mxu2  ;;  %v330_v0 = vmul.f32 %v9361_v16, %v279_v28 }
 0x109   :  { %17957 = vst [vmem:[#allocation60_spill] sm:$0xff] %v9351_v47  ;;  %v9353_v4 = vpop.f32.mrf.mxu1  ;;  %v9355_v32 = vpop.f32.mrf.mxu0  ;;  %v283_v47 = vsel %vm263_vm3, %v9236_v35, %v230_v53  ;;  %v1918_v53 = vld [vmem:[%s17558_s2 + $0x58] sm:$0xff] }
 0x10a   :  { %17958 = vst [vmem:[#allocation61_spill] sm:$0xff] %v9353_v4  ;;  %7221 = vmatmul.msk.f32.gmra.mxu0 %vm364_vm1, %v9099_v59  ;;  %v329_v44 = vmul.f32 %v9358_v49, %v283_v47  ;;  %1978 = vperm.xlu1 %8081, %v1918_v53   ;;  %v9398_v57 = vpop.permute.xlu0 %223  ;;  %v285_v53 = vsel %vm263_vm3, %v9263_v54, %v9304_v43 }
 0x10b   :  { %17959 = vst [vmem:[#allocation62_spill] sm:$0xff] %v9355_v32  ;;  %7348 = vmatpush.msk.msra.mxu0 %vm407_vm0, %v330_v0  ;;  %v314_v5 = vmul.f32 %v9243_v2, %v285_v53 }
 0x10c   :  { %7231 = vmatmul.msk.f32.gmra.mxu1 %vm364_vm1, %v8929_v50  ;;  %7333 = vmatpush.msk.msrb.mxu3 %vm407_vm0, %v329_v44  ;;  %v9389_v47 = vpop.permute.xlu1 %235  ;;  %v246_v32 = vpop.permute.xlu2 %245  ;;  %v286_v44 = vsel %vm263_vm3, %v9224_v10, %v9270_v15 }
 0x10d   :  { %7253 = vmatmul.msk.f32.gmra.mxu2 %vm364_vm1, %v9169_v22  ;;  %7261 = vmatmul.msk.f32.gmra.mxu3 %vm364_vm1, %v8929_v50  ;;  %v275_v46 = vsel %vm263_vm3, %v238_v1, %v246_v32  ;;  %v284_v1 = vsel %vm263_vm3, %v9293_v40, %v9338_v55 }
 0x10f   :  { %v9380_v4 = vpop.f32.mrf.mxu3 }
 0x110   :  { %17960 = vst [vmem:[#allocation63_spill] sm:$0xff] %v9380_v4  ;;  %v9387_v35 = vpop.f32.mrf.mxu2  ;;  %v9396_v4 = vperm.slane %v9233_v11, 3 }
 0x111   :  { %17961 = vst [vmem:[#allocation64_spill] sm:$0xff] %v9387_v35  ;;  %v9391_v28 = vpop.f32.mrf.mxu0  ;;  %v9393_v30 = vpop.f32.mrf.mxu1  ;;  %v321_v35 = vmul.f32 %v9243_v2, %v286_v44  ;;  %v9438_v44 = vperm.slane %v9233_v11, 4 }
 0x112   :  { %17962 = vst [vmem:[#allocation65_spill] sm:$0xff] %v9391_v28  ;;  %7222 = vmatmul.msk.f32.gmra.mxu0 %vm364_vm1, %v9134_v61  ;;  %v331_v0 = vmul.f32 %v9396_v4, %v275_v46  ;;  %v1916_v46 = vld [vmem:[%s17558_s2 + $0x48] sm:$0xff] }
 0x113   :  { %17963 = vst [vmem:[#allocation66_spill] sm:$0xff] %v9393_v30  ;;  %1968 = vperm.xlu1 %8081, %v1916_v46   ;;  %1409 = vmatpush.msrb.mxu2 %v321_v35 }
 0x114   :  { %7232 = vmatmul.msk.f32.gmra.mxu1 %vm364_vm1, %v8960_v23  ;;  %v9447_v35 = vpop.permute.xlu1 %233 }
 0x115   :  { %7254 = vmatmul.msk.f32.gmra.mxu2 %vm364_vm1, %v9191_v31  ;;  %7262 = vmatmul.msk.f32.gmra.mxu3 %vm364_vm1, %v8960_v23 }
 0x116   :  { %7363 = vmatpush.msk.msrb.mxu1 %vm407_vm0, %v331_v0  ;;  %v307_v0 = vmul.f32 %v9243_v2, %v284_v1  ;;  %1410 = vmatpush.msrb.mxu2 %v314_v5  ;;  %v1913_v5 = vld [vmem:[%s17558_s2 + $0x30] sm:$0xff]  ;;  %v1919_v1 = vld [vmem:[%s17558_s2 + $0x60] sm:$0xff] }
 0x117   :  { %1983 = vperm.xlu0 %8080, %v1919_v1  }
 0x118   :  { %v9428_v30 = vpop.f32.mrf.mxu2  ;;  %v9430_v28 = vpop.f32.mrf.mxu3  ;;  %1411 = vmatpush.msrb.mxu2 %v307_v0 }
 0x119   :  { %17964 = vst [vmem:[#allocation67_spill] sm:$0xff] %v9428_v30  ;;  %v9433_v38 = vpop.f32.mrf.mxu0  ;;  %v9435_v62 = vpop.f32.mrf.mxu1 }
 0x11a   :  { %17965 = vst [vmem:[#allocation68_spill] sm:$0xff] %v9433_v38  ;;  %7223 = vmatmul.msk.f32.gmra.mxu0 %vm364_vm1, %v9169_v22  ;;  %v9443_v30 = vpop.permute.xlu0 %253  ;;  %v1910_v38 = vld [vmem:[%s17558_s2 + $0x18] sm:$0xff] }
 0x11b   :  { %17966 = vst [vmem:[#allocation69_spill] sm:$0xff] %v9435_v62  ;;  %v271_v53 = vsel %vm263_vm3, %v246_v32, %v9443_v30  ;;  %1953 = vperm.xlu1 %8081, %v1913_v5   ;;  %v277_v5 = vsel %vm263_vm3, %v9363_v7, %v9447_v35 }
 0x11c   :  { %7233 = vmatmul.msk.f32.gmra.mxu1 %vm364_vm1, %v8993_v21  ;;  %v332_v2 = vmul.f32 %v9438_v44, %v271_v53  ;;  %v278_v53 = vsel %vm263_vm3, %v9326_v18, %v9389_v47  ;;  %v9490_v1 = vpop.permute.xlu1 %231  ;;  %v316_v26 = vmul.f32 %v9361_v16, %v277_v5 }
 0x11d   :  { %7255 = vmatmul.msk.f32.gmra.mxu2 %vm364_vm1, %v9214_v33  ;;  %7263 = vmatmul.msk.f32.gmra.mxu3 %vm364_vm1, %v8993_v21  ;;  %v323_v17 = vmul.f32 %v9361_v16, %v278_v53 }
 0x11e   :  { %7378 = vmatpush.msk.msra.mxu2 %vm407_vm0, %v332_v2  ;;  %v9484_v2 = vpop.permute.xlu2 %243 }
 0x11f   :  { %1527 = vmatpush.msra.mxu0 %v323_v17  ;;  %v1911_v17 = vld [vmem:[%s17558_s2 + $0x20] sm:$0xff] }
 0x120   :  { %v9464_v32 = vpop.f32.mrf.mxu2  ;;  %v9466_v46 = vpop.f32.mrf.mxu3 }
 0x121   :  { %17967 = vst [vmem:[#allocation70_spill] sm:$0xff] %v9464_v32  ;;  %v9468_v0 = vpop.f32.mrf.mxu0  ;;  %v9470_v62 = vpop.f32.mrf.mxu1  ;;  %v276_v32 = vsel %vm263_vm3, %v9398_v57, %v9490_v1  ;;  %1528 = vmatpush.msra.mxu0 %v316_v26 }
 0x122   :  { %17968 = vst [vmem:[#allocation71_spill] sm:$0xff] %v9468_v0  ;;  %7224 = vmatmul.msk.f32.gmra.mxu0 %vm364_vm1, %v9191_v31  ;;  %v1914_v0 = vld [vmem:[%s17558_s2 + $0x38] sm:$0xff]  ;;  %v309_v12 = vmul.f32 %v9361_v16, %v276_v32 }
 0x123   :  { %17969 = vst [vmem:[#allocation72_spill] sm:$0xff] %v9470_v62  ;;  %v9496_v62 = vpop.permute.xlu0 %251  ;;  %1938 = vperm.xlu1 %8081, %v1910_v38   ;;  %1958 = vperm.xlu0 %8080, %v1914_v0   ;;  %v1907_v38 = vld [vmem:[%s17558_s2] sm:$0xff]  ;;  %v282_v0 = vsel %vm263_vm3, %v9270_v15, %v9326_v18  ;;  %v1920_v15 = vld [vmem:[%s17558_s2 + $0x68] sm:$0xff] }
 0x124   :  { %7234 = vmatmul.msk.f32.gmra.mxu1 %vm364_vm1, %v9022_v41  ;;  %1529 = vmatpush.msra.mxu0 %v309_v12  ;;  %v322_v12 = vmul.f32 %v9358_v49, %v282_v0  ;;  %v1908_v18 = vld [vmem:[%s17558_s2 + $0x8] sm:$0xff]  ;;  %v281_v0 = vsel %vm263_vm3, %v9304_v43, %v9363_v7  ;;  %v1917_v7 = vld [vmem:[%s17558_s2 + $0x50] sm:$0xff] }
 0x125   :  { %7256 = vmatmul.msk.f32.gmra.mxu2 %vm364_vm1, %v9252_v36  ;;  %7264 = vmatmul.msk.f32.gmra.mxu3 %vm364_vm1, %v9022_v41  ;;  %v315_v43 = vmul.f32 %v9358_v49, %v281_v0 }
 0x126   :  { %v9529_v16 = vpop.permute.xlu2 %241  ;;  %1468 = vmatpush.msrb.mxu3 %v322_v12  ;;  %1988 = vperm.xlu2 %8079, %v1920_v15  }
 0x128   :  { %v9505_v19 = vpop.f32.mrf.mxu2  ;;  %v9507_v25 = vpop.f32.mrf.mxu3  ;;  %1469 = vmatpush.msrb.mxu3 %v315_v43 }
 0x129   :  { %17970 = vst [vmem:[#allocation73_spill] sm:$0xff] %v9505_v19  ;;  %v9509_v29 = vpop.f32.mrf.mxu1  ;;  %v9511_v52 = vpop.f32.mrf.mxu0 }
 0x12a   :  { %17971 = vst [vmem:[#allocation74_spill] sm:$0xff] %v9509_v29  ;;  %7225 = vmatmul.msk.f32.gmra.mxu0 %vm364_vm1, %v9214_v33 }
 0x12b   :  { %17972 = vst [vmem:[#allocation75_spill] sm:$0xff] %v9511_v52  ;;  %1923 = vperm.xlu1 %8081, %v1907_v38   ;;  %1943 = vperm.xlu0 %8080, %v1911_v17   ;;  %v9543_v19 = vpop.permute.xlu0 %249 }
 0x12c   :  { %7235 = vmatmul.msk.f32.gmra.mxu1 %vm364_vm1, %v9062_v6 }
 0x12d   :  { %7257 = vmatmul.msk.f32.gmra.mxu2 %vm364_vm1, %v9279_v39  ;;  %7265 = vmatmul.msk.f32.gmra.mxu3 %vm364_vm1, %v9062_v6 }
 0x12e   :  { %v9577_v12 = vpop.permute.xlu2 %239  ;;  %1973 = vperm.xlu2 %8079, %v1917_v7   ;;  %v9614_v7 = vld [vmem:[%s17557_s1 + $0xe8] sm:$0xff] }
 0x130   :  { %v9531_v32 = vpop.f32.mrf.mxu2  ;;  %v9533_v26 = vpop.f32.mrf.mxu3 }
 0x131   :  { %17973 = vst [vmem:[#allocation76_spill] sm:$0xff] %v9531_v32  ;;  %v9539_v53 = vpop.f32.mrf.mxu1  ;;  %v9541_v5 = vpop.f32.mrf.mxu0 }
 0x132   :  { %17974 = vst [vmem:[#allocation77_spill] sm:$0xff] %v9539_v53  ;;  %7226 = vmatmul.msk.f32.gmra.mxu0 %vm364_vm1, %v9252_v36  ;;  %v9575_v53 = vld [vmem:[%s17557_s1 + $0xe0] sm:$0xff] }
 0x133   :  { %17975 = vst [vmem:[#allocation78_spill] sm:$0xff] %v9541_v5  ;;  %1928 = vperm.xlu0 %8080, %v1908_v18   ;;  %v9583_v15 = vpop.permute.xlu0 %247  ;;  %v9594_v18 = vperm.slane %v9233_v11, 5  ;;  %v280_v5 = vsel %vm263_vm3, %v9338_v55, %v9398_v57 }
 0x134   :  { %7236 = vmatmul.msk.f32.gmra.mxu1 %vm364_vm1, %v9099_v59  ;;  %v308_v55 = vmul.f32 %v9358_v49, %v280_v5 }
 0x135   :  { %7258 = vmatmul.msk.f32.gmra.mxu2 %vm364_vm1, %v9302_v13  ;;  %7266 = vmatmul.msk.f32.gmra.mxu3 %vm364_vm1, %v9099_v59 }
 0x136   :  { %v9622_v57 = vpop.permute.xlu2 %259  ;;  %1470 = vmatpush.msrb.mxu3 %v308_v55 }
 0x138   :  { %v9560_v38 = vpop.f32.mrf.mxu2  ;;  %v9562_v17 = vpop.f32.mrf.mxu3 }
 0x139   :  { %17976 = vst [vmem:[#allocation79_spill] sm:$0xff] %v9560_v38  ;;  %v9568_v32 = vpop.f32.mrf.mxu1  ;;  %v9570_v29 = vpop.f32.mrf.mxu0 }
 0x13a   :  { %17977 = vst [vmem:[#allocation80_spill] sm:$0xff] %v9562_v17  ;;  %7227 = vmatmul.msk.f32.gmra.mxu0 %vm364_vm1, %v9279_v39  ;;  %v262_v38 = vpop.permute.xlu1 %261 }
 0x13b   :  { %17978 = vst [vmem:[#allocation81_spill] sm:$0xff] %v9568_v32  ;;  %v267_v0 = vsel %vm263_vm3, %v9443_v30, %v262_v38  ;;  %v299_v30 = vperm.slane %v9233_v11, 6  ;;  %v290_v11 = vsel %vm263_vm3, %v9622_v57, %v9224_v10  ;;  %v9659_v10 = vld [vmem:[%s17557_s1 + $0xf0] sm:$0xff] }
 0x13c   :  { %17979 = vst [vmem:[#allocation82_spill] sm:$0xff] %v9570_v29  ;;  %7237 = vmatmul.msk.f32.gmra.mxu1 %vm364_vm1, %v9134_v61 }
 0x13d   :  { %7267 = vmatmul.msk.f32.gmra.mxu3 %vm364_vm1, %v9134_v61  ;;  %7319 = vmatmul.msk.f32.vlgmr.msrb.gmra.mxu2 %vm364_vm1, %v9575_v53 }
 0x140   :  { %v9596_v32 = vpop.f32.mrf.mxu2  ;;  %v9598_v52 = vpop.f32.mrf.mxu3 }
 0x141   :  { %17980 = vst [vmem:[#allocation83_spill] sm:$0xff] %v9596_v32  ;;  %v9607_v29 = vpop.f32.mrf.mxu1  ;;  %v9609_v43 = vpop.f32.mrf.mxu0  ;;  %v333_v32 = vmul.f32 %v9594_v18, %v267_v0  ;;  %v1915_v0 = vld [vmem:[%s17558_s2 + $0x40] sm:$0xff] }
 0x142   :  { %17981 = vst [vmem:[#allocation84_spill] sm:$0xff] %v9598_v52  ;;  %7228 = vmatmul.msk.f32.gmra.mxu0 %vm364_vm1, %v9302_v13  ;;  %1963 = vperm.xlu2 %8079, %v1915_v0   ;;  %v9641_v49 = vpop.permute.xlu1 %255  ;;  %v1912_v0 = vld [vmem:[%s17558_s2 + $0x28] sm:$0xff]  ;;  %v9775_v52 = vld [vmem:[%s17557_s1 + $0x118] sm:$0xff] }
 0x143   :  { %17982 = vst [vmem:[#allocation85_spill] sm:$0xff] %v9607_v29  ;;  %v291_v29 = vsel %vm263_vm3, %v262_v38, %v9201_v14  ;;  %7393 = vmatpush.msk.msra.mxu3 %vm407_vm0, %v333_v32  ;;  %v327_v32 = vmul.f32 %v299_v30, %v290_v11 }
 0x144   :  { %17983 = vst [vmem:[#allocation86_spill] sm:$0xff] %v9609_v43  ;;  %7238 = vmatmul.msk.f32.gmra.mxu1 %vm364_vm1, %v9169_v22  ;;  %v9635_v43 = vpop.permute.xlu0 %257  ;;  %v334_v14 = vmul.f32 %v299_v30, %v291_v29  ;;  %v288_v29 = vsel %vm263_vm3, %v9641_v49, %v9293_v40 }
 0x145   :  { %7268 = vmatmul.msk.f32.gmra.mxu3 %vm364_vm1, %v9169_v22  ;;  %7320 = vmatmul.msk.f32.gmra.mxu2 %vm364_vm1, %v9614_v7  ;;  %v289_v55 = vsel %vm263_vm3, %v9635_v43, %v9263_v54  ;;  %v313_v11 = vmul.f32 %v299_v30, %v288_v29 }
 0x146   :  { %v320_v54 = vmul.f32 %v299_v30, %v289_v55  ;;  %v1909_v30 = vld [vmem:[%s17558_s2 + $0x10] sm:$0xff] }
 0x148   :  { %v9644_v5 = vpop.f32.mrf.mxu2  ;;  %v9646_v38 = vpop.f32.mrf.mxu3 }
 0x149   :  { %17984 = vst [vmem:[#allocation87_spill] sm:$0xff] %v9644_v5  ;;  %v9648_v17 = vpop.f32.mrf.mxu1  ;;  %v9650_v24 = vpop.f32.mrf.mxu0 }
 0x14a   :  { %17985 = vst [vmem:[#allocation88_spill] sm:$0xff] %v9646_v38  ;;  %7275 = vmatmul.msk.f32.vlgmr.msrb.gmra.mxu0 %vm364_vm1, %v8887_v34  ;;  %1948 = vperm.xlu2 %8079, %v1912_v0   ;;  %v9796_v38 = vld [vmem:[%s17557_s1 + $0x120] sm:$0xff] }
 0x14b   :  { %17986 = vst [vmem:[#allocation89_spill] sm:$0xff] %v9648_v17  ;;  %7408 = vmatpush.msk.msrb.mxu0 %vm407_vm0, %v334_v14  ;;  %v9688_v17 = vld [vmem:[%s17557_s1 + $0xf8] sm:$0xff] }
 0x14c   :  { %17987 = vst [vmem:[#allocation90_spill] sm:$0xff] %v9650_v24  ;;  %7239 = vmatmul.msk.f32.gmra.mxu1 %vm364_vm1, %v9191_v31 }
 0x14d   :  { %7269 = vmatmul.msk.f32.gmra.mxu3 %vm364_vm1, %v9191_v31  ;;  %7321 = vmatmul.msk.f32.gmra.mxu2 %vm364_vm1, %v9659_v10 }
 0x14e   :  { %1763 = vmatpush.msrb.mxu0 %v327_v32 }
 0x150   :  { %v9677_v40 = vpop.f32.mrf.mxu3  ;;  %v9679_v5 = vpop.f32.mrf.mxu2  ;;  %1764 = vmatpush.msrb.mxu0 %v320_v54 }
 0x151   :  { %17988 = vst [vmem:[#allocation91_spill] sm:$0xff] %v9677_v40  ;;  %v9681_v14 = vpop.f32.mrf.mxu1  ;;  %v9683_v55 = vpop.f32.mrf.mxu0 }
 0x152   :  { %17989 = vst [vmem:[#allocation92_spill] sm:$0xff] %v9679_v5  ;;  %1765 = vmatpush.msrb.mxu0 %v313_v11  ;;  %1933 = vperm.xlu2 %8079, %v1909_v30   ;;  %v9712_v11 = vld [vmem:[%s17557_s1 + $0x100] sm:$0xff] }
 0x153   :  { %17990 = vst [vmem:[#allocation93_spill] sm:$0xff] %v9681_v14  ;;  %7276 = vmatmul.msk.f32.gmra.mxu0 %vm364_vm1, %v8929_v50 }
 0x154   :  { %17991 = vst [vmem:[#allocation94_spill] sm:$0xff] %v9683_v55  ;;  %7240 = vmatmul.msk.f32.gmra.mxu1 %vm364_vm1, %v9214_v33 }
 0x155   :  { %7270 = vmatmul.msk.f32.gmra.mxu3 %vm364_vm1, %v9214_v33  ;;  %7322 = vmatmul.msk.f32.gmra.mxu2 %vm364_vm1, %v9688_v17 }
 0x158   :  { %v9701_v32 = vpop.f32.mrf.mxu3  ;;  %v9703_v29 = vpop.f32.mrf.mxu2 }
 0x159   :  { %17992 = vst [vmem:[#allocation95_spill] sm:$0xff] %v9701_v32  ;;  %v9705_v54 = vpop.f32.mrf.mxu1  ;;  %v9707_v0 = vpop.f32.mrf.mxu0 }
 0x15a   :  { %17993 = vst [vmem:[#allocation96_spill] sm:$0xff] %v9703_v29 }
 0x15b   :  { %17994 = vst [vmem:[#allocation97_spill] sm:$0xff] %v9705_v54  ;;  %7277 = vmatmul.msk.f32.gmra.mxu0 %vm364_vm1, %v8960_v23  ;;  %v9733_v54 = vld [vmem:[%s17557_s1 + $0x108] sm:$0xff] }
 0x15c   :  { %17995 = vst [vmem:[#allocation98_spill] sm:$0xff] %v9707_v0  ;;  %7241 = vmatmul.msk.f32.gmra.mxu1 %vm364_vm1, %v9252_v36  ;;  %v9754_v0 = vld [vmem:[%s17557_s1 + $0x110] sm:$0xff] }
 0x15d   :  { %7271 = vmatmul.msk.f32.gmra.mxu3 %vm364_vm1, %v9252_v36  ;;  %7323 = vmatmul.msk.f32.gmra.mxu2 %vm364_vm1, %v9712_v11 }
 0x160   :  { %v9722_v30 = vpop.f32.mrf.mxu3  ;;  %v9724_v5 = vpop.f32.mrf.mxu2 }
 0x161   :  { %17996 = vst [vmem:[#allocation99_spill] sm:$0xff] %v9722_v30  ;;  %v9726_v29 = vpop.f32.mrf.mxu1  ;;  %v9728_v14 = vpop.f32.mrf.mxu0 }
 0x162   :  { %17997 = vst [vmem:[#allocation100_spill] sm:$0xff] %v9724_v5 }
 0x163   :  { %17998 = vst [vmem:[#allocation101_spill] sm:$0xff] %v9726_v29  ;;  %7278 = vmatmul.msk.f32.gmra.mxu0 %vm364_vm1, %v8993_v21 }
 0x164   :  { %17999 = vst [vmem:[#allocation102_spill] sm:$0xff] %v9728_v14  ;;  %7242 = vmatmul.msk.f32.gmra.mxu1 %vm364_vm1, %v9279_v39 }
 0x165   :  { %7272 = vmatmul.msk.f32.gmra.mxu3 %vm364_vm1, %v9279_v39  ;;  %7324 = vmatmul.msk.f32.gmra.mxu2 %vm364_vm1, %v9733_v54 }
 0x168   :  { %v9743_v5 = vpop.f32.mrf.mxu3  ;;  %v9745_v29 = vpop.f32.mrf.mxu2 }
 0x169   :  { %18000 = vst [vmem:[#allocation103_spill] sm:$0xff] %v9745_v29  ;;  %v9747_v55 = vpop.f32.mrf.mxu1  ;;  %v9749_v24 = vpop.f32.mrf.mxu0 }
 0x16a   :  { %18001 = vst [vmem:[#allocation104_spill] sm:$0xff] %v9747_v55 }
 0x16b   :  { %18002 = vst [vmem:[#allocation105_spill] sm:$0xff] %v9749_v24  ;;  %7279 = vmatmul.msk.f32.gmra.mxu0 %vm364_vm1, %v9022_v41 }
 0x16c   :  { %7243 = vmatmul.msk.f32.gmra.mxu1 %vm364_vm1, %v9302_v13 }
 0x16d   :  { %7273 = vmatmul.msk.f32.gmra.mxu3 %vm364_vm1, %v9302_v13  ;;  %7325 = vmatmul.msk.f32.gmra.mxu2 %vm364_vm1, %v9754_v0 }
 0x170   :  { %v9764_v29 = vpop.f32.mrf.mxu3  ;;  %v9766_v55 = vpop.f32.mrf.mxu2 }
 0x171   :  { %18003 = vst [vmem:[#allocation106_spill] sm:$0xff] %v9766_v55  ;;  %v9768_v14 = vpop.f32.mrf.mxu1  ;;  %v9770_v24 = vpop.f32.mrf.mxu0 }
 0x172   :  { %18004 = vst [vmem:[#allocation107_spill] sm:$0xff] %v9768_v14 }
 0x173   :  { %18005 = vst [vmem:[#allocation108_spill] sm:$0xff] %v9770_v24  ;;  %7280 = vmatmul.msk.f32.gmra.mxu0 %vm364_vm1, %v9062_v6 }
 0x174   :  { %7290 = vmatmul.msk.f32.vlgmr.msra.gmra.mxu1 %vm364_vm1, %v8887_v34 }
 0x175   :  { %7326 = vmatmul.msk.f32.gmra.mxu2 %vm364_vm1, %v9775_v52  ;;  %7334 = vmatmul.msk.f32.vlgmr.msrb.gmra.mxu3 %vm364_vm1, %v9575_v53 }
 0x178   :  { %v9785_v55 = vpop.f32.mrf.mxu3  ;;  %v9787_v14 = vpop.f32.mrf.mxu2 }
 0x179   :  { %18006 = vst [vmem:[#allocation109_spill] sm:$0xff] %v9787_v14  ;;  %v9789_v24 = vpop.f32.mrf.mxu1  ;;  %v9791_v37 = vpop.f32.mrf.mxu0 }
 0x17a   :  { %18007 = vst [vmem:[#allocation110_spill] sm:$0xff] %v9789_v24 }
 0x17b   :  { %18008 = vst [vmem:[#allocation111_spill] sm:$0xff] %v9791_v37  ;;  %7281 = vmatmul.msk.f32.gmra.mxu0 %vm364_vm1, %v9099_v59 }
 0x17c   :  { %7291 = vmatmul.msk.f32.gmra.mxu1 %vm364_vm1, %v8929_v50  ;;  %v270_v50 = vsel %vm263_vm3, %v9484_v2, %v9496_v62 }
 0x17d   :  { %7327 = vmatmul.msk.f32.gmra.mxu2 %vm364_vm1, %v9796_v38  ;;  %7335 = vmatmul.msk.f32.gmra.mxu3 %vm364_vm1, %v9614_v7 }
 0x180   :  { %v9806_v34 = vpop.f32.mrf.mxu3  ;;  %v9808_v14 = vpop.f32.mrf.mxu2 }
 0x181   :  { %18009 = vst [vmem:[#allocation112_spill] sm:$0xff] %v9808_v14  ;;  %v9810_v24 = vpop.f32.mrf.mxu0  ;;  %v9812_v37 = vpop.f32.mrf.mxu1  ;;  %v269_v14 = vsel %vm263_vm3, %v9529_v16, %v9543_v19 }
 0x182   :  { %18010 = vst [vmem:[#allocation113_spill] sm:$0xff] %v9810_v24  ;;  %v274_v24 = vsel %vm263_vm3, %v9389_v47, %v9484_v2  ;;  %v318_v32 = vmul.f32 %v9438_v44, %v269_v14  ;;  %v9856_v47 = vld [vmem:[%s17557_s1 + $0x130] sm:$0xff] }
 0x183   :  { %18011 = vst [vmem:[#allocation114_spill] sm:$0xff] %v9812_v37  ;;  %7282 = vmatmul.msk.f32.gmra.mxu0 %vm364_vm1, %v9134_v61  ;;  %v325_v37 = vmul.f32 %v9438_v44, %v270_v50  ;;  %v324_v2 = vmul.f32 %v9396_v4, %v274_v24  ;;  %v273_v24 = vsel %vm263_vm3, %v9447_v35, %v9529_v16 }
 0x184   :  { %7292 = vmatmul.msk.f32.gmra.mxu1 %vm364_vm1, %v8960_v23  ;;  %v268_v23 = vsel %vm263_vm3, %v9577_v12, %v9583_v15  ;;  %v272_v35 = vsel %vm263_vm3, %v9490_v1, %v9577_v12 }
 0x185   :  { %7328 = vmatmul.msk.f32.gmra.mxu2 %vm364_vm1, %v9817_v60  ;;  %7336 = vmatmul.msk.f32.gmra.mxu3 %vm364_vm1, %v9659_v10  ;;  %v311_v30 = vmul.f32 %v9438_v44, %v268_v23 }
 0x186   :  { %1645 = vmatpush.msra.mxu2 %v325_v37  ;;  %1586 = vmatpush.msrb.mxu1 %v324_v2 }
 0x188   :  { %v9844_v40 = vpop.f32.mrf.mxu2  ;;  %v9846_v20 = vpop.f32.mrf.mxu3  ;;  %1646 = vmatpush.msra.mxu2 %v318_v32  ;;  %v9883_v32 = vld [vmem:[%s17557_s1 + $0x138] sm:$0xff] }
 0x189   :  { %18012 = vst [vmem:[#allocation115_spill] sm:$0xff] %v9844_v40  ;;  %v9849_v8 = vpop.f32.mrf.mxu0  ;;  %v9851_v50 = vpop.f32.mrf.mxu1 }
 0x18a   :  { %18013 = vst [vmem:[#allocation116_spill] sm:$0xff] %v9846_v20  ;;  %1647 = vmatpush.msra.mxu2 %v311_v30  ;;  %v317_v30 = vmul.f32 %v9396_v4, %v273_v24 }
 0x18b   :  { %18014 = vst [vmem:[#allocation117_spill] sm:$0xff] %v9851_v50  ;;  %7283 = vmatmul.msk.f32.gmra.mxu0 %vm364_vm1, %v9169_v22 }
 0x18c   :  { %7293 = vmatmul.msk.f32.gmra.mxu1 %vm364_vm1, %v8993_v21 }
 0x18d   :  { %7329 = vmatmul.msk.f32.gmra.mxu2 %vm364_vm1, %v9856_v47  ;;  %7337 = vmatmul.msk.f32.gmra.mxu3 %vm364_vm1, %v9688_v17 }
 0x18e   :  { %1587 = vmatpush.msrb.mxu1 %v317_v30  ;;  %v310_v30 = vmul.f32 %v9396_v4, %v272_v35  ;;  %v266_v4 = vsel %vm263_vm3, %v9496_v62, %v9622_v57 }
 0x190   :  { %v9872_v37 = vpop.f32.mrf.mxu2  ;;  %v9874_v44 = vpop.f32.mrf.mxu3  ;;  %1588 = vmatpush.msrb.mxu1 %v310_v30  ;;  %v326_v30 = vmul.f32 %v9594_v18, %v266_v4 }
 0x191   :  { %18015 = vst [vmem:[#allocation118_spill] sm:$0xff] %v9872_v37  ;;  %v9876_v14 = vpop.f32.mrf.mxu0  ;;  %v9878_v21 = vpop.f32.mrf.mxu1  ;;  %v265_v37 = vsel %vm263_vm3, %v9543_v19, %v9635_v43 }
 0x192   :  { %18016 = vst [vmem:[#allocation119_spill] sm:$0xff] %v9874_v44  ;;  %1704 = vmatpush.msra.mxu3 %v326_v30  ;;  %v319_v4 = vmul.f32 %v9594_v18, %v265_v37  ;;  %v264_v30 = vsel %vm263_vm3, %v9583_v15, %v9641_v49 }
 0x193   :  { %18017 = vst [vmem:[#allocation120_spill] sm:$0xff] %v9878_v21  ;;  %7284 = vmatmul.msk.f32.gmra.mxu0 %vm364_vm1, %v9191_v31  ;;  %v312_v37 = vmul.f32 %v9594_v18, %v264_v30 }
 0x194   :  { %7294 = vmatmul.msk.f32.gmra.mxu1 %vm364_vm1, %v9022_v41  ;;  %v9909_v41 = vld [vmem:[%s17557_s1 + $0x140] sm:$0xff]  ;;  %1705 = vmatpush.msra.mxu3 %v319_v4 }
 0x195   :  { %7330 = vmatmul.msk.f32.gmra.mxu2 %vm364_vm1, %v9883_v32  ;;  %7338 = vmatmul.msk.f32.gmra.mxu3 %vm364_vm1, %v9712_v11 }
 0x196   :  { %1706 = vmatpush.msra.mxu3 %v312_v37 }
 0x198   :  { %v9898_v16 = vpop.f32.mrf.mxu2  ;;  %v9900_v23 = vpop.f32.mrf.mxu3 }
 0x199   :  { %18018 = vst [vmem:[#allocation121_spill] sm:$0xff] %v9898_v16  ;;  %v9902_v2 = vpop.f32.mrf.mxu0  ;;  %v9904_v24 = vpop.f32.mrf.mxu1 }
 0x19a   :  { %18019 = vst [vmem:[#allocation122_spill] sm:$0xff] %v9900_v23 }
 0x19b   :  { %18020 = vst [vmem:[#allocation123_spill] sm:$0xff] %v9904_v24  ;;  %7285 = vmatmul.msk.f32.gmra.mxu0 %vm364_vm1, %v9214_v33 }
 0x19c   :  { %7295 = vmatmul.msk.f32.gmra.mxu1 %vm364_vm1, %v9062_v6  ;;  %v9935_v6 = vld [vmem:[%s17557_s1 + $0x148] sm:$0xff] }
 0x19d   :  { %7331 = vmatmul.msk.f32.gmra.mxu2 %vm364_vm1, %v9909_v41  ;;  %7339 = vmatmul.msk.f32.gmra.mxu3 %vm364_vm1, %v9733_v54 }
 0x1a0   :  { %v9920_v1 = vpop.f32.mrf.mxu2  ;;  %v9922_v12 = vpop.f32.mrf.mxu3 }
 0x1a1   :  { %18021 = vst [vmem:[#allocation124_spill] sm:$0xff] %v9920_v1  ;;  %v9928_v35 = vpop.f32.mrf.mxu0  ;;  %v9930_v40 = vpop.f32.mrf.mxu1 }
 0x1a2   :  { %18022 = vst [vmem:[#allocation125_spill] sm:$0xff] %v9922_v12 }
 0x1a3   :  { %18023 = vst [vmem:[#allocation126_spill] sm:$0xff] %v9930_v40  ;;  %7286 = vmatmul.msk.f32.gmra.mxu0 %vm364_vm1, %v9252_v36 }
 0x1a4   :  { %7296 = vmatmul.msk.f32.gmra.mxu1 %vm364_vm1, %v9099_v59 }
 0x1a5   :  { %7332 = vmatmul.msk.f32.gmra.mxu2 %vm364_vm1, %v9935_v6  ;;  %7340 = vmatmul.msk.f32.gmra.mxu3 %vm364_vm1, %v9754_v0 }
 0x1a8   :  { %v9946_v62 = vpop.f32.mrf.mxu2  ;;  %v9948_v57 = vpop.f32.mrf.mxu3 }
 0x1a9   :  { %18024 = vst [vmem:[#allocation127_spill] sm:$0xff] %v9946_v62  ;;  %v9954_v16 = vpop.f32.mrf.mxu0  ;;  %v9956_v59 = vpop.f32.mrf.mxu1 }
 0x1aa   :  { %18025 = vst [vmem:[#allocation128_spill] sm:$0xff] %v9948_v57  ;;  %v10182_v57 = vpop.permute.xlu1 %1978 }
 0x1ab   :  { %18026 = vst [vmem:[#allocation129_spill] sm:$0xff] %v9956_v59  ;;  %7287 = vmatmul.msk.f32.gmra.mxu0 %vm364_vm1, %v9279_v39 }
 0x1ac   :  { %7297 = vmatmul.msk.f32.gmra.mxu1 %vm364_vm1, %v9134_v61 }
 0x1ad   :  { %7341 = vmatmul.msk.f32.gmra.mxu3 %vm364_vm1, %v9775_v52  ;;  %7379 = vmatmul.msk.f32.vlgmr.msra.gmra.mxu2 %vm364_vm1, %v9575_v53 }
 0x1b0   :  { %v9967_v19 = vpop.f32.mrf.mxu2  ;;  %v9969_v43 = vpop.f32.mrf.mxu3 }
 0x1b1   :  { %18027 = vst [vmem:[#allocation130_spill] sm:$0xff] %v9967_v19  ;;  %v9975_v1 = vpop.f32.mrf.mxu1  ;;  %v9977_v61 = vpop.f32.mrf.mxu0 }
 0x1b2   :  { %18028 = vst [vmem:[#allocation131_spill] sm:$0xff] %v9969_v43 }
 0x1b3   :  { %18029 = vst [vmem:[#allocation132_spill] sm:$0xff] %v9975_v1  ;;  %7288 = vmatmul.msk.f32.gmra.mxu0 %vm364_vm1, %v9302_v13 }
 0x1b4   :  { %7298 = vmatmul.msk.f32.gmra.mxu1 %vm364_vm1, %v9169_v22  ;;  %v923_v22 = vadd.f32 %v9430_v28, %v8838_v63  ;;  %v926_v63 = vadd.f32 %v9466_v46, %v8880_v27  ;;  %v929_v27 = vadd.f32 %v9507_v25, %v8918_v48  ;;  %v932_v48 = vadd.f32 %v9533_v26, %v8952_v56 }
 0x1b5   :  { %7342 = vmatmul.msk.f32.gmra.mxu3 %vm364_vm1, %v9796_v38  ;;  %7380 = vmatmul.msk.f32.gmra.mxu2 %vm364_vm1, %v9614_v7 }
 0x1b8   :  { %v9988_v15 = vpop.f32.mrf.mxu2  ;;  %v9990_v49 = vpop.f32.mrf.mxu3 }
 0x1b9   :  { %18030 = vst [vmem:[#allocation133_spill] sm:$0xff] %v9988_v15  ;;  %v9992_v4 = vpop.f32.mrf.mxu1  ;;  %v9994_v45 = vpop.f32.mrf.mxu0 }
 0x1ba   :  { %18031 = vst [vmem:[#allocation134_spill] sm:$0xff] %v9990_v49  ;;  %v10202_v49 = vpop.permute.xlu1 %1968 }
 0x1bb   :  { %18032 = vst [vmem:[#allocation135_spill] sm:$0xff] %v9992_v4  ;;  %7349 = vmatmul.msk.f32.vlgmr.msra.gmra.mxu0 %vm364_vm1, %v9575_v53 }
 0x1bc   :  { %7299 = vmatmul.msk.f32.gmra.mxu1 %vm364_vm1, %v9191_v31 }
 0x1bd   :  { %7343 = vmatmul.msk.f32.gmra.mxu3 %vm364_vm1, %v9817_v60  ;;  %7381 = vmatmul.msk.f32.gmra.mxu2 %vm364_vm1, %v9659_v10 }
 0x1c0   :  { %v10006_v18 = vpop.f32.mrf.mxu3  ;;  %v1413_v30 = vpop.f32.mrf.mxu2 }
 0x1c1   :  { %18033 = vst [vmem:[#allocation136_spill] sm:$0xff] %v10006_v18  ;;  %v10008_v37 = vadd.f32 %v1413_v30, %v923_v22  ;;  %v10010_v15 = vpop.f32.mrf.mxu1  ;;  %v10012_v62 = vpop.f32.mrf.mxu0 }
 0x1c2   :  { %18034 = vst [vmem:[#allocation137_spill] sm:$0xff] %v10010_v15 }
 0x1c3   :  { %7350 = vmatmul.msk.f32.gmra.mxu0 %vm364_vm1, %v9614_v7 }
 0x1c4   :  { %7300 = vmatmul.msk.f32.gmra.mxu1 %vm364_vm1, %v9214_v33 }
 0x1c5   :  { %7344 = vmatmul.msk.f32.gmra.mxu3 %vm364_vm1, %v9856_v47  ;;  %7382 = vmatmul.msk.f32.gmra.mxu2 %vm364_vm1, %v9688_v17 }
 0x1c8   :  { %v10024_v31 = vpop.f32.mrf.mxu3  ;;  %v1416_v28 = vpop.f32.mrf.mxu2 }
 0x1c9   :  { %18035 = vst [vmem:[#allocation138_spill] sm:$0xff] %v10024_v31  ;;  %v10026_v22 = vadd.f32 %v1416_v28, %v926_v63  ;;  %v10028_v30 = vpop.f32.mrf.mxu1  ;;  %v10030_v19 = vpop.f32.mrf.mxu0  ;;  %v956_v31 = vadd.f32 %v9764_v29, %v9207_v3  ;;  %v18069_v3 = vld [vmem:[#allocation99_spill] sm:$0xff] }
 0x1ca   :  { %18036 = vst [vmem:[#allocation139_spill] sm:$0xff] %v10028_v30  ;;  %v10238_v29 = vpop.permute.xlu1 %1953 }
 0x1cb   :  { %18037 = vst [vmem:[#allocation140_spill] sm:$0xff] %v10030_v19  ;;  %7351 = vmatmul.msk.f32.gmra.mxu0 %vm364_vm1, %v9659_v10 }
 0x1cc   :  { %7301 = vmatmul.msk.f32.gmra.mxu1 %vm364_vm1, %v9252_v36 }
 0x1cd   :  { %7345 = vmatmul.msk.f32.gmra.mxu3 %vm364_vm1, %v9883_v32  ;;  %7383 = vmatmul.msk.f32.gmra.mxu2 %vm364_vm1, %v9712_v11 }
 0x1d0   :  { %v10042_v33 = vpop.f32.mrf.mxu3  ;;  %v1419_v46 = vpop.f32.mrf.mxu2 }
 0x1d1   :  { %18038 = vst [vmem:[#allocation141_spill] sm:$0xff] %v10042_v33  ;;  %v10044_v63 = vadd.f32 %v1419_v46, %v929_v27  ;;  %v10046_v28 = vpop.f32.mrf.mxu1  ;;  %v10048_v19 = vpop.f32.mrf.mxu0 }
 0x1d2   :  { %18039 = vst [vmem:[#allocation142_spill] sm:$0xff] %v10046_v28 }
 0x1d3   :  { %18040 = vst [vmem:[#allocation143_spill] sm:$0xff] %v10048_v19  ;;  %7352 = vmatmul.msk.f32.gmra.mxu0 %vm364_vm1, %v9688_v17 }
 0x1d4   :  { %7302 = vmatmul.msk.f32.gmra.mxu1 %vm364_vm1, %v9279_v39 }
 0x1d5   :  { %7346 = vmatmul.msk.f32.gmra.mxu3 %vm364_vm1, %v9909_v41  ;;  %7384 = vmatmul.msk.f32.gmra.mxu2 %vm364_vm1, %v9733_v54 }
 0x1d8   :  { %v10060_v25 = vpop.f32.mrf.mxu3  ;;  %v1422_v36 = vpop.f32.mrf.mxu2 }
 0x1d9   :  { %18041 = vst [vmem:[#allocation144_spill] sm:$0xff] %v10060_v25  ;;  %v10062_v27 = vadd.f32 %v1422_v36, %v932_v48  ;;  %v10064_v46 = vpop.f32.mrf.mxu1  ;;  %v10066_v19 = vpop.f32.mrf.mxu0 }
 0x1da   :  { %18042 = vst [vmem:[#allocation145_spill] sm:$0xff] %v10064_v46 }
 0x1db   :  { %18043 = vst [vmem:[#allocation146_spill] sm:$0xff] %v10066_v19  ;;  %7353 = vmatmul.msk.f32.gmra.mxu0 %vm364_vm1, %v9712_v11 }
 0x1dc   :  { %7303 = vmatmul.msk.f32.gmra.mxu1 %vm364_vm1, %v9302_v13 }
 0x1dd   :  { %7347 = vmatmul.msk.f32.gmra.mxu3 %vm364_vm1, %v9935_v6  ;;  %7385 = vmatmul.msk.f32.gmra.mxu2 %vm364_vm1, %v9754_v0 }
 0x1e0   :  { %v10076_v56 = vpop.f32.mrf.mxu3  ;;  %v10078_v39 = vpop.f32.mrf.mxu2 }
 0x1e1   :  { %18044 = vst [vmem:[#allocation147_spill] sm:$0xff] %v10076_v56  ;;  %v10080_v26 = vpop.f32.mrf.mxu1  ;;  %v10082_v48 = vpop.f32.mrf.mxu0  ;;  %v953_v56 = vadd.f32 %v9743_v5, %v9184_v51  ;;  %v18072_v51 = vld [vmem:[#allocation32_spill] sm:$0xff]  ;;  %v18073_v5 = vld [vmem:[#allocation95_spill] sm:$0xff] }
 0x1e2   :  { %18045 = vst [vmem:[#allocation148_spill] sm:$0xff] %v10080_v26  ;;  %v959_v26 = vadd.f32 %v9785_v55, %v8864_v9 }
 0x1e3   :  { %18046 = vst [vmem:[#allocation149_spill] sm:$0xff] %v10082_v48  ;;  %7354 = vmatmul.msk.f32.gmra.mxu0 %vm364_vm1, %v9733_v54 }
 0x1e4   :  { %7364 = vmatmul.msk.f32.vlgmr.msrb.gmra.mxu1 %vm364_vm1, %v9575_v53 }
 0x1e5   :  { %7386 = vmatmul.msk.f32.gmra.mxu2 %vm364_vm1, %v9775_v52  ;;  %7394 = vmatmul.msk.f32.vlgmr.msra.gmra.mxu3 %vm364_vm1, %v9575_v53 }
 0x1e8   :  { %v10092_v13 = vpop.f32.mrf.mxu3  ;;  %v10094_v36 = vpop.f32.mrf.mxu2 }
 0x1e9   :  { %18047 = vst [vmem:[#allocation150_spill] sm:$0xff] %v10092_v13  ;;  %v10096_v19 = vpop.f32.mrf.mxu1  ;;  %v10098_v50 = vpop.f32.mrf.mxu0 }
 0x1ea   :  { %18048 = vst [vmem:[#allocation151_spill] sm:$0xff] %v10096_v19  ;;  %v10204_v19 = vpop.permute.xlu0 %1983 }
 0x1eb   :  { %18049 = vst [vmem:[#allocation152_spill] sm:$0xff] %v10098_v50  ;;  %7355 = vmatmul.msk.f32.gmra.mxu0 %vm364_vm1, %v9754_v0 }
 0x1ec   :  { %7365 = vmatmul.msk.f32.gmra.mxu1 %vm364_vm1, %v9614_v7 }
 0x1ed   :  { %7387 = vmatmul.msk.f32.gmra.mxu2 %vm364_vm1, %v9796_v38  ;;  %7395 = vmatmul.msk.f32.gmra.mxu3 %vm364_vm1, %v9614_v7 }
 0x1f0   :  { %v10108_v48 = vpop.f32.mrf.mxu3  ;;  %v10110_v21 = vpop.f32.mrf.mxu2 }
 0x1f1   :  { %18050 = vst [vmem:[#allocation153_spill] sm:$0xff] %v10108_v48  ;;  %v10112_v24 = vpop.f32.mrf.mxu0  ;;  %v10114_v40 = vpop.f32.mrf.mxu1 }
 0x1f2   :  { %18051 = vst [vmem:[#allocation154_spill] sm:$0xff] %v10112_v24 }
 0x1f3   :  { %18052 = vst [vmem:[#allocation155_spill] sm:$0xff] %v10114_v40  ;;  %7356 = vmatmul.msk.f32.gmra.mxu0 %vm364_vm1, %v9775_v52 }
 0x1f4   :  { %7366 = vmatmul.msk.f32.gmra.mxu1 %vm364_vm1, %v9659_v10 }
 0x1f5   :  { %7388 = vmatmul.msk.f32.gmra.mxu2 %vm364_vm1, %v9817_v60  ;;  %7396 = vmatmul.msk.f32.gmra.mxu3 %vm364_vm1, %v9659_v10 }
 0x1f8   :  { %v10124_v50 = vpop.f32.mrf.mxu2  ;;  %v10126_v20 = vpop.f32.mrf.mxu3 }
 0x1f9   :  { %18053 = vst [vmem:[#allocation156_spill] sm:$0xff] %v10126_v20  ;;  %v10128_v59 = vpop.f32.mrf.mxu0  ;;  %v10130_v24 = vpop.f32.mrf.mxu1 }
 0x1fa   :  { %18054 = vst [vmem:[#allocation157_spill] sm:$0xff] %v10128_v59 }
 0x1fb   :  { %18055 = vst [vmem:[#allocation158_spill] sm:$0xff] %v10130_v24  ;;  %7357 = vmatmul.msk.f32.gmra.mxu0 %vm364_vm1, %v9796_v38 }
 0x1fc   :  { %7367 = vmatmul.msk.f32.gmra.mxu1 %vm364_vm1, %v9688_v17 }
 0x1fd   :  { %7389 = vmatmul.msk.f32.gmra.mxu2 %vm364_vm1, %v9856_v47  ;;  %7397 = vmatmul.msk.f32.gmra.mxu3 %vm364_vm1, %v9688_v17 }
 0x200   :  { %v10140_v40 = vpop.f32.mrf.mxu2  ;;  %v10142_v44 = vpop.f32.mrf.mxu3 }
 0x201   :  { %18056 = vst [vmem:[#allocation159_spill] sm:$0xff] %v10142_v44  ;;  %v10144_v1 = vpop.f32.mrf.mxu0  ;;  %v10146_v59 = vpop.f32.mrf.mxu1 }
 0x202   :  { %18057 = vst [vmem:[#allocation160_spill] sm:$0xff] %v10144_v1  ;;  %v10234_v44 = vpop.permute.xlu0 %1958 }
 0x203   :  { %18058 = vst [vmem:[#allocation161_spill] sm:$0xff] %v10146_v59  ;;  %7358 = vmatmul.msk.f32.gmra.mxu0 %vm364_vm1, %v9817_v60 }
 0x204   :  { %7368 = vmatmul.msk.f32.gmra.mxu1 %vm364_vm1, %v9712_v11 }
 0x205   :  { %7390 = vmatmul.msk.f32.gmra.mxu2 %vm364_vm1, %v9883_v32  ;;  %7398 = vmatmul.msk.f32.gmra.mxu3 %vm364_vm1, %v9712_v11 }
 0x208   :  { %v1440_v24 = vpop.f32.mrf.mxu2  ;;  %v10156_v23 = vpop.f32.mrf.mxu3 }
 0x209   :  { %v10158_v4 = vpop.f32.mrf.mxu0  ;;  %v10160_v1 = vpop.f32.mrf.mxu1 }
 0x20a   :  { %18059 = vst [vmem:[#allocation162_spill] sm:$0xff] %v10158_v4 }
 0x20b   :  { %18060 = vst [vmem:[#allocation163_spill] sm:$0xff] %v10160_v1  ;;  %7359 = vmatmul.msk.f32.gmra.mxu0 %vm364_vm1, %v9856_v47  ;;  %v10176_v1 = vpop.permute.xlu2 %1988 }
 0x20c   :  { %7369 = vmatmul.msk.f32.gmra.mxu1 %vm364_vm1, %v9733_v54 }
 0x20d   :  { %7391 = vmatmul.msk.f32.gmra.mxu2 %vm364_vm1, %v9909_v41  ;;  %7399 = vmatmul.msk.f32.gmra.mxu3 %vm364_vm1, %v9733_v54 }
 0x210   :  { %v1443_v59 = vpop.f32.mrf.mxu2  ;;  %v10170_v12 = vpop.f32.mrf.mxu3 }
 0x211   :  { %v10172_v15 = vpop.f32.mrf.mxu0  ;;  %v10174_v4 = vpop.f32.mrf.mxu1 }
 0x212   :  { %18061 = vst [vmem:[#allocation164_spill] sm:$0xff] %v10172_v15 }
 0x213   :  { %18062 = vst [vmem:[#allocation165_spill] sm:$0xff] %v10174_v4  ;;  %7360 = vmatmul.msk.f32.gmra.mxu0 %vm364_vm1, %v9883_v32  ;;  %v10198_v28 = vpop.permute.xlu2 %1973 }
 0x214   :  { %7370 = vmatmul.msk.f32.gmra.mxu1 %vm364_vm1, %v9754_v0 }
 0x215   :  { %7392 = vmatmul.msk.f32.gmra.mxu2 %vm364_vm1, %v9935_v6  ;;  %7400 = vmatmul.msk.f32.gmra.mxu3 %vm364_vm1, %v9754_v0 }
 0x218   :  { %v1446_v30 = vpop.f32.mrf.mxu2  ;;  %v10188_v15 = vpop.f32.mrf.mxu3 }
 0x219   :  { %v10190_v4 = vpop.f32.mrf.mxu0  ;;  %v10192_v43 = vpop.f32.mrf.mxu1  ;;  %v1886_v13 = vadd.f32 %v1446_v30, %v956_v31  ;;  %v18076_v30 = vld [vmem:[#allocation91_spill] sm:$0xff] }
 0x21a   :  { %18063 = vst [vmem:[#allocation166_spill] sm:$0xff] %v10190_v4 }
 0x21b   :  { %18064 = vst [vmem:[#allocation167_spill] sm:$0xff] %v10192_v43  ;;  %7361 = vmatmul.msk.f32.gmra.mxu0 %vm364_vm1, %v9909_v41  ;;  %v10224_v33 = vpop.permute.xlu2 %1963 }
 0x21c   :  { %7371 = vmatmul.msk.f32.gmra.mxu1 %vm364_vm1, %v9775_v52 }
 0x21d   :  { %7401 = vmatmul.msk.f32.gmra.mxu3 %vm364_vm1, %v9775_v52 }
 0x220   :  { %v1449_v46 = vpop.f32.mrf.mxu2  ;;  %v10206_v18 = vpop.f32.mrf.mxu3 }
 0x221   :  { %v10208_v4 = vpop.f32.mrf.mxu0  ;;  %v10210_v43 = vpop.f32.mrf.mxu1 }
 0x222   :  { %18065 = vst [vmem:[#allocation168_spill] sm:$0xff] %v10208_v4  ;;  %v962_v4 = vadd.f32 %v9806_v34, %v8906_v42  ;;  %v950_v42 = vadd.f32 %v18069_v3, %v9157_v58  ;;  %v1879_v34 = vadd.f32 %v1443_v59, %v953_v56  ;;  %v10253_v58 = vadd.f32 %v10182_v57, %v1886_v13  ;;  %v18078_v3 = vld [vmem:[#allocation24_spill] sm:$0xff] }
 0x223   :  { %18066 = vst [vmem:[#allocation169_spill] sm:$0xff] %v10210_v43  ;;  %7362 = vmatmul.msk.f32.gmra.mxu0 %vm364_vm1, %v9935_v6  ;;  %v1893_v43 = vadd.f32 %v1449_v46, %v959_v26 }
 0x224   :  { %7372 = vmatmul.msk.f32.gmra.mxu1 %vm364_vm1, %v9796_v38  ;;  %v1872_v31 = vadd.f32 %v1440_v24, %v950_v42  ;;  %18074 = vst [vmem:[#allocation32_spill] sm:$0xff] %v10253_v58  ;;  %v10262_v56 = vadd.f32 %v10198_v28, %v1879_v34  ;;  %v18079_v42 = vld [vmem:[#allocation88_spill] sm:$0xff] }
 0x225   :  { %7402 = vmatmul.msk.f32.gmra.mxu3 %vm364_vm1, %v9796_v38  ;;  %v10241_v46 = vadd.f32 %v10204_v19, %v1893_v43  ;;  %v18075_v43 = vld [vmem:[#allocation28_spill] sm:$0xff] }
 0x226   :  { %18077 = vst [vmem:[#allocation95_spill] sm:$0xff] %v10262_v56 }
 0x227   :  { %18070 = vst [vmem:[#allocation99_spill] sm:$0xff] %v10241_v46  ;;  %v17574_v24 = vmax.f32 %v10241_v46, 0.0 }
 0x228   :  { %v1452_v25 = vpop.f32.mrf.mxu2  ;;  %v10226_v48 = vpop.f32.mrf.mxu3 }
 0x229   :  { %v1900_v9 = vadd.f32 %v1452_v25, %v962_v4  ;;  %v10230_v55 = vpop.f32.mrf.mxu0  ;;  %v10232_v20 = vpop.f32.mrf.mxu1  ;;  %v947_v4 = vadd.f32 %v18073_v5, %v18072_v51  ;;  %v944_v25 = vadd.f32 %v18076_v30, %v18075_v43  ;;  %v941_v51 = vadd.f32 %v18079_v42, %v18078_v3  ;;  %v18086_v42 = vld [vmem:[#allocation16_spill] sm:$0xff] }
 0x22a   :  { %18067 = vst [vmem:[#allocation170_spill] sm:$0xff] %v10230_v55  ;;  %v10275_v43 = vadd.f32 %v10202_v49, %v1872_v31  ;;  %v10284_v30 = vpop.permute.xlu2 %1948  ;;  %v17578_v31 = vmax.f32 %v10262_v56, 0.0 }
 0x22b   :  { %18068 = vst [vmem:[#allocation171_spill] sm:$0xff] %v10232_v20  ;;  %v10244_v26 = vadd.f32 %v10176_v1, %v1900_v9  ;;  %7409 = vmatmul.msk.f32.vlgmr.msrb.gmra.mxu0 %vm364_vm1, %v9575_v53  ;;  %v1865_v53 = vadd.f32 %v10140_v40, %v947_v4  ;;  %v1858_v5 = vadd.f32 %v10124_v50, %v944_v25  ;;  %v17573_v4 = vmax.f32 %v10253_v58, 0.0  ;;  %v18084_v20 = vld [vmem:[#allocation84_spill] sm:$0xff]  ;;  %v10297_v25 = vpop.permute.xlu0 %1943 }
 0x22c   :  { %7373 = vmatmul.msk.f32.gmra.mxu1 %vm364_vm1, %v9817_v60  ;;  %18080 = vst [vmem:[#allocation28_spill] sm:$0xff] %v10275_v43  ;;  %v1851_v3 = vadd.f32 %v10110_v21, %v941_v51  ;;  %v10303_v21 = vpop.permute.xlu1 %1938 }
 0x22d   :  { %18071 = vst [vmem:[#allocation172_spill] sm:$0xff] %v10244_v26  ;;  %v17571_v59 = vmax.f32 %v10244_v26, 0.0  ;;  %7403 = vmatmul.msk.f32.gmra.mxu3 %vm364_vm1, %v9817_v60  ;;  %v10290_v50 = vadd.f32 %v10224_v33, %v1865_v53  ;;  %v10307_v51 = vadd.f32 %v10234_v44, %v1858_v5 }
 0x22f   :  { %2222 = vmatpush.msra.mxu1 %v17571_v59  ;;  %v18083_v59 = vld [vmem:[#allocation20_spill] sm:$0xff]  ;;  %18085 = vst [vmem:[#allocation88_spill] sm:$0xff] %v10290_v50 }
 0x230   :  { %v10267_v13 = vpop.f32.mrf.mxu3  ;;  %v10269_v9 = vpop.f32.mrf.mxu2  ;;  %v938_v26 = vadd.f32 %v18084_v20, %v18083_v59  ;;  %v18087_v20 = vld [vmem:[#allocation80_spill] sm:$0xff]  ;;  %18088 = vst [vmem:[#allocation20_spill] sm:$0xff] %v10307_v51 }
 0x231   :  { %2223 = vmatpush.msra.mxu1 %v17574_v24  ;;  %v10279_v40 = vpop.f32.mrf.mxu0  ;;  %v10281_v34 = vpop.f32.mrf.mxu1  ;;  %v935_v59 = vadd.f32 %v18087_v20, %v18086_v42  ;;  %v10316_v24 = vadd.f32 %v10238_v29, %v1851_v3  ;;  %v17577_v3 = vmax.f32 %v10307_v51, 0.0 }
 0x232   :  { %18081 = vst [vmem:[#allocation91_spill] sm:$0xff] %v10279_v40  ;;  %v1844_v53 = vadd.f32 %v10094_v36, %v938_v26  ;;  %v17576_v36 = vmax.f32 %v10290_v50, 0.0  ;;  %v18104_v50 = vld [vmem:[#allocation42_spill] sm:$0xff]  ;;  %v18106_v40 = vld [vmem:[#allocation39_spill] sm:$0xff] }
 0x233   :  { %18082 = vst [vmem:[#allocation24_spill] sm:$0xff] %v10281_v34  ;;  %2224 = vmatpush.msra.mxu1 %v17573_v4  ;;  %7410 = vmatmul.msk.f32.gmra.mxu0 %vm364_vm1, %v9614_v7  ;;  %v17575_v7 = vmax.f32 %v10275_v43, 0.0  ;;  %v1837_v4 = vadd.f32 %v10078_v39, %v935_v59  ;;  %v18105_v43 = vld [vmem:[#allocation11_spill] sm:$0xff] }
 0x234   :  { %7374 = vmatmul.msk.f32.gmra.mxu1 %vm364_vm1, %v9856_v47  ;;  %18089 = vst [vmem:[#allocation84_spill] sm:$0xff] %v10316_v24  ;;  %v10326_v42 = vadd.f32 %v10284_v30, %v1844_v53  ;;  %v17579_v53 = vmax.f32 %v10316_v24, 0.0  ;;  %v1021_v56 = vadd.f32 %v10012_v62, %v18105_v43  ;;  %v18109_v62 = vld [vmem:[#allocation36_spill] sm:$0xff] }
 0x235   :  { %7404 = vmatmul.msk.f32.gmra.mxu3 %vm364_vm1, %v9856_v47  ;;  %2225 = vmatpush.msra.mxu1 %v17578_v31  ;;  %v10336_v59 = vadd.f32 %v10297_v25, %v1837_v4 }
 0x236   :  { %18090 = vst [vmem:[#allocation16_spill] sm:$0xff] %v10326_v42  ;;  %v17582_v4 = vmax.f32 %v10326_v42, 0.0 }
 0x237   :  { %2226 = vmatpush.msra.mxu1 %v17575_v7  ;;  %18093 = vst [vmem:[#allocation174_spill] sm:$0xff] %v10336_v59  ;;  %v10343_v7 = vpop.permute.xlu2 %1933  ;;  %v17583_v31 = vmax.f32 %v10336_v59, 0.0  ;;  %v18103_v59 = vld [vmem:[#allocation45_spill] sm:$0xff] }
 0x238   :  { %v10321_v26 = vpop.f32.mrf.mxu3  ;;  %v10323_v5 = vpop.f32.mrf.mxu2  ;;  %v1018_v42 = vadd.f32 %v9994_v45, %v18103_v59  ;;  %v10446_v45 = vld [vmem:[%s17561_s5] sm:$0xff] }
 0x239   :  { %2227 = vmatpush.msra.mxu1 %v17576_v36  ;;  %v10330_v20 = vpop.f32.mrf.mxu1  ;;  %v10332_v39 = vpop.f32.mrf.mxu0  ;;  %v10349_v36 = vadd.f32 %v10303_v21, %v10062_v27  ;;  %v10365_v27 = vadd.f32 %v10343_v7, %v10044_v63  ;;  %18108 = vst [vmem:[#allocation42_spill] sm:$0xff] %v10446_v45 }
 0x23a   :  { %18091 = vst [vmem:[#allocation80_spill] sm:$0xff] %v10330_v20 }
 0x23b   :  { %18092 = vst [vmem:[#allocation173_spill] sm:$0xff] %v10332_v39  ;;  %2228 = vmatpush.msra.mxu1 %v17577_v3  ;;  %7411 = vmatmul.msk.f32.gmra.mxu0 %vm364_vm1, %v9659_v10  ;;  %v10356_v10 = vpop.permute.xlu0 %1928  ;;  %v10358_v3 = vpop.permute.xlu1 %1923  ;;  %v17584_v51 = vmax.f32 %v10349_v36, 0.0  ;;  %v17587_v63 = vmax.f32 %v10365_v27, 0.0 }
 0x23c   :  { %7375 = vmatmul.msk.f32.gmra.mxu1 %vm364_vm1, %v9883_v32  ;;  %18094 = vst [vmem:[#allocation175_spill] sm:$0xff] %v10349_v36 }
 0x23d   :  { %7405 = vmatmul.msk.f32.gmra.mxu3 %vm364_vm1, %v9883_v32  ;;  %2229 = vmatpush.msra.mxu1 %v17579_v53  ;;  %18095 = vst [vmem:[#allocation176_spill] sm:$0xff] %v10365_v27 }
 0x23f   :  { %2230 = vmatpush.msra.mxu1 %v17582_v4  ;;  %v10378_v4 = vadd.f32 %v10356_v10, %v10026_v22 }
 0x240   :  { %v1499_v34 = vpop.f32.mrf.mxu3  ;;  %v10367_v20 = vpop.f32.mrf.mxu2 }
 0x241   :  { %2231 = vmatpush.msra.mxu1 %v17583_v31  ;;  %v10371_v53 = vpop.f32.mrf.mxu1  ;;  %v10373_v24 = vpop.f32.mrf.mxu0  ;;  %18098 = vst [vmem:[#allocation179_spill] sm:$0xff] %v10378_v4  ;;  %v10387_v31 = vadd.f32 %v10358_v3, %v10008_v37  ;;  %v17586_v22 = vmax.f32 %v10378_v4, 0.0 }
 0x242   :  { %18096 = vst [vmem:[#allocation177_spill] sm:$0xff] %v10371_v53 }
 0x243   :  { %18097 = vst [vmem:[#allocation178_spill] sm:$0xff] %v10373_v24  ;;  %2232 = vmatpush.msra.mxu1 %v17584_v51  ;;  %7412 = vmatmul.msk.f32.gmra.mxu0 %vm364_vm1, %v9688_v17  ;;  %v17590_v17 = vmax.f32 %v10387_v31, 0.0 }
 0x244   :  { %18099 = vst [vmem:[#allocation180_spill] sm:$0xff] %v10387_v31  ;;  %7376 = vmatmul.msk.f32.gmra.mxu1 %vm364_vm1, %v9909_v41 }
 0x245   :  { %7406 = vmatmul.msk.f32.gmra.mxu3 %vm364_vm1, %v9909_v41  ;;  %2233 = vmatpush.msra.mxu1 %v17587_v63 }
 0x247   :  { %2234 = vmatpush.msra.mxu1 %v17586_v22 }
 0x248   :  { %v1502_v51 = vpop.f32.mrf.mxu3  ;;  %v10399_v53 = vpop.f32.mrf.mxu2 }
 0x249   :  { %2235 = vmatpush.msra.mxu1 %v17590_v17  ;;  %v10403_v37 = vpop.f32.mrf.mxu1  ;;  %v10405_v36 = vpop.f32.mrf.mxu0 }
 0x24a   :  { %18100 = vst [vmem:[#allocation181_spill] sm:$0xff] %v10403_v37 }
 0x24b   :  { %7413 = vmatmul.msk.f32.gmra.mxu0 %vm364_vm1, %v9712_v11 }
 0x24c   :  { %7377 = vmatmul.msk.f32.gmra.mxu1 %vm364_vm1, %v9935_v6 }
 0x24d   :  { %7407 = vmatmul.msk.f32.gmra.mxu3 %vm364_vm1, %v9935_v6 }
 0x250   :  { %v1505_v22 = vpop.f32.mrf.mxu3  ;;  %v10413_v63 = vpop.f32.mrf.mxu2 }
 0x251   :  { %v10415_v4 = vpop.f32.mrf.mxu1  ;;  %v10417_v31 = vpop.f32.mrf.mxu0 }
 0x252   :  { %18101 = vst [vmem:[#allocation182_spill] sm:$0xff] %v10415_v4  ;;  %v1015_v4 = vadd.f32 %v9977_v61, %v18104_v50  ;;  %v1009_v61 = vadd.f32 %v9928_v35, %v18109_v62  ;;  %v18111_v35 = vld [vmem:[#allocation29_spill] sm:$0xff]  ;;  %v10495_v62 = vld [vmem:[%s17561_s5 + $0x8] sm:$0xff] }
 0x253   :  { %7414 = vmatmul.msk.f32.gmra.mxu0 %vm364_vm1, %v9733_v54 }
 0x254   :  { %v1887_v55 = vadd.f32 %v1505_v22, %v1015_v4  ;;  %7423 = vmatmul.msk.f32.vlgmr.msra.gmra.mxu1 %vm2195_vm4, %v10446_v45  ;;  %v1873_v50 = vadd.f32 %v1499_v34, %v1009_v61 }
 0x258   :  { %v1508_v17 = vpop.f32.mrf.mxu3  ;;  %v10421_v37 = vpop.f32.mrf.mxu2 }
 0x259   :  { %v10423_v11 = vpop.f32.mrf.mxu1  ;;  %v10425_v27 = vpop.f32.mrf.mxu0  ;;  %v1894_v54 = vadd.f32 %v1508_v17, %v1018_v42  ;;  %v10463_v42 = vadd.f32 %v10182_v57, %v1887_v55  ;;  %v18113_v55 = vld [vmem:[#allocation25_spill] sm:$0xff] }
 0x25a   :  { %18102 = vst [vmem:[#allocation183_spill] sm:$0xff] %v10423_v11  ;;  %v1012_v11 = vadd.f32 %v9954_v16, %v18106_v40  ;;  %v1000_v22 = vadd.f32 %v9849_v8, %v18113_v55  ;;  %v18117_v8 = vld [vmem:[#allocation21_spill] sm:$0xff] }
 0x25b   :  { %7415 = vmatmul.msk.f32.gmra.mxu0 %vm364_vm1, %v9754_v0  ;;  %v10453_v16 = vadd.f32 %v10204_v19, %v1894_v54  ;;  %v17599_v54 = vmax.f32 %v10463_v42, 0.0 }
 0x25c   :  { %v1880_v43 = vadd.f32 %v1502_v51, %v1012_v11  ;;  %v1003_v51 = vadd.f32 %v9876_v14, %v18111_v35  ;;  %v10483_v14 = vadd.f32 %v10202_v49, %v1873_v50  ;;  %7424 = vmatmul.msk.f32.gmra.mxu1 %vm2195_vm4, %v10495_v62  ;;  %v18120_v50 = vld [vmem:[#allocation17_spill] sm:$0xff]  ;;  %v18121_v35 = vld [vmem:[#allocation111_spill] sm:$0xff] }
 0x25e   :  { %v1859_v17 = vadd.f32 %v10267_v13, %v1003_v51  ;;  %18114 = vst [vmem:[#allocation39_spill] sm:$0xff] %v10483_v14  ;;  %v18118_v13 = vld [vmem:[#allocation113_spill] sm:$0xff]  ;;  %v994_v51 = vadd.f32 %v18121_v35, %v18120_v50  ;;  %v18127_v50 = vld [vmem:[#allocation10_spill] sm:$0xff] }
 0x25f   :  { %v997_v61 = vadd.f32 %v18118_v13, %v18117_v8  ;;  %v18128_v35 = vld [vmem:[#allocation105_spill] sm:$0xff] }
 0x260   :  { %v1511_v58 = vpop.f32.mrf.mxu3  ;;  %v10435_v46 = vpop.f32.mrf.mxu2  ;;  %v10514_v8 = vadd.f32 %v10234_v44, %v1859_v17 }
 0x261   :  { %v1901_v39 = vadd.f32 %v1511_v58, %v1021_v56  ;;  %v10439_v24 = vpop.f32.mrf.mxu0  ;;  %v10441_v0 = vpop.f32.mrf.mxu1  ;;  %v18110_v56 = vld [vmem:[#allocation33_spill] sm:$0xff]  ;;  %v1845_v55 = vadd.f32 %v10206_v18, %v997_v61 }
 0x262   :  { %18107 = vst [vmem:[#allocation45_spill] sm:$0xff] %v10441_v0  ;;  %v1006_v40 = vadd.f32 %v9902_v2, %v18110_v56 }
 0x263   :  { %v10456_v58 = vadd.f32 %v10176_v1, %v1901_v39  ;;  %7416 = vmatmul.msk.f32.gmra.mxu0 %vm364_vm1, %v9775_v52  ;;  %v10470_v39 = vadd.f32 %v10198_v28, %v1880_v43  ;;  %v17601_v52 = vmax.f32 %v10453_v16, 0.0  ;;  %18116 = vst [vmem:[#allocation33_spill] sm:$0xff] %v10495_v62  ;;  %v1852_v43 = vadd.f32 %v10226_v48, %v1000_v22  ;;  %v18124_v22 = vld [vmem:[#allocation108_spill] sm:$0xff] }
 0x264   :  { %v1866_v4 = vadd.f32 %v10321_v26, %v1006_v40  ;;  %18122 = vst [vmem:[#allocation25_spill] sm:$0xff] %v10514_v8  ;;  %v17603_v48 = vmax.f32 %v10483_v14, 0.0 }
 0x265   :  { %v17604_v59 = vmax.f32 %v10456_v58, 0.0  ;;  %v17600_v40 = vmax.f32 %v10470_v39, 0.0 }
 0x266   :  { %v10503_v56 = vadd.f32 %v10224_v33, %v1866_v4  ;;  %v18123_v4 = vld [vmem:[#allocation13_spill] sm:$0xff] }
 0x267   :  { %2263 = vmatpush.msrb.mxu2 %v17604_v59  ;;  %v991_v13 = vadd.f32 %v18124_v22, %v18123_v4  ;;  %v10536_v4 = vadd.f32 %v10284_v30, %v1845_v55  ;;  %v10548_v22 = vld [vmem:[%s17561_s5 + $0x10] sm:$0xff]  ;;  %v18133_v55 = vld [vmem:[#allocation102_spill] sm:$0xff] }
 0x268   :  { %v10475_v2 = vpop.f32.mrf.mxu2  ;;  %v10477_v34 = vpop.f32.mrf.mxu3  ;;  %18119 = vst [vmem:[#allocation29_spill] sm:$0xff] %v10503_v56  ;;  %v17602_v18 = vmax.f32 %v10503_v56, 0.0  ;;  %7425 = vmatmul.msk.f32.gmra.mxu1 %vm2195_vm4, %v10548_v22  ;;  %v18136_v59 = vld [vmem:[#allocation98_spill] sm:$0xff] }
 0x269   :  { %18112 = vst [vmem:[#allocation11_spill] sm:$0xff] %v10477_v34  ;;  %2264 = vmatpush.msrb.mxu2 %v17601_v52  ;;  %v10487_v26 = vpop.f32.mrf.mxu0  ;;  %v10489_v11 = vpop.f32.mrf.mxu1  ;;  %v1831_v52 = vadd.f32 %v10170_v12, %v991_v13  ;;  %v18132_v12 = vld [vmem:[#allocation8_spill] sm:$0xff] }
 0x26a   :  { %18115 = vst [vmem:[#allocation36_spill] sm:$0xff] %v10489_v11  ;;  %v985_v13 = vadd.f32 %v18133_v55, %v18132_v12 }
 0x26b   :  { %2265 = vmatpush.msrb.mxu2 %v17599_v54  ;;  %7417 = vmatmul.msk.f32.gmra.mxu0 %vm364_vm1, %v9796_v38  ;;  %v1838_v38 = vadd.f32 %v10188_v15, %v994_v51  ;;  %v10523_v54 = vadd.f32 %v10238_v29, %v1852_v43  ;;  %18129 = vst [vmem:[#allocation17_spill] sm:$0xff] %v10536_v4  ;;  %v17612_v51 = vmax.f32 %v10514_v8, 0.0 }
 0x26c   :  { %18131 = vst [vmem:[#allocation13_spill] sm:$0xff] %v10548_v22  ;;  %v10567_v12 = vadd.f32 %v10303_v21, %v1831_v52 }
 0x26d   :  { %2266 = vmatpush.msrb.mxu2 %v17600_v40  ;;  %18125 = vst [vmem:[#allocation21_spill] sm:$0xff] %v10523_v54  ;;  %v988_v40 = vadd.f32 %v18128_v35, %v18127_v50  ;;  %v10556_v35 = vadd.f32 %v10297_v25, %v1838_v38 }
 0x26e   :  { %18138 = vst [vmem:[#allocation10_spill] sm:$0xff] %v10567_v12 }
 0x26f   :  { %2267 = vmatpush.msrb.mxu2 %v17603_v48  ;;  %v1824_v50 = vadd.f32 %v10156_v23, %v988_v40  ;;  %18134 = vst [vmem:[#allocation108_spill] sm:$0xff] %v10556_v35  ;;  %v18135_v48 = vld [vmem:[#allocation6_spill] sm:$0xff]  ;;  %v17606_v23 = vmax.f32 %v10536_v4, 0.0  ;;  %v18139_v40 = vld [vmem:[#allocation156_spill] sm:$0xff] }
 0x270   :  { %v10528_v17 = vpop.f32.mrf.mxu2  ;;  %v10530_v61 = vpop.f32.mrf.mxu3  ;;  %v982_v34 = vadd.f32 %v18136_v59, %v18135_v48 }
 0x271   :  { %18126 = vst [vmem:[#allocation113_spill] sm:$0xff] %v10530_v61  ;;  %2268 = vmatpush.msrb.mxu2 %v17602_v18  ;;  %v10540_v15 = vpop.f32.mrf.mxu0  ;;  %v10542_v43 = vpop.f32.mrf.mxu1  ;;  %v17607_v18 = vmax.f32 %v10523_v54, 0.0  ;;  %v18137_v61 = vld [vmem:[#allocation159_spill] sm:$0xff]  ;;  %v10574_v55 = vadd.f32 %v10343_v7, %v1824_v50  ;;  %v10594_v50 = vld [vmem:[%s17561_s5 + $0x18] sm:$0xff]  ;;  %v18160_v54 = vld [vmem:[#allocation144_spill] sm:$0xff] }
 0x272   :  { %18130 = vst [vmem:[#allocation111_spill] sm:$0xff] %v10542_v43  ;;  %v1817_v0 = vadd.f32 %v18137_v61, %v985_v13  ;;  %v1810_v38 = vadd.f32 %v18139_v40, %v982_v34  ;;  %v17608_v13 = vmax.f32 %v10567_v12, 0.0  ;;  %7426 = vmatmul.msk.f32.gmra.mxu1 %vm2195_vm4, %v10594_v50 }
 0x273   :  { %2269 = vmatpush.msrb.mxu2 %v17612_v51  ;;  %7418 = vmatmul.msk.f32.gmra.mxu0 %vm364_vm1, %v9817_v60  ;;  %18140 = vst [vmem:[#allocation105_spill] sm:$0xff] %v10574_v55  ;;  %v17605_v60 = vmax.f32 %v10556_v35, 0.0  ;;  %v17609_v40 = vmax.f32 %v10574_v55, 0.0  ;;  %v18157_v55 = vld [vmem:[#allocation153_spill] sm:$0xff] }
 0x274   :  { %v10582_v52 = vadd.f32 %v10356_v10, %v1817_v0  ;;  %18144 = vst [vmem:[#allocation98_spill] sm:$0xff] %v10594_v50  ;;  %v10599_v0 = vadd.f32 %v10358_v3, %v1810_v38 }
 0x275   :  { %2270 = vmatpush.msrb.mxu2 %v17607_v18 }
 0x276   :  { %18142 = vst [vmem:[#allocation102_spill] sm:$0xff] %v10582_v52 }
 0x277   :  { %2271 = vmatpush.msrb.mxu2 %v17606_v23  ;;  %18145 = vst [vmem:[#allocation159_spill] sm:$0xff] %v10599_v0  ;;  %v17611_v23 = vmax.f32 %v10599_v0, 0.0  ;;  %v18155_v0 = vld [vmem:[#allocation147_spill] sm:$0xff] }
 0x278   :  { %v1676_v59 = vpop.f32.mrf.mxu2  ;;  %v10579_v48 = vpop.f32.mrf.mxu3 }
 0x279   :  { %18141 = vst [vmem:[#allocation8_spill] sm:$0xff] %v10579_v48  ;;  %2272 = vmatpush.msrb.mxu2 %v17605_v60  ;;  %v10586_v61 = vpop.f32.mrf.mxu0  ;;  %v10588_v34 = vpop.f32.mrf.mxu1  ;;  %v17610_v60 = vmax.f32 %v10582_v52, 0.0  ;;  %v18156_v52 = vld [vmem:[#allocation94_spill] sm:$0xff] }
 0x27a   :  { %18143 = vst [vmem:[#allocation6_spill] sm:$0xff] %v10588_v34  ;;  %v10655_v34 = vld [vmem:[%s17561_s5 + $0x30] sm:$0xff]  ;;  %v1198_v12 = vadd.f32 %v18157_v55, %v18156_v52 }
 0x27b   :  { %2273 = vmatpush.msrb.mxu2 %v17608_v13  ;;  %7419 = vmatmul.msk.f32.gmra.mxu0 %vm364_vm1, %v9856_v47  ;;  %v18163_v55 = vld [vmem:[#allocation141_spill] sm:$0xff] }
 0x27d   :  { %2274 = vmatpush.msrb.mxu2 %v17609_v40  ;;  %v10623_v40 = vld [vmem:[%s17561_s5 + $0x20] sm:$0xff] }
 0x27e   :  { %7427 = vmatmul.msk.f32.gmra.mxu1 %vm2195_vm4, %v10623_v40 }
 0x27f   :  { %2275 = vmatpush.msrb.mxu2 %v17610_v60 }
 0x280   :  { %v1679_v38 = vpop.f32.mrf.mxu2  ;;  %v10612_v18 = vpop.f32.mrf.mxu3 }
 0x281   :  { %18146 = vst [vmem:[#allocation156_spill] sm:$0xff] %v10612_v18  ;;  %2276 = vmatpush.msrb.mxu2 %v17611_v23  ;;  %v10616_v13 = vpop.f32.mrf.mxu0  ;;  %v10618_v47 = vpop.f32.mrf.mxu1  ;;  %v10640_v18 = vld [vmem:[%s17561_s5 + $0x28] sm:$0xff] }
 0x282   :  { %18147 = vst [vmem:[#allocation184_spill] sm:$0xff] %v10618_v47  ;;  %7431 = vmatmul.msk.f32.vlgmr.msrb.gmra.mxu2 %vm2195_vm4, %v10446_v45  ;;  %v18153_v47 = vld [vmem:[#allocation150_spill] sm:$0xff] }
 0x283   :  { %7420 = vmatmul.msk.f32.gmra.mxu0 %vm364_vm1, %v9883_v32 }
 0x286   :  { %7428 = vmatmul.msk.f32.gmra.mxu1 %vm2195_vm4, %v10640_v18 }
 0x288   :  { %v1682_v60 = vpop.f32.mrf.mxu2  ;;  %v10631_v23 = vpop.f32.mrf.mxu3 }
 0x289   :  { %18148 = vst [vmem:[#allocation185_spill] sm:$0xff] %v10631_v23  ;;  %v10633_v51 = vpop.f32.mrf.mxu0  ;;  %v10635_v48 = vpop.f32.mrf.mxu1 }
 0x28a   :  { %18149 = vst [vmem:[#allocation186_spill] sm:$0xff] %v10635_v48  ;;  %7432 = vmatmul.msk.f32.gmra.mxu2 %vm2195_vm4, %v10495_v62  ;;  %v18154_v48 = vld [vmem:[#allocation86_spill] sm:$0xff] }
 0x28b   :  { %7421 = vmatmul.msk.f32.gmra.mxu0 %vm364_vm1, %v9909_v41  ;;  %v18152_v41 = vld [vmem:[#allocation90_spill] sm:$0xff] }
 0x28e   :  { %7429 = vmatmul.msk.f32.gmra.mxu1 %vm2195_vm4, %v10655_v34 }
 0x290   :  { %v1685_v32 = vpop.f32.mrf.mxu2  ;;  %v10648_v23 = vpop.f32.mrf.mxu3 }
 0x291   :  { %18150 = vst [vmem:[#allocation187_spill] sm:$0xff] %v10648_v23  ;;  %v1564_v11 = vpop.f32.mrf.mxu0  ;;  %v10650_v43 = vpop.f32.mrf.mxu1  ;;  %v1195_v23 = vadd.f32 %v18153_v47, %v18152_v41  ;;  %v10678_v47 = vld [vmem:[%s17561_s5 + $0x38] sm:$0xff]  ;;  %v18169_v41 = vld [vmem:[#allocation35_spill] sm:$0xff] }
 0x292   :  { %18151 = vst [vmem:[#allocation188_spill] sm:$0xff] %v10650_v43  ;;  %7433 = vmatmul.msk.f32.gmra.mxu2 %vm2195_vm4, %v10548_v22  ;;  %v1192_v43 = vadd.f32 %v18155_v0, %v18154_v48  ;;  %v18159_v22 = vld [vmem:[#allocation82_spill] sm:$0xff] }
 0x293   :  { %7422 = vmatmul.msk.f32.gmra.mxu0 %vm364_vm1, %v9935_v6  ;;  %v1897_v35 = vadd.f32 %v1685_v32, %v1195_v23  ;;  %v1189_v8 = vadd.f32 %v18160_v54, %v18159_v22  ;;  %v18162_v23 = vld [vmem:[#allocation78_spill] sm:$0xff]  ;;  %v18166_v22 = vld [vmem:[#allocation75_spill] sm:$0xff] }
 0x294   :  { %v1890_v56 = vadd.f32 %v1682_v60, %v1192_v43  ;;  %v1186_v48 = vadd.f32 %v18163_v55, %v18162_v23  ;;  %v18171_v23 = vld [vmem:[#allocation71_spill] sm:$0xff]  ;;  %v18175_v55 = vld [vmem:[#allocation145_spill] sm:$0xff] }
 0x295   :  { %v1883_v54 = vadd.f32 %v1679_v38, %v1189_v8  ;;  %v18172_v8 = vld [vmem:[#allocation136_spill] sm:$0xff] }
 0x296   :  { %7430 = vmatmul.msk.f32.gmra.mxu1 %vm2195_vm4, %v10678_v47  ;;  %v1876_v52 = vadd.f32 %v1676_v59, %v1186_v48  ;;  %v10695_v0 = vadd.f32 %v10182_v57, %v1890_v56  ;;  %v1180_v38 = vadd.f32 %v18172_v8, %v18171_v23  ;;  %v18174_v56 = vld [vmem:[#allocation31_spill] sm:$0xff]  ;;  %v18178_v23 = vld [vmem:[#allocation68_spill] sm:$0xff]  ;;  %v18179_v8 = vld [vmem:[#allocation134_spill] sm:$0xff] }
 0x297   :  { %v1074_v48 = vadd.f32 %v18175_v55, %v18174_v56  ;;  %v18181_v55 = vld [vmem:[#allocation27_spill] sm:$0xff] }
 0x298   :  { %v1688_v4 = vpop.f32.mrf.mxu2  ;;  %v10669_v62 = vpop.f32.mrf.mxu3  ;;  %18168 = vst [vmem:[#allocation94_spill] sm:$0xff] %v10695_v0  ;;  %v17636_v56 = vmax.f32 %v10695_v0, 0.0  ;;  %v18279_v0 = vld [vmem:[#allocation115_spill] sm:$0xff] }
 0x299   :  { %18158 = vst [vmem:[#allocation90_spill] sm:$0xff] %v10669_v62  ;;  %v1904_v14 = vadd.f32 %v1688_v4, %v1198_v12  ;;  %v1567_v45 = vpop.f32.mrf.mxu0  ;;  %v10673_v6 = vpop.f32.mrf.mxu1  ;;  %v10687_v4 = vadd.f32 %v10204_v19, %v1897_v35  ;;  %v18167_v12 = vld [vmem:[#allocation138_spill] sm:$0xff]  ;;  %v18170_v62 = vld [vmem:[#allocation148_spill] sm:$0xff] }
 0x29a   :  { %18161 = vst [vmem:[#allocation150_spill] sm:$0xff] %v10673_v6  ;;  %7434 = vmatmul.msk.f32.gmra.mxu2 %vm2195_vm4, %v10594_v50  ;;  %v1183_v60 = vadd.f32 %v18167_v12, %v18166_v22  ;;  %v1077_v50 = vadd.f32 %v18170_v62, %v18169_v41  ;;  %v18176_v22 = vld [vmem:[#allocation38_spill] sm:$0xff]  ;;  %v18177_v12 = vld [vmem:[#allocation151_spill] sm:$0xff] }
 0x29b   :  { %18164 = vst [vmem:[#allocation86_spill] sm:$0xff] %v10687_v4  ;;  %v10690_v43 = vadd.f32 %v10176_v1, %v1904_v14  ;;  %v10704_v14 = vadd.f32 %v10198_v28, %v1883_v54  ;;  %v17633_v59 = vmax.f32 %v10687_v4, 0.0  ;;  %v1080_v6 = vadd.f32 %v18177_v12, %v18176_v22  ;;  %v18186_v4 = vld [vmem:[#allocation23_spill] sm:$0xff] }
 0x29c   :  { %v1869_v35 = vadd.f32 %v10528_v17, %v1183_v60  ;;  %v1895_v62 = vadd.f32 %v1567_v45, %v1077_v50  ;;  %v1177_v17 = vadd.f32 %v18179_v8, %v18178_v23  ;;  %v1862_v54 = vadd.f32 %v10475_v2, %v1180_v38  ;;  %v18182_v45 = vld [vmem:[#allocation142_spill] sm:$0xff]  ;;  %v18183_v2 = vld [vmem:[#allocation65_spill] sm:$0xff]  ;;  %v18184_v38 = vld [vmem:[#allocation131_spill] sm:$0xff] }
 0x29d   :  { %18165 = vst [vmem:[#allocation147_spill] sm:$0xff] %v10690_v43  ;;  %v17631_v32 = vmax.f32 %v10690_v43, 0.0  ;;  %v10719_v60 = vadd.f32 %v10202_v49, %v1876_v52  ;;  %v1071_v50 = vadd.f32 %v18182_v45, %v18181_v55  ;;  %v1888_v22 = vadd.f32 %v1564_v11, %v1074_v48  ;;  %v18187_v55 = vld [vmem:[#allocation139_spill] sm:$0xff] }
 0x29e   :  { %18173 = vst [vmem:[#allocation153_spill] sm:$0xff] %v10704_v14  ;;  %v1174_v52 = vadd.f32 %v18184_v38, %v18183_v2  ;;  %v1855_v23 = vadd.f32 %v10435_v46, %v1177_v17  ;;  %v10734_v8 = vadd.f32 %v10224_v33, %v1869_v35  ;;  %v1068_v11 = vadd.f32 %v18187_v55, %v18186_v4  ;;  %v18188_v46 = vld [vmem:[#allocation62_spill] sm:$0xff]  ;;  %v18189_v17 = vld [vmem:[#allocation128_spill] sm:$0xff] }
 0x29f   :  { %2386 = vmatpush.msra.mxu2 %v17631_v32  ;;  %18180 = vst [vmem:[#allocation82_spill] sm:$0xff] %v10719_v60  ;;  %v1171_v35 = vadd.f32 %v18189_v17, %v18188_v46  ;;  %v10752_v2 = vadd.f32 %v10234_v44, %v1862_v54  ;;  %v17637_v4 = vmax.f32 %v10719_v60, 0.0  ;;  %v18193_v46 = vld [vmem:[#allocation58_spill] sm:$0xff]  ;;  %v18259_v60 = vld [vmem:[#allocation124_spill] sm:$0xff] }
 0x2a0   :  { %v10713_v41 = vpop.f32.mrf.mxu3  ;;  %18185 = vst [vmem:[#allocation144_spill] sm:$0xff] %v10734_v8  ;;  %v1848_v45 = vadd.f32 %v10421_v37, %v1174_v52  ;;  %v1874_v38 = vadd.f32 %v10616_v13, %v1068_v11  ;;  %v18194_v37 = vld [vmem:[#allocation125_spill] sm:$0xff]  ;;  %v10768_v17 = vadd.f32 %v10238_v29, %v1855_v23  ;;  %v18197_v13 = vld [vmem:[#allocation135_spill] sm:$0xff]  ;;  %v18198_v23 = vld [vmem:[#allocation54_spill] sm:$0xff] }
 0x2a1   :  { %2387 = vmatpush.msra.mxu2 %v17633_v59  ;;  %v1570_v32 = vpop.f32.mrf.mxu0  ;;  %v10723_v43 = vpop.f32.mrf.mxu1  ;;  %v17635_v59 = vmax.f32 %v10704_v14, 0.0  ;;  %18190 = vst [vmem:[#allocation78_spill] sm:$0xff] %v10752_v2  ;;  %v1168_v52 = vadd.f32 %v18194_v37, %v18193_v46  ;;  %v1841_v54 = vadd.f32 %v10413_v63, %v1171_v35  ;;  %v18199_v35 = vld [vmem:[#allocation122_spill] sm:$0xff]  ;;  %v18275_v14 = vld [vmem:[#allocation91_spill] sm:$0xff] }
 0x2a2   :  { %v1902_v12 = vadd.f32 %v1570_v32, %v1080_v6  ;;  %7435 = vmatmul.msk.f32.gmra.mxu2 %vm2195_vm4, %v10623_v40  ;;  %v1881_v6 = vadd.f32 %v10633_v51, %v1071_v50  ;;  %v10743_v32 = vadd.f32 %v10204_v19, %v1895_v62  ;;  %v18191_v51 = vld [vmem:[#allocation19_spill] sm:$0xff]  ;;  %v18192_v50 = vld [vmem:[#allocation137_spill] sm:$0xff]  ;;  %18195 = vst [vmem:[#allocation141_spill] sm:$0xff] %v10768_v17 }
 0x2a3   :  { %2388 = vmatpush.msra.mxu2 %v17636_v56  ;;  %v1065_v62 = vadd.f32 %v18192_v50, %v18191_v51  ;;  %v17639_v51 = vmax.f32 %v10734_v8, 0.0  ;;  %v18196_v50 = vld [vmem:[#allocation15_spill] sm:$0xff]  ;;  %v1165_v46 = vadd.f32 %v18199_v35, %v18198_v23  ;;  %v1834_v37 = vadd.f32 %v10399_v53, %v1168_v52  ;;  %v18205_v52 = vld [vmem:[#allocation50_spill] sm:$0xff] }
 0x2a4   :  { %v10746_v48 = vadd.f32 %v10176_v1, %v1902_v12  ;;  %v10761_v12 = vadd.f32 %v10182_v57, %v1888_v22  ;;  %v1062_v11 = vadd.f32 %v18197_v13, %v18196_v50  ;;  %v18202_v50 = vld [vmem:[#allocation12_spill] sm:$0xff]  ;;  %v10801_v23 = vadd.f32 %v10202_v49, %v1874_v38  ;;  %v18206_v35 = vld [vmem:[#allocation119_spill] sm:$0xff] }
 0x2a5   :  { %2389 = vmatpush.msra.mxu2 %v17635_v59  ;;  %v1867_v22 = vadd.f32 %v10586_v61, %v1065_v62  ;;  %v10777_v59 = vadd.f32 %v10198_v28, %v1881_v6  ;;  %v18203_v13 = vld [vmem:[#allocation132_spill] sm:$0xff]  ;;  %v18204_v53 = vmax.f32 %v10743_v32, 0.0  ;;  %v1827_v62 = vadd.f32 %v10367_v20, %v1165_v46 }
 0x2a6   :  { %v17638_v55 = vmax.f32 %v10746_v48, 0.0  ;;  %v1860_v63 = vadd.f32 %v10540_v15, %v1062_v11  ;;  %v18208_v15 = vmax.f32 %v10752_v2, 0.0  ;;  %v18209_v11 = vld [vmem:[#allocation9_spill] sm:$0xff]  ;;  %v18213_v46 = vld [vmem:[#allocation116_spill] sm:$0xff]  ;;  %v10830_v38 = vadd.f32 %v10303_v21, %v1834_v37 }
 0x2a7   :  { %2390 = vmatpush.msra.mxu2 %v17637_v4  ;;  %v10788_v4 = vadd.f32 %v10284_v30, %v1848_v45  ;;  %v10821_v45 = vadd.f32 %v10224_v33, %v1867_v22  ;;  %v18217_v22 = vld [vmem:[#allocation126_spill] sm:$0xff]  ;;  %v10846_v37 = vadd.f32 %v10343_v7, %v1827_v62 }
 0x2a8   :  { %v10779_v56 = vpop.f32.mrf.mxu3  ;;  %2304 = vmatpush.msrb.mxu3 %v17638_v55  ;;  %v1059_v55 = vadd.f32 %v18203_v13, %v18202_v50  ;;  %v10812_v50 = vadd.f32 %v10297_v25, %v1841_v54  ;;  %v18210_v13 = vld [vmem:[#allocation129_spill] sm:$0xff]  ;;  %v18212_v54 = vld [vmem:[#allocation46_spill] sm:$0xff]  ;;  %18214 = vst [vmem:[#allocation148_spill] sm:$0xff] %v10830_v38  ;;  %v10839_v20 = vadd.f32 %v10234_v44, %v1860_v63 }
 0x2a9   :  { %18200 = vst [vmem:[#allocation75_spill] sm:$0xff] %v10788_v4  ;;  %2391 = vmatpush.msra.mxu2 %v17639_v51  ;;  %v10792_v61 = vpop.f32.mrf.mxu1  ;;  %v10794_v6 = vpop.f32.mrf.mxu0  ;;  %v1162_v51 = vadd.f32 %v18206_v35, %v18205_v52  ;;  %v18211_v52 = vmax.f32 %v10761_v12, 0.0  ;;  %v1159_v35 = vadd.f32 %v18213_v46, %v18212_v54  ;;  %v18218_v54 = vmax.f32 %v10777_v59, 0.0 }
 0x2aa   :  { %18201 = vst [vmem:[#allocation138_spill] sm:$0xff] %v10794_v6  ;;  %7436 = vmatmul.msk.f32.gmra.mxu2 %vm2195_vm4, %v10640_v18  ;;  %2305 = vmatpush.msrb.mxu3 %v18204_v53  ;;  %v1056_v6 = vadd.f32 %v18210_v13, %v18209_v11  ;;  %v1853_v53 = vadd.f32 %v10487_v26, %v1059_v55  ;;  %v18215_v11 = vmax.f32 %v10768_v17, 0.0  ;;  %v17640_v26 = vmax.f32 %v10788_v4, 0.0  ;;  %v18216_v55 = vld [vmem:[#allocation7_spill] sm:$0xff]  ;;  %v18255_v17 = vld [vmem:[#allocation21_spill] sm:$0xff] }
 0x2ab   :  { %18207 = vst [vmem:[#allocation35_spill] sm:$0xff] %v10812_v50  ;;  %2392 = vmatpush.msra.mxu2 %v18208_v15  ;;  %v1820_v15 = vadd.f32 %v10323_v5, %v1162_v51  ;;  %v1053_v13 = vadd.f32 %v18217_v22, %v18216_v55  ;;  %v17642_v5 = vmax.f32 %v10801_v23, 0.0  ;;  %v1813_v51 = vadd.f32 %v10269_v9, %v1159_v35 }
 0x2ac   :  { %2306 = vmatpush.msrb.mxu3 %v18211_v52  ;;  %v1846_v52 = vadd.f32 %v10439_v24, %v1056_v6  ;;  %18219 = vst [vmem:[#allocation71_spill] sm:$0xff] %v10846_v37  ;;  %v17641_v46 = vmax.f32 %v10812_v50, 0.0  ;;  %v18221_v24 = vld [vmem:[#allocation123_spill] sm:$0xff]  ;;  %v10855_v55 = vadd.f32 %v10238_v29, %v1853_v53  ;;  %v17643_v9 = vmax.f32 %v10821_v45, 0.0  ;;  %v18224_v53 = vld [vmem:[#allocation57_spill] sm:$0xff]  ;;  %v18231_v50 = vld [vmem:[#allocation178_spill] sm:$0xff] }
 0x2ad   :  { %2393 = vmatpush.msra.mxu2 %v18215_v11  ;;  %v18220_v11 = vld [vmem:[#allocation61_spill] sm:$0xff]  ;;  %v1839_v63 = vadd.f32 %v10425_v27, %v1053_v13  ;;  %v10863_v62 = vadd.f32 %v10356_v10, %v1820_v15  ;;  %v17644_v27 = vmax.f32 %v10830_v38, 0.0  ;;  %v18225_v13 = vld [vmem:[#allocation120_spill] sm:$0xff]  ;;  %v17648_v15 = vmax.f32 %v10839_v20, 0.0 }
 0x2ae   :  { %2307 = vmatpush.msrb.mxu3 %v18218_v54  ;;  %v1050_v6 = vadd.f32 %v18221_v24, %v18220_v11  ;;  %v1047_v11 = vadd.f32 %v18225_v13, %v18224_v53  ;;  %v17647_v53 = vmax.f32 %v10846_v37, 0.0  ;;  %v18253_v37 = vld [vmem:[#allocation63_spill] sm:$0xff]  ;;  %v18256_v2 = vmax.f32 %v18255_v17, 0.0  ;;  %v18264_v17 = vld [vmem:[#allocation121_spill] sm:$0xff] }
 0x2af   :  { %2394 = vmatpush.msra.mxu2 %v17640_v26  ;;  %18222 = vst [vmem:[#allocation136_spill] sm:$0xff] %v10863_v62  ;;  %v10876_v26 = vadd.f32 %v10284_v30, %v1846_v52 }
 0x2b0   :  { %v10857_v22 = vpop.f32.mrf.mxu3  ;;  %2308 = vmatpush.msrb.mxu3 %v17642_v5  ;;  %v1832_v24 = vadd.f32 %v10417_v31, %v1050_v6  ;;  %v18227_v31 = vld [vmem:[#allocation53_spill] sm:$0xff]  ;;  %v1825_v13 = vadd.f32 %v10405_v36, %v1047_v11  ;;  %v10893_v5 = vadd.f32 %v10297_v25, %v1839_v63 }
 0x2b1   :  { %2395 = vmatpush.msra.mxu2 %v17641_v46  ;;  %v10867_v35 = vpop.f32.mrf.mxu1  ;;  %v10869_v54 = vpop.f32.mrf.mxu0  ;;  %v10884_v46 = vadd.f32 %v10358_v3, %v1813_v51  ;;  %v18228_v6 = vld [vmem:[#allocation117_spill] sm:$0xff]  ;;  %v17650_v51 = vmax.f32 %v10863_v62, 0.0  ;;  %v17655_v63 = vmax.f32 %v10876_v26, 0.0 }
 0x2b2   :  { %18223 = vst [vmem:[#allocation31_spill] sm:$0xff] %v10869_v54  ;;  %7437 = vmatmul.msk.f32.gmra.mxu2 %vm2195_vm4, %v10655_v34  ;;  %2309 = vmatpush.msrb.mxu3 %v17643_v9  ;;  %v1044_v52 = vadd.f32 %v18228_v6, %v18227_v31  ;;  %v17656_v9 = vmax.f32 %v10855_v55, 0.0  ;;  %v18230_v54 = vld [vmem:[#allocation114_spill] sm:$0xff]  ;;  %v10905_v36 = vadd.f32 %v10303_v21, %v1832_v24  ;;  %v18232_v6 = vld [vmem:[#allocation173_spill] sm:$0xff] }
 0x2b3   :  { %18226 = vst [vmem:[#allocation145_spill] sm:$0xff] %v10884_v46  ;;  %2396 = vmatpush.msra.mxu2 %v17644_v27  ;;  %v18229_v27 = vld [vmem:[#allocation49_spill] sm:$0xff]  ;;  %v17649_v11 = vmax.f32 %v10884_v46, 0.0  ;;  %v18252_v46 = vld [vmem:[#allocation127_spill] sm:$0xff] }
 0x2b4   :  { %2310 = vmatpush.msrb.mxu3 %v17648_v15  ;;  %v1041_v38 = vadd.f32 %v18230_v54, %v18229_v27  ;;  %v1818_v31 = vadd.f32 %v18231_v50, %v1044_v52  ;;  %v10915_v15 = vadd.f32 %v10343_v7, %v1825_v13  ;;  %v17651_v50 = vmax.f32 %v10893_v5, 0.0 }
 0x2b5   :  { %2397 = vmatpush.msra.mxu2 %v17647_v53  ;;  %v18236_v13 = vmax.f32 %v10456_v58, 0.0 }
 0x2b6   :  { %2311 = vmatpush.msrb.mxu3 %v17656_v9  ;;  %v1811_v53 = vadd.f32 %v18232_v6, %v1041_v38  ;;  %18233 = vst [vmem:[#allocation38_spill] sm:$0xff] %v10915_v15  ;;  %v10927_v52 = vadd.f32 %v10356_v10, %v1818_v31  ;;  %v17652_v38 = vmax.f32 %v10905_v36, 0.0  ;;  %v17654_v31 = vmax.f32 %v10915_v15, 0.0  ;;  %v18249_v9 = vld [vmem:[#allocation25_spill] sm:$0xff] }
 0x2b7   :  { %2398 = vmatpush.msra.mxu2 %v17650_v51  ;;  %v18291_v15 = vld [vmem:[#allocation13_spill] sm:$0xff] }
 0x2b8   :  { %v10917_v54 = vpop.f32.mrf.mxu3  ;;  %2312 = vmatpush.msrb.mxu3 %v17655_v63  ;;  %18235 = vst [vmem:[#allocation68_spill] sm:$0xff] %v10927_v52  ;;  %v10937_v6 = vadd.f32 %v10358_v3, %v1811_v53  ;;  %v17653_v51 = vmax.f32 %v10927_v52, 0.0 }
 0x2b9   :  { %2399 = vmatpush.msra.mxu2 %v17649_v11  ;;  %v1623_v27 = vpop.f32.mrf.mxu1  ;;  %v10924_v24 = vpop.f32.mrf.mxu0  ;;  %v18238_v11 = vmax.f32 %v10453_v16, 0.0 }
 0x2ba   :  { %18234 = vst [vmem:[#allocation151_spill] sm:$0xff] %v10924_v24  ;;  %7438 = vmatmul.msk.f32.gmra.mxu2 %vm2195_vm4, %v10678_v47  ;;  %2313 = vmatpush.msrb.mxu3 %v17651_v50  ;;  %v18239_v50 = vmax.f32 %v10463_v42, 0.0  ;;  %v17660_v53 = vmax.f32 %v10937_v6, 0.0  ;;  %v18243_v42 = vld [vmem:[#allocation39_spill] sm:$0xff]  ;;  %v18250_v24 = vmax.f32 %v18249_v9, 0.0 }
 0x2bb   :  { %2582 = vmatpush.msrb.mxu2 %v18236_v13  ;;  %18237 = vst [vmem:[#allocation134_spill] sm:$0xff] %v10937_v6  ;;  %v18240_v13 = vmax.f32 %v10470_v39, 0.0  ;;  %v18247_v39 = vld [vmem:[#allocation59_spill] sm:$0xff] }
 0x2bc   :  { %2314 = vmatpush.msrb.mxu3 %v17652_v38 }
 0x2bd   :  { %2583 = vmatpush.msrb.mxu2 %v18238_v11  ;;  %v18242_v11 = vld [vmem:[#allocation42_spill] sm:$0xff] }
 0x2be   :  { %2315 = vmatpush.msrb.mxu3 %v17654_v31 }
 0x2bf   :  { %2584 = vmatpush.msrb.mxu2 %v18239_v50  ;;  %v18244_v50 = vmax.f32 %v18243_v42, 0.0 }
 0x2c0   :  { %v1741_v58 = vpop.f32.mrf.mxu3  ;;  %2316 = vmatpush.msrb.mxu3 %v17653_v51  ;;  %v18245_v51 = vld [vmem:[#allocation29_spill] sm:$0xff] }
 0x2c1   :  { %2585 = vmatpush.msrb.mxu2 %v18240_v13  ;;  %v1626_v38 = vpop.f32.mrf.mxu1  ;;  %v10954_v16 = vpop.f32.mrf.mxu0  ;;  %v18246_v31 = vmax.f32 %v18245_v51, 0.0  ;;  %v18248_v13 = vld [vmem:[#allocation130_spill] sm:$0xff] }
 0x2c2   :  { %18241 = vst [vmem:[#allocation27_spill] sm:$0xff] %v10954_v16  ;;  %7455 = vmatmul.msk.f32.vlgmr.msra.gmra.mxu2 %vm2195_vm4, %v18242_v11  ;;  %2317 = vmatpush.msrb.mxu3 %v17660_v53  ;;  %v1136_v63 = vadd.f32 %v18248_v13, %v18247_v39  ;;  %v18251_v16 = vld [vmem:[#allocation55_spill] sm:$0xff]  ;;  %v18254_v53 = vld [vmem:[#allocation133_spill] sm:$0xff] }
 0x2c3   :  { %2586 = vmatpush.msrb.mxu2 %v18244_v50  ;;  %7439 = vmatmul.msk.f32.vlgmr.msrb.gmra.mxu3 %vm2195_vm4, %v18242_v11  ;;  %v1133_v62 = vadd.f32 %v18252_v46, %v18251_v16  ;;  %v1139_v4 = vadd.f32 %v18254_v53, %v18253_v37  ;;  %v18261_v46 = vld [vmem:[#allocation17_spill] sm:$0xff]  ;;  %v18263_v37 = vld [vmem:[#allocation47_spill] sm:$0xff] }
 0x2c4   :  { %v1896_v42 = vadd.f32 %v1626_v38, %v1136_v63  ;;  %v18262_v16 = vmax.f32 %v18261_v46, 0.0  ;;  %v18271_v46 = vld [vmem:[#allocation118_spill] sm:$0xff] }
 0x2c5   :  { %2587 = vmatpush.msrb.mxu2 %v18246_v31  ;;  %v18258_v31 = vld [vmem:[#allocation51_spill] sm:$0xff]  ;;  %v1889_v13 = vadd.f32 %v1623_v27, %v1133_v62  ;;  %v18268_v27 = vld [vmem:[#allocation108_spill] sm:$0xff] }
 0x2c6   :  { %v1130_v39 = vadd.f32 %v18259_v60, %v18258_v31  ;;  %v10990_v38 = vadd.f32 %v10204_v19, %v1896_v42  ;;  %v18269_v53 = vmax.f32 %v18268_v27, 0.0  ;;  %v18270_v31 = vld [vmem:[#allocation43_spill] sm:$0xff]  ;;  %v18272_v42 = vld [vmem:[#allocation104_spill] sm:$0xff] }
 0x2c7   :  { %2588 = vmatpush.msrb.mxu2 %v18250_v24  ;;  %v18260_v24 = vld [vmem:[#allocation33_spill] sm:$0xff] }
 0x2c8   :  { %v1744_v50 = vpop.f32.mrf.mxu3  ;;  %v1882_v63 = vadd.f32 %v10867_v35, %v1130_v39  ;;  %v18273_v39 = vld [vmem:[#allocation168_spill] sm:$0xff] }
 0x2c9   :  { %2589 = vmatpush.msrb.mxu2 %v18256_v2  ;;  %v1629_v8 = vpop.f32.mrf.mxu1  ;;  %v10976_v51 = vpop.f32.mrf.mxu0  ;;  %v1127_v2 = vadd.f32 %v18264_v17, %v18263_v37  ;;  %v11003_v37 = vadd.f32 %v10182_v57, %v1889_v13  ;;  %v18274_v17 = vld [vmem:[#allocation110_spill] sm:$0xff] }
 0x2ca   :  { %18257 = vst [vmem:[#allocation142_spill] sm:$0xff] %v10976_v51  ;;  %v1903_v9 = vadd.f32 %v1629_v8, %v1139_v4  ;;  %7456 = vmatmul.msk.f32.gmra.mxu2 %vm2195_vm4, %v18260_v24  ;;  %v18266_v8 = vld [vmem:[#allocation107_spill] sm:$0xff]  ;;  %v18267_v4 = vld [vmem:[#allocation170_spill] sm:$0xff]  ;;  %v1257_v6 = vadd.f32 %v18275_v14, %v18274_v17  ;;  %v11016_v13 = vadd.f32 %v10198_v28, %v1882_v63  ;;  %v18282_v14 = vld [vmem:[#allocation112_spill] sm:$0xff] }
 0x2cb   :  { %2590 = vmatpush.msrb.mxu2 %v18262_v16  ;;  %7440 = vmatmul.msk.f32.gmra.mxu3 %vm2195_vm4, %v18260_v24  ;;  %v1254_v62 = vadd.f32 %v18267_v4, %v18266_v8  ;;  %v1124_v16 = vadd.f32 %v18271_v46, %v18270_v31  ;;  %v1875_v51 = vadd.f32 %v10792_v61, %v1127_v2  ;;  %v18276_v4 = vld [vmem:[#allocation10_spill] sm:$0xff]  ;;  %v18287_v63 = vld [vmem:[#allocation97_spill] sm:$0xff] }
 0x2cc   :  { %v10993_v60 = vadd.f32 %v10176_v1, %v1903_v9  ;;  %v1251_v9 = vadd.f32 %v18273_v39, %v18272_v42  ;;  %v18277_v27 = vmax.f32 %v18276_v4, 0.0  ;;  %18280 = vst [vmem:[#allocation131_spill] sm:$0xff] %v11016_v13  ;;  %v18281_v42 = vld [vmem:[#allocation37_spill] sm:$0xff]  ;;  %v18284_v39 = vld [vmem:[#allocation166_spill] sm:$0xff] }
 0x2cd   :  { %2591 = vmatpush.msrb.mxu2 %v18269_v53  ;;  %v1898_v8 = vadd.f32 %v1744_v50, %v1254_v62  ;;  %v18278_v53 = vld [vmem:[#allocation40_spill] sm:$0xff]  ;;  %v1868_v61 = vadd.f32 %v10723_v43, %v1124_v16  ;;  %v1118_v50 = vadd.f32 %v18282_v14, %v18281_v42  ;;  %v18283_v62 = vld [vmem:[#allocation101_spill] sm:$0xff]  ;;  %v11033_v46 = vadd.f32 %v10202_v49, %v1875_v51  ;;  %v18293_v14 = vld [vmem:[#allocation102_spill] sm:$0xff] }
 0x2ce   :  { %18265 = vst [vmem:[#allocation65_spill] sm:$0xff] %v10993_v60  ;;  %v17671_v35 = vmax.f32 %v10993_v60, 0.0  ;;  %v1121_v31 = vadd.f32 %v18279_v0, %v18278_v53  ;;  %v1248_v17 = vadd.f32 %v18284_v39, %v18283_v62  ;;  %v1891_v4 = vadd.f32 %v1741_v58, %v1251_v9  ;;  %v18285_v0 = vld [vmem:[#allocation105_spill] sm:$0xff]  ;;  %v18288_v16 = vld [vmem:[#allocation164_spill] sm:$0xff]  ;;  %v18289_v60 = vld [vmem:[#allocation150_spill] sm:$0xff] }
 0x2cf   :  { %2592 = vmatpush.msrb.mxu2 %v18277_v27  ;;  %v18286_v53 = vmax.f32 %v18285_v0, 0.0  ;;  %v1245_v52 = vadd.f32 %v18288_v16, %v18287_v63  ;;  %18290 = vst [vmem:[#allocation23_spill] sm:$0xff] %v11033_v46  ;;  %v18292_v42 = vmax.f32 %v10990_v38, 0.0  ;;  %v2080_v9 = vadd.f32 %v10204_v19, %v1898_v8  ;;  %v18295_v51 = vld [vmem:[#allocation34_spill] sm:$0xff]  ;;  %v18297_v39 = vld [vmem:[#allocation188_spill] sm:$0xff]  ;;  %v18299_v8 = vld [vmem:[#allocation93_spill] sm:$0xff] }
 0x2d0   :  { %v1747_v2 = vpop.f32.mrf.mxu3  ;;  %2345 = vmatpush.msrb.mxu1 %v17671_v35  ;;  %v1861_v35 = vadd.f32 %v18289_v60, %v1121_v31  ;;  %v1884_v58 = vadd.f32 %v10917_v54, %v1248_v17  ;;  %v18294_v62 = vmax.f32 %v18293_v14, 0.0  ;;  %v18296_v60 = vld [vmem:[#allocation109_spill] sm:$0xff]  ;;  %v1854_v0 = vadd.f32 %v18297_v39, %v1118_v50  ;;  %v18300_v17 = vld [vmem:[#allocation162_spill] sm:$0xff]  ;;  %v18301_v14 = vld [vmem:[#allocation159_spill] sm:$0xff] }
 0x2d1   :  { %v1905_v27 = vadd.f32 %v1747_v2, %v1257_v6  ;;  %2593 = vmatpush.msrb.mxu2 %v18286_v53  ;;  %v11027_v43 = vpop.f32.mrf.mxu0  ;;  %v17673_v6 = vmax.f32 %v11003_v37, 0.0  ;;  %v1115_v31 = vadd.f32 %v18296_v60, %v18295_v51  ;;  %v11051_v53 = vadd.f32 %v10224_v33, %v1868_v61  ;;  %v18303_v50 = vld [vmem:[#allocation30_spill] sm:$0xff] }
 0x2d2   :  { %7457 = vmatmul.msk.f32.gmra.mxu2 %vm2195_vm4, %v18291_v15  ;;  %2346 = vmatpush.msrb.mxu1 %v18292_v42  ;;  %v17674_v54 = vmax.f32 %v11016_v13, 0.0  ;;  %v1877_v63 = vadd.f32 %v10857_v22, %v1245_v52  ;;  %v2073_v16 = vadd.f32 %v10182_v57, %v1891_v4  ;;  %v18304_v51 = vld [vmem:[#allocation106_spill] sm:$0xff]  ;;  %v18307_v22 = vld [vmem:[#allocation89_spill] sm:$0xff]  ;;  %v18308_v52 = vld [vmem:[#allocation160_spill] sm:$0xff] }
 0x2d3   :  { %v2087_v2 = vadd.f32 %v10176_v1, %v1905_v27  ;;  %2594 = vmatpush.msrb.mxu2 %v18294_v62  ;;  %7441 = vmatmul.msk.f32.gmra.mxu3 %vm2195_vm4, %v18291_v15  ;;  %18298 = vst [vmem:[#allocation139_spill] sm:$0xff] %v11051_v53  ;;  %v1242_v27 = vadd.f32 %v18300_v17, %v18299_v8  ;;  %v18302_v62 = vmax.f32 %v18301_v14, 0.0  ;;  %v18305_v60 = vld [vmem:[#allocation186_spill] sm:$0xff]  ;;  %v17675_v8 = vmax.f32 %v11033_v46, 0.0  ;;  %v18324_v46 = vld [vmem:[#allocation111_spill] sm:$0xff] }
 0x2d4   :  { %2347 = vmatpush.msrb.mxu1 %v17673_v6  ;;  %v1112_v61 = vadd.f32 %v18304_v51, %v18303_v50  ;;  %v1847_v39 = vadd.f32 %v18305_v60, %v1115_v31  ;;  %v11066_v6 = vadd.f32 %v10234_v44, %v1861_v35  ;;  %v1239_v4 = vadd.f32 %v18308_v52, %v18307_v22  ;;  %v18310_v31 = vld [vmem:[#allocation103_spill] sm:$0xff]  ;;  %v18311_v35 = vld [vmem:[#allocation184_spill] sm:$0xff]  ;;  %v18312_v52 = vld [vmem:[#allocation85_spill] sm:$0xff] }
 0x2d5   :  { %v2185_v42 = vmax.f32 %v2087_v2, 0.0  ;;  %2595 = vmatpush.msrb.mxu2 %v18302_v62  ;;  %v1870_v2 = vadd.f32 %v10779_v56, %v1242_v27  ;;  %v2066_v17 = vadd.f32 %v10198_v28, %v1884_v58  ;;  %v2178_v14 = vmax.f32 %v2080_v9, 0.0  ;;  %v18309_v62 = vld [vmem:[#allocation26_spill] sm:$0xff]  ;;  %v18313_v56 = vld [vmem:[#allocation157_spill] sm:$0xff] }
 0x2d6   :  { %18306 = vst [vmem:[#allocation62_spill] sm:$0xff] %v11066_v6  ;;  %2348 = vmatpush.msrb.mxu1 %v17674_v54  ;;  %v1109_v50 = vadd.f32 %v18310_v31, %v18309_v62  ;;  %v1840_v51 = vadd.f32 %v18311_v35, %v1112_v61  ;;  %v11079_v60 = vadd.f32 %v10238_v29, %v1854_v0  ;;  %v2171_v61 = vmax.f32 %v2073_v16, 0.0  ;;  %v18314_v62 = vld [vmem:[#allocation22_spill] sm:$0xff]  ;;  %v18315_v0 = vld [vmem:[#allocation100_spill] sm:$0xff] }
 0x2d7   :  { %2427 = vmatpush.msra.mxu3 %v2185_v42  ;;  %2746 = vmatpush.msra.mxu2 %v2185_v42  ;;  %v1236_v27 = vadd.f32 %v18313_v56, %v18312_v52  ;;  %v1863_v58 = vadd.f32 %v10713_v41, %v1239_v4  ;;  %v2059_v9 = vadd.f32 %v10202_v49, %v1877_v63  ;;  %v18316_v35 = vld [vmem:[#allocation6_spill] sm:$0xff]  ;;  %v18318_v41 = vmax.f32 %v11051_v53, 0.0  ;;  %v18319_v4 = vld [vmem:[#allocation81_spill] sm:$0xff] }
 0x2d8   :  { %2349 = vmatpush.msrb.mxu1 %v17675_v8  ;;  %v1106_v31 = vadd.f32 %v18315_v0, %v18314_v62  ;;  %v1833_v54 = vadd.f32 %v18316_v35, %v1109_v50  ;;  %v11094_v8 = vadd.f32 %v10284_v30, %v1847_v39  ;;  %v18317_v22 = vld [vmem:[#allocation98_spill] sm:$0xff]  ;;  %v17680_v63 = vmax.f32 %v11066_v6, 0.0  ;;  %v18323_v0 = vld [vmem:[#allocation96_spill] sm:$0xff] }
 0x2d9   :  { %2428 = vmatpush.msra.mxu3 %v2178_v14  ;;  %2747 = vmatpush.msra.mxu2 %v2178_v14  ;;  %v11088_v42 = vpop.f32.mrf.mxu0  ;;  %v18320_v14 = vld [vmem:[#allocation154_spill] sm:$0xff]  ;;  %v2052_v62 = vadd.f32 %v10224_v33, %v1870_v2  ;;  %v2164_v50 = vmax.f32 %v2066_v17, 0.0  ;;  %v11109_v53 = vadd.f32 %v10297_v25, %v1840_v51  ;;  %v18325_v2 = vld [vmem:[#allocation77_spill] sm:$0xff]  ;;  %v18327_v17 = vld [vmem:[#allocation187_spill] sm:$0xff] }
 0x2da   :  { %7458 = vmatmul.msk.f32.gmra.mxu2 %vm2195_vm4, %v18317_v22  ;;  %2350 = vmatpush.msrb.mxu1 %v18318_v41  ;;  %v1233_v52 = vadd.f32 %v18320_v14, %v18319_v4  ;;  %v18321_v16 = vld [vmem:[#allocation90_spill] sm:$0xff]  ;;  %v1826_v13 = vadd.f32 %v18324_v46, %v1106_v31  ;;  %v18326_v41 = vld [vmem:[#allocation152_spill] sm:$0xff]  ;;  %v2045_v14 = vadd.f32 %v10234_v44, %v1863_v58  ;;  %v2157_v46 = vmax.f32 %v2059_v9, 0.0  ;;  %v18333_v58 = vld [vmem:[#allocation185_spill] sm:$0xff] }
 0x2db   :  { %v1856_v56 = vadd.f32 %v18321_v16, %v1236_v27  ;;  %2429 = vmatpush.msra.mxu3 %v2171_v61  ;;  %2748 = vmatpush.msra.mxu2 %v2171_v61  ;;  %v18322_v39 = vld [vmem:[#allocation18_spill] sm:$0xff]  ;;  %v17681_v27 = vmax.f32 %v11079_v60, 0.0  ;;  %v1230_v61 = vadd.f32 %v18326_v41, %v18325_v2  ;;  %v18329_v31 = vld [vmem:[#allocation92_spill] sm:$0xff]  ;;  %v11124_v6 = vadd.f32 %v10303_v21, %v1833_v54 }
 0x2dc   :  { %v1103_v35 = vadd.f32 %v18323_v0, %v18322_v39  ;;  %7442 = vmatmul.msk.f32.gmra.mxu3 %vm2195_vm4, %v18317_v22  ;;  %2351 = vmatpush.msrb.mxu1 %v17680_v63  ;;  %v1849_v4 = vadd.f32 %v18327_v17, %v1233_v52  ;;  %v18328_v51 = vld [vmem:[#allocation14_spill] sm:$0xff]  ;;  %v18330_v39 = vld [vmem:[#allocation36_spill] sm:$0xff]  ;;  %v17684_v2 = vmax.f32 %v11094_v8, 0.0  ;;  %v18332_v52 = vld [vmem:[#allocation149_spill] sm:$0xff]  ;;  %v11135_v54 = vadd.f32 %v10343_v7, %v1826_v13 }
 0x2dd   :  { %2430 = vmatpush.msra.mxu3 %v2164_v50  ;;  %2749 = vmatpush.msra.mxu2 %v2164_v50  ;;  %v1100_v16 = vadd.f32 %v18329_v31, %v18328_v51  ;;  %v18331_v41 = vld [vmem:[#allocation74_spill] sm:$0xff]  ;;  %v1842_v63 = vadd.f32 %v18333_v58, %v1230_v61  ;;  %v2038_v9 = vadd.f32 %v10238_v29, %v1856_v56  ;;  %v2150_v50 = vmax.f32 %v2052_v62, 0.0  ;;  %v18334_v51 = vld [vmem:[#allocation45_spill] sm:$0xff] }
 0x2de   :  { %v1819_v0 = vadd.f32 %v18330_v39, %v1103_v35  ;;  %2352 = vmatpush.msrb.mxu1 %v17681_v27  ;;  %v1227_v17 = vadd.f32 %v18332_v52, %v18331_v41  ;;  %v17682_v31 = vmax.f32 %v11109_v53, 0.0  ;;  %v18335_v39 = vld [vmem:[#allocation72_spill] sm:$0xff]  ;;  %v18336_v27 = vld [vmem:[#allocation146_spill] sm:$0xff]  ;;  %v2031_v56 = vadd.f32 %v10284_v30, %v1849_v4 }
 0x2df   :  { %2431 = vmatpush.msra.mxu3 %v2157_v46  ;;  %2750 = vmatpush.msra.mxu2 %v2157_v46  ;;  %v1812_v35 = vadd.f32 %v18334_v51, %v1100_v16  ;;  %v1224_v41 = vadd.f32 %v18336_v27, %v18335_v39  ;;  %v18337_v52 = vld [vmem:[#allocation156_spill] sm:$0xff]  ;;  %v2143_v46 = vmax.f32 %v2045_v14, 0.0  ;;  %v17683_v27 = vmax.f32 %v11124_v6, 0.0  ;;  %v18338_v16 = vld [vmem:[#allocation69_spill] sm:$0xff] }
 0x2e0   :  { %2353 = vmatpush.msrb.mxu1 %v17684_v2  ;;  %v1835_v61 = vadd.f32 %v18337_v52, %v1227_v17  ;;  %v11147_v13 = vadd.f32 %v10356_v10, %v1819_v0  ;;  %v18339_v17 = vld [vmem:[#allocation143_spill] sm:$0xff]  ;;  %v18340_v4 = vld [vmem:[#allocation8_spill] sm:$0xff]  ;;  %v2136_v14 = vmax.f32 %v2038_v9, 0.0  ;;  %v2106_v39 = vmax.f32 %v11135_v54, 0.0  ;;  %v18341_v52 = vld [vmem:[#allocation66_spill] sm:$0xff] }
 0x2e1   :  { %2432 = vmatpush.msra.mxu3 %v2150_v50  ;;  %2751 = vmatpush.msra.mxu2 %v2150_v50  ;;  %v11144_v62 = vpop.f32.mrf.mxu0  ;;  %v1221_v58 = vadd.f32 %v18339_v17, %v18338_v16  ;;  %v1828_v51 = vadd.f32 %v18340_v4, %v1224_v41  ;;  %v2024_v50 = vadd.f32 %v10297_v25, %v1842_v63  ;;  %v18342_v16 = vld [vmem:[#allocation140_spill] sm:$0xff]  ;;  %v18343_v41 = vld [vmem:[#allocation113_spill] sm:$0xff]  ;;  %v2129_v9 = vmax.f32 %v2031_v56, 0.0  ;;  %v8209_v54 = vld [vmem:[%s17561_s5 + $0x20] sm:$0xff] }
 0x2e2   :  { %7459 = vmatmul.msk.f32.gmra.mxu2 %vm2195_vm4, %v10623_v40  ;;  %2354 = vmatpush.msrb.mxu1 %v17682_v31  ;;  %v11159_v0 = vadd.f32 %v10358_v3, %v1812_v35  ;;  %v1218_v17 = vadd.f32 %v18342_v16, %v18341_v52  ;;  %v2017_v63 = vadd.f32 %v10303_v21, %v1835_v61  ;;  %v2099_v35 = vmax.f32 %v11147_v13, 0.0 }
 0x2e3   :  { %2433 = vmatpush.msra.mxu3 %v2143_v46  ;;  %2752 = vmatpush.msra.mxu2 %v2143_v46  ;;  %v1821_v4 = vadd.f32 %v18343_v41, %v1221_v58  ;;  %v18344_v46 = vld [vmem:[#allocation11_spill] sm:$0xff]  ;;  %v2122_v2 = vmax.f32 %v2024_v50, 0.0 }
 0x2e4   :  { %7443 = vmatmul.msk.f32.gmra.mxu3 %vm2195_vm4, %v10623_v40  ;;  %2355 = vmatpush.msrb.mxu1 %v17683_v27  ;;  %v1814_v31 = vadd.f32 %v18344_v46, %v1218_v17  ;;  %v2010_v27 = vadd.f32 %v10343_v7, %v1828_v51  ;;  %v2092_v61 = vmax.f32 %v11159_v0, 0.0  ;;  %v18347_v17 = vld [vmem:[#allocation99_spill] sm:$0xff] }
 0x2e5   :  { %2434 = vmatpush.msra.mxu3 %v2136_v14  ;;  %2753 = vmatpush.msra.mxu2 %v2136_v14  ;;  %v2003_v58 = vadd.f32 %v10356_v10, %v1821_v4  ;;  %v2115_v14 = vmax.f32 %v2017_v63, 0.0  ;;  %v18348_v41 = vmax.f32 %v18347_v17, 0.0  ;;  %v18349_v4 = vld [vmem:[#allocation32_spill] sm:$0xff]  ;;  %v18352_v46 = vld [vmem:[#allocation95_spill] sm:$0xff] }
 0x2e6   :  { %2356 = vmatpush.msrb.mxu1 %v2106_v39  ;;  %v1996_v51 = vadd.f32 %v10358_v3, %v1814_v31  ;;  %v2108_v50 = vmax.f32 %v2010_v27, 0.0  ;;  %v18350_v27 = vmax.f32 %v18349_v4, 0.0  ;;  %v18363_v4 = vld [vmem:[#allocation84_spill] sm:$0xff] }
 0x2e7   :  { %2435 = vmatpush.msra.mxu3 %v2129_v9  ;;  %2754 = vmatpush.msra.mxu2 %v2129_v9  ;;  %v2101_v16 = vmax.f32 %v2003_v58, 0.0  ;;  %v18351_v9 = vmax.f32 %v10746_v48, 0.0  ;;  %v18353_v58 = vmax.f32 %v18352_v46, 0.0  ;;  %v18357_v48 = vld [vmem:[#allocation88_spill] sm:$0xff]  ;;  %v18369_v46 = vld [vmem:[#allocation174_spill] sm:$0xff] }
 0x2e8   :  { %2357 = vmatpush.msrb.mxu1 %v2099_v35  ;;  %v2094_v31 = vmax.f32 %v1996_v51, 0.0 }
 0x2e9   :  { %2436 = vmatpush.msra.mxu3 %v2122_v2  ;;  %2755 = vmatpush.msra.mxu2 %v2122_v2  ;;  %v11179_v56 = vpop.f32.mrf.mxu0  ;;  %v18345_v2 = vld [vmem:[#allocation172_spill] sm:$0xff] }
 0x2ea   :  { %7460 = vmatmul.msk.f32.gmra.mxu2 %vm2195_vm4, %v10640_v18  ;;  %2358 = vmatpush.msrb.mxu1 %v2092_v61  ;;  %v18346_v52 = vmax.f32 %v18345_v2, 0.0  ;;  %v18358_v2 = vmax.f32 %v18357_v48, 0.0 }
 0x2eb   :  { %2437 = vmatpush.msra.mxu3 %v2115_v14  ;;  %2756 = vmatpush.msra.mxu2 %v2115_v14  ;;  %v18354_v14 = vld [vmem:[#allocation28_spill] sm:$0xff] }
 0x2ec   :  { %7444 = vmatmul.msk.f32.gmra.mxu3 %vm2195_vm4, %v10640_v18  ;;  %7447 = vmatmul.msk.f32.vlgmr.msrb.gmra.mxu1 %vm2195_vm4, %v18242_v11  ;;  %v18355_v51 = vmax.f32 %v18354_v14, 0.0  ;;  %v18371_v14 = vmax.f32 %v10839_v20, 0.0  ;;  %v18377_v20 = vmax.f32 %v10876_v26, 0.0  ;;  %v18383_v26 = vmax.f32 %v10905_v36, 0.0  ;;  %v18390_v36 = vld [vmem:[#allocation68_spill] sm:$0xff] }
 0x2ed   :  { %2541 = vmatpush.msra.mxu1 %v18346_v52  ;;  %2438 = vmatpush.msra.mxu3 %v2108_v50  ;;  %v18359_v52 = vmax.f32 %v10761_v12, 0.0  ;;  %v18366_v12 = vld [vmem:[#allocation16_spill] sm:$0xff] }
 0x2ee   :  { %2757 = vmatpush.msra.mxu2 %v2108_v50  ;;  %v18356_v50 = vmax.f32 %v10743_v32, 0.0  ;;  %v18365_v32 = vmax.f32 %v10801_v23, 0.0  ;;  %v11241_v23 = vld [vmem:[%s17562_s6] sm:$0xff] }
 0x2ef   :  { %2542 = vmatpush.msra.mxu1 %v18348_v41  ;;  %2439 = vmatpush.msra.mxu3 %v2101_v16  ;;  %v18362_v41 = vmax.f32 %v10777_v59, 0.0  ;;  %v18368_v59 = vmax.f32 %v10821_v45, 0.0  ;;  %v18375_v45 = vld [vmem:[#allocation176_spill] sm:$0xff] }
 0x2f0   :  { %2758 = vmatpush.msra.mxu2 %v2101_v16  ;;  %v18360_v16 = vld [vmem:[#allocation20_spill] sm:$0xff] }
 0x2f1   :  { %2543 = vmatpush.msra.mxu1 %v18350_v27  ;;  %2440 = vmatpush.msra.mxu3 %v2094_v31  ;;  %v11196_v63 = vpop.f32.mrf.mxu0  ;;  %v18361_v17 = vmax.f32 %v18360_v16, 0.0  ;;  %v18364_v27 = vmax.f32 %v18363_v4, 0.0  ;;  %v18378_v16 = vld [vmem:[#allocation179_spill] sm:$0xff]  ;;  %v18381_v4 = vld [vmem:[#allocation180_spill] sm:$0xff] }
 0x2f2   :  { %2759 = vmatpush.msra.mxu2 %v2094_v31 }
 0x2f3   :  { %2623 = vmatpush.msrb.mxu3 %v18351_v9  ;;  %7461 = vmatmul.msk.f32.gmra.mxu2 %vm2195_vm4, %v10655_v34  ;;  %v18367_v9 = vmax.f32 %v18366_v12, 0.0 }
 0x2f4   :  { %2544 = vmatpush.msra.mxu1 %v18353_v58  ;;  %7445 = vmatmul.msk.f32.gmra.mxu3 %vm2195_vm4, %v10655_v34  ;;  %v18370_v58 = vmax.f32 %v18369_v46, 0.0 }
 0x2f5   :  { %7448 = vmatmul.msk.f32.gmra.mxu1 %vm2195_vm4, %v18260_v24  ;;  %2624 = vmatpush.msrb.mxu3 %v18356_v50 }
 0x2f6   :  { %2545 = vmatpush.msra.mxu1 %v18355_v51  ;;  %v18372_v51 = vld [vmem:[#allocation175_spill] sm:$0xff] }
 0x2f7   :  { %2625 = vmatpush.msrb.mxu3 %v18359_v52  ;;  %v18373_v50 = vmax.f32 %v18372_v51, 0.0  ;;  %v18376_v52 = vmax.f32 %v18375_v45, 0.0  ;;  %v18392_v51 = vld [vmem:[#allocation94_spill] sm:$0xff]  ;;  %v18394_v45 = vld [vmem:[#allocation83_spill] sm:$0xff] }
 0x2f8   :  { %2546 = vmatpush.msra.mxu1 %v18358_v2  ;;  %v18374_v2 = vmax.f32 %v10855_v55, 0.0 }
 0x2f9   :  { %2626 = vmatpush.msrb.mxu3 %v18362_v41  ;;  %v1797_v31 = vpop.f32.mrf.mxu0  ;;  %v18380_v41 = vmax.f32 %v10893_v5, 0.0  ;;  %v18388_v5 = vld [vmem:[#allocation86_spill] sm:$0xff] }
 0x2fa   :  { %2547 = vmatpush.msra.mxu1 %v18361_v17  ;;  %v18379_v17 = vmax.f32 %v18378_v16, 0.0  ;;  %v18396_v16 = vld [vmem:[#allocation134_spill] sm:$0xff] }
 0x2fb   :  { %7462 = vmatmul.msk.f32.gmra.mxu2 %vm2195_vm4, %v10678_v47  ;;  %2627 = vmatpush.msrb.mxu3 %v18365_v32  ;;  %v18384_v32 = vld [vmem:[#allocation147_spill] sm:$0xff] }
 0x2fc   :  { %2548 = vmatpush.msra.mxu1 %v18364_v27  ;;  %7446 = vmatmul.msk.f32.gmra.mxu3 %vm2195_vm4, %v10678_v47  ;;  %v18382_v27 = vmax.f32 %v18381_v4, 0.0  ;;  %v18385_v12 = vmax.f32 %v18384_v32, 0.0 }
 0x2fd   :  { %7449 = vmatmul.msk.f32.gmra.mxu1 %vm2195_vm4, %v18291_v15  ;;  %2628 = vmatpush.msrb.mxu3 %v18368_v59  ;;  %v18386_v59 = vld [vmem:[#allocation38_spill] sm:$0xff] }
 0x2fe   :  { %2549 = vmatpush.msra.mxu1 %v18367_v9  ;;  %v18387_v46 = vmax.f32 %v18386_v59, 0.0  ;;  %v18403_v59 = vld [vmem:[#allocation183_spill] sm:$0xff] }
 0x2ff   :  { %2629 = vmatpush.msrb.mxu3 %v18371_v14  ;;  %v18391_v14 = vmax.f32 %v18390_v36, 0.0  ;;  %v11305_v36 = vld [vmem:[%s17562_s6 + $0x10] sm:$0xff] }
 0x300   :  { %2550 = vmatpush.msra.mxu1 %v18370_v58  ;;  %v18389_v58 = vmax.f32 %v18388_v5, 0.0 }
 0x301   :  { %v1800_v48 = vpop.f32.mrf.mxu0  ;;  %2630 = vmatpush.msrb.mxu3 %v18374_v2 }
 0x302   :  { %2551 = vmatpush.msra.mxu1 %v18373_v50  ;;  %v18393_v50 = vmax.f32 %v18392_v51, 0.0 }
 0x303   :  { %7487 = vmatmul.msk.f32.vlgmr.msrb.gmra.mxu2 %vm2195_vm4, %v11241_v23  ;;  %2631 = vmatpush.msrb.mxu3 %v18377_v20 }
 0x304   :  { %2552 = vmatpush.msra.mxu1 %v18376_v52  ;;  %7463 = vmatmul.msk.f32.vlgmr.msra.gmra.mxu3 %vm2195_vm4, %v18242_v11  ;;  %v11272_v11 = vld [vmem:[%s17562_s6 + $0x8] sm:$0xff]  ;;  %v18395_v52 = vld [vmem:[#allocation182_spill] sm:$0xff] }
 0x305   :  { %7450 = vmatmul.msk.f32.gmra.mxu1 %vm2195_vm4, %v18317_v22  ;;  %v11259_v55 = vpop.f32.mrf.mxu2  ;;  %2632 = vmatpush.msrb.mxu3 %v18380_v41  ;;  %v1313_v20 = vadd.f32 %v18395_v52, %v18394_v45  ;;  %v18398_v41 = vld [vmem:[#allocation153_spill] sm:$0xff] }
 0x306   :  { %2553 = vmatpush.msra.mxu1 %v18379_v17  ;;  %v18397_v17 = vmax.f32 %v18396_v16, 0.0  ;;  %v18399_v4 = vmax.f32 %v18398_v41, 0.0  ;;  %v18408_v16 = vld [vmem:[#allocation76_spill] sm:$0xff] }
 0x307   :  { %2633 = vmatpush.msrb.mxu3 %v18383_v26  ;;  %v18401_v26 = vld [vmem:[#allocation181_spill] sm:$0xff] }
 0x308   :  { %2554 = vmatpush.msra.mxu1 %v18382_v27  ;;  %v18400_v27 = vld [vmem:[#allocation79_spill] sm:$0xff] }
 0x309   :  { %v1803_v9 = vpop.f32.mrf.mxu0  ;;  %2634 = vmatpush.msrb.mxu3 %v18387_v46  ;;  %v1310_v32 = vadd.f32 %v18401_v26, %v18400_v27  ;;  %v18412_v26 = vld [vmem:[#allocation73_spill] sm:$0xff] }
 0x30a   :  { %2705 = vmatpush.msrb.mxu1 %v18385_v12  ;;  %v18402_v12 = vld [vmem:[#allocation87_spill] sm:$0xff]  ;;  %v1899_v5 = vadd.f32 %v1803_v9, %v1313_v20 }
 0x30b   :  { %7488 = vmatmul.msk.f32.gmra.mxu2 %vm2195_vm4, %v11272_v11  ;;  %2635 = vmatpush.msrb.mxu3 %v18391_v14  ;;  %v1316_v46 = vadd.f32 %v18403_v59, %v18402_v12  ;;  %v1892_v51 = vadd.f32 %v1800_v48, %v1310_v32  ;;  %v18413_v12 = vld [vmem:[#allocation80_spill] sm:$0xff] }
 0x30c   :  { %2706 = vmatpush.msrb.mxu1 %v18389_v58  ;;  %7464 = vmatmul.msk.f32.gmra.mxu3 %vm2195_vm4, %v18260_v24  ;;  %v18404_v58 = vld [vmem:[#allocation82_spill] sm:$0xff]  ;;  %v2081_v9 = vadd.f32 %v10204_v19, %v1899_v5  ;;  %v1304_v48 = vadd.f32 %v18413_v12, %v18412_v26  ;;  %v18414_v5 = vld [vmem:[#allocation141_spill] sm:$0xff]  ;;  %v18426_v12 = vld [vmem:[#allocation148_spill] sm:$0xff] }
 0x30d   :  { %7451 = vmatmul.msk.f32.gmra.mxu1 %vm2195_vm4, %v10623_v40  ;;  %v11288_v2 = vpop.f32.mrf.mxu2  ;;  %2636 = vmatpush.msrb.mxu3 %v18397_v17  ;;  %v18405_v24 = vmax.f32 %v18404_v58, 0.0  ;;  %v18409_v17 = vld [vmem:[#allocation177_spill] sm:$0xff]  ;;  %v18416_v58 = vld [vmem:[#allocation70_spill] sm:$0xff] }
 0x30e   :  { %2707 = vmatpush.msrb.mxu1 %v18393_v50  ;;  %v18406_v50 = vld [vmem:[#allocation144_spill] sm:$0xff]  ;;  %v1307_v41 = vadd.f32 %v18409_v17, %v18408_v16  ;;  %v18420_v16 = vld [vmem:[#allocation67_spill] sm:$0xff] }
 0x30f   :  { %v18407_v45 = vmax.f32 %v18406_v50, 0.0  ;;  %v1878_v50 = vadd.f32 %v11196_v63, %v1304_v48  ;;  %v18421_v17 = vld [vmem:[#allocation171_spill] sm:$0xff]  ;;  %v18427_v48 = vmax.f32 %v18426_v12, 0.0 }
 0x310   :  { %2708 = vmatpush.msrb.mxu1 %v18399_v4  ;;  %v18410_v4 = vld [vmem:[#allocation78_spill] sm:$0xff]  ;;  %v1885_v32 = vadd.f32 %v1797_v31, %v1307_v41  ;;  %v18418_v31 = vld [vmem:[#allocation75_spill] sm:$0xff]  ;;  %v1298_v63 = vadd.f32 %v18421_v17, %v18420_v16 }
 0x311   :  { %v1806_v14 = vpop.f32.mrf.mxu0  ;;  %v18411_v27 = vmax.f32 %v18410_v4, 0.0  ;;  %v18422_v41 = vld [vmem:[#allocation35_spill] sm:$0xff] }
 0x312   :  { %2709 = vmatpush.msrb.mxu1 %v18405_v24  ;;  %v1906_v52 = vadd.f32 %v1806_v14, %v1316_v46  ;;  %v2074_v46 = vadd.f32 %v10182_v57, %v1892_v51  ;;  %v18417_v24 = vld [vmem:[#allocation24_spill] sm:$0xff]  ;;  %v2067_v51 = vadd.f32 %v10198_v28, %v1885_v32  ;;  %v1864_v26 = vadd.f32 %v11144_v62, %v1298_v63  ;;  %v18437_v16 = vld [vmem:[#allocation163_spill] sm:$0xff]  ;;  %v18438_v63 = vld [vmem:[#allocation142_spill] sm:$0xff] }
 0x313   :  { %7489 = vmatmul.msk.f32.gmra.mxu2 %vm2195_vm4, %v11305_v36  ;;  %v1301_v14 = vadd.f32 %v18417_v24, %v18416_v58  ;;  %v18430_v58 = vld [vmem:[#allocation71_spill] sm:$0xff] }
 0x314   :  { %2710 = vmatpush.msrb.mxu1 %v18407_v45  ;;  %v2088_v20 = vadd.f32 %v10176_v1, %v1906_v52  ;;  %7465 = vmatmul.msk.f32.gmra.mxu3 %vm2195_vm4, %v18291_v15  ;;  %v18415_v1 = vmax.f32 %v18414_v5, 0.0  ;;  %v18419_v45 = vmax.f32 %v18418_v31, 0.0  ;;  %v2179_v15 = vmax.f32 %v2081_v9, 0.0  ;;  %v11340_v52 = vpop.f32.mrf.mxu1  ;;  %v18425_v9 = vld [vmem:[#allocation169_spill] sm:$0xff]  ;;  %v18429_v5 = vld [vmem:[#allocation167_spill] sm:$0xff] }
 0x315   :  { %7452 = vmatmul.msk.f32.gmra.mxu1 %vm2195_vm4, %v10640_v18  ;;  %v11323_v59 = vpop.f32.mrf.mxu2  ;;  %v11336_v18 = vld [vmem:[%s17562_s6 + $0x18] sm:$0xff]  ;;  %v1871_v57 = vadd.f32 %v11179_v56, %v1301_v14  ;;  %v2172_v4 = vmax.f32 %v2074_v46, 0.0  ;;  %v18424_v56 = vld [vmem:[#allocation64_spill] sm:$0xff]  ;;  %v2165_v46 = vmax.f32 %v2067_v51, 0.0  ;;  %v18431_v24 = vmax.f32 %v18430_v58, 0.0  ;;  %v18447_v58 = vld [vmem:[#allocation41_spill] sm:$0xff] }
 0x316   :  { %2711 = vmatpush.msrb.mxu1 %v18411_v27  ;;  %v2186_v19 = vmax.f32 %v2088_v20, 0.0  ;;  %v18423_v20 = vmax.f32 %v18422_v41, 0.0  ;;  %v2060_v27 = vadd.f32 %v10202_v49, %v1878_v50  ;;  %v1295_v28 = vadd.f32 %v18425_v9, %v18424_v56  ;;  %v18432_v14 = vld [vmem:[#allocation56_spill] sm:$0xff]  ;;  %v18433_v50 = vld [vmem:[#allocation165_spill] sm:$0xff] }
 0x317   :  { %v2053_v32 = vadd.f32 %v10224_v33, %v1871_v57  ;;  %v18436_v51 = vld [vmem:[#allocation52_spill] sm:$0xff]  ;;  %v18442_v56 = vld [vmem:[#allocation161_spill] sm:$0xff] }
 0x318   :  { %2712 = vmatpush.msrb.mxu1 %v18415_v1  ;;  %2468 = vmatpush.msra.mxu0 %v2186_v19  ;;  %v1857_v62 = vadd.f32 %v11088_v42, %v1295_v28  ;;  %v2158_v33 = vmax.f32 %v2060_v27, 0.0  ;;  %v11375_v42 = vld [vmem:[%s17562_s6 + $0x20] sm:$0xff]  ;;  %v1286_v17 = vadd.f32 %v18437_v16, %v18436_v51  ;;  %v18441_v27 = vld [vmem:[#allocation48_spill] sm:$0xff] }
 0x319   :  { %2787 = vmatpush.msra.mxu3 %v2186_v19  ;;  %v18428_v19 = vld [vmem:[#allocation60_spill] sm:$0xff]  ;;  %v2151_v57 = vmax.f32 %v2053_v32, 0.0  ;;  %v1283_v9 = vadd.f32 %v18442_v56, %v18441_v27  ;;  %v18443_v28 = vld [vmem:[#allocation27_spill] sm:$0xff] }
 0x31a   :  { %2713 = vmatpush.msrb.mxu1 %v18419_v45  ;;  %2469 = vmatpush.msra.mxu0 %v2179_v15  ;;  %v1292_v1 = vadd.f32 %v18429_v5, %v18428_v19  ;;  %v18434_v45 = vld [vmem:[#allocation136_spill] sm:$0xff]  ;;  %v18446_v5 = vld [vmem:[#allocation151_spill] sm:$0xff] }
 0x31b   :  { %7490 = vmatmul.msk.f32.gmra.mxu2 %vm2195_vm4, %v11336_v18  ;;  %2788 = vmatpush.msra.mxu3 %v2179_v15  ;;  %v18435_v15 = vmax.f32 %v18434_v45, 0.0  ;;  %v18444_v32 = vld [vmem:[#allocation44_spill] sm:$0xff] }
 0x31c   :  { %2714 = vmatpush.msrb.mxu1 %v18423_v20  ;;  %2470 = vmatpush.msra.mxu0 %v2172_v4  ;;  %v1850_v31 = vadd.f32 %v11027_v43, %v1292_v1  ;;  %v2039_v43 = vadd.f32 %v10238_v29, %v1857_v62  ;;  %v18439_v20 = vld [vmem:[#allocation145_spill] sm:$0xff]  ;;  %v1829_v1 = vadd.f32 %v18446_v5, %v1283_v9  ;;  %v18453_v9 = vmax.f32 %v10990_v38, 0.0  ;;  %v8206_v38 = vld [vmem:[%s17561_s5 + $0x8] sm:$0xff]  ;;  %v18459_v5 = vld [vmem:[#allocation139_spill] sm:$0xff] }
 0x31d   :  { %7453 = vmatmul.msk.f32.gmra.mxu1 %vm2195_vm4, %v10655_v34  ;;  %7466 = vmatmul.msk.f32.gmra.mxu3 %vm2195_vm4, %v18317_v22  ;;  %v11359_v49 = vpop.f32.mrf.mxu2  ;;  %v1289_v34 = vadd.f32 %v18433_v50, %v18432_v14  ;;  %v2046_v22 = vadd.f32 %v10234_v44, %v1864_v26  ;;  %v18440_v44 = vmax.f32 %v18439_v20, 0.0  ;;  %v1836_v26 = vadd.f32 %v18443_v28, %v1286_v17  ;;  %v18449_v14 = vld [vmem:[#allocation31_spill] sm:$0xff]  ;;  %v11457_v28 = vld [vmem:[%s17562_s6 + $0x38] sm:$0xff] }
 0x31e   :  { %2715 = vmatpush.msrb.mxu1 %v18427_v48  ;;  %2789 = vmatpush.msra.mxu3 %v2172_v4  ;;  %v11385_v4 = vpop.f32.mrf.mxu1  ;;  %v2032_v12 = vadd.f32 %v10284_v30, %v1850_v31  ;;  %v2137_v30 = vmax.f32 %v2039_v43, 0.0  ;;  %v18450_v31 = vld [vmem:[#allocation138_spill] sm:$0xff]  ;;  %v8204_v43 = vld [vmem:[%s17561_s5] sm:$0xff] }
 0x31f   :  { %2471 = vmatpush.msra.mxu0 %v2165_v46  ;;  %v1843_v41 = vadd.f32 %v18438_v63, %v1289_v34  ;;  %v2144_v48 = vmax.f32 %v2046_v22, 0.0  ;;  %v2018_v50 = vadd.f32 %v10303_v21, %v1836_v26  ;;  %v11408_v34 = vld [vmem:[%s17562_s6 + $0x28] sm:$0xff]  ;;  %v2011_v22 = vadd.f32 %v10343_v7, %v1829_v1  ;;  %v11432_v63 = vld [vmem:[%s17562_s6 + $0x30] sm:$0xff] }
 0x320   :  { %2716 = vmatpush.msrb.mxu1 %v18431_v24  ;;  %2790 = vmatpush.msra.mxu3 %v2165_v46  ;;  %v18445_v46 = vld [vmem:[#allocation158_spill] sm:$0xff]  ;;  %v18448_v24 = vld [vmem:[#allocation155_spill] sm:$0xff]  ;;  %v18454_v26 = vmax.f32 %v11003_v37, 0.0  ;;  %v18460_v1 = vmax.f32 %v18459_v5, 0.0 }
 0x321   :  { %2472 = vmatpush.msra.mxu0 %v2158_v33  ;;  %v1280_v19 = vadd.f32 %v18445_v46, %v18444_v32  ;;  %v2025_v62 = vadd.f32 %v10297_v25, %v1843_v41  ;;  %v2109_v16 = vmax.f32 %v2011_v22, 0.0  ;;  %v8205_v32 = vld [vmem:[%s17561_s5 + $0x38] sm:$0xff]  ;;  %v18457_v46 = vld [vmem:[#allocation23_spill] sm:$0xff] }
 0x322   :  { %2717 = vmatpush.msrb.mxu1 %v18435_v15  ;;  %2791 = vmatpush.msra.mxu3 %v2158_v33  ;;  %v1277_v33 = vadd.f32 %v18448_v24, %v18447_v58  ;;  %v2116_v15 = vmax.f32 %v2018_v50, 0.0  ;;  %v18463_v24 = vmax.f32 %v11079_v60, 0.0  ;;  %v18465_v60 = vmax.f32 %v11109_v53, 0.0 }
 0x323   :  { %7491 = vmatmul.msk.f32.gmra.mxu2 %vm2195_vm4, %v11375_v42  ;;  %2473 = vmatpush.msra.mxu0 %v2151_v57  ;;  %v2123_v45 = vmax.f32 %v2025_v62, 0.0 }
 0x324   :  { %2718 = vmatpush.msrb.mxu1 %v18440_v44  ;;  %2792 = vmatpush.msra.mxu3 %v2151_v57  ;;  %v1815_v25 = vadd.f32 %v18450_v31, %v1277_v33  ;;  %v11418_v57 = vld [vmem:[%s17561_s5 + $0x28] sm:$0xff]  ;;  %v18451_v44 = vld [vmem:[#allocation65_spill] sm:$0xff] }
 0x325   :  { %7454 = vmatmul.msk.f32.gmra.mxu1 %vm2195_vm4, %v10678_v47  ;;  %7467 = vmatmul.msk.f32.gmra.mxu3 %vm2195_vm4, %v10623_v40  ;;  %v11395_v29 = vpop.f32.mrf.mxu2  ;;  %v1822_v47 = vadd.f32 %v18449_v14, %v1280_v19  ;;  %v2130_v40 = vmax.f32 %v2032_v12, 0.0  ;;  %v18452_v27 = vmax.f32 %v18451_v44, 0.0  ;;  %v18455_v12 = vld [vmem:[#allocation131_spill] sm:$0xff]  ;;  %v18458_v19 = vmax.f32 %v18457_v46, 0.0  ;;  %v8207_v33 = vld [vmem:[%s17561_s5 + $0x10] sm:$0xff] }
 0x326   :  { %2474 = vmatpush.msra.mxu0 %v2144_v48  ;;  %2793 = vmatpush.msra.mxu3 %v2144_v48  ;;  %v11426_v51 = vpop.f32.mrf.mxu1  ;;  %v18456_v48 = vmax.f32 %v18455_v12, 0.0 }
 0x327   :  { %v2004_v21 = vadd.f32 %v10356_v10, %v1822_v47  ;;  %v1997_v10 = vadd.f32 %v10358_v3, %v1815_v25  ;;  %v8203_v3 = vld [vmem:[%s17561_s5 + $0x30] sm:$0xff]  ;;  %v18464_v47 = vmax.f32 %v11094_v8, 0.0  ;;  %v8208_v8 = vld [vmem:[%s17561_s5 + $0x18] sm:$0xff]  ;;  %s8244_s5 = smov 2  }
 0x328   :  { %2475 = vmatpush.msra.mxu0 %v2137_v30  ;;  %2794 = vmatpush.msra.mxu3 %v2137_v30  ;;  %v18461_v30 = vld [vmem:[#allocation62_spill] sm:$0xff] }
 0x329   :  { %v2102_v17 = vmax.f32 %v2004_v21, 0.0  ;;  %v2095_v41 = vmax.f32 %v1997_v10, 0.0  ;;  %v18462_v58 = vmax.f32 %v18461_v30, 0.0 }
 0x32a   :  { %2476 = vmatpush.msra.mxu0 %v2130_v40  ;;  %2795 = vmatpush.msra.mxu3 %v2130_v40  ;;  %v18466_v40 = vmax.f32 %v11124_v6, 0.0 }
 0x32b   :  { %7492 = vmatmul.msk.f32.gmra.mxu2 %vm2195_vm4, %v11408_v34 }
 0x32c   :  { %2477 = vmatpush.msra.mxu0 %v2123_v45  ;;  %2796 = vmatpush.msra.mxu3 %v2123_v45 }
 0x32d   :  { %7468 = vmatmul.msk.f32.gmra.mxu3 %vm2195_vm4, %v11418_v57  ;;  %7479 = vmatmul.msk.f32.vlgmr.msra.gmra.mxu1 %vm2195_vm4, %v11241_v23  ;;  %v11424_v7 = vpop.f32.mrf.mxu2 }
 0x32e   :  { %2478 = vmatpush.msra.mxu0 %v2116_v15  ;;  %2797 = vmatpush.msra.mxu3 %v2116_v15  ;;  %v11450_v56 = vpop.f32.mrf.mxu1 }
 0x330   :  { %2479 = vmatpush.msra.mxu0 %v2109_v16  ;;  %2798 = vmatpush.msra.mxu3 %v2109_v16 }
 0x332   :  { %2480 = vmatpush.msra.mxu0 %v2102_v17  ;;  %2799 = vmatpush.msra.mxu3 %v2102_v17 }
 0x333   :  { %7493 = vmatmul.msk.f32.gmra.mxu2 %vm2195_vm4, %v11432_v63 }
 0x334   :  { %2481 = vmatpush.msra.mxu0 %v2095_v41  ;;  %2800 = vmatpush.msra.mxu3 %v2095_v41 }
 0x335   :  { %7469 = vmatmul.msk.f32.gmra.mxu3 %vm2195_vm4, %v8203_v3  ;;  %7471 = vmatmul.msk.f32.vlgmr.msra.gmra.mxu0 %vm2195_vm4, %v8204_v43  ;;  %v11444_v20 = vpop.f32.mrf.mxu2 }
 0x336   :  { %7480 = vmatmul.msk.f32.gmra.mxu1 %vm2195_vm4, %v11272_v11  ;;  %2664 = vmatpush.msrb.mxu0 %v18452_v27  ;;  %v11481_v62 = vpop.f32.mrf.mxu1 }
 0x338   :  { %2665 = vmatpush.msrb.mxu0 %v18453_v9 }
 0x33a   :  { %2666 = vmatpush.msrb.mxu0 %v18454_v26 }
 0x33b   :  { %7494 = vmatmul.msk.f32.gmra.mxu2 %vm2195_vm4, %v11457_v28 }
 0x33c   :  { %2667 = vmatpush.msrb.mxu0 %v18456_v48 }
 0x33d   :  { %7470 = vmatmul.msk.f32.gmra.mxu3 %vm2195_vm4, %v8205_v32  ;;  %7472 = vmatmul.msk.f32.gmra.mxu0 %vm2195_vm4, %v8206_v38  ;;  %v11473_v37 = vpop.f32.mrf.mxu2 }
 0x33e   :  { %7481 = vmatmul.msk.f32.gmra.mxu1 %vm2195_vm4, %v11305_v36  ;;  %2668 = vmatpush.msrb.mxu0 %v18458_v19  ;;  %v11509_v31 = vpop.f32.mrf.mxu1 }
 0x340   :  { %2669 = vmatpush.msrb.mxu0 %v18460_v1 }
 0x342   :  { %2670 = vmatpush.msrb.mxu0 %v18462_v58 }
 0x343   :  { %7519 = vmatmul.msk.f32.vlgmr.msra.gmra.mxu2 %vm2195_vm4, %v11241_v23 }
 0x344   :  { %2671 = vmatpush.msrb.mxu0 %v18463_v24 }
 0x345   :  { %7473 = vmatmul.msk.f32.gmra.mxu0 %vm2195_vm4, %v8207_v33  ;;  %7495 = vmatmul.msk.f32.vlgmr.msrb.gmra.mxu3 %vm2195_vm4, %v11241_v23  ;;  %v11495_v14 = vpop.f32.mrf.mxu2 }
 0x346   :  { %7482 = vmatmul.msk.f32.gmra.mxu1 %vm2195_vm4, %v11336_v18  ;;  %2672 = vmatpush.msrb.mxu0 %v18464_v47  ;;  %v11501_v50 = vpop.f32.mrf.mxu3  ;;  %v11539_v13 = vpop.f32.mrf.mxu1 }
 0x348   :  { %2673 = vmatpush.msrb.mxu0 %v18465_v60 }
 0x34a   :  { %2674 = vmatpush.msrb.mxu0 %v18466_v40 }
 0x34b   :  { %7520 = vmatmul.msk.f32.gmra.mxu2 %vm2195_vm4, %v11272_v11 }
 0x34c   :  { %2675 = vmatpush.msrb.mxu0 %v2106_v39 }
 0x34d   :  { %7474 = vmatmul.msk.f32.gmra.mxu0 %vm2195_vm4, %v8208_v8  ;;  %7496 = vmatmul.msk.f32.gmra.mxu3 %vm2195_vm4, %v11272_v11  ;;  %v11519_v53 = vpop.f32.mrf.mxu2 }
 0x34e   :  { %7483 = vmatmul.msk.f32.gmra.mxu1 %vm2195_vm4, %v11375_v42  ;;  %2676 = vmatpush.msrb.mxu0 %v2099_v35  ;;  %v11525_v6 = vpop.f32.mrf.mxu3  ;;  %v11557_v25 = vpop.f32.mrf.mxu1 }
 0x350   :  { %2677 = vmatpush.msrb.mxu0 %v2092_v61 }
 0x353   :  { %7521 = vmatmul.msk.f32.gmra.mxu2 %vm2195_vm4, %v11305_v36 }
 0x355   :  { %7475 = vmatmul.msk.f32.gmra.mxu0 %vm2195_vm4, %v8209_v54  ;;  %7497 = vmatmul.msk.f32.gmra.mxu3 %vm2195_vm4, %v11305_v36  ;;  %v11537_v39 = vpop.f32.mrf.mxu2 }
 0x356   :  { %7484 = vmatmul.msk.f32.gmra.mxu1 %vm2195_vm4, %v11408_v34  ;;  %v11543_v0 = vpop.f32.mrf.mxu3 }
 0x35b   :  { %7522 = vmatmul.msk.f32.gmra.mxu2 %vm2195_vm4, %v11336_v18 }
 0x35d   :  { %7476 = vmatmul.msk.f32.gmra.mxu0 %vm2195_vm4, %v11418_v57  ;;  %7498 = vmatmul.msk.f32.gmra.mxu3 %vm2195_vm4, %v11336_v18  ;;  %v11551_v35 = vpop.f32.mrf.mxu2 }
 0x35e   :  { %7485 = vmatmul.msk.f32.gmra.mxu1 %vm2195_vm4, %v11432_v63 }
 0x35f   :  { %v11555_v61 = vpop.f32.mrf.mxu3 }
 0x363   :  { %7523 = vmatmul.msk.f32.gmra.mxu2 %vm2195_vm4, %v11375_v42 }
 0x365   :  { %7477 = vmatmul.msk.f32.gmra.mxu0 %vm2195_vm4, %v8203_v3  ;;  %7499 = vmatmul.msk.f32.gmra.mxu3 %vm2195_vm4, %v11375_v42  ;;  %v11564_v22 = vpop.f32.mrf.mxu2 }
 0x366   :  { %7486 = vmatmul.msk.f32.gmra.mxu1 %vm2195_vm4, %v11457_v28 }
 0x367   :  { %v11568_v45 = vpop.f32.mrf.mxu3 }
 0x369   :  { %v11570_v21 = vpop.f32.mrf.mxu1 }
 0x36b   :  { %7524 = vmatmul.msk.f32.gmra.mxu2 %vm2195_vm4, %v11408_v34 }
 0x36d   :  { %7478 = vmatmul.msk.f32.gmra.mxu0 %vm2195_vm4, %v8205_v32  ;;  %7500 = vmatmul.msk.f32.gmra.mxu3 %vm2195_vm4, %v11408_v34  ;;  %v11577_v15 = vpop.f32.mrf.mxu2 }
 0x36e   :  { %7511 = vmatmul.msk.f32.vlgmr.msrb.gmra.mxu1 %vm2195_vm4, %v11241_v23 }
 0x36f   :  { %v11581_v57 = vpop.f32.mrf.mxu3 }
 0x372   :  { %v11583_v10 = vpop.f32.mrf.mxu1 }
 0x373   :  { %7525 = vmatmul.msk.f32.gmra.mxu2 %vm2195_vm4, %v11432_v63 }
 0x375   :  { %7501 = vmatmul.msk.f32.gmra.mxu3 %vm2195_vm4, %v11432_v63  ;;  %7503 = vmatmul.msk.f32.vlgmr.msrb.gmra.mxu0 %vm2195_vm4, %v11241_v23 }
 0x376   :  { %7512 = vmatmul.msk.f32.gmra.mxu1 %vm2195_vm4, %v11272_v11  ;;  %v11593_v16 = vpop.f32.mrf.mxu2 }
 0x377   :  { %v11595_v17 = vpop.f32.mrf.mxu3 }
 0x37a   :  { %v11597_v41 = vpop.f32.mrf.mxu1 }
 0x37b   :  { %7526 = vmatmul.msk.f32.gmra.mxu2 %vm2195_vm4, %v11457_v28 }
 0x37d   :  { %7502 = vmatmul.msk.f32.gmra.mxu3 %vm2195_vm4, %v11457_v28  ;;  %7504 = vmatmul.msk.f32.gmra.mxu0 %vm2195_vm4, %v11272_v11 }
 0x37e   :  { %7513 = vmatmul.msk.f32.gmra.mxu1 %vm2195_vm4, %v11305_v36  ;;  %v11607_v3 = vpop.f32.mrf.mxu2 }
 0x37f   :  { %v11609_v43 = vpop.f32.mrf.mxu3 }
 0x382   :  { %v11611_v44 = vpop.f32.mrf.mxu1 }
 0x385   :  { %7505 = vmatmul.msk.f32.gmra.mxu0 %vm2195_vm4, %v11305_v36  ;;  %7527 = vmatmul.msk.f32.vlgmr.msra.gmra.mxu3 %vm2195_vm4, %v11241_v23 }
 0x386   :  { %7514 = vmatmul.msk.f32.gmra.mxu1 %vm2195_vm4, %v11336_v18  ;;  %v11619_v27 = vpop.f32.mrf.mxu2 }
 0x387   :  { %v11621_v9 = vpop.f32.mrf.mxu3 }
 0x38a   :  { %v11623_v26 = vpop.f32.mrf.mxu1 }
 0x38d   :  { %7506 = vmatmul.msk.f32.gmra.mxu0 %vm2195_vm4, %v11336_v18  ;;  %7528 = vmatmul.msk.f32.gmra.mxu3 %vm2195_vm4, %v11272_v11 }
 0x38e   :  { %7515 = vmatmul.msk.f32.gmra.mxu1 %vm2195_vm4, %v11375_v42  ;;  %v11631_v12 = vpop.f32.mrf.mxu2 }
 0x38f   :  { %v11633_v23 = vpop.f32.mrf.mxu3 }
 0x392   :  { %v11635_v48 = vpop.f32.mrf.mxu1 }
 0x395   :  { %7507 = vmatmul.msk.f32.gmra.mxu0 %vm2195_vm4, %v11375_v42  ;;  %7529 = vmatmul.msk.f32.gmra.mxu3 %vm2195_vm4, %v11305_v36 }
 0x396   :  { %7516 = vmatmul.msk.f32.gmra.mxu1 %vm2195_vm4, %v11408_v34  ;;  %v11643_v32 = vpop.f32.mrf.mxu2 }
 0x397   :  { %v11645_v11 = vpop.f32.mrf.mxu3 }
 0x39a   :  { %v11647_v38 = vpop.f32.mrf.mxu1 }
 0x39d   :  { %7508 = vmatmul.msk.f32.gmra.mxu0 %vm2195_vm4, %v11408_v34  ;;  %7530 = vmatmul.msk.f32.gmra.mxu3 %vm2195_vm4, %v11336_v18 }
 0x39e   :  { %7517 = vmatmul.msk.f32.gmra.mxu1 %vm2195_vm4, %v11432_v63  ;;  %v2606_v46 = vpop.f32.mrf.mxu2 }
 0x39f   :  { %v11656_v36 = vmax.f32 %v11359_v49, %v2606_v46 }
 0x3a0   :  { %v11658_v19 = vpop.f32.mrf.mxu3 }
 0x3a1   :  { %18467 = vst [vmem:[#allocation128_spill] sm:$0xff] %v11656_v36  ;;  %2904 = vrot.lane.b32.xlu2 %v11656_v36, %s8242_s0 }
 0x3a2   :  { %v11662_v5 = vpop.f32.mrf.mxu1 }
 0x3a5   :  { %7509 = vmatmul.msk.f32.gmra.mxu0 %vm2195_vm4, %v11432_v63  ;;  %7531 = vmatmul.msk.f32.gmra.mxu3 %vm2195_vm4, %v11375_v42 }
 0x3a6   :  { %7518 = vmatmul.msk.f32.gmra.mxu1 %vm2195_vm4, %v11457_v28  ;;  %v2609_v18 = vpop.f32.mrf.mxu2 }
 0x3a7   :  { %v11671_v49 = vmax.f32 %v11395_v29, %v2609_v18 }
 0x3a8   :  { %v11673_v1 = vpop.f32.mrf.mxu3 }
 0x3a9   :  { %18468 = vst [vmem:[#allocation19_spill] sm:$0xff] %v11671_v49  ;;  %2906 = vrot.lane.b32.xlu0 %v11671_v49, %s8242_s0 }
 0x3aa   :  { %v2556_v30 = vpop.f32.mrf.mxu1 }
 0x3ad   :  { %7510 = vmatmul.msk.f32.gmra.mxu0 %vm2195_vm4, %v11457_v28  ;;  %7532 = vmatmul.msk.f32.gmra.mxu3 %vm2195_vm4, %v11408_v34 }
 0x3ae   :  { %v2612_v42 = vpop.f32.mrf.mxu2 }
 0x3af   :  { %v11682_v58 = vmax.f32 %v11424_v7, %v2612_v42 }
 0x3b0   :  { %v11684_v24 = vpop.f32.mrf.mxu3 }
 0x3b1   :  { %18469 = vst [vmem:[#allocation137_spill] sm:$0xff] %v11682_v58  ;;  %2908 = vrot.lane.b32.xlu1 %v11682_v58, %s8242_s0 }
 0x3b2   :  { %v11688_v29 = vpop.f32.mrf.mxu0 }
 0x3b3   :  { %v2559_v33 = vpop.f32.mrf.mxu1 }
 0x3b5   :  { %7533 = vmatmul.msk.f32.gmra.mxu3 %vm2195_vm4, %v11432_v63 }
 0x3b6   :  { %v2615_v47 = vpop.f32.mrf.mxu2 }
 0x3b7   :  { %v11693_v60 = vmax.f32 %v11444_v20, %v2615_v47 }
 0x3b8   :  { %v11695_v34 = vpop.f32.mrf.mxu3 }
 0x3b9   :  { %18470 = vst [vmem:[#allocation58_spill] sm:$0xff] %v11693_v60  ;;  %2910 = vrot.lane.b32.xlu2 %v11693_v60, %s8242_s0 }
 0x3ba   :  { %v11699_v7 = vpop.f32.mrf.mxu0 }
 0x3bb   :  { %18471 = vst [vmem:[#allocation125_spill] sm:$0xff] %v11699_v7  ;;  %v2562_v40 = vpop.f32.mrf.mxu1 }
 0x3bc   :  { %v11702_v8 = vmax.f32 %v11426_v51, %v2562_v40 }
 0x3bd   :  { %7534 = vmatmul.msk.f32.gmra.mxu3 %vm2195_vm4, %v11457_v28 }
 0x3be   :  { %18472 = vst [vmem:[#allocation15_spill] sm:$0xff] %v11702_v8  ;;  %2886 = vrot.lane.b32.xlu0 %v11702_v8, %s8242_s0  ;;  %v2618_v20 = vpop.f32.mrf.mxu2  ;;  %v11761_v8 = vmax.f32 %v11323_v59, %v11643_v32 }
 0x3bf   :  { %v11713_v18 = vmax.f32 %v11473_v37, %v2618_v20 }
 0x3c0   :  { %v11708_v63 = vpop.f32.mrf.mxu3 }
 0x3c1   :  { %18473 = vst [vmem:[#allocation135_spill] sm:$0xff] %v11713_v18 }
 0x3c2   :  { %v11710_v54 = vpop.f32.mrf.mxu0 }
 0x3c3   :  { %v2565_v46 = vpop.f32.mrf.mxu1 }
 0x3c4   :  { %v11716_v42 = vmax.f32 %v11450_v56, %v2565_v46 }
 0x3c6   :  { %2888 = vrot.lane.b32.xlu1 %v11716_v42, %s8242_s0  ;;  %2912 = vrot.lane.b32.xlu0 %v11713_v18, %s8242_s0  ;;  %v11726_v40 = vpop.f32.mrf.mxu2 }
 0x3c8   :  { %v11722_v51 = vpop.f32.mrf.mxu3 }
 0x3ca   :  { %v11724_v28 = vpop.f32.mrf.mxu0 }
 0x3cb   :  { %v2568_v47 = vpop.f32.mrf.mxu1 }
 0x3cc   :  { %v11729_v36 = vmax.f32 %v11481_v62, %v2568_v47  ;;  %v11746_v47 = vmax.f32 %v11288_v2, %v11631_v12 }
 0x3ce   :  { %2890 = vrot.lane.b32.xlu2 %v11729_v36, %s8242_s0  ;;  %v11738_v49 = vpop.f32.mrf.mxu2  ;;  %18475 = vst [vmem:[#allocation122_spill] sm:$0xff] %v11746_v47 }
 0x3d0   :  { %v2641_v56 = vpop.f32.mrf.mxu3 }
 0x3d2   :  { %v11733_v37 = vpop.f32.mrf.mxu0 }
 0x3d3   :  { %v2571_v20 = vpop.f32.mrf.mxu1 }
 0x3d4   :  { %v11736_v46 = vmax.f32 %v11509_v31, %v2571_v20 }
 0x3d6   :  { %2892 = vrot.lane.b32.xlu0 %v11736_v46, %s8242_s0  ;;  %v11755_v31 = vpop.f32.mrf.mxu2 }
 0x3d8   :  { %v2644_v58 = vpop.f32.mrf.mxu3 }
 0x3da   :  { %v11742_v60 = vpop.f32.mrf.mxu0 }
 0x3db   :  { %18474 = vst [vmem:[#allocation54_spill] sm:$0xff] %v11742_v60  ;;  %v2574_v62 = vpop.f32.mrf.mxu1 }
 0x3dc   :  { %v11749_v18 = vmax.f32 %v11539_v13, %v2574_v62 }
 0x3de   :  { %2894 = vrot.lane.b32.xlu1 %v11749_v18, %s8242_s0  ;;  %2900 = vrot.lane.b32.xlu0 %v11746_v47, %s8242_s0  ;;  %v11775_v62 = vpop.f32.mrf.mxu2 }
 0x3e0   :  { %v2647_v20 = vpop.f32.mrf.mxu3 }
 0x3e1   :  { %v11767_v13 = vmax.f32 %v11555_v61, %v2647_v20  ;;  %v11785_v61 = vmax.f32 %v11385_v4, %v2559_v33  ;;  %v11800_v4 = vmax.f32 %v11259_v55, %v11619_v27 }
 0x3e2   :  { %v11757_v7 = vpop.f32.mrf.mxu0 }
 0x3e3   :  { %v2577_v60 = vpop.f32.mrf.mxu1  ;;  %18476 = vst [vmem:[#allocation12_spill] sm:$0xff] %v11767_v13 }
 0x3e4   :  { %v11764_v2 = vmax.f32 %v11557_v25, %v2577_v60  ;;  %v11782_v25 = vmax.f32 %v11340_v52, %v2556_v30  ;;  %v11788_v60 = vmax.f32 %v11543_v0, %v2644_v58  ;;  %v11805_v0 = vmax.f32 %v11525_v6, %v2641_v56 }
 0x3e6   :  { %2902 = vrot.lane.b32.xlu1 %v11761_v8, %s8242_s0  ;;  %2896 = vrot.lane.b32.xlu2 %v11764_v2, %s8242_s0  ;;  %18477 = vst [vmem:[#allocation132_spill] sm:$0xff] %v11788_v60  ;;  %v11802_v30 = vpop.f32.mrf.mxu2 }
 0x3e7   :  { %2920 = vrot.lane.b32.xlu0 %v11767_v13, %s8242_s0 }
 0x3e8   :  { %v2650_v12 = vpop.f32.mrf.mxu3 }
 0x3e9   :  { %v11818_v27 = vmax.f32 %v11568_v45, %v2650_v12 }
 0x3ea   :  { %v11777_v59 = vpop.f32.mrf.mxu0 }
 0x3eb   :  { %v11779_v32 = vpop.f32.mrf.mxu1 }
 0x3ee   :  { %2882 = vrot.lane.b32.xlu1 %v11782_v25, %s8242_s0  ;;  %2884 = vrot.lane.b32.xlu2 %v11785_v61, %s8242_s0  ;;  %v11822_v6 = vpop.f32.mrf.mxu2 }
 0x3ef   :  { %2918 = vrot.lane.b32.xlu0 %v11788_v60, %s8242_s0 }
 0x3f0   :  { %v2653_v20 = vpop.f32.mrf.mxu3 }
 0x3f1   :  { %v11835_v12 = vmax.f32 %v11581_v57, %v2653_v20 }
 0x3f2   :  { %v11796_v13 = vpop.f32.mrf.mxu0 }
 0x3f3   :  { %v2723_v52 = vpop.f32.mrf.mxu1 }
 0x3f4   :  { %v11815_v55 = vmax.f32 %v11519_v53, %v2723_v52 }
 0x3f6   :  { %2898 = vrot.lane.b32.xlu2 %v11800_v4, %s8242_s0  ;;  %18478 = vst [vmem:[#allocation50_spill] sm:$0xff] %v11815_v55  ;;  %v2779_v52 = vpop.f32.mrf.mxu2 }
 0x3f7   :  { %2916 = vrot.lane.b32.xlu0 %v11805_v0, %s8242_s0 }
 0x3f8   :  { %v2656_v58 = vpop.f32.mrf.mxu3 }
 0x3fa   :  { %v2682_v33 = vpop.f32.mrf.mxu0 }
 0x3fb   :  { %v11812_v60 = vmax.f32 %v11583_v10, %v2682_v33  ;;  %v2726_v47 = vpop.f32.mrf.mxu1 }
 0x3fc   :  { %v11832_v45 = vmax.f32 %v11537_v39, %v2726_v47  ;;  %v11852_v47 = vmax.f32 %v11595_v17, %v2656_v58 }
 0x3fd   :  { %2932 = vrot.lane.b32.xlu1 %v11812_v60, %s8242_s0 }
 0x3fe   :  { %2948 = vrot.lane.b32.xlu2 %v11815_v55, %s8242_s0  ;;  %18479 = vst [vmem:[#allocation119_spill] sm:$0xff] %v11832_v45 }
 0x3ff   :  { %2922 = vrot.lane.b32.xlu0 %v11818_v27, %s8242_s0 }
 0x400   :  { %v2659_v10 = vpop.f32.mrf.mxu3 }
 0x402   :  { %v2685_v56 = vpop.f32.mrf.mxu0 }
 0x403   :  { %v11829_v33 = vmax.f32 %v11597_v41, %v2685_v56  ;;  %v2729_v53 = vpop.f32.mrf.mxu1 }
 0x404   :  { %v11849_v57 = vmax.f32 %v11551_v35, %v2729_v53 }
 0x405   :  { %2934 = vrot.lane.b32.xlu1 %v11829_v33, %s8242_s0 }
 0x406   :  { %2950 = vrot.lane.b32.xlu2 %v11832_v45, %s8242_s0  ;;  %18480 = vst [vmem:[#allocation9_spill] sm:$0xff] %v11849_v57 }
 0x407   :  { %2924 = vrot.lane.b32.xlu0 %v11835_v12, %s8242_s0 }
 0x408   :  { %v11843_v55 = vpop.f32.mrf.mxu3 }
 0x40a   :  { %v2688_v41 = vpop.f32.mrf.mxu0 }
 0x40b   :  { %v11846_v56 = vmax.f32 %v11611_v44, %v2688_v41  ;;  %v2732_v39 = vpop.f32.mrf.mxu1  ;;  %v2782_v44 = vpop.f32.mrf.mxu2 }
 0x40c   :  { %v11866_v35 = vmax.f32 %v11564_v22, %v2732_v39  ;;  %v11869_v17 = vmax.f32 %v11708_v63, %v2782_v44  ;;  %v11886_v63 = vmax.f32 %v11609_v43, %v2659_v10  ;;  %v11902_v43 = vmax.f32 %v11495_v14, %v11779_v32  ;;  %v11910_v10 = vpop.permute.xlu2 %2904 }
 0x40d   :  { %2936 = vrot.lane.b32.xlu1 %v11846_v56, %s8242_s0  ;;  %v11920_v14 = vmax.f32 %v11673_v1, %v11802_v30  ;;  %v11938_v1 = vmax.f32 %v11570_v21, %v11796_v13  ;;  %v11942_v30 = vmax.f32 %v11633_v23, %v11738_v49  ;;  %v11955_v21 = vmax.f32 %v11695_v34, %v2779_v52 }
 0x40e   :  { %2952 = vrot.lane.b32.xlu2 %v11849_v57, %s8242_s0  ;;  %18481 = vst [vmem:[#allocation129_spill] sm:$0xff] %v11866_v35  ;;  %v11959_v23 = vmax.f32 %v11684_v24, %v11822_v6  ;;  %v18488_v24 = vld [vmem:[#allocation5_spill] sm:$0xff] }
 0x40f   :  { %2926 = vrot.lane.b32.xlu0 %v11852_v47, %s8242_s0  ;;  %18482 = vst [vmem:[#allocation46_spill] sm:$0xff] %v11902_v43  ;;  %vm3218_vm6 = vcmp.lt.s32.totalorder %v18488_v24, 2  ;;  %vm3458_vm7 = vcmp.lt.s32.totalorder %v18488_v24, 126 }
 0x410   :  { %v11860_v20 = vpop.f32.mrf.mxu3  ;;  %18483 = vst [vmem:[#allocation116_spill] sm:$0xff] %v11920_v14 }
 0x411   :  { %18484 = vst [vmem:[#allocation7_spill] sm:$0xff] %v11942_v30 }
 0x412   :  { %v2691_v41 = vpop.f32.mrf.mxu0  ;;  %18486 = vst [vmem:[#allocation61_spill] sm:$0xff] %v11955_v21 }
 0x413   :  { %v11863_v45 = vmax.f32 %v11623_v26, %v2691_v41  ;;  %v2735_v58 = vpop.f32.mrf.mxu1  ;;  %18487 = vst [vmem:[#allocation123_spill] sm:$0xff] %v11959_v23 }
 0x414   :  { %v11883_v22 = vmax.f32 %v11577_v15, %v2735_v58 }
 0x415   :  { %2938 = vrot.lane.b32.xlu1 %v11863_v45, %s8242_s0 }
 0x416   :  { %2954 = vrot.lane.b32.xlu2 %v11866_v35, %s8242_s0 }
 0x417   :  { %2976 = vrot.lane.b32.xlu0 %v11869_v17, %s8242_s0 }
 0x418   :  { %v11877_v53 = vpop.f32.mrf.mxu3 }
 0x41a   :  { %v2694_v26 = vpop.f32.mrf.mxu0 }
 0x41b   :  { %v11880_v41 = vmax.f32 %v11635_v48, %v2694_v26  ;;  %v2738_v39 = vpop.f32.mrf.mxu1  ;;  %v11924_v32 = vpop.permute.xlu0 %2906 }
 0x41c   :  { %v11898_v15 = vmax.f32 %v11593_v16, %v2738_v39 }
 0x41d   :  { %2940 = vrot.lane.b32.xlu1 %v11880_v41, %s8242_s0 }
 0x41e   :  { %2956 = vrot.lane.b32.xlu2 %v11883_v22, %s8242_s0 }
 0x41f   :  { %2928 = vrot.lane.b32.xlu0 %v11886_v63, %s8242_s0 }
 0x420   :  { %v2811_v58 = vpop.f32.mrf.mxu3 }
 0x421   :  { %v11962_v49 = vmax.f32 %v11724_v28, %v2811_v58 }
 0x422   :  { %v2697_v44 = vpop.f32.mrf.mxu0 }
 0x423   :  { %v11895_v48 = vmax.f32 %v11647_v38, %v2697_v44  ;;  %v2741_v38 = vpop.f32.mrf.mxu1  ;;  %v11968_v13 = vpop.permute.xlu1 %2908 }
 0x424   :  { %v11916_v39 = vmax.f32 %v11607_v3, %v2741_v38  ;;  %v11934_v3 = vmax.f32 %v11501_v50, %v11722_v51 }
 0x425   :  { %2942 = vrot.lane.b32.xlu1 %v11895_v48, %s8242_s0 }
 0x426   :  { %2958 = vrot.lane.b32.xlu2 %v11898_v15, %s8242_s0 }
 0x427   :  { %2946 = vrot.lane.b32.xlu0 %v11902_v43, %s8242_s0 }
 0x428   :  { %v2814_v44 = vpop.f32.mrf.mxu3 }
 0x42a   :  { %v2700_v26 = vpop.f32.mrf.mxu0 }
 0x42b   :  { %v11913_v16 = vmax.f32 %v11662_v5, %v2700_v26  ;;  %v11930_v5 = vpop.permute.xlu2 %2910  ;;  %v11985_v26 = vmax.f32 %v11658_v19, %v11775_v62  ;;  %v12016_v62 = vmax.f32 %v11688_v29, %v11843_v55 }
 0x42d   :  { %2944 = vrot.lane.b32.xlu1 %v11913_v16, %s8242_s0  ;;  %18490 = vst [vmem:[#allocation120_spill] sm:$0xff] %v11985_v26 }
 0x42e   :  { %2960 = vrot.lane.b32.xlu2 %v11916_v39, %s8242_s0  ;;  %18496 = vst [vmem:[#allocation173_spill] sm:$0xff] %v12016_v62 }
 0x42f   :  { %2970 = vrot.lane.b32.xlu0 %v11920_v14, %s8242_s0 }
 0x430   :  { %v11946_v38 = vpop.permute.xlu0 %2886  ;;  %v2817_v51 = vpop.f32.mrf.mxu3 }
 0x431   :  { %18485 = vst [vmem:[#allocation126_spill] sm:$0xff] %v11946_v38 }
 0x433   :  { %v11952_v50 = vpop.permute.xlu2 %2890 }
 0x435   :  { %2914 = vrot.lane.b32.xlu1 %v11934_v3, %s8242_s0 }
 0x436   :  { %2930 = vrot.lane.b32.xlu2 %v11938_v1, %s8242_s0 }
 0x437   :  { %2964 = vrot.lane.b32.xlu0 %v11942_v30, %s8242_s0  ;;  %v11989_v30 = vmax.f32 %v11645_v11, %v11755_v31  ;;  %v12009_v31 = vmax.f32 %v11621_v9, %v11726_v40 }
 0x438   :  { %v11972_v34 = vpop.permute.xlu0 %2912  ;;  %v2820_v6 = vpop.f32.mrf.mxu3 }
 0x439   :  { %18491 = vst [vmem:[#allocation53_spill] sm:$0xff] %v11989_v30  ;;  %v11993_v14 = vmax.f32 %v11757_v7, %v2820_v6  ;;  %v12012_v7 = vmax.f32 %v11733_v37, %v2814_v44 }
 0x43a   :  { %18495 = vst [vmem:[#allocation178_spill] sm:$0xff] %v12009_v31 }
 0x43b   :  { %18492 = vst [vmem:[#allocation117_spill] sm:$0xff] %v11993_v14 }
 0x43d   :  { %2974 = vrot.lane.b32.xlu1 %v11955_v21, %s8242_s0 }
 0x43e   :  { %2972 = vrot.lane.b32.xlu2 %v11959_v23, %s8242_s0 }
 0x43f   :  { %2984 = vrot.lane.b32.xlu0 %v11962_v49, %s8242_s0 }
 0x440   :  { %v11974_v52 = vpop.permute.xlu2 %2896  ;;  %v2823_v40 = vpop.f32.mrf.mxu3 }
 0x441   :  { %v3041_v28 = vsel %vm263_vm3, %v11974_v52, %v11972_v34 }
 0x442   :  { %v11981_v58 = vmax.f32 %v11764_v2, %v3041_v28  ;;  %v11999_v2 = vpop.permute.xlu1 %2888 }
 0x443   :  { %v3037_v44 = vsel %vm263_vm3, %v11999_v2, %v11910_v10 }
 0x444   :  { %18489 = vst [vmem:[#allocation57_spill] sm:$0xff] %v11981_v58  ;;  %3666 = vmatpush.msra.mxu0 %v11981_v58 }
 0x445   :  { %2968 = vrot.lane.b32.xlu1 %v11985_v26, %s8242_s0 }
 0x446   :  { %2966 = vrot.lane.b32.xlu2 %v11989_v30, %s8242_s0  ;;  %v12054_v30 = vmax.f32 %v11777_v59, %v2823_v40 }
 0x447   :  { %2990 = vrot.lane.b32.xlu0 %v11993_v14, %s8242_s0  ;;  %v12198_v14 = vld [vmem:[%s17559_s3 + $0x98] sm:$0xff] }
 0x448   :  { %v12003_v19 = vpop.permute.xlu2 %2884  ;;  %v12005_v11 = vpop.permute.xlu0 %2892  ;;  %18517 = vst [vmem:[#allocation107_spill] sm:$0xff] %v12198_v14 }
 0x449   :  { %18493 = vst [vmem:[#allocation49_spill] sm:$0xff] %v12003_v19  ;;  %v3039_v29 = vsel %vm263_vm3, %v12005_v11, %v11968_v13 }
 0x44a   :  { %18494 = vst [vmem:[#allocation114_spill] sm:$0xff] %v12005_v11  ;;  %v12058_v26 = vmax.f32 %v11736_v46, %v3039_v29  ;;  %v18505_v29 = vld [vmem:[#allocation54_spill] sm:$0xff] }
 0x44c   :  { %18500 = vst [vmem:[#allocation59_spill] sm:$0xff] %v12058_v26 }
 0x44d   :  { %2962 = vrot.lane.b32.xlu1 %v12009_v31, %s8242_s0  ;;  %v12047_v31 = vmax.f32 %v11710_v54, %v11877_v53 }
 0x44e   :  { %2986 = vrot.lane.b32.xlu2 %v12012_v7, %s8242_s0 }
 0x44f   :  { %2978 = vrot.lane.b32.xlu0 %v12016_v62, %s8242_s0  ;;  %18499 = vst [vmem:[#allocation29_spill] sm:$0xff] %v12047_v31  ;;  %v3038_v62 = vsel %vm263_vm3, %v11952_v50, %v11924_v32 }
 0x450   :  { %v12024_v28 = vpop.permute.xlu1 %2894  ;;  %v12026_v9 = vpop.permute.xlu2 %2898  ;;  %v12069_v54 = vmax.f32 %v11729_v36, %v3038_v62  ;;  %v18503_v62 = vld [vmem:[#allocation15_spill] sm:$0xff] }
 0x451   :  { %18497 = vst [vmem:[#allocation42_spill] sm:$0xff] %v12024_v28  ;;  %v3040_v37 = vsel %vm263_vm3, %v12024_v28, %v11930_v5  ;;  %v12036_v55 = vpop.permute.xlu0 %2900 }
 0x452   :  { %v12043_v6 = vmax.f32 %v11749_v18, %v3040_v37  ;;  %v12063_v18 = vmax.f32 %v11716_v42, %v3037_v44  ;;  %18502 = vst [vmem:[#allocation25_spill] sm:$0xff] %v12069_v54  ;;  %v3035_v42 = vsel %vm263_vm3, %v12003_v19, %v12036_v55  ;;  %v12093_v37 = vmax.f32 %v18505_v29, %v2817_v51  ;;  %v18507_v44 = vld [vmem:[#allocation125_spill] sm:$0xff] }
 0x453   :  { %v12097_v23 = vmax.f32 %v18507_v44, %v11860_v20  ;;  %v12101_v11 = vmax.f32 %v11785_v61, %v3035_v42  ;;  %v12142_v44 = vld [vmem:[%s17559_s3 + $0x78] sm:$0xff] }
 0x454   :  { %18498 = vst [vmem:[#allocation39_spill] sm:$0xff] %v12043_v6  ;;  %3667 = vmatpush.msra.mxu0 %v12043_v6 }
 0x455   :  { %2982 = vrot.lane.b32.xlu1 %v12047_v31, %s8242_s0  ;;  %18501 = vst [vmem:[#allocation130_spill] sm:$0xff] %v12063_v18 }
 0x456   :  { %3668 = vmatpush.msra.mxu0 %v12058_v26  ;;  %2992 = vrot.lane.b32.xlu2 %v12054_v30, %s8242_s0  ;;  %18506 = vst [vmem:[#allocation127_spill] sm:$0xff] %v12093_v37 }
 0x457   :  { %3112 = vrot.lane.b32.xlu0 %v12063_v18, %s8244_s5  ;;  %18508 = vst [vmem:[#allocation63_spill] sm:$0xff] %v12097_v23 }
 0x458   :  { %v12073_v46 = vpop.permute.xlu1 %2902  ;;  %v12075_v59 = vpop.permute.xlu2 %2948  ;;  %3669 = vmatpush.msra.mxu0 %v12069_v54  ;;  %18509 = vst [vmem:[#allocation133_spill] sm:$0xff] %v12101_v11 }
 0x459   :  { %v3036_v36 = vsel %vm263_vm3, %v11946_v38, %v12073_v46  ;;  %v12086_v53 = vpop.permute.xlu0 %2920  ;;  %18512 = vst [vmem:[#allocation124_spill] sm:$0xff] %v12142_v44  ;;  %v12183_v38 = vld [vmem:[%s17559_s3 + $0x90] sm:$0xff] }
 0x45a   :  { %3670 = vmatpush.msra.mxu0 %v12063_v18  ;;  %v12090_v40 = vmax.f32 %v18503_v62, %v3036_v36  ;;  %v12126_v62 = vld [vmem:[%s17559_s3 + $0x70] sm:$0xff]  ;;  %v12159_v18 = vld [vmem:[%s17559_s3 + $0x80] sm:$0xff]  ;;  %18515 = vst [vmem:[#allocation47_spill] sm:$0xff] %v12183_v38 }
 0x45b   :  { %18513 = vst [vmem:[#allocation33_spill] sm:$0xff] %v12159_v18 }
 0x45c   :  { %18504 = vst [vmem:[#allocation55_spill] sm:$0xff] %v12090_v40  ;;  %3671 = vmatpush.msra.mxu0 %v12090_v40 }
 0x45d   :  { %2988 = vrot.lane.b32.xlu1 %v12093_v37, %s8242_s0 }
 0x45e   :  { %3672 = vmatpush.msra.mxu0 %v12101_v11  ;;  %2980 = vrot.lane.b32.xlu2 %v12097_v23, %s8242_s0 }
 0x45f   :  { %3118 = vrot.lane.b32.xlu0 %v12043_v6, %s8244_s5 }
 0x460   :  { %v12110_v51 = vpop.permute.xlu1 %2882  ;;  %v12112_v20 = vpop.permute.xlu2 %2950 }
 0x461   :  { %18510 = vst [vmem:[#allocation21_spill] sm:$0xff] %v12110_v51  ;;  %v3034_v61 = vsel %vm263_vm3, %v12110_v51, %v12026_v9  ;;  %v12118_v42 = vpop.permute.xlu0 %2918  ;;  %v12172_v51 = vld [vmem:[%s17559_s3 + $0x88] sm:$0xff] }
 0x462   :  { %v12121_v36 = vmax.f32 %v11782_v25, %v3034_v61  ;;  %18514 = vst [vmem:[#allocation17_spill] sm:$0xff] %v12172_v51 }
 0x464   :  { %18511 = vst [vmem:[#allocation51_spill] sm:$0xff] %v12121_v36  ;;  %3673 = vmatpush.msra.mxu0 %v12121_v36 }
 0x465   :  { %3108 = vrot.lane.b32.xlu1 %v12101_v11, %s8244_s5  ;;  %7549 = vmatmul.msk.f32.vlgmr.msra.gmra.mxu0 %vm3615_vm5, %v12126_v62 }
 0x466   :  { %3110 = vrot.lane.b32.xlu2 %v12090_v40, %s8244_s5 }
 0x468   :  { %v12135_v29 = vpop.permute.xlu2 %2952 }
 0x469   :  { %v12137_v25 = vpop.permute.xlu0 %2916 }
 0x46d   :  { %3114 = vrot.lane.b32.xlu1 %v12069_v54, %s8244_s5  ;;  %7550 = vmatmul.msk.f32.gmra.mxu0 %vm3615_vm5, %v12142_v44 }
 0x46e   :  { %3116 = vrot.lane.b32.xlu2 %v12058_v26, %s8244_s5 }
 0x46f   :  { %v12150_v61 = vpop.permute.xlu1 %2932 }
 0x470   :  { %v12152_v11 = vpop.permute.xlu2 %2954 }
 0x471   :  { %v12154_v40 = vpop.permute.xlu0 %2922 }
 0x475   :  { %3120 = vrot.lane.b32.xlu1 %v11981_v58, %s8244_s5  ;;  %7551 = vmatmul.msk.f32.gmra.mxu0 %vm3615_vm5, %v12159_v18 }
 0x477   :  { %v12165_v54 = vpop.permute.xlu1 %2934 }
 0x478   :  { %v12167_v26 = vpop.permute.xlu2 %2956 }
 0x479   :  { %v2925_v6 = vpop.permute.xlu0 %2924 }
 0x47d   :  { %7552 = vmatmul.msk.f32.gmra.mxu0 %vm3615_vm5, %v12172_v51 }
 0x47f   :  { %v12176_v37 = vpop.permute.xlu1 %2936 }
 0x480   :  { %v12178_v31 = vpop.permute.xlu2 %2958 }
 0x481   :  { %v2927_v58 = vpop.permute.xlu0 %2926 }
 0x482   :  { %v3032_v57 = vsel %vm263_vm3, %v11930_v5, %v2927_v58  ;;  %v18521_v5 = vld [vmem:[#allocation58_spill] sm:$0xff] }
 0x483   :  { %v12226_v35 = vmax.f32 %v18521_v5, %v3032_v57  ;;  %v3029_v57 = vsel %vm263_vm3, %v11910_v10, %v12086_v53  ;;  %v12261_v10 = vld [vmem:[%s17559_s3 + $0xa8] sm:$0xff] }
 0x484   :  { %18528 = vst [vmem:[#allocation168_spill] sm:$0xff] %v12261_v10 }
 0x485   :  { %7553 = vmatmul.msk.f32.gmra.mxu0 %vm3615_vm5, %v12183_v38 }
 0x487   :  { %v2939_v36 = vpop.permute.xlu1 %2938 }
 0x488   :  { %v2961_v43 = vpop.permute.xlu2 %2960 }
 0x489   :  { %v12187_v18 = vpop.permute.xlu0 %2976 }
 0x48a   :  { %v3009_v51 = vsel %vm263_vm3, %v2961_v43, %v12187_v18 }
 0x48b   :  { %v12193_v21 = vmax.f32 %v11916_v39, %v3009_v51  ;;  %v18518_v51 = vld [vmem:[#allocation135_spill] sm:$0xff] }
 0x48d   :  { %18516 = vst [vmem:[#allocation121_spill] sm:$0xff] %v12193_v21  ;;  %3902 = vmatpush.msrb.mxu0 %v12193_v21  ;;  %v12217_v21 = vld [vmem:[%s17559_s3 + $0xa0] sm:$0xff] }
 0x48e   :  { %7554 = vmatmul.msk.f32.gmra.mxu0 %vm3615_vm5, %v12198_v14  ;;  %18520 = vst [vmem:[#allocation108_spill] sm:$0xff] %v12217_v21  ;;  %v3031_v14 = vsel %vm263_vm3, %v11968_v13, %v2925_v6  ;;  %v18522_v13 = vld [vmem:[#allocation137_spill] sm:$0xff] }
 0x48f   :  { %v2941_v38 = vpop.permute.xlu1 %2940 }
 0x490   :  { %v12203_v23 = vpop.permute.xlu2 %2930 }
 0x491   :  { %v2929_v28 = vpop.permute.xlu0 %2928 }
 0x492   :  { %v3033_v39 = vsel %vm263_vm3, %v11972_v34, %v2929_v28  ;;  %v3030_v34 = vsel %vm263_vm3, %v11924_v32, %v12154_v40  ;;  %v18524_v32 = vld [vmem:[#allocation19_spill] sm:$0xff] }
 0x493   :  { %v12212_v19 = vmax.f32 %v18518_v51, %v3033_v39  ;;  %v12236_v51 = vmax.f32 %v18522_v13, %v3031_v14  ;;  %v12248_v44 = vmax.f32 %v18524_v32, %v3030_v34  ;;  %v3028_v14 = vsel %vm263_vm3, %v12073_v46, %v12118_v42  ;;  %v18526_v13 = vld [vmem:[#allocation128_spill] sm:$0xff] }
 0x494   :  { %v3027_v34 = vsel %vm263_vm3, %v12036_v55, %v12137_v25  ;;  %v12269_v32 = vmax.f32 %v11761_v8, %v3028_v14 }
 0x495   :  { %18519 = vst [vmem:[#allocation170_spill] sm:$0xff] %v12212_v19  ;;  %3136 = vrot.lane.b32.xlu2 %v12212_v19, %s8244_s5  ;;  %3725 = vmatpush.msra.mxu1 %v12212_v19 }
 0x496   :  { %7555 = vmatmul.msk.f32.gmra.mxu0 %vm3615_vm5, %v12217_v21  ;;  %18523 = vst [vmem:[#allocation43_spill] sm:$0xff] %v12236_v51  ;;  %v12256_v21 = vmax.f32 %v18526_v13, %v3029_v57  ;;  %v18529_v57 = vld [vmem:[#allocation122_spill] sm:$0xff] }
 0x497   :  { %3726 = vmatpush.msra.mxu1 %v12226_v35  ;;  %v2943_v39 = vpop.permute.xlu1 %2942  ;;  %18525 = vst [vmem:[#allocation118_spill] sm:$0xff] %v12248_v44  ;;  %v12275_v13 = vmax.f32 %v18529_v57, %v3027_v34 }
 0x498   :  { %v12242_v5 = vpop.permute.xlu2 %2972  ;;  %18527 = vst [vmem:[#allocation104_spill] sm:$0xff] %v12256_v21  ;;  %v3024_v55 = vsel %vm263_vm3, %v2927_v58, %v2943_v39  ;;  %v3015_v58 = vsel %vm263_vm3, %v2941_v38, %v12167_v26 }
 0x499   :  { %3727 = vmatpush.msra.mxu1 %v12236_v51  ;;  %v12245_v19 = vpop.permute.xlu0 %2946  ;;  %18530 = vst [vmem:[#allocation110_spill] sm:$0xff] %v12275_v13  ;;  %v3016_v51 = vsel %vm263_vm3, %v2943_v39, %v12178_v31  ;;  %v3014_v39 = vsel %vm263_vm3, %v2939_v36, %v12152_v11 }
 0x49b   :  { %3728 = vmatpush.msra.mxu1 %v12248_v44 }
 0x49d   :  { %3729 = vmatpush.msra.mxu1 %v12256_v21 }
 0x49e   :  { %7556 = vmatmul.msk.f32.gmra.mxu0 %vm3615_vm5, %v12261_v10 }
 0x49f   :  { %3730 = vmatpush.msra.mxu1 %v12269_v32  ;;  %v2945_v46 = vpop.permute.xlu1 %2944 }
 0x4a0   :  { %v3017_v8 = vsel %vm263_vm3, %v2945_v46, %v2961_v43  ;;  %v3025_v14 = vsel %vm263_vm3, %v2929_v28, %v2945_v46  ;;  %v12286_v10 = vpop.permute.xlu2 %2966  ;;  %v3023_v43 = vsel %vm263_vm3, %v2925_v6, %v2941_v38  ;;  %v12313_v28 = vld [vmem:[%s17559_s3 + $0xb0] sm:$0xff]  ;;  %v3022_v38 = vsel %vm263_vm3, %v12154_v40, %v2939_v36 }
 0x4a1   :  { %v12289_v21 = vmax.f32 %v11886_v63, %v3025_v14  ;;  %v12292_v34 = vmax.f32 %v11913_v16, %v3017_v8  ;;  %3731 = vmatpush.msra.mxu1 %v12275_v13  ;;  %v12295_v57 = vpop.permute.xlu0 %2970  ;;  %v12305_v63 = vmax.f32 %v11852_v47, %v3024_v55  ;;  %v12308_v16 = vmax.f32 %v11895_v48, %v3016_v51 }
 0x4a2   :  { %v12324_v47 = vmax.f32 %v11880_v41, %v3015_v58  ;;  %v12327_v48 = vmax.f32 %v11835_v12, %v3023_v43  ;;  %v3013_v6 = vsel %vm263_vm3, %v12176_v37, %v12135_v29  ;;  %v3021_v40 = vsel %vm263_vm3, %v12086_v53, %v12176_v37 }
 0x4a3   :  { %3784 = vmatpush.msrb.mxu2 %v12289_v21  ;;  %3843 = vmatpush.msrb.mxu3 %v12292_v34  ;;  %v12342_v12 = vmax.f32 %v11818_v27, %v3022_v38  ;;  %v12345_v41 = vmax.f32 %v11863_v45, %v3014_v39  ;;  %v3012_v51 = vsel %vm263_vm3, %v12165_v54, %v12112_v20 }
 0x4a4   :  { %v3020_v53 = vsel %vm263_vm3, %v12118_v42, %v12165_v54  ;;  %v12369_v55 = vmax.f32 %v11846_v56, %v3013_v6  ;;  %v3019_v56 = vsel %vm263_vm3, %v12137_v25, %v12150_v61  ;;  %v3010_v14 = vsel %vm263_vm3, %v12203_v23, %v12245_v19  ;;  %v18533_v25 = vld [vmem:[#allocation132_spill] sm:$0xff] }
 0x4a5   :  { %3785 = vmatpush.msrb.mxu2 %v12305_v63  ;;  %3844 = vmatpush.msrb.mxu3 %v12308_v16  ;;  %v12419_v43 = vmax.f32 %v11805_v0, %v3019_v56  ;;  %v3007_v0 = vsel %vm263_vm3, %v12167_v26, %v12242_v5 }
 0x4a6   :  { %7557 = vmatmul.msk.f32.gmra.mxu0 %vm3615_vm5, %v12313_v28 }
 0x4a7   :  { %v2915_v36 = vpop.permute.xlu1 %2914  ;;  %3845 = vmatpush.msrb.mxu3 %v12324_v47  ;;  %3786 = vmatpush.msrb.mxu2 %v12327_v48 }
 0x4a8   :  { %v3026_v37 = vsel %vm263_vm3, %v12026_v9, %v2915_v36  ;;  %v12358_v46 = vpop.permute.xlu2 %2986  ;;  %v3011_v9 = vsel %vm263_vm3, %v12150_v61, %v12075_v59  ;;  %v12406_v61 = vmax.f32 %v18533_v25, %v3020_v53 }
 0x4a9   :  { %v3046_v27 = vsel %vm263_vm3, %v12358_v46, %v11952_v50  ;;  %v12364_v45 = vpop.permute.xlu0 %2964  ;;  %3787 = vmatpush.msrb.mxu2 %v12342_v12  ;;  %3846 = vmatpush.msrb.mxu3 %v12345_v41  ;;  %v12372_v54 = vmax.f32 %v11800_v4, %v3026_v37  ;;  %v18532_v50 = vld [vmem:[#allocation12_spill] sm:$0xff]  ;;  %v12391_v4 = vmax.f32 %v11829_v33, %v3012_v51  ;;  %v18541_v37 = vld [vmem:[#allocation49_spill] sm:$0xff] }
 0x4aa   :  { %v12379_v42 = vmax.f32 %v12012_v7, %v3046_v27  ;;  %v12382_v8 = vmax.f32 %v18532_v50, %v3021_v40  ;;  %v12396_v7 = vld [vmem:[%s17559_s3 + $0xb8] sm:$0xff]  ;;  %v3018_v33 = vsel %vm263_vm3, %v2915_v36, %v12203_v23  ;;  %v12415_v58 = vmax.f32 %v11812_v60, %v3011_v9  ;;  %v18542_v50 = vld [vmem:[#allocation9_spill] sm:$0xff] }
 0x4ab   :  { %3847 = vmatpush.msrb.mxu3 %v12369_v55  ;;  %3732 = vmatpush.msra.mxu1 %v12372_v54  ;;  %v12425_v23 = vmax.f32 %v11938_v1, %v3010_v14  ;;  %v12432_v6 = vmax.f32 %v11934_v3, %v3018_v33  ;;  %v3004_v14 = vsel %vm263_vm3, %v12112_v20, %v12286_v10 }
 0x4ac   :  { %18531 = vst [vmem:[#allocation91_spill] sm:$0xff] %v12379_v42  ;;  %3210 = vrot.lane.b32.xlu2 %v12379_v42, %s8244_s5  ;;  %3788 = vmatpush.msrb.mxu2 %v12382_v8 }
 0x4ad   :  { %7563 = vmatmul.msk.f32.vlgmr.msra.gmra.mxu1 %vm3615_vm5, %v12126_v62  ;;  %3848 = vmatpush.msrb.mxu3 %v12391_v4  ;;  %18534 = vst [vmem:[#allocation10_spill] sm:$0xff] %v12415_v58 }
 0x4ae   :  { %3789 = vmatpush.msrb.mxu2 %v12406_v61  ;;  %7558 = vmatmul.msk.f32.gmra.mxu0 %vm3615_vm5, %v12396_v7 }
 0x4af   :  { %3849 = vmatpush.msrb.mxu3 %v12415_v58  ;;  %v2975_v39 = vpop.permute.xlu1 %2974 }
 0x4b0   :  { %v2993_v38 = vpop.permute.xlu2 %2992  ;;  %v3008_v60 = vsel %vm263_vm3, %v12178_v31, %v2975_v39  ;;  %3790 = vmatpush.msrb.mxu2 %v12419_v43 }
 0x4b1   :  { %v3001_v1 = vsel %vm263_vm3, %v12187_v18, %v2993_v38  ;;  %v3049_v40 = vsel %vm263_vm3, %v2993_v38, %v11974_v52  ;;  %v12444_v36 = vpop.permute.xlu0 %2984  ;;  %3850 = vmatpush.msrb.mxu3 %v12425_v23  ;;  %v12448_v3 = vmax.f32 %v11898_v15, %v3008_v60  ;;  %v3006_v15 = vsel %vm263_vm3, %v12152_v11, %v12295_v57  ;;  %v12482_v52 = vld [vmem:[%s17559_s3 + $0xc0] sm:$0xff] }
 0x4b2   :  { %v12451_v31 = vmax.f32 %v11869_v17, %v3001_v1  ;;  %v3045_v26 = vsel %vm263_vm3, %v12444_v36, %v11999_v2  ;;  %3791 = vmatpush.msrb.mxu2 %v12432_v6  ;;  %v12459_v18 = vmax.f32 %v12054_v30, %v3049_v40  ;;  %7591 = vmatmul.msk.f32.vlgmr.msrb.gmra.mxu3 %vm3615_vm5, %v12126_v62  ;;  %v18539_v2 = vld [vmem:[#allocation129_spill] sm:$0xff]  ;;  %v18545_v38 = vld [vmem:[#allocation63_spill] sm:$0xff] }
 0x4b3   :  { %3903 = vmatpush.msrb.mxu0 %v12448_v3  ;;  %v12469_v17 = vmax.f32 %v11962_v49, %v3045_v26  ;;  %7577 = vmatmul.msk.f32.vlgmr.msrb.gmra.mxu2 %vm3615_vm5, %v12126_v62  ;;  %v12477_v30 = vmax.f32 %v11883_v22, %v3007_v0  ;;  %v18538_v49 = vld [vmem:[#allocation124_spill] sm:$0xff]  ;;  %v12491_v11 = vmax.f32 %v18539_v2, %v3006_v15  ;;  %v18547_v0 = vld [vmem:[#allocation117_spill] sm:$0xff]  ;;  %v18550_v26 = vld [vmem:[#allocation119_spill] sm:$0xff] }
 0x4b4   :  { %18535 = vst [vmem:[#allocation40_spill] sm:$0xff] %v12459_v18  ;;  %3216 = vrot.lane.b32.xlu2 %v12459_v18, %s8244_s5  ;;  %3961 = vmatpush.msrb.mxu1 %v12451_v31  ;;  %v18549_v40 = vld [vmem:[#allocation61_spill] sm:$0xff]  ;;  %v12543_v15 = vmax.f32 %v18550_v26, %v3004_v14  ;;  %v12548_v2 = vld [vmem:[%s17559_s3 + $0xc8] sm:$0xff]  ;;  %v18562_v26 = vld [vmem:[#allocation43_spill] sm:$0xff] }
 0x4b5   :  { %18536 = vst [vmem:[#allocation115_spill] sm:$0xff] %v12469_v17  ;;  %4020 = vmatpush.msra.mxu2 %v12459_v18  ;;  %3208 = vrot.lane.b32.xlu1 %v12469_v17, %s8244_s5 }
 0x4b6   :  { %18537 = vst [vmem:[#allocation37_spill] sm:$0xff] %v12477_v30  ;;  %7564 = vmatmul.msk.f32.gmra.mxu1 %vm3615_vm5, %v18538_v49  ;;  %3904 = vmatpush.msrb.mxu0 %v12477_v30 }
 0x4b7   :  { %18540 = vst [vmem:[#allocation112_spill] sm:$0xff] %v12491_v11  ;;  %v2969_v22 = vpop.permute.xlu1 %2968  ;;  %7559 = vmatmul.msk.f32.gmra.mxu0 %vm3615_vm5, %v12482_v52 }
 0x4b8   :  { %v12495_v51 = vpop.permute.xlu2 %2980  ;;  %v3005_v53 = vsel %vm263_vm3, %v12135_v29, %v2969_v22  ;;  %3905 = vmatpush.msrb.mxu0 %v12491_v11  ;;  %v18544_v29 = vld [vmem:[#allocation42_spill] sm:$0xff]  ;;  %18551 = vst [vmem:[#allocation97_spill] sm:$0xff] %v12543_v15 }
 0x4b9   :  { %v3043_v27 = vsel %vm263_vm3, %v12495_v51, %v18541_v37  ;;  %v2991_v9 = vpop.permute.xlu0 %2990  ;;  %v12506_v56 = vmax.f32 %v18542_v50, %v3005_v53  ;;  %v18553_v37 = vld [vmem:[#allocation50_spill] sm:$0xff] }
 0x4ba   :  { %v3000_v25 = vsel %vm263_vm3, %v2975_v39, %v2991_v9  ;;  %v3048_v33 = vsel %vm263_vm3, %v2991_v9, %v18544_v29  ;;  %v12518_v60 = vmax.f32 %v18545_v38, %v3043_v27  ;;  %7592 = vmatmul.msk.f32.gmra.mxu3 %vm3615_vm5, %v18538_v49  ;;  %v3003_v39 = vsel %vm263_vm3, %v12075_v59, %v12364_v45  ;;  %v18552_v59 = vld [vmem:[#allocation33_spill] sm:$0xff]  ;;  %v18555_v50 = vld [vmem:[#allocation46_spill] sm:$0xff] }
 0x4bb   :  { %18543 = vst [vmem:[#allocation101_spill] sm:$0xff] %v12506_v56  ;;  %3906 = vmatpush.msrb.mxu0 %v12506_v56  ;;  %v12524_v1 = vmax.f32 %v18547_v0, %v3048_v33  ;;  %v12527_v20 = vmax.f32 %v18549_v40, %v3000_v25  ;;  %7578 = vmatmul.msk.f32.gmra.mxu2 %vm3615_vm5, %v18538_v49  ;;  %v12578_v25 = vld [vmem:[%s17559_s3 + $0xd0] sm:$0xff]  ;;  %v18559_v38 = vld [vmem:[#allocation126_spill] sm:$0xff] }
 0x4bc   :  { %18546 = vst [vmem:[#allocation166_spill] sm:$0xff] %v12518_v60  ;;  %3204 = vrot.lane.b32.xlu0 %v12518_v60, %s8244_s5  ;;  %3134 = vrot.lane.b32.xlu2 %v12226_v35, %s8244_s5  ;;  %v12555_v27 = vmax.f32 %v18553_v37, %v3003_v39  ;;  %v18558_v29 = vld [vmem:[#allocation17_spill] sm:$0xff]  ;;  %v12603_v37 = vld [vmem:[%s17559_s3 + $0xd8] sm:$0xff] }
 0x4bd   :  { %18548 = vst [vmem:[#allocation105_spill] sm:$0xff] %v12524_v1  ;;  %3214 = vrot.lane.b32.xlu1 %v12524_v1, %s8244_s5  ;;  %3962 = vmatpush.msrb.mxu1 %v12527_v20  ;;  %v18560_v40 = vld [vmem:[#allocation29_spill] sm:$0xff] }
 0x4be   :  { %4021 = vmatpush.msra.mxu2 %v12524_v1  ;;  %7565 = vmatmul.msk.f32.gmra.mxu1 %vm3615_vm5, %v18552_v59  ;;  %18554 = vst [vmem:[#allocation164_spill] sm:$0xff] %v12555_v27  ;;  %v18565_v1 = vld [vmem:[#allocation127_spill] sm:$0xff] }
 0x4bf   :  { %3907 = vmatpush.msrb.mxu0 %v12543_v15  ;;  %v2963_v53 = vpop.permute.xlu1 %2962 }
 0x4c0   :  { %v3002_v9 = vsel %vm263_vm3, %v12245_v19, %v2963_v53  ;;  %7560 = vmatmul.msk.f32.gmra.mxu0 %vm3615_vm5, %v12548_v2  ;;  %v18557_v19 = vld [vmem:[#allocation51_spill] sm:$0xff] }
 0x4c1   :  { %3908 = vmatpush.msrb.mxu0 %v12555_v27  ;;  %v12564_v14 = vmax.f32 %v18555_v50, %v3002_v9  ;;  %v18563_v9 = vld [vmem:[#allocation47_spill] sm:$0xff] }
 0x4c2   :  { %7593 = vmatmul.msk.f32.gmra.mxu3 %vm3615_vm5, %v18552_v59 }
 0x4c3   :  { %18556 = vst [vmem:[#allocation150_spill] sm:$0xff] %v12564_v14  ;;  %3909 = vmatpush.msrb.mxu0 %v12564_v14  ;;  %7579 = vmatmul.msk.f32.gmra.mxu2 %vm3615_vm5, %v18552_v59 }
 0x4c4   :  { %3130 = vrot.lane.b32.xlu2 %v12248_v44, %s8244_s5 }
 0x4c5   :  { %3106 = vrot.lane.b32.xlu1 %v18557_v19, %s8244_s5 }
 0x4c6   :  { %7566 = vmatmul.msk.f32.gmra.mxu1 %vm3615_vm5, %v18558_v29 }
 0x4c7   :  { %v2983_v33 = vpop.permute.xlu1 %2982 }
 0x4c8   :  { %v3044_v0 = vsel %vm263_vm3, %v2983_v33, %v18559_v38  ;;  %7561 = vmatmul.msk.f32.gmra.mxu0 %vm3615_vm5, %v12578_v25  ;;  %v2998_v38 = vsel %vm263_vm3, %v12295_v57, %v12358_v46  ;;  %v2997_v57 = vsel %vm263_vm3, %v2969_v22, %v12444_v36  ;;  %v18568_v46 = vld [vmem:[#allocation116_spill] sm:$0xff]  ;;  %v2995_v22 = vsel %vm263_vm3, %v12364_v45, %v12495_v51  ;;  %v18575_v51 = vld [vmem:[#allocation7_spill] sm:$0xff] }
 0x4c9   :  { %v12588_v39 = vmax.f32 %v18560_v40, %v3044_v0  ;;  %v18564_v40 = vld [vmem:[#allocation114_spill] sm:$0xff]  ;;  %v18569_v36 = vld [vmem:[#allocation120_spill] sm:$0xff] }
 0x4ca   :  { %7594 = vmatmul.msk.f32.gmra.mxu3 %vm3615_vm5, %v18558_v29 }
 0x4cb   :  { %18561 = vst [vmem:[#allocation13_spill] sm:$0xff] %v12588_v39  ;;  %3206 = vrot.lane.b32.xlu0 %v12588_v39, %s8244_s5  ;;  %7580 = vmatmul.msk.f32.gmra.mxu2 %vm3615_vm5, %v18558_v29 }
 0x4cc   :  { %3124 = vrot.lane.b32.xlu2 %v12275_v13, %s8244_s5  ;;  %v18567_v13 = vld [vmem:[#allocation123_spill] sm:$0xff] }
 0x4cd   :  { %3132 = vrot.lane.b32.xlu1 %v18562_v26, %s8244_s5 }
 0x4ce   :  { %7567 = vmatmul.msk.f32.gmra.mxu1 %vm3615_vm5, %v18563_v9 }
 0x4cf   :  { %v2989_v50 = vpop.permute.xlu1 %2988 }
 0x4d0   :  { %v2999_v0 = vsel %vm263_vm3, %v12242_v5, %v2989_v50  ;;  %v3047_v18 = vsel %vm263_vm3, %v2989_v50, %v18564_v40  ;;  %7562 = vmatmul.msk.f32.gmra.mxu0 %vm3615_vm5, %v12603_v37  ;;  %v2979_v5 = vpop.permute.xlu0 %2978  ;;  %v12634_v50 = vmax.f32 %v18568_v46, %v2998_v38  ;;  %v18573_v38 = vld [vmem:[#allocation53_spill] sm:$0xff]  ;;  %v12671_v40 = vmax.f32 %v18575_v51, %v2995_v22  ;;  %v18581_v22 = vld [vmem:[#allocation108_spill] sm:$0xff] }
 0x4d1   :  { %v12620_v19 = vmax.f32 %v18565_v1, %v3047_v18  ;;  %v12623_v44 = vmax.f32 %v18567_v13, %v2999_v0  ;;  %v2996_v13 = vsel %vm263_vm3, %v12286_v10, %v2983_v33  ;;  %v12646_v18 = vmax.f32 %v18569_v36, %v2997_v57  ;;  %v18571_v1 = vld [vmem:[#allocation21_spill] sm:$0xff]  ;;  %v18572_v33 = vld [vmem:[#allocation107_spill] sm:$0xff]  ;;  %v12690_v36 = vpop.permute.xlu2 %3110 }
 0x4d2   :  { %7595 = vmatmul.msk.f32.gmra.mxu3 %vm3615_vm5, %v18563_v9  ;;  %v3042_v10 = vsel %vm263_vm3, %v2979_v5, %v18571_v1  ;;  %v12660_v0 = vmax.f32 %v18573_v38, %v2996_v13  ;;  %v2994_v45 = vsel %vm263_vm3, %v2963_v53, %v2979_v5  ;;  %18576 = vst [vmem:[#allocation188_spill] sm:$0xff] %v12671_v40  ;;  %v18577_v57 = vld [vmem:[#allocation173_spill] sm:$0xff]  ;;  %v18579_v53 = vld [vmem:[#allocation178_spill] sm:$0xff] }
 0x4d3   :  { %18566 = vst [vmem:[#allocation102_spill] sm:$0xff] %v12620_v19  ;;  %3212 = vrot.lane.b32.xlu0 %v12620_v19, %s8244_s5  ;;  %3963 = vmatpush.msrb.mxu1 %v12623_v44  ;;  %v12674_v46 = vmax.f32 %v18577_v57, %v3042_v10  ;;  %v12685_v5 = vmax.f32 %v18579_v53, %v2994_v45  ;;  %v18583_v10 = vld [vmem:[#allocation104_spill] sm:$0xff] }
 0x4d4   :  { %3168 = vrot.lane.b32.xlu2 %v12292_v34, %s8244_s5  ;;  %4022 = vmatpush.msra.mxu2 %v12620_v19  ;;  %18570 = vst [vmem:[#allocation34_spill] sm:$0xff] %v12646_v18  ;;  %v18584_v45 = vld [vmem:[#allocation168_spill] sm:$0xff] }
 0x4d5   :  { %3126 = vrot.lane.b32.xlu1 %v12269_v32, %s8244_s5  ;;  %3964 = vmatpush.msrb.mxu1 %v12634_v50  ;;  %18574 = vst [vmem:[#allocation109_spill] sm:$0xff] %v12660_v0  ;;  %v12725_v57 = vld [vmem:[%s17567_s11 + $0xe] sm:$0xff] }
 0x4d6   :  { %7568 = vmatmul.msk.f32.gmra.mxu1 %vm3615_vm5, %v18572_v33  ;;  %4023 = vmatpush.msra.mxu2 %v12379_v42  ;;  %18578 = vst [vmem:[#allocation93_spill] sm:$0xff] %v12674_v46  ;;  %v18587_v42 = vld [vmem:[#allocation121_spill] sm:$0xff]  ;;  %v12818_v19 = vperm.slane %v12725_v57, 0 }
 0x4d7   :  { %3965 = vmatpush.msrb.mxu1 %v12646_v18  ;;  %7581 = vmatmul.msk.f32.gmra.mxu2 %vm3615_vm5, %v18563_v9  ;;  %v12679_v13 = vpop.permute.xlu1 %3108  ;;  %18580 = vst [vmem:[#allocation162_spill] sm:$0xff] %v12685_v5 }
 0x4d8   :  { %4024 = vmatpush.msra.mxu2 %v12469_v17  ;;  %7605 = vmatmul.msk.f32.vlgmr.msrb.gmra.mxu0 %vm3615_vm5, %v12126_v62 }
 0x4d9   :  { %3966 = vmatpush.msrb.mxu1 %v12660_v0  ;;  %v12716_v51 = vpop.permute.xlu2 %3116 }
 0x4da   :  { %4025 = vmatpush.msra.mxu2 %v12588_v39  ;;  %7596 = vmatmul.msk.f32.gmra.mxu3 %vm3615_vm5, %v18572_v33 }
 0x4db   :  { %3967 = vmatpush.msrb.mxu1 %v12671_v40  ;;  %3202 = vrot.lane.b32.xlu0 %v12674_v46, %s8244_s5 }
 0x4dc   :  { %3166 = vrot.lane.b32.xlu2 %v12308_v16, %s8244_s5  ;;  %4026 = vmatpush.msra.mxu2 %v12518_v60 }
 0x4dd   :  { %3152 = vrot.lane.b32.xlu1 %v12289_v21, %s8244_s5  ;;  %3968 = vmatpush.msrb.mxu1 %v12685_v5 }
 0x4de   :  { %7569 = vmatmul.msk.f32.gmra.mxu1 %vm3615_vm5, %v18581_v22  ;;  %4027 = vmatpush.msra.mxu2 %v12674_v46 }
 0x4df   :  { %7582 = vmatmul.msk.f32.gmra.mxu2 %vm3615_vm5, %v18572_v33  ;;  %v12710_v38 = vpop.permute.xlu1 %3114 }
 0x4e0   :  { %7606 = vmatmul.msk.f32.gmra.mxu0 %vm3615_vm5, %v18538_v49 }
 0x4e2   :  { %v12702_v1 = vpop.f32.mrf.mxu0  ;;  %7597 = vmatmul.msk.f32.gmra.mxu3 %vm3615_vm5, %v18581_v22 }
 0x4e3   :  { %18582 = vst [vmem:[#allocation159_spill] sm:$0xff] %v12702_v1  ;;  %3128 = vrot.lane.b32.xlu0 %v18583_v10, %s8244_s5  ;;  %v12739_v1 = vperm.slane %v12725_v57, 1 }
 0x4e4   :  { %3164 = vrot.lane.b32.xlu2 %v12324_v47, %s8244_s5 }
 0x4e5   :  { %3150 = vrot.lane.b32.xlu1 %v12305_v63, %s8244_s5 }
 0x4e6   :  { %7570 = vmatmul.msk.f32.gmra.mxu1 %vm3615_vm5, %v18584_v45 }
 0x4e7   :  { %7583 = vmatmul.msk.f32.gmra.mxu2 %vm3615_vm5, %v18581_v22 }
 0x4e8   :  { %7607 = vmatmul.msk.f32.gmra.mxu0 %vm3615_vm5, %v18552_v59 }
 0x4ea   :  { %v12727_v53 = vpop.f32.mrf.mxu0  ;;  %7598 = vmatmul.msk.f32.gmra.mxu3 %vm3615_vm5, %v18584_v45 }
 0x4eb   :  { %18585 = vst [vmem:[#allocation30_spill] sm:$0xff] %v12727_v53  ;;  %3122 = vrot.lane.b32.xlu0 %v12372_v54, %s8244_s5  ;;  %v3121_v53 = vpop.permute.xlu1 %3120 }
 0x4ec   :  { %3162 = vrot.lane.b32.xlu2 %v12345_v41, %s8244_s5 }
 0x4ed   :  { %3148 = vrot.lane.b32.xlu1 %v12327_v48, %s8244_s5 }
 0x4ee   :  { %7571 = vmatmul.msk.f32.gmra.mxu1 %vm3615_vm5, %v12313_v28 }
 0x4ef   :  { %v12743_v46 = vpop.permute.xlu2 %3136  ;;  %7584 = vmatmul.msk.f32.gmra.mxu2 %vm3615_vm5, %v18584_v45 }
 0x4f0   :  { %v3266_v60 = vsel %vm3218_vm6, %v3121_v53, %v12743_v46  ;;  %7608 = vmatmul.msk.f32.gmra.mxu0 %vm3615_vm5, %v18558_v29 }
 0x4f1   :  { %v3340_v39 = vmul.f32 %v12739_v1, %v3266_v60 }
 0x4f2   :  { %v12753_v17 = vpop.f32.mrf.mxu0  ;;  %7599 = vmatmul.msk.f32.gmra.mxu3 %vm3615_vm5, %v12313_v28 }
 0x4f3   :  { %18586 = vst [vmem:[#allocation106_spill] sm:$0xff] %v12753_v17  ;;  %4180 = vmatpush.msra.mxu0 %v3340_v39  ;;  %3184 = vrot.lane.b32.xlu0 %v18587_v42, %s8244_s5  ;;  %v12809_v17 = vpop.permute.xlu0 %3112 }
 0x4f4   :  { %3160 = vrot.lane.b32.xlu2 %v12369_v55, %s8244_s5 }
 0x4f5   :  { %3146 = vrot.lane.b32.xlu1 %v12342_v12, %s8244_s5 }
 0x4f6   :  { %7572 = vmatmul.msk.f32.gmra.mxu1 %vm3615_vm5, %v12396_v7 }
 0x4f7   :  { %7585 = vmatmul.msk.f32.gmra.mxu2 %vm3615_vm5, %v12313_v28 }
 0x4f8   :  { %7609 = vmatmul.msk.f32.gmra.mxu0 %vm3615_vm5, %v18563_v9 }
 0x4fa   :  { %v12769_v60 = vpop.f32.mrf.mxu0  ;;  %7600 = vmatmul.msk.f32.gmra.mxu3 %vm3615_vm5, %v12396_v7 }
 0x4fb   :  { %18588 = vst [vmem:[#allocation186_spill] sm:$0xff] %v12769_v60  ;;  %3182 = vrot.lane.b32.xlu0 %v12448_v3, %s8244_s5 }
 0x4fc   :  { %3158 = vrot.lane.b32.xlu2 %v12391_v4, %s8244_s5 }
 0x4fd   :  { %3144 = vrot.lane.b32.xlu1 %v12382_v8, %s8244_s5 }
 0x4fe   :  { %7573 = vmatmul.msk.f32.gmra.mxu1 %vm3615_vm5, %v12482_v52 }
 0x4ff   :  { %7586 = vmatmul.msk.f32.gmra.mxu2 %vm3615_vm5, %v12396_v7 }
 0x500   :  { %7610 = vmatmul.msk.f32.gmra.mxu0 %vm3615_vm5, %v18572_v33 }
 0x502   :  { %v12785_v39 = vpop.f32.mrf.mxu0  ;;  %7601 = vmatmul.msk.f32.gmra.mxu3 %vm3615_vm5, %v12482_v52 }
 0x503   :  { %18589 = vst [vmem:[#allocation89_spill] sm:$0xff] %v12785_v39  ;;  %3180 = vrot.lane.b32.xlu0 %v12477_v30, %s8244_s5 }
 0x504   :  { %3156 = vrot.lane.b32.xlu2 %v12415_v58, %s8244_s5 }
 0x505   :  { %3142 = vrot.lane.b32.xlu1 %v12406_v61, %s8244_s5 }
 0x506   :  { %7574 = vmatmul.msk.f32.gmra.mxu1 %vm3615_vm5, %v12548_v2  ;;  %v12797_v60 = vpop.permute.xlu2 %3210 }
 0x507   :  { %7587 = vmatmul.msk.f32.gmra.mxu2 %vm3615_vm5, %v12482_v52 }
 0x508   :  { %7611 = vmatmul.msk.f32.gmra.mxu0 %vm3615_vm5, %v18581_v22 }
 0x50a   :  { %7602 = vmatmul.msk.f32.gmra.mxu3 %vm3615_vm5, %v12548_v2 }
 0x50b   :  { %3178 = vrot.lane.b32.xlu0 %v12491_v11, %s8244_s5  ;;  %v12807_v39 = vpop.f32.mrf.mxu0 }
 0x50c   :  { %18590 = vst [vmem:[#allocation160_spill] sm:$0xff] %v12807_v39  ;;  %3138 = vrot.lane.b32.xlu2 %v12432_v6, %s8244_s5 }
 0x50d   :  { %3140 = vrot.lane.b32.xlu1 %v12419_v43, %s8244_s5 }
 0x50e   :  { %7575 = vmatmul.msk.f32.gmra.mxu1 %vm3615_vm5, %v12578_v25  ;;  %v12820_v30 = vpop.permute.xlu2 %3216 }
 0x50f   :  { %v3274_v39 = vsel %vm3218_vm6, %v12820_v30, %v3121_v53  ;;  %7588 = vmatmul.msk.f32.gmra.mxu2 %vm3615_vm5, %v12548_v2  ;;  %v3119_v53 = vpop.permute.xlu0 %3118 }
 0x510   :  { %v3339_v11 = vmul.f32 %v12818_v19, %v3274_v39  ;;  %7612 = vmatmul.msk.f32.gmra.mxu0 %vm3615_vm5, %v18584_v45 }
 0x512   :  { %4121 = vmatpush.msra.mxu3 %v3339_v11 }
 0x513   :  { %3176 = vrot.lane.b32.xlu0 %v12506_v56, %s8244_s5  ;;  %v12832_v58 = vpop.f32.mrf.mxu0  ;;  %7603 = vmatmul.msk.f32.gmra.mxu3 %vm3615_vm5, %v12578_v25 }
 0x514   :  { %18591 = vst [vmem:[#allocation26_spill] sm:$0xff] %v12832_v58  ;;  %3198 = vrot.lane.b32.xlu2 %v12527_v20, %s8244_s5 }
 0x515   :  { %3170 = vrot.lane.b32.xlu1 %v12564_v14, %s8244_s5 }
 0x516   :  { %7576 = vmatmul.msk.f32.gmra.mxu1 %vm3615_vm5, %v12603_v37  ;;  %v12842_v39 = vpop.permute.xlu2 %3134 }
 0x517   :  { %v3265_v11 = vsel %vm3218_vm6, %v3119_v53, %v12842_v39  ;;  %7589 = vmatmul.msk.f32.gmra.mxu2 %vm3615_vm5, %v12578_v25 }
 0x518   :  { %v3333_v58 = vmul.f32 %v12739_v1, %v3265_v11  ;;  %7613 = vmatmul.msk.f32.gmra.mxu0 %vm3615_vm5, %v12313_v28 }
 0x51a   :  { %4181 = vmatpush.msra.mxu0 %v3333_v58 }
 0x51b   :  { %3174 = vrot.lane.b32.xlu0 %v12543_v15, %s8244_s5  ;;  %v12854_v14 = vpop.f32.mrf.mxu0  ;;  %7604 = vmatmul.msk.f32.gmra.mxu3 %vm3615_vm5, %v12603_v37 }
 0x51c   :  { %18592 = vst [vmem:[#allocation103_spill] sm:$0xff] %v12854_v14  ;;  %3192 = vrot.lane.b32.xlu2 %v12646_v18, %s8244_s5 }
 0x51d   :  { %3200 = vrot.lane.b32.xlu1 %v12451_v31, %s8244_s5 }
 0x51e   :  { %7619 = vmatmul.msk.f32.vlgmr.msrb.gmra.mxu1 %vm3615_vm5, %v12126_v62  ;;  %v12864_v11 = vpop.permute.xlu2 %3130 }
 0x51f   :  { %7590 = vmatmul.msk.f32.gmra.mxu2 %vm3615_vm5, %v12603_v37 }
 0x520   :  { %7614 = vmatmul.msk.f32.gmra.mxu0 %vm3615_vm5, %v12396_v7 }
 0x523   :  { %3172 = vrot.lane.b32.xlu0 %v12555_v27, %s8244_s5  ;;  %v12872_v58 = vpop.f32.mrf.mxu0 }
 0x524   :  { %18593 = vst [vmem:[#allocation184_spill] sm:$0xff] %v12872_v58  ;;  %3186 = vrot.lane.b32.xlu2 %v12685_v5, %s8244_s5 }
 0x525   :  { %3194 = vrot.lane.b32.xlu1 %v12634_v50, %s8244_s5 }
 0x526   :  { %7620 = vmatmul.msk.f32.gmra.mxu1 %vm3615_vm5, %v18538_v49  ;;  %v12880_v14 = vpop.permute.xlu2 %3124 }
 0x527   :  { %v12882_v15 = vpop.permute.xlu1 %3208  ;;  %7633 = vmatmul.msk.f32.vlgmr.msra.gmra.mxu2 %vm3615_vm5, %v12126_v62 }
 0x528   :  { %7615 = vmatmul.msk.f32.gmra.mxu0 %vm3615_vm5, %v12482_v52 }
 0x52a   :  { %v12888_v58 = vpop.f32.mrf.mxu1 }
 0x52b   :  { %18594 = vst [vmem:[#allocation85_spill] sm:$0xff] %v12888_v58  ;;  %3154 = vrot.lane.b32.xlu0 %v12425_v23, %s8244_s5  ;;  %v12892_v27 = vpop.f32.mrf.mxu0 }
 0x52c   :  { %18595 = vst [vmem:[#allocation157_spill] sm:$0xff] %v12892_v27  ;;  %3392 = vrot.lane.b32.xlu2 %v12289_v21, %s8245_s28 }
 0x52d   :  { %3188 = vrot.lane.b32.xlu1 %v12671_v40, %s8244_s5 }
 0x52e   :  { %7621 = vmatmul.msk.f32.gmra.mxu1 %vm3615_vm5, %v18552_v59  ;;  %v12900_v62 = vpop.permute.xlu2 %3168 }
 0x52f   :  { %v12902_v5 = vpop.permute.xlu1 %3214  ;;  %7634 = vmatmul.msk.f32.gmra.mxu2 %vm3615_vm5, %v18538_v49  ;;  %v12920_v49 = vpop.permute.xlu0 %3204 }
 0x530   :  { %v3273_v58 = vsel %vm3218_vm6, %v12902_v5, %v3119_v53  ;;  %7616 = vmatmul.msk.f32.gmra.mxu0 %vm3615_vm5, %v12548_v2  ;;  %18598 = vst [vmem:[#allocation6_spill] sm:$0xff] %v12920_v49  ;;  %v18599_v53 = vld [vmem:[#allocation170_spill] sm:$0xff] }
 0x531   :  { %v3332_v21 = vmul.f32 %v12818_v19, %v3273_v58 }
 0x533   :  { %v12912_v27 = vpop.f32.mrf.mxu1  ;;  %4122 = vmatpush.msra.mxu3 %v3332_v21  ;;  %3196 = vrot.lane.b32.xlu0 %v12623_v44, %s8244_s5 }
 0x534   :  { %18596 = vst [vmem:[#allocation22_spill] sm:$0xff] %v12912_v27  ;;  %3390 = vrot.lane.b32.xlu2 %v12305_v63, %s8245_s28  ;;  %v12918_v40 = vpop.f32.mrf.mxu0 }
 0x535   :  { %18597 = vst [vmem:[#allocation100_spill] sm:$0xff] %v12918_v40  ;;  %3376 = vrot.lane.b32.xlu1 %v18599_v53, %s8245_s28 }
 0x536   :  { %7622 = vmatmul.msk.f32.gmra.mxu1 %vm3615_vm5, %v18558_v29  ;;  %v12926_v58 = vpop.permute.xlu2 %3166  ;;  %v12928_v27 = vpop.f32.mrf.mxu2 }
 0x537   :  { %18600 = vst [vmem:[#allocation98_spill] sm:$0xff] %v12928_v27  ;;  %v12930_v21 = vpop.permute.xlu1 %3106  ;;  %7635 = vmatmul.msk.f32.gmra.mxu2 %vm3615_vm5, %v18552_v59 }
 0x538   :  { %7617 = vmatmul.msk.f32.gmra.mxu0 %vm3615_vm5, %v12578_v25 }
 0x53b   :  { %v12936_v63 = vpop.f32.mrf.mxu1  ;;  %3190 = vrot.lane.b32.xlu0 %v12660_v0, %s8244_s5 }
 0x53c   :  { %18601 = vst [vmem:[#allocation81_spill] sm:$0xff] %v12936_v63  ;;  %3388 = vrot.lane.b32.xlu2 %v12327_v48, %s8245_s28 }
 0x53d   :  { %3374 = vrot.lane.b32.xlu1 %v12226_v35, %s8245_s28  ;;  %v12944_v53 = vpop.permute.xlu0 %3206  ;;  %v12946_v27 = vpop.f32.mrf.mxu0  ;;  %v3263_v35 = vsel %vm3218_vm6, %v12710_v38, %v12864_v11 }
 0x53e   :  { %18602 = vst [vmem:[#allocation154_spill] sm:$0xff] %v12944_v53  ;;  %7623 = vmatmul.msk.f32.gmra.mxu1 %vm3615_vm5, %v18563_v9  ;;  %v12950_v59 = vpop.permute.xlu2 %3164  ;;  %v12952_v40 = vpop.f32.mrf.mxu2  ;;  %v3319_v0 = vmul.f32 %v12739_v1, %v3263_v35 }
 0x53f   :  { %18603 = vst [vmem:[#allocation90_spill] sm:$0xff] %v12946_v27  ;;  %v12954_v63 = vpop.permute.xlu1 %3132  ;;  %7636 = vmatmul.msk.f32.gmra.mxu2 %vm3615_vm5, %v18558_v29  ;;  %v18606_v29 = vld [vmem:[#allocation57_spill] sm:$0xff] }
 0x540   :  { %18604 = vst [vmem:[#allocation18_spill] sm:$0xff] %v12952_v40  ;;  %v3264_v48 = vsel %vm3218_vm6, %v12716_v51, %v12954_v63  ;;  %7618 = vmatmul.msk.f32.gmra.mxu0 %vm3615_vm5, %v12603_v37 }
 0x541   :  { %v3326_v40 = vmul.f32 %v12739_v1, %v3264_v48 }
 0x543   :  { %v12969_v27 = vpop.f32.mrf.mxu1  ;;  %4182 = vmatpush.msra.mxu0 %v3326_v40  ;;  %3360 = vrot.lane.b32.xlu0 %v18606_v29, %s8245_s28  ;;  %v3271_v40 = vsel %vm3218_vm6, %v12797_v60, %v12710_v38  ;;  %v3270_v38 = vsel %vm3218_vm6, %v12882_v15, %v12809_v17 }
 0x544   :  { %18605 = vst [vmem:[#allocation96_spill] sm:$0xff] %v12969_v27  ;;  %3386 = vrot.lane.b32.xlu2 %v12342_v12, %s8245_s28  ;;  %v3318_v29 = vmul.f32 %v12818_v19, %v3271_v40  ;;  %v13021_v40 = vpop.f32.mrf.mxu3  ;;  %v18612_v27 = vld [vmem:[#allocation118_spill] sm:$0xff] }
 0x545   :  { %3372 = vrot.lane.b32.xlu1 %v18562_v26, %s8245_s28  ;;  %4183 = vmatpush.msra.mxu0 %v3319_v0  ;;  %v12978_v56 = vpop.permute.xlu0 %3212  ;;  %v12980_v18 = vpop.f32.mrf.mxu0  ;;  %18611 = vst [vmem:[#allocation187_spill] sm:$0xff] %v13021_v40 }
 0x546   :  { %18607 = vst [vmem:[#allocation111_spill] sm:$0xff] %v12980_v18  ;;  %7624 = vmatmul.msk.f32.gmra.mxu1 %vm3615_vm5, %v18572_v33  ;;  %v12988_v35 = vpop.permute.xlu2 %3162  ;;  %v3272_v12 = vsel %vm3218_vm6, %v12978_v56, %v12716_v51  ;;  %v12994_v26 = vpop.f32.mrf.mxu2  ;;  %v3269_v51 = vsel %vm3218_vm6, %v12944_v53, %v12690_v36 }
 0x547   :  { %18608 = vst [vmem:[#allocation77_spill] sm:$0xff] %v12994_v26  ;;  %v12996_v0 = vpop.permute.xlu1 %3126  ;;  %v3325_v48 = vmul.f32 %v12818_v19, %v3272_v12  ;;  %7637 = vmatmul.msk.f32.gmra.mxu2 %vm3615_vm5, %v18563_v9  ;;  %v18610_v12 = vld [vmem:[#allocation39_spill] sm:$0xff]  ;;  %v3311_v9 = vmul.f32 %v12818_v19, %v3270_v38 }
 0x549   :  { %4123 = vmatpush.msra.mxu3 %v3325_v48  ;;  %v3268_v48 = vsel %vm3218_vm6, %v12920_v49, %v12679_v13 }
 0x54b   :  { %v13010_v26 = vpop.f32.mrf.mxu1  ;;  %3358 = vrot.lane.b32.xlu0 %v18610_v12, %s8245_s28  ;;  %4124 = vmatpush.msra.mxu3 %v3318_v29  ;;  %v13029_v29 = vperm.slane %v12725_v57, 3  ;;  %v3304_v12 = vmul.f32 %v12818_v19, %v3269_v51 }
 0x54c   :  { %18609 = vst [vmem:[#allocation152_spill] sm:$0xff] %v13010_v26  ;;  %3384 = vrot.lane.b32.xlu2 %v12382_v8, %s8245_s28  ;;  %v13026_v26 = vperm.slane %v12725_v57, 2 }
 0x54d   :  { %3370 = vrot.lane.b32.xlu1 %v18612_v27, %s8245_s28  ;;  %4125 = vmatpush.msra.mxu3 %v3311_v9  ;;  %v13031_v38 = vpop.permute.xlu0 %3202  ;;  %v13034_v18 = vpop.f32.mrf.mxu0  ;;  %v3297_v27 = vmul.f32 %v12818_v19, %v3268_v48 }
 0x54e   :  { %18613 = vst [vmem:[#allocation14_spill] sm:$0xff] %v13034_v18  ;;  %7625 = vmatmul.msk.f32.gmra.mxu1 %vm3615_vm5, %v18581_v22  ;;  %v13038_v8 = vpop.permute.xlu2 %3160  ;;  %v3267_v18 = vsel %vm3218_vm6, %v13031_v38, %v12930_v21  ;;  %v13053_v49 = vpop.f32.mrf.mxu2 }
 0x54f   :  { %v3153_v40 = vpop.permute.xlu1 %3152  ;;  %4126 = vmatpush.msra.mxu3 %v3304_v12  ;;  %7638 = vmatmul.msk.f32.gmra.mxu2 %vm3615_vm5, %v18572_v33  ;;  %18614 = vst [vmem:[#allocation92_spill] sm:$0xff] %v13053_v49  ;;  %v3290_v53 = vmul.f32 %v12818_v19, %v3267_v18 }
 0x550   :  { %v3250_v9 = vsel %vm3218_vm6, %v3153_v40, %v12900_v62  ;;  %v3258_v51 = vsel %vm3218_vm6, %v12743_v46, %v3153_v40  ;;  %v13063_v46 = vld [vmem:[%s17559_s3] sm:$0xff] }
 0x551   :  { %v3341_v48 = vmul.f32 %v13026_v26, %v3258_v51  ;;  %v3342_v12 = vmul.f32 %v13029_v29, %v3250_v9  ;;  %4127 = vmatpush.msra.mxu3 %v3297_v27  ;;  %v18616_v40 = vld [vmem:[#allocation59_spill] sm:$0xff]  ;;  %v3261_v51 = vsel %vm3218_vm6, %v12690_v36, %v12996_v0 }
 0x553   :  { %v13057_v33 = vpop.f32.mrf.mxu1  ;;  %4239 = vmatpush.msra.mxu1 %v3341_v48  ;;  %4298 = vmatpush.msrb.mxu2 %v3342_v12 }
 0x554   :  { %18615 = vst [vmem:[#allocation36_spill] sm:$0xff] %v13057_v33  ;;  %3356 = vrot.lane.b32.xlu0 %v18616_v40, %s8245_s28  ;;  %3382 = vrot.lane.b32.xlu2 %v12406_v61, %s8245_s28  ;;  %v3260_v40 = vsel %vm3218_vm6, %v12679_v13, %v12880_v14 }
 0x555   :  { %3368 = vrot.lane.b32.xlu1 %v18583_v10, %s8245_s28  ;;  %4128 = vmatpush.msra.mxu3 %v3290_v53  ;;  %v13071_v27 = vpop.permute.xlu0 %3128  ;;  %v13073_v9 = vpop.f32.mrf.mxu0  ;;  %v3298_v13 = vmul.f32 %v12739_v1, %v3260_v40 }
 0x556   :  { %18617 = vst [vmem:[#allocation74_spill] sm:$0xff] %v13073_v9  ;;  %7626 = vmatmul.msk.f32.gmra.mxu1 %vm3615_vm5, %v18584_v45  ;;  %7647 = vmatmul.msk.f32.vlgmr.msra.gmra.mxu3 %vm3615_vm5, %v13063_v46  ;;  %v13079_v19 = vpop.permute.xlu2 %3158  ;;  %v3262_v61 = vsel %vm3218_vm6, %v12809_v17, %v13071_v27  ;;  %v13088_v53 = vpop.f32.mrf.mxu3  ;;  %v3305_v9 = vmul.f32 %v12739_v1, %v3261_v51 }
 0x557   :  { %v3151_v18 = vpop.permute.xlu1 %3150  ;;  %v3312_v10 = vmul.f32 %v12739_v1, %v3262_v61  ;;  %7639 = vmatmul.msk.f32.gmra.mxu2 %vm3615_vm5, %v18581_v22  ;;  %18618 = vst [vmem:[#allocation149_spill] sm:$0xff] %v13088_v53 }
 0x558   :  { %v3249_v48 = vsel %vm3218_vm6, %v3151_v18, %v12926_v58  ;;  %v3257_v17 = vsel %vm3218_vm6, %v12842_v39, %v3151_v18  ;;  %v13114_v39 = vld [vmem:[%s17559_s3 + $0x8] sm:$0xff]  ;;  %v18621_v18 = vld [vmem:[#allocation25_spill] sm:$0xff] }
 0x559   :  { %4184 = vmatpush.msra.mxu0 %v3312_v10  ;;  %v3334_v12 = vmul.f32 %v13026_v26, %v3257_v17  ;;  %v3335_v22 = vmul.f32 %v13029_v29, %v3249_v48 }
 0x55a   :  { %v13106_v61 = vpop.f32.mrf.mxu2 }
 0x55b   :  { %18619 = vst [vmem:[#allocation185_spill] sm:$0xff] %v13106_v61  ;;  %v13108_v36 = vpop.f32.mrf.mxu1  ;;  %4240 = vmatpush.msra.mxu1 %v3334_v12  ;;  %4299 = vmatpush.msrb.mxu2 %v3335_v22 }
 0x55c   :  { %18620 = vst [vmem:[#allocation45_spill] sm:$0xff] %v13108_v36  ;;  %3354 = vrot.lane.b32.xlu0 %v18621_v18, %s8245_s28  ;;  %3380 = vrot.lane.b32.xlu2 %v12419_v43, %s8245_s28  ;;  %v13162_v18 = vperm.slane %v12725_v57, 4 }
 0x55d   :  { %3366 = vrot.lane.b32.xlu1 %v12269_v32, %s8245_s28  ;;  %4185 = vmatpush.msra.mxu0 %v3305_v9  ;;  %v13123_v10 = vpop.permute.xlu0 %3122  ;;  %v13125_v51 = vpop.f32.mrf.mxu0 }
 0x55e   :  { %18622 = vst [vmem:[#allocation72_spill] sm:$0xff] %v13125_v51  ;;  %7627 = vmatmul.msk.f32.gmra.mxu1 %vm3615_vm5, %v12313_v28  ;;  %7648 = vmatmul.msk.f32.gmra.mxu3 %vm3615_vm5, %v13114_v39  ;;  %v13131_v48 = vpop.permute.xlu2 %3156  ;;  %v3259_v32 = vsel %vm3218_vm6, %v12930_v21, %v13123_v10  ;;  %v13148_v40 = vpop.f32.mrf.mxu3  ;;  %v13204_v51 = vld [vmem:[%s17559_s3 + $0x18] sm:$0xff] }
 0x55f   :  { %v3149_v43 = vpop.permute.xlu1 %3148  ;;  %4186 = vmatpush.msra.mxu0 %v3298_v13  ;;  %v3291_v9 = vmul.f32 %v12739_v1, %v3259_v32  ;;  %7640 = vmatmul.msk.f32.gmra.mxu2 %vm3615_vm5, %v18584_v45  ;;  %18623 = vst [vmem:[#allocation146_spill] sm:$0xff] %v13148_v40  ;;  %v18626_v13 = vld [vmem:[#allocation130_spill] sm:$0xff] }
 0x560   :  { %v3248_v17 = vsel %vm3218_vm6, %v3149_v43, %v12950_v59  ;;  %v3256_v12 = vsel %vm3218_vm6, %v12954_v63, %v3149_v43  ;;  %v13159_v63 = vld [vmem:[%s17559_s3 + $0x10] sm:$0xff]  ;;  %v18627_v32 = vld [vmem:[#allocation110_spill] sm:$0xff] }
 0x561   :  { %4187 = vmatpush.msra.mxu0 %v3291_v9  ;;  %v3327_v22 = vmul.f32 %v13026_v26, %v3256_v12  ;;  %v3328_v21 = vmul.f32 %v13029_v29, %v3248_v17 }
 0x562   :  { %7661 = vmatmul.msk.f32.vlgmr.msra.gmra.mxu0 %vm3615_vm5, %v13063_v46  ;;  %v13152_v1 = vpop.f32.mrf.mxu2 }
 0x563   :  { %18624 = vst [vmem:[#allocation156_spill] sm:$0xff] %v13152_v1  ;;  %v13154_v45 = vpop.f32.mrf.mxu1  ;;  %4241 = vmatpush.msra.mxu1 %v3327_v22  ;;  %4300 = vmatpush.msrb.mxu2 %v3328_v21  ;;  %v5100_v1 = vld [vmem:[%s17560_s4 + $0x30] sm:$0xff] }
 0x564   :  { %18625 = vst [vmem:[#allocation69_spill] sm:$0xff] %v13154_v45  ;;  %3352 = vrot.lane.b32.xlu0 %v18626_v13, %s8245_s28  ;;  %3362 = vrot.lane.b32.xlu2 %v12372_v54, %s8245_s28 }
 0x565   :  { %3364 = vrot.lane.b32.xlu1 %v18627_v32, %s8245_s28  ;;  %v13170_v43 = vpop.permute.xlu0 %3184  ;;  %v13185_v22 = vpop.f32.mrf.mxu0 }
 0x566   :  { %7628 = vmatmul.msk.f32.gmra.mxu1 %vm3615_vm5, %v12396_v7  ;;  %7649 = vmatmul.msk.f32.gmra.mxu3 %vm3615_vm5, %v13159_v63  ;;  %v13176_v9 = vpop.permute.xlu2 %3138  ;;  %v3242_v17 = vsel %vm3218_vm6, %v12900_v62, %v13170_v43  ;;  %18628 = vst [vmem:[#allocation143_spill] sm:$0xff] %v13185_v22 }
 0x567   :  { %v3147_v12 = vpop.permute.xlu1 %3146  ;;  %v3343_v54 = vmul.f32 %v13162_v18, %v3242_v17  ;;  %7641 = vmatmul.msk.f32.gmra.mxu2 %vm3615_vm5, %v12313_v28 }
 0x568   :  { %v3247_v21 = vsel %vm3218_vm6, %v3147_v12, %v12988_v35  ;;  %v3255_v13 = vsel %vm3218_vm6, %v12864_v11, %v3147_v12  ;;  %v13206_v11 = vpop.f32.mrf.mxu3  ;;  %v18631_v12 = vld [vmem:[#allocation55_spill] sm:$0xff] }
 0x569   :  { %v3320_v32 = vmul.f32 %v13026_v26, %v3255_v13  ;;  %v3321_v62 = vmul.f32 %v13029_v29, %v3247_v21  ;;  %4357 = vmatpush.msrb.mxu3 %v3343_v54  ;;  %18630 = vst [vmem:[#allocation66_spill] sm:$0xff] %v13206_v11  ;;  %v18632_v54 = vld [vmem:[#allocation51_spill] sm:$0xff] }
 0x56a   :  { %7662 = vmatmul.msk.f32.gmra.mxu0 %vm3615_vm5, %v13114_v39  ;;  %v13197_v17 = vpop.f32.mrf.mxu2 }
 0x56b   :  { %18629 = vst [vmem:[#allocation8_spill] sm:$0xff] %v13197_v17  ;;  %v13199_v28 = vpop.f32.mrf.mxu1  ;;  %4242 = vmatpush.msra.mxu1 %v3320_v32  ;;  %4301 = vmatpush.msrb.mxu2 %v3321_v62 }
 0x56c   :  { %3350 = vrot.lane.b32.xlu0 %v18631_v12, %s8245_s28  ;;  %3404 = vrot.lane.b32.xlu2 %v12324_v47, %s8245_s28 }
 0x56d   :  { %3346 = vrot.lane.b32.xlu1 %v18632_v54, %s8245_s28  ;;  %v13214_v21 = vpop.permute.xlu0 %3182 }
 0x56e   :  { %7629 = vmatmul.msk.f32.gmra.mxu1 %vm3615_vm5, %v12482_v52  ;;  %7650 = vmatmul.msk.f32.gmra.mxu3 %vm3615_vm5, %v13204_v51  ;;  %v13220_v13 = vpop.permute.xlu2 %3198  ;;  %v3241_v32 = vsel %vm3218_vm6, %v12926_v58, %v13214_v21  ;;  %v13237_v58 = vpop.f32.mrf.mxu0 }
 0x56f   :  { %v3145_v62 = vpop.permute.xlu1 %3144  ;;  %v3336_v47 = vmul.f32 %v13162_v18, %v3241_v32  ;;  %7642 = vmatmul.msk.f32.gmra.mxu2 %vm3615_vm5, %v12396_v7  ;;  %18633 = vst [vmem:[#allocation140_spill] sm:$0xff] %v13237_v58 }
 0x570   :  { %v3246_v12 = vsel %vm3218_vm6, %v3145_v62, %v13038_v8  ;;  %v3254_v54 = vsel %vm3218_vm6, %v13071_v27, %v3145_v62  ;;  %v13248_v27 = vld [vmem:[%s17559_s3 + $0x20] sm:$0xff]  ;;  %v18635_v62 = vld [vmem:[#allocation133_spill] sm:$0xff] }
 0x571   :  { %v3313_v22 = vmul.f32 %v13026_v26, %v3254_v54  ;;  %v3314_v53 = vmul.f32 %v13029_v29, %v3246_v12  ;;  %4358 = vmatpush.msrb.mxu3 %v3336_v47  ;;  %v13258_v12 = vpop.f32.mrf.mxu3 }
 0x572   :  { %7663 = vmatmul.msk.f32.gmra.mxu0 %vm3615_vm5, %v13159_v63  ;;  %v13241_v32 = vpop.f32.mrf.mxu2  ;;  %18636 = vst [vmem:[#allocation11_spill] sm:$0xff] %v13258_v12 }
 0x573   :  { %18634 = vst [vmem:[#allocation113_spill] sm:$0xff] %v13241_v32  ;;  %v13243_v7 = vpop.f32.mrf.mxu1  ;;  %4243 = vmatpush.msra.mxu1 %v3313_v22  ;;  %4302 = vmatpush.msrb.mxu2 %v3314_v53 }
 0x574   :  { %3348 = vrot.lane.b32.xlu0 %v18635_v62, %s8245_s28  ;;  %3398 = vrot.lane.b32.xlu2 %v12391_v4, %s8245_s28 }
 0x575   :  { %3406 = vrot.lane.b32.xlu1 %v12308_v16, %s8245_s28  ;;  %v13256_v47 = vpop.permute.xlu0 %3180 }
 0x576   :  { %7630 = vmatmul.msk.f32.gmra.mxu1 %vm3615_vm5, %v12548_v2  ;;  %7651 = vmatmul.msk.f32.gmra.mxu3 %vm3615_vm5, %v13248_v27  ;;  %v13264_v53 = vpop.permute.xlu2 %3192  ;;  %v3240_v4 = vsel %vm3218_vm6, %v12950_v59, %v13256_v47 }
 0x577   :  { %v3143_v22 = vpop.permute.xlu1 %3142  ;;  %v3329_v16 = vmul.f32 %v13162_v18, %v3240_v4  ;;  %7643 = vmatmul.msk.f32.gmra.mxu2 %vm3615_vm5, %v12482_v52  ;;  %v13290_v52 = vld [vmem:[%s17559_s3 + $0x28] sm:$0xff] }
 0x578   :  { %v3245_v54 = vsel %vm3218_vm6, %v3143_v22, %v13079_v19  ;;  %v3253_v62 = vsel %vm3218_vm6, %v12996_v0, %v3143_v22  ;;  %v13292_v0 = vpop.f32.mrf.mxu0  ;;  %v18639_v22 = vld [vmem:[#allocation105_spill] sm:$0xff] }
 0x579   :  { %v3306_v58 = vmul.f32 %v13026_v26, %v3253_v62  ;;  %v3307_v40 = vmul.f32 %v13029_v29, %v3245_v54  ;;  %4359 = vmatpush.msrb.mxu3 %v3329_v16  ;;  %18638 = vst [vmem:[#allocation99_spill] sm:$0xff] %v13292_v0  ;;  %v3251_v62 = vsel %vm3218_vm6, %v13123_v10, %v13176_v9 }
 0x57a   :  { %7664 = vmatmul.msk.f32.gmra.mxu0 %vm3615_vm5, %v13204_v51  ;;  %v13283_v59 = vpop.f32.mrf.mxu2  ;;  %v3292_v10 = vmul.f32 %v13026_v26, %v3251_v62 }
 0x57b   :  { %18637 = vst [vmem:[#allocation172_spill] sm:$0xff] %v13283_v59  ;;  %v13285_v4 = vpop.f32.mrf.mxu1  ;;  %4244 = vmatpush.msra.mxu1 %v3306_v58  ;;  %4303 = vmatpush.msrb.mxu2 %v3307_v40 }
 0x57c   :  { %3408 = vrot.lane.b32.xlu0 %v12292_v34, %s8245_s28  ;;  %3454 = vrot.lane.b32.xlu2 %v18639_v22, %s8245_s28 }
 0x57d   :  { %3400 = vrot.lane.b32.xlu1 %v12369_v55, %s8245_s28  ;;  %v13300_v16 = vpop.permute.xlu0 %3178  ;;  %v13315_v55 = vpop.f32.mrf.mxu3 }
 0x57e   :  { %7631 = vmatmul.msk.f32.gmra.mxu1 %vm3615_vm5, %v12578_v25  ;;  %7652 = vmatmul.msk.f32.gmra.mxu3 %vm3615_vm5, %v13290_v52  ;;  %v13306_v40 = vpop.permute.xlu2 %3186  ;;  %v3239_v34 = vsel %vm3218_vm6, %v12988_v35, %v13300_v16  ;;  %18640 = vst [vmem:[#allocation32_spill] sm:$0xff] %v13315_v55 }
 0x57f   :  { %v3141_v58 = vpop.permute.xlu1 %3140  ;;  %v3322_v54 = vmul.f32 %v13162_v18, %v3239_v34  ;;  %7644 = vmatmul.msk.f32.gmra.mxu2 %vm3615_vm5, %v12548_v2 }
 0x580   :  { %v3244_v22 = vsel %vm3218_vm6, %v3141_v58, %v13131_v48  ;;  %v3252_v35 = vsel %vm3218_vm6, %v12880_v14, %v3141_v58  ;;  %v13339_v14 = vld [vmem:[%s17559_s3 + $0x30] sm:$0xff] }
 0x581   :  { %v3299_v34 = vmul.f32 %v13026_v26, %v3252_v35  ;;  %v3300_v0 = vmul.f32 %v13029_v29, %v3244_v22  ;;  %4360 = vmatpush.msrb.mxu3 %v3322_v54 }
 0x582   :  { %7665 = vmatmul.msk.f32.gmra.mxu0 %vm3615_vm5, %v13248_v27  ;;  %v13331_v2 = vpop.f32.mrf.mxu2 }
 0x583   :  { %18641 = vst [vmem:[#allocation95_spill] sm:$0xff] %v13331_v2  ;;  %v13333_v11 = vpop.f32.mrf.mxu1  ;;  %4245 = vmatpush.msra.mxu1 %v3299_v34  ;;  %4304 = vmatpush.msrb.mxu2 %v3300_v0  ;;  %v13349_v0 = vpop.f32.mrf.mxu0 }
 0x584   :  { %3378 = vrot.lane.b32.xlu0 %v12432_v6, %s8245_s28  ;;  %3424 = vrot.lane.b32.xlu2 %v18587_v42, %s8245_s28  ;;  %18642 = vst [vmem:[#allocation28_spill] sm:$0xff] %v13349_v0 }
 0x585   :  { %3394 = vrot.lane.b32.xlu1 %v12425_v23, %s8245_s28  ;;  %4246 = vmatpush.msra.mxu1 %v3292_v10  ;;  %v13347_v58 = vpop.permute.xlu0 %3176  ;;  %v13366_v54 = vpop.f32.mrf.mxu3 }
 0x586   :  { %7632 = vmatmul.msk.f32.gmra.mxu1 %vm3615_vm5, %v12603_v37  ;;  %7653 = vmatmul.msk.f32.gmra.mxu3 %vm3615_vm5, %v13339_v14  ;;  %v13355_v26 = vpop.permute.xlu2 %3392  ;;  %v3238_v42 = vsel %vm3218_vm6, %v13038_v8, %v13347_v58  ;;  %18643 = vst [vmem:[#allocation88_spill] sm:$0xff] %v13366_v54  ;;  %v13377_v8 = vld [vmem:[%s17559_s3 + $0x38] sm:$0xff] }
 0x587   :  { %v13361_v6 = vpop.permute.xlu1 %3170  ;;  %v3315_v23 = vmul.f32 %v13162_v18, %v3238_v42  ;;  %7645 = vmatmul.msk.f32.gmra.mxu2 %vm3615_vm5, %v12578_v25 }
 0x589   :  { %4361 = vmatpush.msrb.mxu3 %v3315_v23  ;;  %v3233_v23 = vsel %vm3218_vm6, %v13214_v21, %v13220_v13 }
 0x58a   :  { %7666 = vmatmul.msk.f32.gmra.mxu0 %vm3615_vm5, %v13290_v52  ;;  %v13370_v62 = vpop.f32.mrf.mxu2 }
 0x58b   :  { %18644 = vst [vmem:[#allocation20_spill] sm:$0xff] %v13370_v62  ;;  %v13372_v22 = vpop.f32.mrf.mxu1  ;;  %v13406_v42 = vpop.f32.mrf.mxu0 }
 0x58c   :  { %3402 = vrot.lane.b32.xlu0 %v12345_v41, %s8245_s28  ;;  %3422 = vrot.lane.b32.xlu2 %v12448_v3, %s8245_s28  ;;  %v13398_v3 = vperm.slane %v12725_v57, 5  ;;  %18645 = vst [vmem:[#allocation84_spill] sm:$0xff] %v13406_v42 }
 0x58d   :  { %3438 = vrot.lane.b32.xlu1 %v12527_v20, %s8245_s28  ;;  %v13385_v25 = vpop.permute.xlu0 %3174  ;;  %v13401_v20 = vperm.slane %v12725_v57, 6 }
 0x58e   :  { %7654 = vmatmul.msk.f32.gmra.mxu3 %vm3615_vm5, %v13377_v8  ;;  %7675 = vmatmul.msk.f32.vlgmr.msra.gmra.mxu1 %vm3615_vm5, %v13063_v46  ;;  %v13391_v35 = vpop.permute.xlu2 %3390  ;;  %v3237_v41 = vsel %vm3218_vm6, %v13079_v19, %v13385_v25 }
 0x58f   :  { %v3201_v34 = vpop.permute.xlu1 %3200  ;;  %v3308_v10 = vmul.f32 %v13162_v18, %v3237_v41  ;;  %7646 = vmatmul.msk.f32.gmra.mxu2 %vm3615_vm5, %v12603_v37  ;;  %v3225_v37 = vsel %vm3218_vm6, %v13220_v13, %v12902_v5  ;;  %v13434_v5 = vld [vmem:[%s17559_s3 + $0x40] sm:$0xff]  ;;  %v13436_v13 = vpop.f32.mrf.mxu3 }
 0x590   :  { %v3226_v19 = vsel %vm3218_vm6, %v3201_v34, %v12820_v30  ;;  %v3234_v57 = vsel %vm3218_vm6, %v13170_v43, %v3201_v34  ;;  %v3337_v43 = vmul.f32 %v13398_v3, %v3233_v23  ;;  %18647 = vst [vmem:[#allocation174_spill] sm:$0xff] %v13436_v13  ;;  %v18648_v34 = vld [vmem:[#allocation10_spill] sm:$0xff] }
 0x591   :  { %v3344_v41 = vmul.f32 %v13398_v3, %v3234_v57  ;;  %v3345_v0 = vmul.f32 %v13401_v20, %v3226_v19  ;;  %4362 = vmatpush.msrb.mxu3 %v3308_v10  ;;  %v18649_v10 = vld [vmem:[#allocation37_spill] sm:$0xff]  ;;  %v3338_v19 = vmul.f32 %v13401_v20, %v3225_v37  ;;  %v18650_v57 = vld [vmem:[#allocation102_spill] sm:$0xff] }
 0x592   :  { %7667 = vmatmul.msk.f32.gmra.mxu0 %vm3615_vm5, %v13339_v14  ;;  %v13426_v21 = vpop.f32.mrf.mxu2 }
 0x593   :  { %18646 = vst [vmem:[#allocation16_spill] sm:$0xff] %v13426_v21  ;;  %v13428_v30 = vpop.f32.mrf.mxu1  ;;  %4416 = vmatpush.msrb.mxu0 %v3344_v41  ;;  %4475 = vmatpush.msrb.mxu1 %v3345_v0 }
 0x594   :  { %3396 = vrot.lane.b32.xlu0 %v18648_v34, %s8245_s28  ;;  %3420 = vrot.lane.b32.xlu2 %v18649_v10, %s8245_s28 }
 0x595   :  { %3452 = vrot.lane.b32.xlu1 %v18650_v57, %s8245_s28  ;;  %4417 = vmatpush.msrb.mxu0 %v3337_v43  ;;  %v13445_v0 = vpop.permute.xlu0 %3172  ;;  %v13458_v43 = vpop.f32.mrf.mxu0  ;;  %v18654_v57 = vld [vmem:[#allocation112_spill] sm:$0xff] }
 0x596   :  { %4476 = vmatpush.msrb.mxu1 %v3338_v19  ;;  %7655 = vmatmul.msk.f32.gmra.mxu3 %vm3615_vm5, %v13434_v5  ;;  %v13449_v23 = vpop.permute.xlu2 %3388  ;;  %v3236_v41 = vsel %vm3218_vm6, %v13131_v48, %v13445_v0  ;;  %18651 = vst [vmem:[#allocation175_spill] sm:$0xff] %v13458_v43  ;;  %v13469_v48 = vld [vmem:[%s17559_s3 + $0x48] sm:$0xff] }
 0x597   :  { %7676 = vmatmul.msk.f32.gmra.mxu1 %vm3615_vm5, %v13114_v39  ;;  %v3195_v37 = vpop.permute.xlu1 %3194  ;;  %v3301_v34 = vmul.f32 %v13162_v18, %v3236_v41  ;;  %v18655_v41 = vld [vmem:[#allocation91_spill] sm:$0xff]  ;;  %v13477_v42 = vpop.f32.mrf.mxu3 }
 0x598   :  { %18656 = vst [vmem:[#allocation180_spill] sm:$0xff] %v13477_v42  ;;  %v3223_v13 = vsel %vm3218_vm6, %v3195_v37, %v12797_v60 }
 0x599   :  { %4363 = vmatpush.msrb.mxu3 %v3301_v34 }
 0x59a   :  { %7668 = vmatmul.msk.f32.gmra.mxu0 %vm3615_vm5, %v13377_v8  ;;  %v13462_v10 = vpop.f32.mrf.mxu2 }
 0x59b   :  { %18652 = vst [vmem:[#allocation176_spill] sm:$0xff] %v13462_v10  ;;  %v13464_v19 = vpop.f32.mrf.mxu1 }
 0x59c   :  { %18653 = vst [vmem:[#allocation179_spill] sm:$0xff] %v13464_v19  ;;  %3436 = vrot.lane.b32.xlu0 %v12623_v44, %s8245_s28  ;;  %3418 = vrot.lane.b32.xlu2 %v18654_v57, %s8245_s28 }
 0x59d   :  { %3450 = vrot.lane.b32.xlu1 %v18655_v41, %s8245_s28  ;;  %v3155_v34 = vpop.permute.xlu0 %3154 }
 0x59e   :  { %7656 = vmatmul.msk.f32.gmra.mxu3 %vm3615_vm5, %v13469_v48  ;;  %v13481_v19 = vpop.permute.xlu2 %3386  ;;  %v3235_v43 = vsel %vm3218_vm6, %v3155_v34, %v13361_v6  ;;  %v3243_v44 = vsel %vm3218_vm6, %v13176_v9, %v3155_v34  ;;  %v13502_v9 = vld [vmem:[%s17567_s11 + $0x15] sm:$0xff] }
 0x59f   :  { %7677 = vmatmul.msk.f32.gmra.mxu1 %vm3615_vm5, %v13159_v63  ;;  %v13491_v57 = vpop.permute.xlu1 %3188  ;;  %v3293_v41 = vmul.f32 %v13029_v29, %v3243_v44  ;;  %v3294_v12 = vmul.f32 %v13162_v18, %v3235_v43  ;;  %v13511_v29 = vld [vmem:[%s17559_s3 + $0x50] sm:$0xff]  ;;  %v13513_v18 = vpop.f32.mrf.mxu0  ;;  %v13523_v43 = vperm.slane %v13502_v9, 1 }
 0x5a0   :  { %18659 = vst [vmem:[#allocation86_spill] sm:$0xff] %v13513_v18  ;;  %v13544_v54 = vpop.f32.mrf.mxu3 }
 0x5a1   :  { %4305 = vmatpush.msrb.mxu2 %v3293_v41  ;;  %4364 = vmatpush.msrb.mxu3 %v3294_v12  ;;  %v18660_v12 = vld [vmem:[#allocation115_spill] sm:$0xff]  ;;  %v3231_v41 = vsel %vm3218_vm6, %v13300_v16, %v3195_v37  ;;  %18661 = vst [vmem:[#allocation68_spill] sm:$0xff] %v13544_v54  ;;  %v3222_v37 = vsel %vm3218_vm6, %v13264_v53, %v12882_v15  ;;  %v18666_v15 = vld [vmem:[#allocation13_spill] sm:$0xff] }
 0x5a2   :  { %7669 = vmatmul.msk.f32.gmra.mxu0 %vm3615_vm5, %v13434_v5  ;;  %7689 = vmatmul.msk.f32.vlgmr.msrb.gmra.mxu2 %vm3615_vm5, %v13063_v46  ;;  %v13504_v34 = vpop.f32.mrf.mxu2 }
 0x5a3   :  { %18657 = vst [vmem:[#allocation147_spill] sm:$0xff] %v13504_v34  ;;  %v13506_v55 = vpop.f32.mrf.mxu1 }
 0x5a4   :  { %18658 = vst [vmem:[#allocation38_spill] sm:$0xff] %v13506_v55  ;;  %3434 = vrot.lane.b32.xlu0 %v12634_v50, %s8245_s28  ;;  %3440 = vrot.lane.b32.xlu2 %v12451_v31, %s8245_s28 }
 0x5a5   :  { %3448 = vrot.lane.b32.xlu1 %v18660_v12, %s8245_s28  ;;  %v3197_v44 = vpop.permute.xlu0 %3196 }
 0x5a6   :  { %7657 = vmatmul.msk.f32.gmra.mxu3 %vm3615_vm5, %v13511_v29  ;;  %v13530_v50 = vpop.permute.xlu2 %3384  ;;  %v3224_v31 = vsel %vm3218_vm6, %v3197_v44, %v12978_v56  ;;  %v3232_v12 = vsel %vm3218_vm6, %v13256_v47, %v3197_v44  ;;  %v3230_v47 = vsel %vm3218_vm6, %v13347_v58, %v13264_v53 }
 0x5a7   :  { %7678 = vmatmul.msk.f32.gmra.mxu1 %vm3615_vm5, %v13204_v51  ;;  %v13540_v55 = vpop.permute.xlu1 %3376  ;;  %v3330_v16 = vmul.f32 %v13398_v3, %v3232_v12  ;;  %v3331_v18 = vmul.f32 %v13401_v20, %v3224_v31  ;;  %v3323_v31 = vmul.f32 %v13398_v3, %v3231_v41  ;;  %v13575_v41 = vld [vmem:[%s17559_s3 + $0x58] sm:$0xff] }
 0x5a8   :  { %v3498_v56 = vsel %vm3458_vm7, %v13540_v55, %v13355_v26  ;;  %v18664_v12 = vld [vmem:[#allocation34_spill] sm:$0xff] }
 0x5a9   :  { %v3580_v44 = vmul.f32 %v13523_v43, %v3498_v56  ;;  %4418 = vmatpush.msrb.mxu0 %v3330_v16  ;;  %4477 = vmatpush.msrb.mxu1 %v3331_v18  ;;  %v3324_v18 = vmul.f32 %v13401_v20, %v3223_v13  ;;  %v18665_v16 = vld [vmem:[#allocation101_spill] sm:$0xff]  ;;  %v3316_v56 = vmul.f32 %v13398_v3, %v3230_v47 }
 0x5aa   :  { %7670 = vmatmul.msk.f32.gmra.mxu0 %vm3615_vm5, %v13469_v48  ;;  %7690 = vmatmul.msk.f32.gmra.mxu2 %vm3615_vm5, %v13114_v39  ;;  %v13563_v60 = vpop.f32.mrf.mxu2 }
 0x5ab   :  { %18662 = vst [vmem:[#allocation94_spill] sm:$0xff] %v13563_v60  ;;  %v13569_v58 = vpop.f32.mrf.mxu1  ;;  %4650 = vmatpush.msra.mxu3 %v3580_v44  ;;  %4419 = vmatpush.msrb.mxu0 %v3323_v31  ;;  %v13584_v44 = vpop.f32.mrf.mxu0  ;;  %v3317_v31 = vmul.f32 %v13401_v20, %v3222_v37  ;;  %v3228_v37 = vsel %vm3218_vm6, %v13445_v0, %v13491_v57 }
 0x5ac   :  { %18663 = vst [vmem:[#allocation83_spill] sm:$0xff] %v13569_v58  ;;  %3432 = vrot.lane.b32.xlu0 %v18664_v12, %s8245_s28  ;;  %3416 = vrot.lane.b32.xlu2 %v18665_v16, %s8245_s28  ;;  %v18668_v12 = vld [vmem:[#allocation154_spill] sm:$0xff]  ;;  %v3227_v0 = vsel %vm3218_vm6, %v13361_v6, %v13306_v40  ;;  %v13635_v6 = vld [vmem:[%s17559_s3 + $0x60] sm:$0xff]  ;;  %v5104_v58 = vld [vmem:[%s17560_s4 + $0x50] sm:$0xff] }
 0x5ad   :  { %3446 = vrot.lane.b32.xlu1 %v18666_v15, %s8245_s28  ;;  %4478 = vmatpush.msrb.mxu1 %v3324_v18  ;;  %v3191_v53 = vpop.permute.xlu0 %3190  ;;  %18667 = vst [vmem:[#allocation182_spill] sm:$0xff] %v13584_v44 }
 0x5ae   :  { %7658 = vmatmul.msk.f32.gmra.mxu3 %vm3615_vm5, %v13575_v41  ;;  %v13588_v13 = vpop.permute.xlu2 %3382  ;;  %4420 = vmatpush.msrb.mxu0 %v3316_v56  ;;  %v3221_v16 = vsel %vm3218_vm6, %v3191_v53, %v18668_v12  ;;  %v3229_v47 = vsel %vm3218_vm6, %v13385_v25, %v3191_v53  ;;  %v18669_v12 = vld [vmem:[#allocation6_spill] sm:$0xff] }
 0x5af   :  { %7679 = vmatmul.msk.f32.gmra.mxu1 %vm3615_vm5, %v13248_v27  ;;  %v3375_v18 = vpop.permute.xlu1 %3374  ;;  %v3309_v15 = vmul.f32 %v13398_v3, %v3229_v47  ;;  %v3310_v60 = vmul.f32 %v13401_v20, %v3221_v16  ;;  %v3220_v25 = vsel %vm3218_vm6, %v13491_v57, %v18669_v12  ;;  %v13613_v47 = vpop.f32.mrf.mxu3  ;;  %v3219_v57 = vsel %vm3218_vm6, %v13306_v40, %v13031_v38  ;;  %v18674_v38 = vld [vmem:[#allocation97_spill] sm:$0xff]  ;;  %v18675_v12 = vld [vmem:[#allocation166_spill] sm:$0xff] }
 0x5b0   :  { %v3497_v56 = vsel %vm3458_vm7, %v3375_v18, %v13391_v35  ;;  %4479 = vmatpush.msrb.mxu1 %v3317_v31  ;;  %18670 = vst [vmem:[#allocation134_spill] sm:$0xff] %v13613_v47  ;;  %v3303_v40 = vmul.f32 %v13401_v20, %v3220_v25 }
 0x5b1   :  { %4421 = vmatpush.msrb.mxu0 %v3309_v15  ;;  %v3573_v53 = vmul.f32 %v13523_v43, %v3497_v56  ;;  %v3302_v15 = vmul.f32 %v13398_v3, %v3228_v37  ;;  %v18673_v56 = vld [vmem:[#allocation109_spill] sm:$0xff]  ;;  %v3295_v37 = vmul.f32 %v13398_v3, %v3227_v0 }
 0x5b2   :  { %4480 = vmatpush.msrb.mxu1 %v3310_v60  ;;  %7671 = vmatmul.msk.f32.gmra.mxu0 %vm3615_vm5, %v13511_v29  ;;  %v13621_v31 = vpop.f32.mrf.mxu2  ;;  %v13638_v60 = vperm.slane %v13502_v9, 0 }
 0x5b3   :  { %18671 = vst [vmem:[#allocation153_spill] sm:$0xff] %v13621_v31  ;;  %v13627_v16 = vpop.f32.mrf.mxu1  ;;  %4651 = vmatpush.msra.mxu3 %v3573_v53  ;;  %7691 = vmatmul.msk.f32.gmra.mxu2 %vm3615_vm5, %v13159_v63  ;;  %v13662_v0 = vpop.f32.mrf.mxu0 }
 0x5b4   :  { %18672 = vst [vmem:[#allocation79_spill] sm:$0xff] %v13627_v16  ;;  %3430 = vrot.lane.b32.xlu0 %v18673_v56, %s8245_s28  ;;  %3414 = vrot.lane.b32.xlu2 %v18674_v38, %s8245_s28  ;;  %v3296_v56 = vmul.f32 %v13401_v20, %v3219_v57 }
 0x5b5   :  { %3444 = vrot.lane.b32.xlu1 %v18675_v12, %s8245_s28  ;;  %4422 = vmatpush.msrb.mxu0 %v3302_v15  ;;  %v13648_v53 = vpop.permute.xlu0 %3360  ;;  %18676 = vst [vmem:[#allocation181_spill] sm:$0xff] %v13662_v0  ;;  %v13682_v12 = vld [vmem:[%s17559_s3 + $0x68] sm:$0xff]  ;;  %v5101_v0 = vld [vmem:[%s17560_s4 + $0x38] sm:$0xff] }
 0x5b6   :  { %4481 = vmatpush.msrb.mxu1 %v3303_v40  ;;  %7659 = vmatmul.msk.f32.gmra.mxu3 %vm3615_vm5, %v13635_v6  ;;  %v13652_v31 = vpop.permute.xlu2 %3380  ;;  %v3506_v25 = vsel %vm3458_vm7, %v13648_v53, %v13540_v55  ;;  %v5107_v55 = vld [vmem:[%s17560_s4 + $0x68] sm:$0xff] }
 0x5b7   :  { %7680 = vmatmul.msk.f32.gmra.mxu1 %vm3615_vm5, %v13290_v52  ;;  %v3373_v15 = vpop.permute.xlu1 %3372  ;;  %4423 = vmatpush.msrb.mxu0 %v3295_v37  ;;  %v3579_v3 = vmul.f32 %v13638_v60, %v3506_v25  ;;  %v13684_v37 = vpop.f32.mrf.mxu3  ;;  %v18681_v25 = vld [vmem:[#allocation93_spill] sm:$0xff] }
 0x5b8   :  { %v3496_v38 = vsel %vm3458_vm7, %v3373_v15, %v13449_v23  ;;  %4482 = vmatpush.msrb.mxu1 %v3296_v56  ;;  %18679 = vst [vmem:[#allocation82_spill] sm:$0xff] %v13684_v37  ;;  %v18680_v56 = vld [vmem:[#allocation40_spill] sm:$0xff] }
 0x5b9   :  { %4591 = vmatpush.msra.mxu2 %v3579_v3  ;;  %v3566_v20 = vmul.f32 %v13523_v43, %v3496_v38  ;;  %v5095_v37 = vld [vmem:[%s17560_s4 + $0x8] sm:$0xff] }
 0x5ba   :  { %7672 = vmatmul.msk.f32.gmra.mxu0 %vm3615_vm5, %v13575_v41  ;;  %v13673_v57 = vpop.f32.mrf.mxu2 }
 0x5bb   :  { %18677 = vst [vmem:[#allocation87_spill] sm:$0xff] %v13673_v57  ;;  %v13675_v40 = vpop.f32.mrf.mxu1  ;;  %4652 = vmatpush.msra.mxu3 %v3566_v20  ;;  %7692 = vmatmul.msk.f32.gmra.mxu2 %vm3615_vm5, %v13204_v51  ;;  %v13709_v16 = vpop.f32.mrf.mxu0 }
 0x5bc   :  { %18678 = vst [vmem:[#allocation183_spill] sm:$0xff] %v13675_v40  ;;  %3456 = vrot.lane.b32.xlu0 %v18680_v56, %s8245_s28  ;;  %5175 = vperm.xlu2 %8079, %v5107_v55  }
 0x5bd   :  { %3442 = vrot.lane.b32.xlu1 %v18681_v25, %s8245_s28  ;;  %v13690_v3 = vpop.permute.xlu0 %3358  ;;  %18682 = vst [vmem:[#allocation144_spill] sm:$0xff] %v13709_v16 }
 0x5be   :  { %7660 = vmatmul.msk.f32.gmra.mxu3 %vm3615_vm5, %v13682_v12  ;;  %v13694_v38 = vpop.permute.xlu2 %3362  ;;  %v3505_v20 = vsel %vm3458_vm7, %v13690_v3, %v3375_v18 }
 0x5bf   :  { %7681 = vmatmul.msk.f32.gmra.mxu1 %vm3615_vm5, %v13339_v14  ;;  %v3371_v57 = vpop.permute.xlu1 %3370  ;;  %v3572_v55 = vmul.f32 %v13638_v60, %v3505_v20  ;;  %v18685_v20 = vld [vmem:[#allocation188_spill] sm:$0xff] }
 0x5c0   :  { %v3495_v56 = vsel %vm3458_vm7, %v3371_v57, %v13481_v19 }
 0x5c1   :  { %4592 = vmatpush.msra.mxu2 %v3572_v55  ;;  %v3559_v25 = vmul.f32 %v13523_v43, %v3495_v56  ;;  %v18686_v55 = vld [vmem:[#allocation150_spill] sm:$0xff]  ;;  %v13723_v56 = vpop.f32.mrf.mxu3 }
 0x5c2   :  { %7673 = vmatmul.msk.f32.gmra.mxu0 %vm3615_vm5, %v13635_v6  ;;  %v13713_v18 = vpop.f32.mrf.mxu2  ;;  %18687 = vst [vmem:[#allocation78_spill] sm:$0xff] %v13723_v56 }
 0x5c3   :  { %18683 = vst [vmem:[#allocation76_spill] sm:$0xff] %v13713_v18  ;;  %v13715_v40 = vpop.f32.mrf.mxu1  ;;  %4653 = vmatpush.msra.mxu3 %v3559_v25  ;;  %7693 = vmatmul.msk.f32.gmra.mxu2 %vm3615_vm5, %v13248_v27 }
 0x5c4   :  { %18684 = vst [vmem:[#allocation177_spill] sm:$0xff] %v13715_v40  ;;  %3428 = vrot.lane.b32.xlu0 %v18685_v20, %s8245_s28  ;;  %5160 = vperm.xlu2 %8079, %v5104_v58  }
 0x5c5   :  { %3410 = vrot.lane.b32.xlu1 %v18686_v55, %s8245_s28 }
 0x5c6   :  { %7703 = vmatmul.msk.f32.vlgmr.msrb.gmra.mxu3 %vm3615_vm5, %v13063_v46  ;;  %v13727_v44 = vpop.permute.xlu2 %3404  ;;  %v13729_v18 = vpop.permute.xlu0 %3356 }
 0x5c7   :  { %7682 = vmatmul.msk.f32.gmra.mxu1 %vm3615_vm5, %v13377_v8  ;;  %v3369_v25 = vpop.permute.xlu1 %3368  ;;  %v3504_v58 = vsel %vm3458_vm7, %v13729_v18, %v3373_v15  ;;  %v5105_v15 = vld [vmem:[%s17560_s4 + $0x58] sm:$0xff]  ;;  %v3488_v33 = vsel %vm3458_vm7, %v13449_v23, %v13727_v44 }
 0x5c8   :  { %v3494_v20 = vsel %vm3458_vm7, %v3369_v25, %v13530_v50  ;;  %v3565_v55 = vmul.f32 %v13638_v60, %v3504_v58  ;;  %v13755_v58 = vpop.f32.mrf.mxu0 }
 0x5c9   :  { %v3552_v40 = vmul.f32 %v13523_v43, %v3494_v20  ;;  %18690 = vst [vmem:[#allocation141_spill] sm:$0xff] %v13755_v58  ;;  %v18691_v20 = vld [vmem:[#allocation162_spill] sm:$0xff]  ;;  %v5098_v58 = vld [vmem:[%s17560_s4 + $0x20] sm:$0xff] }
 0x5ca   :  { %4593 = vmatpush.msra.mxu2 %v3565_v55  ;;  %7674 = vmatmul.msk.f32.gmra.mxu0 %vm3615_vm5, %v13682_v12  ;;  %v13749_v16 = vpop.f32.mrf.mxu2 }
 0x5cb   :  { %18688 = vst [vmem:[#allocation73_spill] sm:$0xff] %v13749_v16  ;;  %v13751_v42 = vpop.f32.mrf.mxu1  ;;  %4654 = vmatpush.msra.mxu3 %v3552_v40  ;;  %7694 = vmatmul.msk.f32.gmra.mxu2 %vm3615_vm5, %v13290_v52 }
 0x5cc   :  { %18689 = vst [vmem:[#allocation80_spill] sm:$0xff] %v13751_v42  ;;  %3426 = vrot.lane.b32.xlu0 %v18691_v20, %s8245_s28  ;;  %5145 = vperm.xlu2 %8079, %v5101_v0   ;;  %v13770_v42 = vpop.f32.mrf.mxu3 }
 0x5cd   :  { %5165 = vperm.xlu1 %8081, %v5105_v15   ;;  %18692 = vst [vmem:[#allocation70_spill] sm:$0xff] %v13770_v42 }
 0x5ce   :  { %7704 = vmatmul.msk.f32.gmra.mxu3 %vm3615_vm5, %v13114_v39  ;;  %v13761_v55 = vpop.permute.xlu2 %3398  ;;  %v13763_v54 = vpop.permute.xlu0 %3354 }
 0x5cf   :  { %7683 = vmatmul.msk.f32.gmra.mxu1 %vm3615_vm5, %v13434_v5  ;;  %v3367_v40 = vpop.permute.xlu1 %3366  ;;  %v3503_v16 = vsel %vm3458_vm7, %v13763_v54, %v3371_v57  ;;  %v5102_v57 = vld [vmem:[%s17560_s4 + $0x40] sm:$0xff] }
 0x5d0   :  { %v3493_v0 = vsel %vm3458_vm7, %v3367_v40, %v13588_v13  ;;  %v3558_v15 = vmul.f32 %v13638_v60, %v3503_v16  ;;  %v18695_v16 = vld [vmem:[#allocation164_spill] sm:$0xff] }
 0x5d1   :  { %v3545_v20 = vmul.f32 %v13523_v43, %v3493_v0  ;;  %v13793_v0 = vpop.f32.mrf.mxu0 }
 0x5d2   :  { %4594 = vmatpush.msra.mxu2 %v3558_v15  ;;  %7717 = vmatmul.msk.f32.vlgmr.msrb.gmra.mxu0 %vm3615_vm5, %v13063_v46  ;;  %v13785_v47 = vpop.f32.mrf.mxu2  ;;  %18696 = vst [vmem:[#allocation67_spill] sm:$0xff] %v13793_v0  ;;  %v5106_v0 = vld [vmem:[%s17560_s4 + $0x60] sm:$0xff] }
 0x5d3   :  { %18693 = vst [vmem:[#allocation24_spill] sm:$0xff] %v13785_v47  ;;  %v13787_v42 = vpop.f32.mrf.mxu1  ;;  %4655 = vmatpush.msra.mxu3 %v3545_v20  ;;  %7695 = vmatmul.msk.f32.gmra.mxu2 %vm3615_vm5, %v13339_v14 }
 0x5d4   :  { %18694 = vst [vmem:[#allocation75_spill] sm:$0xff] %v13787_v42  ;;  %3412 = vrot.lane.b32.xlu0 %v18695_v16, %s8245_s28  ;;  %5130 = vperm.xlu2 %8079, %v5098_v58  }
 0x5d5   :  { %5150 = vperm.xlu1 %8081, %v5102_v57  }
 0x5d6   :  { %7705 = vmatmul.msk.f32.gmra.mxu3 %vm3615_vm5, %v13159_v63  ;;  %v13797_v46 = vpop.permute.xlu2 %3454  ;;  %v13799_v15 = vpop.permute.xlu0 %3352 }
 0x5d7   :  { %7684 = vmatmul.msk.f32.gmra.mxu1 %vm3615_vm5, %v13469_v48  ;;  %v3365_v20 = vpop.permute.xlu1 %3364  ;;  %v3502_v47 = vsel %vm3458_vm7, %v13799_v15, %v3369_v25 }
 0x5d8   :  { %v3492_v58 = vsel %vm3458_vm7, %v3365_v20, %v13652_v31  ;;  %v3551_v57 = vmul.f32 %v13638_v60, %v3502_v47  ;;  %v5099_v47 = vld [vmem:[%s17560_s4 + $0x28] sm:$0xff] }
 0x5d9   :  { %v13810_v16 = vpop.f32.mrf.mxu3  ;;  %v3538_v42 = vmul.f32 %v13523_v43, %v3492_v58 }
 0x5da   :  { %4595 = vmatpush.msra.mxu2 %v3551_v57  ;;  %7718 = vmatmul.msk.f32.gmra.mxu0 %vm3615_vm5, %v13114_v39  ;;  %v13824_v25 = vpop.f32.mrf.mxu2 }
 0x5db   :  { %18697 = vst [vmem:[#allocation171_spill] sm:$0xff] %v13824_v25  ;;  %v13826_v56 = vpop.f32.mrf.mxu1  ;;  %4656 = vmatpush.msra.mxu3 %v3538_v42  ;;  %7696 = vmatmul.msk.f32.gmra.mxu2 %vm3615_vm5, %v13377_v8 }
 0x5dc   :  { %18698 = vst [vmem:[#allocation35_spill] sm:$0xff] %v13826_v56  ;;  %5170 = vperm.xlu0 %8080, %v5106_v0   ;;  %5115 = vperm.xlu2 %8079, %v5095_v37   ;;  %v5096_v56 = vld [vmem:[%s17560_s4 + $0x10] sm:$0xff] }
 0x5dd   :  { %5135 = vperm.xlu1 %8081, %v5099_v47   ;;  %v5103_v47 = vld [vmem:[%s17560_s4 + $0x48] sm:$0xff] }
 0x5de   :  { %7706 = vmatmul.msk.f32.gmra.mxu3 %vm3615_vm5, %v13204_v51  ;;  %v13832_v58 = vpop.permute.xlu2 %3424  ;;  %v13834_v39 = vpop.permute.xlu0 %3350 }
 0x5df   :  { %7685 = vmatmul.msk.f32.gmra.mxu1 %vm3615_vm5, %v13511_v29  ;;  %v13838_v57 = vpop.permute.xlu1 %3346  ;;  %v3501_v42 = vsel %vm3458_vm7, %v13834_v39, %v3367_v40  ;;  %v13843_v25 = vpop.f32.mrf.mxu0 }
 0x5e0   :  { %18699 = vst [vmem:[#allocation64_spill] sm:$0xff] %v13843_v25  ;;  %v3544_v37 = vmul.f32 %v13638_v60, %v3501_v42  ;;  %v3499_v61 = vsel %vm3458_vm7, %v13838_v57, %v13694_v38 }
 0x5e1   :  { %v13846_v0 = vpop.f32.mrf.mxu3  ;;  %v3530_v17 = vmul.f32 %v13638_v60, %v3499_v61 }
 0x5e2   :  { %4596 = vmatpush.msra.mxu2 %v3544_v37  ;;  %7719 = vmatmul.msk.f32.gmra.mxu0 %vm3615_vm5, %v13159_v63  ;;  %v13856_v49 = vpop.f32.mrf.mxu2 }
 0x5e3   :  { %18700 = vst [vmem:[#allocation169_spill] sm:$0xff] %v13856_v49  ;;  %v13858_v40 = vpop.f32.mrf.mxu1  ;;  %7697 = vmatmul.msk.f32.gmra.mxu2 %vm3615_vm5, %v13434_v5 }
 0x5e4   :  { %18701 = vst [vmem:[#allocation148_spill] sm:$0xff] %v13858_v40  ;;  %5155 = vperm.xlu0 %8080, %v5103_v47  }
 0x5e5   :  { %5120 = vperm.xlu1 %8081, %v5096_v56  }
 0x5e6   :  { %7707 = vmatmul.msk.f32.gmra.mxu3 %vm3615_vm5, %v13248_v27  ;;  %v13864_v42 = vpop.permute.xlu2 %3422  ;;  %v13866_v37 = vpop.permute.xlu0 %3348 }
 0x5e7   :  { %7686 = vmatmul.msk.f32.gmra.mxu1 %vm3615_vm5, %v13575_v41  ;;  %v3407_v49 = vpop.permute.xlu1 %3406  ;;  %v3500_v56 = vsel %vm3458_vm7, %v13866_v37, %v3365_v20  ;;  %v13877_v47 = vpop.f32.mrf.mxu0  ;;  %v13895_v20 = vperm.slane %v13502_v9, 3 }
 0x5e8   :  { %18702 = vst [vmem:[#allocation60_spill] sm:$0xff] %v13877_v47  ;;  %v3537_v40 = vmul.f32 %v13638_v60, %v3500_v56  ;;  %v13902_v56 = vperm.slane %v13502_v9, 2  ;;  %v3489_v60 = vsel %vm3458_vm7, %v13391_v35, %v3407_v49  ;;  %v3481_v47 = vsel %vm3458_vm7, %v3407_v49, %v13864_v42 }
 0x5e9   :  { %v13880_v25 = vpop.f32.mrf.mxu3  ;;  %v3575_v49 = vmul.f32 %v13895_v20, %v3481_v47 }
 0x5ea   :  { %4597 = vmatpush.msra.mxu2 %v3537_v40  ;;  %7720 = vmatmul.msk.f32.gmra.mxu0 %vm3615_vm5, %v13204_v51  ;;  %v13888_v32 = vpop.f32.mrf.mxu2 }
 0x5eb   :  { %18703 = vst [vmem:[#allocation167_spill] sm:$0xff] %v13888_v32  ;;  %v13890_v59 = vpop.f32.mrf.mxu1  ;;  %7698 = vmatmul.msk.f32.gmra.mxu2 %vm3615_vm5, %v13469_v48 }
 0x5ec   :  { %18704 = vst [vmem:[#allocation71_spill] sm:$0xff] %v13890_v59  ;;  %5140 = vperm.xlu0 %8080, %v5100_v1   ;;  %4598 = vmatpush.msra.mxu2 %v3530_v17 }
 0x5ee   :  { %7708 = vmatmul.msk.f32.gmra.mxu3 %vm3615_vm5, %v13290_v52  ;;  %v13899_v40 = vpop.permute.xlu2 %3420  ;;  %v3409_v61 = vpop.permute.xlu0 %3408 }
 0x5ef   :  { %7687 = vmatmul.msk.f32.gmra.mxu1 %vm3615_vm5, %v13635_v6  ;;  %v13909_v1 = vpop.permute.xlu1 %3400  ;;  %v3482_v17 = vsel %vm3458_vm7, %v3409_v61, %v13832_v58  ;;  %v3490_v32 = vsel %vm3458_vm7, %v13355_v26, %v3409_v61  ;;  %v13917_v59 = vpop.f32.mrf.mxu0  ;;  %v5097_v26 = vld [vmem:[%s17560_s4 + $0x18] sm:$0xff]  ;;  %v3574_v61 = vmul.f32 %v13902_v56, %v3489_v60 }
 0x5f0   :  { %18705 = vst [vmem:[#allocation56_spill] sm:$0xff] %v13917_v59  ;;  %v3581_v35 = vmul.f32 %v13902_v56, %v3490_v32  ;;  %v3582_v2 = vmul.f32 %v13895_v20, %v3482_v17  ;;  %v3480_v32 = vsel %vm3458_vm7, %v13727_v44, %v13899_v40 }
 0x5f1   :  { %v13928_v62 = vpop.f32.mrf.mxu3  ;;  %v3568_v47 = vmul.f32 %v13895_v20, %v3480_v32  ;;  %v5094_v32 = vld [vmem:[%s17560_s4] sm:$0xff] }
 0x5f2   :  { %4709 = vmatpush.msra.mxu0 %v3581_v35  ;;  %4768 = vmatpush.msra.mxu1 %v3582_v2  ;;  %v13945_v23 = vpop.f32.mrf.mxu2  ;;  %v3567_v2 = vmul.f32 %v13902_v56, %v3488_v33 }
 0x5f3   :  { %v13939_v17 = vpop.f32.mrf.mxu1  ;;  %7699 = vmatmul.msk.f32.gmra.mxu2 %vm3615_vm5, %v13511_v29  ;;  %7721 = vmatmul.msk.f32.gmra.mxu0 %vm3615_vm5, %v13248_v27  ;;  %18707 = vst [vmem:[#allocation136_spill] sm:$0xff] %v13945_v23 }
 0x5f4   :  { %18706 = vst [vmem:[#allocation165_spill] sm:$0xff] %v13939_v17  ;;  %5125 = vperm.xlu0 %8080, %v5097_v26   ;;  %4710 = vmatpush.msra.mxu0 %v3574_v61 }
 0x5f5   :  { %4769 = vmatpush.msra.mxu1 %v3575_v49 }
 0x5f6   :  { %7709 = vmatmul.msk.f32.gmra.mxu3 %vm3615_vm5, %v13339_v14  ;;  %v13951_v44 = vpop.permute.xlu2 %3418  ;;  %4711 = vmatpush.msra.mxu0 %v3567_v2  ;;  %v3379_v60 = vpop.permute.xlu0 %3378 }
 0x5f7   :  { %7688 = vmatmul.msk.f32.gmra.mxu1 %vm3615_vm5, %v13682_v12  ;;  %v13955_v35 = vpop.permute.xlu1 %3394  ;;  %v3491_v26 = vsel %vm3458_vm7, %v13694_v38, %v3379_v60  ;;  %v13960_v33 = vpop.f32.mrf.mxu0  ;;  %v13975_v38 = vperm.slane %v13502_v9, 4 }
 0x5f8   :  { %18708 = vst [vmem:[#allocation52_spill] sm:$0xff] %v13960_v33  ;;  %4770 = vmatpush.msra.mxu1 %v3568_v47  ;;  %v3531_v61 = vmul.f32 %v13523_v43, %v3491_v26 }
 0x5f9   :  { %v13963_v49 = vpop.f32.mrf.mxu3 }
 0x5fa   :  { %4657 = vmatpush.msra.mxu3 %v3531_v61  ;;  %v13977_v43 = vpop.f32.mrf.mxu2  ;;  %v8210_v61 = vld [vmem:[%s17559_s3] sm:$0xff] }
 0x5fb   :  { %v13968_v2 = vpop.f32.mrf.mxu1  ;;  %7700 = vmatmul.msk.f32.gmra.mxu2 %vm3615_vm5, %v13575_v41  ;;  %7722 = vmatmul.msk.f32.gmra.mxu0 %vm3615_vm5, %v13290_v52  ;;  %18710 = vst [vmem:[#allocation142_spill] sm:$0xff] %v13977_v43 }
 0x5fc   :  { %18709 = vst [vmem:[#allocation163_spill] sm:$0xff] %v13968_v2  ;;  %5110 = vperm.xlu0 %8080, %v5094_v32  }
 0x5fe   :  { %7710 = vmatmul.msk.f32.gmra.mxu3 %vm3615_vm5, %v13377_v8  ;;  %v13981_v47 = vpop.permute.xlu2 %3440  ;;  %v3403_v26 = vpop.permute.xlu0 %3402 }
 0x5ff   :  { %7731 = vmatmul.msk.f32.vlgmr.msrb.gmra.mxu1 %vm3615_vm5, %v8210_v61  ;;  %v13987_v23 = vpop.permute.xlu1 %3438  ;;  %v3474_v32 = vsel %vm3458_vm7, %v13832_v58, %v13981_v47  ;;  %v3479_v43 = vsel %vm3458_vm7, %v3403_v26, %v13951_v44  ;;  %v3487_v17 = vsel %vm3458_vm7, %v13481_v19, %v3403_v26  ;;  %v13999_v2 = vpop.f32.mrf.mxu0  ;;  %v3486_v61 = vsel %vm3458_vm7, %v13530_v50, %v13909_v1 }
 0x600   :  { %18711 = vst [vmem:[#allocation145_spill] sm:$0xff] %v13999_v2  ;;  %v3473_v58 = vsel %vm3458_vm7, %v13864_v42, %v13987_v23  ;;  %v3583_v59 = vmul.f32 %v13975_v38, %v3474_v32  ;;  %v3560_v36 = vmul.f32 %v13902_v56, %v3487_v17  ;;  %v3561_v19 = vmul.f32 %v13895_v20, %v3479_v43 }
 0x601   :  { %v14010_v33 = vpop.f32.mrf.mxu3  ;;  %v3485_v26 = vsel %vm3458_vm7, %v13588_v13, %v13761_v55  ;;  %v3576_v50 = vmul.f32 %v13975_v38, %v3473_v58  ;;  %v3553_v42 = vmul.f32 %v13902_v56, %v3486_v61 }
 0x602   :  { %4827 = vmatpush.msrb.mxu2 %v3583_v59  ;;  %4712 = vmatpush.msra.mxu0 %v3560_v36  ;;  %v3546_v17 = vmul.f32 %v13902_v56, %v3485_v26  ;;  %v8211_v36 = vld [vmem:[%s17559_s3 + $0x8] sm:$0xff]  ;;  %v14044_v58 = vpop.f32.mrf.mxu2 }
 0x603   :  { %v14019_v2 = vpop.f32.mrf.mxu1  ;;  %4771 = vmatpush.msra.mxu1 %v3561_v19  ;;  %7701 = vmatmul.msk.f32.gmra.mxu2 %vm3615_vm5, %v13635_v6  ;;  %18714 = vst [vmem:[#allocation27_spill] sm:$0xff] %v14044_v58  ;;  %v3483_v19 = vsel %vm3458_vm7, %v3379_v60, %v13955_v35 }
 0x604   :  { %18712 = vst [vmem:[#allocation48_spill] sm:$0xff] %v14019_v2  ;;  %7723 = vmatmul.msk.f32.gmra.mxu0 %vm3615_vm5, %v13339_v14  ;;  %4828 = vmatpush.msrb.mxu2 %v3576_v50 }
 0x605   :  { %4713 = vmatpush.msra.mxu0 %v3553_v42 }
 0x606   :  { %7711 = vmatmul.msk.f32.gmra.mxu3 %vm3615_vm5, %v13434_v5  ;;  %v3417_v59 = vpop.permute.xlu2 %3416  ;;  %v14029_v13 = vpop.permute.xlu0 %3396 }
 0x607   :  { %7732 = vmatmul.msk.f32.gmra.mxu1 %vm3615_vm5, %v8211_v36  ;;  %v3478_v43 = vsel %vm3458_vm7, %v13909_v1, %v3417_v59  ;;  %4714 = vmatpush.msra.mxu0 %v3546_v17  ;;  %v3484_v32 = vsel %vm3458_vm7, %v13652_v31, %v14029_v13  ;;  %v14042_v61 = vpop.f32.mrf.mxu0  ;;  %v14049_v26 = vpop.permute.xlu1 %3452  ;;  %v3532_v31 = vmul.f32 %v13902_v56, %v3483_v19 }
 0x608   :  { %18713 = vst [vmem:[#allocation161_spill] sm:$0xff] %v14042_v61  ;;  %v3554_v50 = vmul.f32 %v13895_v20, %v3478_v43  ;;  %v3539_v1 = vmul.f32 %v13902_v56, %v3484_v32 }
 0x609   :  { %v14053_v42 = vpop.f32.mrf.mxu3 }
 0x60a   :  { %4715 = vmatpush.msra.mxu0 %v3539_v1  ;;  %4772 = vmatpush.msra.mxu1 %v3554_v50 }
 0x60b   :  { %v14055_v17 = vpop.f32.mrf.mxu1  ;;  %7702 = vmatmul.msk.f32.gmra.mxu2 %vm3615_vm5, %v13682_v12 }
 0x60c   :  { %18715 = vst [vmem:[#allocation44_spill] sm:$0xff] %v14055_v17  ;;  %7724 = vmatmul.msk.f32.gmra.mxu0 %vm3615_vm5, %v13377_v8 }
 0x60d   :  { %4716 = vmatpush.msra.mxu0 %v3532_v31  ;;  %v14086_v31 = vpop.f32.mrf.mxu2 }
 0x60e   :  { %7712 = vmatmul.msk.f32.gmra.mxu3 %vm3615_vm5, %v13469_v48  ;;  %v3415_v60 = vpop.permute.xlu2 %3414  ;;  %v14064_v36 = vpop.permute.xlu0 %3436  ;;  %18717 = vst [vmem:[#allocation151_spill] sm:$0xff] %v14086_v31  ;;  %v14111_v31 = vld [vmem:[%s17559_s3 + $0xe8] sm:$0xff] }
 0x60f   :  { %7733 = vmatmul.msk.f32.gmra.mxu1 %vm3615_vm5, %v13159_v63  ;;  %v3477_v56 = vsel %vm3458_vm7, %v13761_v55, %v3415_v60  ;;  %v3472_v43 = vsel %vm3458_vm7, %v13899_v40, %v14064_v36  ;;  %v14075_v32 = vpop.f32.mrf.mxu0  ;;  %v14084_v63 = vld [vmem:[%s17559_s3 + $0xe0] sm:$0xff]  ;;  %v14088_v55 = vpop.permute.xlu1 %3450 }
 0x610   :  { %18716 = vst [vmem:[#allocation158_spill] sm:$0xff] %v14075_v32  ;;  %v3547_v19 = vmul.f32 %v13895_v20, %v3477_v56  ;;  %v3569_v50 = vmul.f32 %v13975_v38, %v3472_v43 }
 0x611   :  { %v14079_v1 = vpop.f32.mrf.mxu3 }
 0x612   :  { %4773 = vmatpush.msra.mxu1 %v3547_v19  ;;  %4829 = vmatpush.msrb.mxu2 %v3569_v50 }
 0x613   :  { %7759 = vmatmul.msk.f32.vlgmr.msra.gmra.mxu2 %vm3615_vm5, %v14084_v63 }
 0x614   :  { %v14090_v40 = vpop.f32.mrf.mxu1  ;;  %7725 = vmatmul.msk.f32.gmra.mxu0 %vm3615_vm5, %v13434_v5 }
 0x615   :  { %18718 = vst [vmem:[#allocation41_spill] sm:$0xff] %v14090_v40  ;;  %v14113_v2 = vpop.f32.mrf.mxu2 }
 0x616   :  { %7713 = vmatmul.msk.f32.gmra.mxu3 %vm3615_vm5, %v13511_v29  ;;  %v3435_v56 = vpop.permute.xlu0 %3434  ;;  %18720 = vst [vmem:[#allocation31_spill] sm:$0xff] %v14113_v2 }
 0x617   :  { %7734 = vmatmul.msk.f32.gmra.mxu1 %vm3615_vm5, %v13204_v51  ;;  %v3471_v43 = vsel %vm3458_vm7, %v13951_v44, %v3435_v56  ;;  %v14103_v19 = vpop.f32.mrf.mxu0  ;;  %v14115_v17 = vpop.permute.xlu1 %3448 }
 0x618   :  { %18719 = vst [vmem:[#allocation155_spill] sm:$0xff] %v14103_v19  ;;  %v3562_v50 = vmul.f32 %v13975_v38, %v3471_v43 }
 0x619   :  { %v14106_v58 = vpop.f32.mrf.mxu3 }
 0x61a   :  { %4830 = vmatpush.msrb.mxu2 %v3562_v50 }
 0x61b   :  { %7760 = vmatmul.msk.f32.gmra.mxu2 %vm3615_vm5, %v14111_v31 }
 0x61c   :  { %v14117_v51 = vpop.f32.mrf.mxu1  ;;  %7726 = vmatmul.msk.f32.gmra.mxu0 %vm3615_vm5, %v13469_v48 }
 0x61d   :  { %18721 = vst [vmem:[#allocation138_spill] sm:$0xff] %v14117_v51  ;;  %v14137_v51 = vld [vmem:[%s17559_s3 + $0xf0] sm:$0xff] }
 0x61e   :  { %7714 = vmatmul.msk.f32.gmra.mxu3 %vm3615_vm5, %v13575_v41  ;;  %v3433_v44 = vpop.permute.xlu0 %3432 }
 0x61f   :  { %7735 = vmatmul.msk.f32.gmra.mxu1 %vm3615_vm5, %v13248_v27  ;;  %v3470_v43 = vsel %vm3458_vm7, %v3417_v59, %v3433_v44  ;;  %v14129_v50 = vpop.f32.mrf.mxu0  ;;  %v3447_v59 = vpop.permute.xlu1 %3446 }
 0x620   :  { %18722 = vst [vmem:[#allocation65_spill] sm:$0xff] %v14129_v50  ;;  %v3555_v2 = vmul.f32 %v13975_v38, %v3470_v43 }
 0x621   :  { %v14132_v40 = vpop.f32.mrf.mxu3 }
 0x622   :  { %4831 = vmatpush.msrb.mxu2 %v3555_v2 }
 0x623   :  { %7761 = vmatmul.msk.f32.gmra.mxu2 %vm3615_vm5, %v14137_v51 }
 0x624   :  { %v14139_v61 = vpop.f32.mrf.mxu1  ;;  %7727 = vmatmul.msk.f32.gmra.mxu0 %vm3615_vm5, %v13511_v29 }
 0x625   :  { %18723 = vst [vmem:[#allocation131_spill] sm:$0xff] %v14139_v61  ;;  %v14145_v27 = vpop.f32.mrf.mxu2 }
 0x626   :  { %18724 = vst [vmem:[#allocation23_spill] sm:$0xff] %v14145_v27  ;;  %7715 = vmatmul.msk.f32.gmra.mxu3 %vm3615_vm5, %v13635_v6  ;;  %v3431_v43 = vpop.permute.xlu0 %3430  ;;  %v14161_v27 = vld [vmem:[%s17559_s3 + $0xf8] sm:$0xff] }
 0x627   :  { %7736 = vmatmul.msk.f32.gmra.mxu1 %vm3615_vm5, %v13290_v52  ;;  %v3469_v2 = vsel %vm3458_vm7, %v3415_v60, %v3431_v43  ;;  %v14153_v61 = vpop.f32.mrf.mxu0  ;;  %v14172_v60 = vperm.slane %v13502_v9, 5  ;;  %v3445_v45 = vpop.permute.xlu1 %3444 }
 0x628   :  { %v3548_v32 = vmul.f32 %v13975_v38, %v3469_v2  ;;  %v14175_v2 = vperm.slane %v13502_v9, 6  ;;  %v3513_v9 = vsel %vm3458_vm7, %v13797_v46, %v13690_v3  ;;  %v3464_v3 = vsel %vm3458_vm7, %v14064_v36, %v14049_v26 }
 0x629   :  { %v14156_v34 = vpop.f32.mrf.mxu3  ;;  %v3462_v36 = vsel %vm3458_vm7, %v3433_v44, %v14115_v17  ;;  %v3461_v44 = vsel %vm3458_vm7, %v3431_v43, %v3447_v59 }
 0x62a   :  { %4832 = vmatpush.msrb.mxu2 %v3548_v32 }
 0x62b   :  { %7762 = vmatmul.msk.f32.gmra.mxu2 %vm3615_vm5, %v14161_v27 }
 0x62c   :  { %v14163_v21 = vpop.f32.mrf.mxu1  ;;  %7728 = vmatmul.msk.f32.gmra.mxu0 %vm3615_vm5, %v13575_v41 }
 0x62d   :  { %18725 = vst [vmem:[#allocation139_spill] sm:$0xff] %v14163_v21  ;;  %v14169_v52 = vpop.f32.mrf.mxu2 }
 0x62e   :  { %18726 = vst [vmem:[#allocation62_spill] sm:$0xff] %v14169_v52  ;;  %7716 = vmatmul.msk.f32.gmra.mxu3 %vm3615_vm5, %v13682_v12  ;;  %v3457_v32 = vpop.permute.xlu0 %3456 }
 0x62f   :  { %7737 = vmatmul.msk.f32.gmra.mxu1 %vm3615_vm5, %v13339_v14  ;;  %v3466_v21 = vsel %vm3458_vm7, %v13981_v47, %v3457_v32  ;;  %v3514_v52 = vsel %vm3458_vm7, %v3457_v32, %v13648_v53  ;;  %v14187_v19 = vpop.f32.mrf.mxu0  ;;  %v3465_v14 = vsel %vm3458_vm7, %v13987_v23, %v13797_v46  ;;  %v14204_v53 = vld [vmem:[%s17559_s3 + $0x100] sm:$0xff]  ;;  %v3578_v23 = vmul.f32 %v14175_v2, %v3513_v9  ;;  %v3443_v43 = vpop.permute.xlu1 %3442 }
 0x630   :  { %v3584_v10 = vmul.f32 %v14172_v60, %v3466_v21  ;;  %v3585_v47 = vmul.f32 %v14175_v2, %v3514_v52  ;;  %v3577_v46 = vmul.f32 %v14172_v60, %v3465_v14  ;;  %v3512_v21 = vsel %vm3458_vm7, %v14049_v26, %v13729_v18 }
 0x631   :  { %v14199_v50 = vpop.f32.mrf.mxu3  ;;  %v3463_v52 = vsel %vm3458_vm7, %v3435_v56, %v14088_v55  ;;  %v3570_v18 = vmul.f32 %v14172_v60, %v3464_v3  ;;  %v3571_v26 = vmul.f32 %v14175_v2, %v3512_v21  ;;  %v3509_v3 = vsel %vm3458_vm7, %v3447_v59, %v13834_v39 }
 0x632   :  { %4886 = vmatpush.msrb.mxu3 %v3584_v10  ;;  %4945 = vmatpush.msrb.mxu0 %v3585_v47  ;;  %v3511_v10 = vsel %vm3458_vm7, %v14088_v55, %v13763_v54  ;;  %v3510_v54 = vsel %vm3458_vm7, %v14115_v17, %v13799_v15  ;;  %v3563_v55 = vmul.f32 %v14172_v60, %v3463_v52 }
 0x633   :  { %7763 = vmatmul.msk.f32.gmra.mxu2 %vm3615_vm5, %v14204_v53  ;;  %v3564_v14 = vmul.f32 %v14175_v2, %v3511_v10  ;;  %v3556_v15 = vmul.f32 %v14172_v60, %v3462_v36  ;;  %v3508_v39 = vsel %vm3458_vm7, %v3445_v45, %v13866_v37  ;;  %v3549_v59 = vmul.f32 %v14172_v60, %v3461_v44  ;;  %v14297_v44 = vld [vmem:[%s17559_s3 + $0x110] sm:$0xff] }
 0x634   :  { %v14219_v32 = vpop.f32.mrf.mxu1  ;;  %7729 = vmatmul.msk.f32.gmra.mxu0 %vm3615_vm5, %v13635_v6  ;;  %4887 = vmatpush.msrb.mxu3 %v3577_v46  ;;  %v3557_v46 = vmul.f32 %v14175_v2, %v3510_v54  ;;  %v3507_v10 = vsel %vm3458_vm7, %v3443_v43, %v13838_v57 }
 0x635   :  { %18727 = vst [vmem:[#allocation15_spill] sm:$0xff] %v14219_v32  ;;  %4946 = vmatpush.msrb.mxu0 %v3578_v23  ;;  %v3550_v23 = vmul.f32 %v14175_v2, %v3509_v3  ;;  %v3536_v57 = vmul.f32 %v14175_v2, %v3507_v10 }
 0x636   :  { %7773 = vmatmul.msk.f32.vlgmr.msra.gmra.mxu3 %vm3615_vm5, %v14084_v63  ;;  %v14236_v56 = vpop.f32.mrf.mxu2  ;;  %v3429_v9 = vpop.permute.xlu0 %3428 }
 0x637   :  { %18728 = vst [vmem:[#allocation54_spill] sm:$0xff] %v14236_v56  ;;  %7738 = vmatmul.msk.f32.gmra.mxu1 %vm3615_vm5, %v13377_v8  ;;  %4888 = vmatpush.msrb.mxu3 %v3570_v18  ;;  %v14248_v47 = vpop.f32.mrf.mxu0  ;;  %v14259_v8 = vld [vmem:[%s17559_s3 + $0x108] sm:$0xff]  ;;  %v3460_v21 = vsel %vm3458_vm7, %v3429_v9, %v3445_v45  ;;  %v3543_v45 = vmul.f32 %v14175_v2, %v3508_v39  ;;  %v3411_v2 = vpop.permute.xlu1 %3410 }
 0x638   :  { %4947 = vmatpush.msrb.mxu0 %v3571_v26  ;;  %v3542_v18 = vmul.f32 %v14172_v60, %v3460_v21 }
 0x639   :  { %v14254_v17 = vpop.f32.mrf.mxu3  ;;  %4889 = vmatpush.msrb.mxu3 %v3563_v55 }
 0x63a   :  { %4948 = vmatpush.msrb.mxu0 %v3564_v14 }
 0x63b   :  { %4890 = vmatpush.msrb.mxu3 %v3556_v15  ;;  %7764 = vmatmul.msk.f32.gmra.mxu2 %vm3615_vm5, %v14259_v8  ;;  %v3475_v15 = vsel %vm3458_vm7, %v13955_v35, %v3411_v2  ;;  %v14330_v35 = vld [vmem:[%s17559_s3 + $0x118] sm:$0xff] }
 0x63c   :  { %v14269_v52 = vpop.f32.mrf.mxu1  ;;  %4949 = vmatpush.msrb.mxu0 %v3557_v46 }
 0x63d   :  { %18729 = vst [vmem:[#allocation125_spill] sm:$0xff] %v14269_v52  ;;  %7730 = vmatmul.msk.f32.gmra.mxu0 %vm3615_vm5, %v13682_v12  ;;  %4891 = vmatpush.msrb.mxu3 %v3549_v59  ;;  %v18809_v52 = vld [vmem:[#allocation90_spill] sm:$0xff] }
 0x63e   :  { %4950 = vmatpush.msrb.mxu0 %v3550_v23  ;;  %7774 = vmatmul.msk.f32.gmra.mxu3 %vm3615_vm5, %v14111_v31  ;;  %v14282_v37 = vpop.f32.mrf.mxu2  ;;  %v3427_v26 = vpop.permute.xlu0 %3426 }
 0x63f   :  { %18730 = vst [vmem:[#allocation135_spill] sm:$0xff] %v14282_v37  ;;  %7739 = vmatmul.msk.f32.gmra.mxu1 %vm3615_vm5, %v13434_v5  ;;  %4892 = vmatpush.msrb.mxu3 %v3542_v18  ;;  %v3459_v36 = vsel %vm3458_vm7, %v3427_v26, %v3443_v43  ;;  %v14289_v54 = vpop.f32.mrf.mxu0  ;;  %v3467_v39 = vsel %vm3458_vm7, %v3411_v2, %v3427_v26 }
 0x640   :  { %4951 = vmatpush.msrb.mxu0 %v3543_v45  ;;  %v3535_v55 = vmul.f32 %v14172_v60, %v3459_v36  ;;  %v14353_v45 = vld [vmem:[%s17559_s3 + $0x120] sm:$0xff] }
 0x641   :  { %v14292_v14 = vpop.f32.mrf.mxu3 }
 0x642   :  { %4952 = vmatpush.msrb.mxu0 %v3536_v57  ;;  %4893 = vmatpush.msrb.mxu3 %v3535_v55  ;;  %v14374_v55 = vld [vmem:[%s17559_s3 + $0x128] sm:$0xff] }
 0x643   :  { %7765 = vmatmul.msk.f32.gmra.mxu2 %vm3615_vm5, %v14297_v44 }
 0x644   :  { %v14299_v5 = vpop.f32.mrf.mxu1 }
 0x645   :  { %18731 = vst [vmem:[#allocation58_spill] sm:$0xff] %v14299_v5  ;;  %7787 = vmatmul.msk.f32.vlgmr.msra.gmra.mxu0 %vm3615_vm5, %v14084_v63 }
 0x646   :  { %7775 = vmatmul.msk.f32.gmra.mxu3 %vm3615_vm5, %v14137_v51  ;;  %v14307_v60 = vpop.f32.mrf.mxu2  ;;  %v3413_v3 = vpop.permute.xlu0 %3412 }
 0x647   :  { %18732 = vst [vmem:[#allocation137_spill] sm:$0xff] %v14307_v60  ;;  %7740 = vmatmul.msk.f32.gmra.mxu1 %vm3615_vm5, %v13469_v48  ;;  %v3468_v46 = vsel %vm3458_vm7, %v3413_v3, %v3429_v9  ;;  %v3476_v43 = vsel %vm3458_vm7, %v14029_v13, %v3413_v3  ;;  %v14319_v21 = vpop.f32.mrf.mxu0  ;;  %v3533_v9 = vmul.f32 %v13895_v20, %v3475_v15 }
 0x648   :  { %v3540_v59 = vmul.f32 %v13895_v20, %v3476_v43  ;;  %v3541_v48 = vmul.f32 %v13975_v38, %v3468_v46  ;;  %v3534_v13 = vmul.f32 %v13975_v38, %v3467_v39  ;;  %v14395_v46 = vld [vmem:[%s17559_s3 + $0x130] sm:$0xff] }
 0x649   :  { %v14325_v23 = vpop.f32.mrf.mxu3 }
 0x64a   :  { %18733 = vst [vmem:[#allocation19_spill] sm:$0xff] %v14325_v23  ;;  %4774 = vmatpush.msra.mxu1 %v3540_v59  ;;  %4833 = vmatpush.msrb.mxu2 %v3541_v48  ;;  %v14416_v48 = vld [vmem:[%s17559_s3 + $0x138] sm:$0xff]  ;;  %v14458_v23 = vld [vmem:[%s17559_s3 + $0x148] sm:$0xff] }
 0x64b   :  { %7766 = vmatmul.msk.f32.gmra.mxu2 %vm3615_vm5, %v14330_v35 }
 0x64c   :  { %v14334_v10 = vpop.f32.mrf.mxu1  ;;  %4775 = vmatpush.msra.mxu1 %v3533_v9  ;;  %4834 = vmatpush.msrb.mxu2 %v3534_v13 }
 0x64d   :  { %18734 = vst [vmem:[#allocation128_spill] sm:$0xff] %v14334_v10  ;;  %7788 = vmatmul.msk.f32.gmra.mxu0 %vm3615_vm5, %v14111_v31  ;;  %v18810_v10 = vld [vmem:[#allocation100_spill] sm:$0xff] }
 0x64e   :  { %7776 = vmatmul.msk.f32.gmra.mxu3 %vm3615_vm5, %v14161_v27  ;;  %v14342_v18 = vpop.f32.mrf.mxu2 }
 0x64f   :  { %18735 = vst [vmem:[#allocation122_spill] sm:$0xff] %v14342_v18  ;;  %7741 = vmatmul.msk.f32.gmra.mxu1 %vm3615_vm5, %v13511_v29  ;;  %v14346_v20 = vpop.f32.mrf.mxu0 }
 0x650   :  { %18736 = vst [vmem:[#allocation12_spill] sm:$0xff] %v14346_v20 }
 0x651   :  { %v14348_v38 = vpop.f32.mrf.mxu3 }
 0x652   :  { %18737 = vst [vmem:[#allocation132_spill] sm:$0xff] %v14348_v38 }
 0x653   :  { %7767 = vmatmul.msk.f32.gmra.mxu2 %vm3615_vm5, %v14353_v45 }
 0x654   :  { %v14355_v26 = vpop.f32.mrf.mxu1 }
 0x655   :  { %18738 = vst [vmem:[#allocation124_spill] sm:$0xff] %v14355_v26  ;;  %7789 = vmatmul.msk.f32.gmra.mxu0 %vm3615_vm5, %v14137_v51 }
 0x656   :  { %7777 = vmatmul.msk.f32.gmra.mxu3 %vm3615_vm5, %v14204_v53  ;;  %v14363_v29 = vpop.f32.mrf.mxu2 }
 0x657   :  { %18739 = vst [vmem:[#allocation129_spill] sm:$0xff] %v14363_v29  ;;  %7742 = vmatmul.msk.f32.gmra.mxu1 %vm3615_vm5, %v13575_v41  ;;  %v14367_v57 = vpop.f32.mrf.mxu0 }
 0x658   :  { %18740 = vst [vmem:[#allocation49_spill] sm:$0xff] %v14367_v57  ;;  %v14437_v57 = vld [vmem:[%s17559_s3 + $0x140] sm:$0xff] }
 0x659   :  { %v14369_v36 = vpop.f32.mrf.mxu3 }
 0x65a   :  { %18741 = vst [vmem:[#allocation9_spill] sm:$0xff] %v14369_v36 }
 0x65b   :  { %7768 = vmatmul.msk.f32.gmra.mxu2 %vm3615_vm5, %v14374_v55 }
 0x65c   :  { %v14376_v2 = vpop.f32.mrf.mxu1 }
 0x65d   :  { %7790 = vmatmul.msk.f32.gmra.mxu0 %vm3615_vm5, %v14161_v27 }
 0x65e   :  { %7778 = vmatmul.msk.f32.gmra.mxu3 %vm3615_vm5, %v14259_v8  ;;  %v14384_v41 = vpop.f32.mrf.mxu2 }
 0x65f   :  { %18742 = vst [vmem:[#allocation42_spill] sm:$0xff] %v14384_v41  ;;  %7743 = vmatmul.msk.f32.gmra.mxu1 %vm3615_vm5, %v13635_v6  ;;  %v14388_v3 = vpop.f32.mrf.mxu0 }
 0x660   :  { %18743 = vst [vmem:[#allocation63_spill] sm:$0xff] %v14388_v3 }
 0x661   :  { %v14390_v15 = vpop.f32.mrf.mxu3 }
 0x662   :  { %18744 = vst [vmem:[#allocation117_spill] sm:$0xff] %v14390_v15 }
 0x663   :  { %7769 = vmatmul.msk.f32.gmra.mxu2 %vm3615_vm5, %v14395_v46 }
 0x664   :  { %v14397_v43 = vpop.f32.mrf.mxu1 }
 0x665   :  { %7791 = vmatmul.msk.f32.gmra.mxu0 %vm3615_vm5, %v14204_v53 }
 0x666   :  { %7779 = vmatmul.msk.f32.gmra.mxu3 %vm3615_vm5, %v14297_v44  ;;  %v14405_v6 = vpop.f32.mrf.mxu2 }
 0x667   :  { %18745 = vst [vmem:[#allocation61_spill] sm:$0xff] %v14405_v6  ;;  %7744 = vmatmul.msk.f32.gmra.mxu1 %vm3615_vm5, %v13682_v12  ;;  %v14409_v39 = vpop.f32.mrf.mxu0 }
 0x668   :  { %18746 = vst [vmem:[#allocation119_spill] sm:$0xff] %v14409_v39 }
 0x669   :  { %v14411_v59 = vpop.f32.mrf.mxu3 }
 0x66a   :  { %18747 = vst [vmem:[#allocation33_spill] sm:$0xff] %v14411_v59 }
 0x66b   :  { %7770 = vmatmul.msk.f32.gmra.mxu2 %vm3615_vm5, %v14416_v48 }
 0x66c   :  { %v14418_v9 = vpop.f32.mrf.mxu1 }
 0x66d   :  { %7792 = vmatmul.msk.f32.gmra.mxu0 %vm3615_vm5, %v14259_v8 }
 0x66e   :  { %7780 = vmatmul.msk.f32.gmra.mxu3 %vm3615_vm5, %v14330_v35  ;;  %v14426_v12 = vpop.f32.mrf.mxu2 }
 0x66f   :  { %18748 = vst [vmem:[#allocation50_spill] sm:$0xff] %v14426_v12  ;;  %7801 = vmatmul.msk.f32.vlgmr.msra.gmra.mxu1 %vm3615_vm5, %v14084_v63 }
 0x670   :  { %v14430_v13 = vpop.f32.mrf.mxu0 }
 0x671   :  { %18749 = vst [vmem:[#allocation46_spill] sm:$0xff] %v14430_v13  ;;  %v14432_v24 = vpop.f32.mrf.mxu3 }
 0x672   :  { %18750 = vst [vmem:[#allocation17_spill] sm:$0xff] %v14432_v24 }
 0x673   :  { %7771 = vmatmul.msk.f32.gmra.mxu2 %vm3615_vm5, %v14437_v57 }
 0x674   :  { %v14439_v3 = vpop.f32.mrf.mxu1 }
 0x675   :  { %7793 = vmatmul.msk.f32.gmra.mxu0 %vm3615_vm5, %v14297_v44 }
 0x676   :  { %7781 = vmatmul.msk.f32.gmra.mxu3 %vm3615_vm5, %v14353_v45  ;;  %v14447_v39 = vpop.f32.mrf.mxu2 }
 0x677   :  { %18751 = vst [vmem:[#allocation126_spill] sm:$0xff] %v14447_v39  ;;  %7802 = vmatmul.msk.f32.gmra.mxu1 %vm3615_vm5, %v14111_v31 }
 0x678   :  { %v14451_v20 = vpop.f32.mrf.mxu0 }
 0x679   :  { %18752 = vst [vmem:[#allocation29_spill] sm:$0xff] %v14451_v20  ;;  %v14453_v13 = vpop.f32.mrf.mxu3 }
 0x67a   :  { %18753 = vst [vmem:[#allocation43_spill] sm:$0xff] %v14453_v13 }
 0x67b   :  { %7772 = vmatmul.msk.f32.gmra.mxu2 %vm3615_vm5, %v14458_v23 }
 0x67c   :  { %v14460_v38 = vpop.f32.mrf.mxu1 }
 0x67d   :  { %18754 = vst [vmem:[#allocation47_spill] sm:$0xff] %v14460_v38  ;;  %7794 = vmatmul.msk.f32.gmra.mxu0 %vm3615_vm5, %v14330_v35 }
 0x67e   :  { %7782 = vmatmul.msk.f32.gmra.mxu3 %vm3615_vm5, %v14374_v55  ;;  %v14468_v36 = vpop.f32.mrf.mxu2 }
 0x67f   :  { %18755 = vst [vmem:[#allocation114_spill] sm:$0xff] %v14468_v36  ;;  %7803 = vmatmul.msk.f32.gmra.mxu1 %vm3615_vm5, %v14137_v51 }
 0x681   :  { %v14472_v20 = vpop.f32.mrf.mxu3  ;;  %v14474_v15 = vpop.f32.mrf.mxu0 }
 0x682   :  { %18756 = vst [vmem:[#allocation127_spill] sm:$0xff] %v14472_v20 }
 0x683   :  { %18757 = vst [vmem:[#allocation123_spill] sm:$0xff] %v14474_v15  ;;  %7815 = vmatmul.msk.f32.vlgmr.msrb.gmra.mxu2 %vm3615_vm5, %v14084_v63 }
 0x684   :  { %v14476_v59 = vpop.f32.mrf.mxu1 }
 0x685   :  { %18758 = vst [vmem:[#allocation116_spill] sm:$0xff] %v14476_v59  ;;  %7795 = vmatmul.msk.f32.gmra.mxu0 %vm3615_vm5, %v14353_v45 }
 0x686   :  { %7783 = vmatmul.msk.f32.gmra.mxu3 %vm3615_vm5, %v14395_v46  ;;  %v14486_v38 = vpop.f32.mrf.mxu2 }
 0x687   :  { %7804 = vmatmul.msk.f32.gmra.mxu1 %vm3615_vm5, %v14161_v27  ;;  %18759 = vst [vmem:[#allocation120_spill] sm:$0xff] %v14486_v38 }
 0x689   :  { %v14488_v24 = vpop.f32.mrf.mxu3  ;;  %v14490_v13 = vpop.f32.mrf.mxu0 }
 0x68a   :  { %18760 = vst [vmem:[#allocation21_spill] sm:$0xff] %v14488_v24 }
 0x68b   :  { %18761 = vst [vmem:[#allocation107_spill] sm:$0xff] %v14490_v13  ;;  %7816 = vmatmul.msk.f32.gmra.mxu2 %vm3615_vm5, %v14111_v31 }
 0x68c   :  { %v14492_v15 = vpop.f32.mrf.mxu1 }
 0x68d   :  { %18762 = vst [vmem:[#allocation53_spill] sm:$0xff] %v14492_v15  ;;  %7796 = vmatmul.msk.f32.gmra.mxu0 %vm3615_vm5, %v14374_v55  ;;  %v18767_v15 = vld [vmem:[#allocation159_spill] sm:$0xff] }
 0x68e   :  { %7784 = vmatmul.msk.f32.gmra.mxu3 %vm3615_vm5, %v14416_v48  ;;  %v14502_v59 = vpop.f32.mrf.mxu2  ;;  %v4131_v56 = vadd.f32 %v13810_v16, %v18767_v15  ;;  %v18771_v16 = vld [vmem:[#allocation30_spill] sm:$0xff] }
 0x68f   :  { %7805 = vmatmul.msk.f32.gmra.mxu1 %vm3615_vm5, %v14204_v53  ;;  %18763 = vst [vmem:[#allocation7_spill] sm:$0xff] %v14502_v59  ;;  %v4134_v15 = vadd.f32 %v13846_v0, %v18771_v16  ;;  %v18775_v0 = vld [vmem:[#allocation106_spill] sm:$0xff] }
 0x690   :  { %v4137_v16 = vadd.f32 %v13880_v25, %v18775_v0  ;;  %v18779_v25 = vld [vmem:[#allocation186_spill] sm:$0xff] }
 0x691   :  { %v14504_v20 = vpop.f32.mrf.mxu3  ;;  %v14506_v24 = vpop.f32.mrf.mxu0  ;;  %v4140_v0 = vadd.f32 %v13928_v62, %v18779_v25 }
 0x692   :  { %18764 = vst [vmem:[#allocation173_spill] sm:$0xff] %v14504_v20 }
 0x693   :  { %18765 = vst [vmem:[#allocation178_spill] sm:$0xff] %v14506_v24  ;;  %7817 = vmatmul.msk.f32.gmra.mxu2 %vm3615_vm5, %v14137_v51 }
 0x694   :  { %v14508_v13 = vpop.f32.mrf.mxu1 }
 0x695   :  { %18766 = vst [vmem:[#allocation108_spill] sm:$0xff] %v14508_v13  ;;  %7797 = vmatmul.msk.f32.gmra.mxu0 %vm3615_vm5, %v14395_v46 }
 0x696   :  { %7785 = vmatmul.msk.f32.gmra.mxu3 %vm3615_vm5, %v14437_v57  ;;  %v4600_v20 = vpop.f32.mrf.mxu2 }
 0x697   :  { %7806 = vmatmul.msk.f32.gmra.mxu1 %vm3615_vm5, %v14259_v8  ;;  %v14520_v37 = vadd.f32 %v4600_v20, %v4131_v56 }
 0x699   :  { %v14522_v24 = vpop.f32.mrf.mxu3  ;;  %v14524_v13 = vpop.f32.mrf.mxu0 }
 0x69a   :  { %18768 = vst [vmem:[#allocation104_spill] sm:$0xff] %v14522_v24 }
 0x69b   :  { %18769 = vst [vmem:[#allocation168_spill] sm:$0xff] %v14524_v13  ;;  %7818 = vmatmul.msk.f32.gmra.mxu2 %vm3615_vm5, %v14161_v27 }
 0x69c   :  { %v14526_v60 = vpop.f32.mrf.mxu1 }
 0x69d   :  { %18770 = vst [vmem:[#allocation121_spill] sm:$0xff] %v14526_v60  ;;  %7798 = vmatmul.msk.f32.gmra.mxu0 %vm3615_vm5, %v14416_v48 }
 0x69e   :  { %7786 = vmatmul.msk.f32.gmra.mxu3 %vm3615_vm5, %v14458_v23  ;;  %v4603_v56 = vpop.f32.mrf.mxu2 }
 0x69f   :  { %7807 = vmatmul.msk.f32.gmra.mxu1 %vm3615_vm5, %v14297_v44  ;;  %v14538_v20 = vadd.f32 %v4603_v56, %v4134_v15 }
 0x6a1   :  { %v14540_v13 = vpop.f32.mrf.mxu3  ;;  %v14542_v60 = vpop.f32.mrf.mxu0 }
 0x6a2   :  { %18772 = vst [vmem:[#allocation170_spill] sm:$0xff] %v14540_v13 }
 0x6a3   :  { %18773 = vst [vmem:[#allocation57_spill] sm:$0xff] %v14542_v60  ;;  %7819 = vmatmul.msk.f32.gmra.mxu2 %vm3615_vm5, %v14204_v53 }
 0x6a4   :  { %v14544_v24 = vpop.f32.mrf.mxu1 }
 0x6a5   :  { %18774 = vst [vmem:[#allocation39_spill] sm:$0xff] %v14544_v24  ;;  %7799 = vmatmul.msk.f32.gmra.mxu0 %vm3615_vm5, %v14437_v57 }
 0x6a6   :  { %7829 = vmatmul.msk.f32.vlgmr.msrb.gmra.mxu3 %vm3615_vm5, %v14084_v63  ;;  %v4606_v15 = vpop.f32.mrf.mxu2 }
 0x6a7   :  { %7808 = vmatmul.msk.f32.gmra.mxu1 %vm3615_vm5, %v14330_v35  ;;  %v14556_v56 = vadd.f32 %v4606_v15, %v4137_v16 }
 0x6a9   :  { %v14558_v60 = vpop.f32.mrf.mxu3  ;;  %v14560_v24 = vpop.f32.mrf.mxu0 }
 0x6aa   :  { %18776 = vst [vmem:[#allocation118_spill] sm:$0xff] %v14558_v60 }
 0x6ab   :  { %18777 = vst [vmem:[#allocation59_spill] sm:$0xff] %v14560_v24  ;;  %7820 = vmatmul.msk.f32.gmra.mxu2 %vm3615_vm5, %v14259_v8 }
 0x6ac   :  { %v14562_v13 = vpop.f32.mrf.mxu1 }
 0x6ad   :  { %18778 = vst [vmem:[#allocation25_spill] sm:$0xff] %v14562_v13  ;;  %7800 = vmatmul.msk.f32.gmra.mxu0 %vm3615_vm5, %v14458_v23 }
 0x6ae   :  { %7830 = vmatmul.msk.f32.gmra.mxu3 %vm3615_vm5, %v14111_v31  ;;  %v4609_v16 = vpop.f32.mrf.mxu2 }
 0x6af   :  { %7809 = vmatmul.msk.f32.gmra.mxu1 %vm3615_vm5, %v14353_v45  ;;  %v14574_v15 = vadd.f32 %v4609_v16, %v4140_v0 }
 0x6b1   :  { %v14576_v24 = vpop.f32.mrf.mxu3  ;;  %v14578_v13 = vpop.f32.mrf.mxu0 }
 0x6b2   :  { %18780 = vst [vmem:[#allocation130_spill] sm:$0xff] %v14576_v24 }
 0x6b3   :  { %18781 = vst [vmem:[#allocation110_spill] sm:$0xff] %v14578_v13  ;;  %7821 = vmatmul.msk.f32.gmra.mxu2 %vm3615_vm5, %v14297_v44 }
 0x6b4   :  { %v14580_v60 = vpop.f32.mrf.mxu1 }
 0x6b5   :  { %18782 = vst [vmem:[#allocation55_spill] sm:$0xff] %v14580_v60  ;;  %7843 = vmatmul.msk.f32.vlgmr.msrb.gmra.mxu0 %vm3615_vm5, %v14084_v63 }
 0x6b6   :  { %7831 = vmatmul.msk.f32.gmra.mxu3 %vm3615_vm5, %v14137_v51  ;;  %v14590_v62 = vpop.f32.mrf.mxu2 }
 0x6b7   :  { %7810 = vmatmul.msk.f32.gmra.mxu1 %vm3615_vm5, %v14374_v55 }
 0x6b9   :  { %v14592_v25 = vpop.f32.mrf.mxu3 }
 0x6ba   :  { %18783 = vst [vmem:[#allocation51_spill] sm:$0xff] %v14592_v25  ;;  %v14594_v0 = vpop.f32.mrf.mxu0 }
 0x6bb   :  { %18784 = vst [vmem:[#allocation133_spill] sm:$0xff] %v14594_v0  ;;  %7822 = vmatmul.msk.f32.gmra.mxu2 %vm3615_vm5, %v14330_v35 }
 0x6bc   :  { %v14596_v16 = vpop.f32.mrf.mxu1 }
 0x6bd   :  { %18785 = vst [vmem:[#allocation105_spill] sm:$0xff] %v14596_v16  ;;  %7844 = vmatmul.msk.f32.gmra.mxu0 %vm3615_vm5, %v14111_v31 }
 0x6be   :  { %7832 = vmatmul.msk.f32.gmra.mxu3 %vm3615_vm5, %v14161_v27  ;;  %v14606_v63 = vpop.f32.mrf.mxu2 }
 0x6bf   :  { %7811 = vmatmul.msk.f32.gmra.mxu1 %vm3615_vm5, %v14395_v46 }
 0x6c1   :  { %v14608_v60 = vpop.f32.mrf.mxu3 }
 0x6c2   :  { %18786 = vst [vmem:[#allocation10_spill] sm:$0xff] %v14608_v60  ;;  %v14610_v13 = vpop.f32.mrf.mxu0 }
 0x6c3   :  { %18787 = vst [vmem:[#allocation37_spill] sm:$0xff] %v14610_v13  ;;  %7823 = vmatmul.msk.f32.gmra.mxu2 %vm3615_vm5, %v14353_v45 }
 0x6c4   :  { %v14612_v0 = vpop.f32.mrf.mxu1 }
 0x6c5   :  { %18788 = vst [vmem:[#allocation102_spill] sm:$0xff] %v14612_v0  ;;  %7845 = vmatmul.msk.f32.gmra.mxu0 %vm3615_vm5, %v14137_v51 }
 0x6c6   :  { %7833 = vmatmul.msk.f32.gmra.mxu3 %vm3615_vm5, %v14204_v53  ;;  %v14622_v31 = vpop.f32.mrf.mxu2 }
 0x6c7   :  { %7812 = vmatmul.msk.f32.gmra.mxu1 %vm3615_vm5, %v14416_v48 }
 0x6c9   :  { %v14624_v16 = vpop.f32.mrf.mxu3 }
 0x6ca   :  { %18789 = vst [vmem:[#allocation112_spill] sm:$0xff] %v14624_v16  ;;  %v14626_v24 = vpop.f32.mrf.mxu0 }
 0x6cb   :  { %18790 = vst [vmem:[#allocation91_spill] sm:$0xff] %v14626_v24  ;;  %7824 = vmatmul.msk.f32.gmra.mxu2 %vm3615_vm5, %v14374_v55  ;;  %v14696_v24 = vpop.permute.xlu0 %5170 }
 0x6cc   :  { %v14628_v18 = vpop.f32.mrf.mxu1 }
 0x6cd   :  { %18791 = vst [vmem:[#allocation115_spill] sm:$0xff] %v14628_v18  ;;  %7846 = vmatmul.msk.f32.gmra.mxu0 %vm3615_vm5, %v14161_v27 }
 0x6ce   :  { %7834 = vmatmul.msk.f32.gmra.mxu3 %vm3615_vm5, %v14259_v8  ;;  %v14638_v51 = vpop.f32.mrf.mxu2 }
 0x6cf   :  { %7813 = vmatmul.msk.f32.gmra.mxu1 %vm3615_vm5, %v14437_v57 }
 0x6d1   :  { %v14640_v0 = vpop.f32.mrf.mxu3 }
 0x6d2   :  { %18792 = vst [vmem:[#allocation34_spill] sm:$0xff] %v14640_v0  ;;  %v14642_v29 = vpop.f32.mrf.mxu0  ;;  %v4164_v0 = vadd.f32 %v14199_v50, %v18809_v52 }
 0x6d3   :  { %18793 = vst [vmem:[#allocation101_spill] sm:$0xff] %v14642_v29  ;;  %7825 = vmatmul.msk.f32.gmra.mxu2 %vm3615_vm5, %v14395_v46  ;;  %v14714_v60 = vpop.permute.xlu0 %5155 }
 0x6d4   :  { %v14644_v41 = vpop.f32.mrf.mxu1 }
 0x6d5   :  { %18794 = vst [vmem:[#allocation13_spill] sm:$0xff] %v14644_v41  ;;  %7847 = vmatmul.msk.f32.gmra.mxu0 %vm3615_vm5, %v14204_v53 }
 0x6d6   :  { %7835 = vmatmul.msk.f32.gmra.mxu3 %vm3615_vm5, %v14297_v44  ;;  %v14654_v27 = vpop.f32.mrf.mxu2 }
 0x6d7   :  { %7814 = vmatmul.msk.f32.gmra.mxu1 %vm3615_vm5, %v14458_v23 }
 0x6d9   :  { %v14656_v18 = vpop.f32.mrf.mxu3 }
 0x6da   :  { %18795 = vst [vmem:[#allocation154_spill] sm:$0xff] %v14656_v18  ;;  %v14658_v6 = vpop.f32.mrf.mxu0 }
 0x6db   :  { %18796 = vst [vmem:[#allocation6_spill] sm:$0xff] %v14658_v6  ;;  %7826 = vmatmul.msk.f32.gmra.mxu2 %vm3615_vm5, %v14416_v48 }
 0x6dc   :  { %v14660_v12 = vpop.f32.mrf.mxu1 }
 0x6dd   :  { %18797 = vst [vmem:[#allocation109_spill] sm:$0xff] %v14660_v12  ;;  %7848 = vmatmul.msk.f32.gmra.mxu0 %vm3615_vm5, %v14259_v8 }
 0x6de   :  { %7836 = vmatmul.msk.f32.gmra.mxu3 %vm3615_vm5, %v14330_v35  ;;  %v4627_v53 = vpop.f32.mrf.mxu2 }
 0x6e1   :  { %v14668_v41 = vpop.f32.mrf.mxu3 }
 0x6e2   :  { %18798 = vst [vmem:[#allocation97_spill] sm:$0xff] %v14668_v41  ;;  %v14670_v39 = vpop.f32.mrf.mxu0 }
 0x6e3   :  { %18799 = vst [vmem:[#allocation166_spill] sm:$0xff] %v14670_v39  ;;  %7827 = vmatmul.msk.f32.gmra.mxu2 %vm3615_vm5, %v14437_v57 }
 0x6e4   :  { %v14672_v59 = vpop.f32.mrf.mxu1 }
 0x6e5   :  { %18800 = vst [vmem:[#allocation40_spill] sm:$0xff] %v14672_v59  ;;  %7849 = vmatmul.msk.f32.gmra.mxu0 %vm3615_vm5, %v14297_v44  ;;  %v14692_v59 = vpop.permute.xlu2 %5175 }
 0x6e6   :  { %7837 = vmatmul.msk.f32.gmra.mxu3 %vm3615_vm5, %v14353_v45  ;;  %v4630_v8 = vpop.f32.mrf.mxu2 }
 0x6e9   :  { %v14680_v12 = vpop.f32.mrf.mxu3 }
 0x6ea   :  { %v14682_v36 = vpop.f32.mrf.mxu0 }
 0x6eb   :  { %18801 = vst [vmem:[#allocation93_spill] sm:$0xff] %v14682_v36  ;;  %7828 = vmatmul.msk.f32.gmra.mxu2 %vm3615_vm5, %v14458_v23 }
 0x6ec   :  { %v14684_v38 = vpop.f32.mrf.mxu1 }
 0x6ed   :  { %18802 = vst [vmem:[#allocation188_spill] sm:$0xff] %v14684_v38  ;;  %7850 = vmatmul.msk.f32.gmra.mxu0 %vm3615_vm5, %v14330_v35  ;;  %v14706_v38 = vpop.permute.xlu1 %5165  ;;  %v14710_v25 = vpop.permute.xlu2 %5160 }
 0x6ee   :  { %7838 = vmatmul.msk.f32.gmra.mxu3 %vm3615_vm5, %v14374_v55  ;;  %v4633_v44 = vpop.f32.mrf.mxu2 }
 0x6ef   :  { %v5073_v41 = vadd.f32 %v4633_v44, %v4164_v0 }
 0x6f1   :  { %v14694_v13 = vpop.f32.mrf.mxu3 }
 0x6f2   :  { %v14698_v29 = vpop.f32.mrf.mxu0 }
 0x6f3   :  { %18803 = vst [vmem:[#allocation150_spill] sm:$0xff] %v14698_v29 }
 0x6f4   :  { %v14700_v6 = vpop.f32.mrf.mxu1 }
 0x6f5   :  { %18804 = vst [vmem:[#allocation162_spill] sm:$0xff] %v14700_v6  ;;  %7851 = vmatmul.msk.f32.gmra.mxu0 %vm3615_vm5, %v14353_v45  ;;  %v18807_v6 = vld [vmem:[#allocation111_spill] sm:$0xff]  ;;  %v18808_v45 = vld [vmem:[#allocation14_spill] sm:$0xff]  ;;  %v14744_v52 = vpop.permute.xlu2 %5145 }
 0x6f6   :  { %7839 = vmatmul.msk.f32.gmra.mxu3 %vm3615_vm5, %v14395_v46  ;;  %v4636_v35 = vpop.f32.mrf.mxu2  ;;  %v4167_v32 = vadd.f32 %v14254_v17, %v18807_v6  ;;  %v4170_v16 = vadd.f32 %v14292_v14, %v18808_v45  ;;  %v14732_v6 = vpop.permute.xlu1 %5150  ;;  %v18811_v45 = vld [vmem:[#allocation157_spill] sm:$0xff] }
 0x6f7   :  { %v4158_v26 = vadd.f32 %v14132_v40, %v18811_v45  ;;  %v14756_v40 = vpop.permute.xlu0 %5140 }
 0x6f9   :  { %v14708_v39 = vpop.f32.mrf.mxu3 }
 0x6fa   :  { %v14712_v36 = vpop.f32.mrf.mxu0 }
 0x6fb   :  { %18805 = vst [vmem:[#allocation164_spill] sm:$0xff] %v14712_v36  ;;  %v5080_v36 = vadd.f32 %v4636_v35, %v4167_v32 }
 0x6fc   :  { %v14716_v29 = vpop.f32.mrf.mxu1 }
 0x6fd   :  { %18806 = vst [vmem:[#allocation159_spill] sm:$0xff] %v14716_v29  ;;  %7852 = vmatmul.msk.f32.gmra.mxu0 %vm3615_vm5, %v14374_v55  ;;  %v4161_v29 = vadd.f32 %v14156_v34, %v18810_v10  ;;  %v14742_v32 = vadd.f32 %v14696_v24, %v5080_v36  ;;  %v18812_v10 = vld [vmem:[#allocation184_spill] sm:$0xff] }
 0x6fe   :  { %7840 = vmatmul.msk.f32.gmra.mxu3 %vm3615_vm5, %v14416_v48  ;;  %v4639_v5 = vpop.f32.mrf.mxu2  ;;  %v4155_v0 = vadd.f32 %v14106_v58, %v18812_v10 }
 0x6ff   :  { %v5087_v18 = vadd.f32 %v4639_v5, %v4170_v16  ;;  %v5066_v50 = vadd.f32 %v4630_v8, %v4161_v29  ;;  %v14752_v16 = vadd.f32 %v14706_v38, %v5073_v41  ;;  %v18813_v29 = vld [vmem:[#allocation103_spill] sm:$0xff]  ;;  %v18815_v41 = vld [vmem:[#allocation26_spill] sm:$0xff] }
 0x700   :  { %v4152_v36 = vadd.f32 %v14079_v1, %v18813_v29  ;;  %v5052_v8 = vadd.f32 %v14654_v27, %v4155_v0 }
 0x701   :  { %v14730_v17 = vpop.f32.mrf.mxu3  ;;  %v14735_v55 = vadd.f32 %v14692_v59, %v5087_v18  ;;  %v5059_v18 = vadd.f32 %v4627_v53, %v4158_v26  ;;  %v14764_v44 = vadd.f32 %v14710_v25, %v5066_v50  ;;  %v17770_v26 = vmax.f32 %v14742_v32, 0.0  ;;  %v18816_v50 = vld [vmem:[#allocation160_spill] sm:$0xff] }
 0x702   :  { %v14737_v14 = vpop.f32.mrf.mxu0  ;;  %v5045_v53 = vadd.f32 %v14638_v51, %v4152_v36  ;;  %v17775_v27 = vmax.f32 %v14752_v16, 0.0  ;;  %v4146_v10 = vadd.f32 %v14010_v33, %v18816_v50  ;;  %v18817_v36 = vld [vmem:[#allocation89_spill] sm:$0xff] }
 0x703   :  { %v17777_v34 = vmax.f32 %v14735_v55, 0.0  ;;  %v14775_v35 = vadd.f32 %v14714_v60, %v5059_v18  ;;  %v17774_v51 = vmax.f32 %v14764_v44, 0.0  ;;  %v14793_v18 = vpop.permute.xlu1 %5135 }
 0x704   :  { %v14747_v5 = vpop.f32.mrf.mxu1  ;;  %v14801_v33 = vadd.f32 %v14744_v52, %v5045_v53  ;;  %v14821_v53 = vpop.permute.xlu0 %5125 }
 0x705   :  { %7853 = vmatmul.msk.f32.gmra.mxu0 %vm3615_vm5, %v14395_v46  ;;  %5404 = vmatpush.msra.mxu3 %v17777_v34  ;;  %v4149_v46 = vadd.f32 %v14053_v42, %v18815_v41  ;;  %v14788_v42 = vadd.f32 %v14732_v6, %v5052_v8  ;;  %v4143_v41 = vadd.f32 %v13963_v49, %v18817_v36  ;;  %v14808_v8 = vpop.permute.xlu2 %5130 }
 0x706   :  { %7841 = vmatmul.msk.f32.gmra.mxu3 %vm3615_vm5, %v14437_v57  ;;  %v14768_v58 = vpop.f32.mrf.mxu2 }
 0x707   :  { %18814 = vst [vmem:[#allocation30_spill] sm:$0xff] %v14768_v58  ;;  %5405 = vmatpush.msra.mxu3 %v17770_v26  ;;  %v5038_v0 = vadd.f32 %v14622_v31, %v4149_v46  ;;  %v5031_v26 = vadd.f32 %v14606_v63, %v4146_v10  ;;  %v17771_v31 = vmax.f32 %v14775_v35, 0.0  ;;  %v5024_v49 = vadd.f32 %v14590_v62, %v4143_v41 }
 0x708   :  { %v17773_v62 = vmax.f32 %v14801_v33, 0.0 }
 0x709   :  { %v14779_v1 = vpop.f32.mrf.mxu3  ;;  %5406 = vmatpush.msra.mxu3 %v17775_v27  ;;  %v14814_v63 = vadd.f32 %v14756_v40, %v5038_v0  ;;  %v14824_v50 = vadd.f32 %v14793_v18, %v5031_v26  ;;  %v14832_v36 = vadd.f32 %v14808_v8, %v5024_v49  ;;  %v14841_v26 = vadd.f32 %v14821_v53, %v14574_v15 }
 0x70a   :  { %v14782_v45 = vpop.f32.mrf.mxu0 }
 0x70b   :  { %5407 = vmatpush.msra.mxu3 %v17774_v51  ;;  %18818 = vst [vmem:[#allocation106_spill] sm:$0xff] %v14814_v63  ;;  %v17776_v41 = vmax.f32 %v14814_v63, 0.0  ;;  %v17779_v49 = vmax.f32 %v14824_v50, 0.0  ;;  %v17780_v15 = vmax.f32 %v14832_v36, 0.0  ;;  %v14902_v63 = vld [vmem:[%s17563_s7] sm:$0xff] }
 0x70c   :  { %v14795_v29 = vpop.f32.mrf.mxu1  ;;  %18820 = vst [vmem:[#allocation111_spill] sm:$0xff] %v14824_v50  ;;  %v14868_v34 = vpop.permute.xlu0 %5110 }
 0x70d   :  { %7854 = vmatmul.msk.f32.gmra.mxu0 %vm3615_vm5, %v14416_v48  ;;  %5408 = vmatpush.msra.mxu3 %v17771_v31  ;;  %v17772_v48 = vmax.f32 %v14788_v42, 0.0  ;;  %18821 = vst [vmem:[#allocation14_spill] sm:$0xff] %v14832_v36  ;;  %v14859_v27 = vpop.permute.xlu2 %5115  ;;  %v4226_v36 = vadd.f32 %v14289_v54, %v13372_v22  ;;  %v4220_v22 = vadd.f32 %v14187_v19, %v13285_v4  ;;  %v18828_v19 = vld [vmem:[#allocation65_spill] sm:$0xff] }
 0x70e   :  { %7842 = vmatmul.msk.f32.gmra.mxu3 %vm3615_vm5, %v14458_v23  ;;  %v14818_v46 = vpop.f32.mrf.mxu2  ;;  %18822 = vst [vmem:[#allocation90_spill] sm:$0xff] %v14841_v26 }
 0x70f   :  { %18819 = vst [vmem:[#allocation186_spill] sm:$0xff] %v14818_v46  ;;  %5409 = vmatpush.msra.mxu3 %v17772_v48  ;;  %v14848_v48 = vpop.permute.xlu1 %5120 }
 0x711   :  { %v4692_v10 = vpop.f32.mrf.mxu3  ;;  %5410 = vmatpush.msra.mxu3 %v17773_v62  ;;  %v14852_v62 = vadd.f32 %v14848_v48, %v14556_v56  ;;  %v17782_v56 = vmax.f32 %v14841_v26, 0.0  ;;  %v4223_v26 = vadd.f32 %v14248_v47, %v13333_v11  ;;  %v4217_v11 = vadd.f32 %v14153_v61, %v13243_v7 }
 0x712   :  { %v14829_v0 = vpop.f32.mrf.mxu0 }
 0x713   :  { %5411 = vmatpush.msra.mxu3 %v17776_v41  ;;  %18823 = vst [vmem:[#allocation100_spill] sm:$0xff] %v14852_v62  ;;  %v17785_v58 = vmax.f32 %v14852_v62, 0.0  ;;  %v5074_v54 = vadd.f32 %v4692_v10, %v4223_v26  ;;  %v5060_v10 = vadd.f32 %v14730_v17, %v4217_v11  ;;  %v18832_v26 = vld [vmem:[#allocation155_spill] sm:$0xff]  ;;  %v18834_v17 = vld [vmem:[#allocation16_spill] sm:$0xff] }
 0x714   :  { %v14837_v31 = vpop.f32.mrf.mxu1  ;;  %v18835_v11 = vld [vmem:[#allocation147_spill] sm:$0xff] }
 0x715   :  { %7855 = vmatmul.msk.f32.gmra.mxu0 %vm3615_vm5, %v14437_v57  ;;  %5412 = vmatpush.msra.mxu3 %v17779_v49  ;;  %v14863_v57 = vadd.f32 %v14859_v27, %v14538_v20  ;;  %v14872_v49 = vadd.f32 %v14868_v34, %v14520_v37  ;;  %v14921_v7 = vadd.f32 %v14706_v38, %v5074_v54 }
 0x716   :  { %v14856_v51 = vpop.f32.mrf.mxu2  ;;  %v4282_v54 = vadd.f32 %v14397_v43, %v18834_v17  ;;  %v18840_v17 = vld [vmem:[#allocation20_spill] sm:$0xff] }
 0x717   :  { %18824 = vst [vmem:[#allocation157_spill] sm:$0xff] %v14863_v57  ;;  %5413 = vmatpush.msra.mxu3 %v17780_v15  ;;  %v17786_v15 = vmax.f32 %v14863_v57, 0.0  ;;  %v17791_v43 = vmax.f32 %v14921_v7, 0.0 }
 0x718   :  { %18825 = vst [vmem:[#allocation184_spill] sm:$0xff] %v14872_v49 }
 0x719   :  { %v4695_v41 = vpop.f32.mrf.mxu3  ;;  %5414 = vmatpush.msra.mxu3 %v17782_v56  ;;  %v17792_v56 = vmax.f32 %v14872_v49, 0.0  ;;  %18829 = vst [vmem:[#allocation160_spill] sm:$0xff] %v14921_v7  ;;  %v18942_v49 = vld [vmem:[#allocation61_spill] sm:$0xff] }
 0x71a   :  { %v4751_v50 = vpop.f32.mrf.mxu0  ;;  %v5081_v62 = vadd.f32 %v4695_v41, %v4226_v36  ;;  %v18831_v41 = vld [vmem:[#allocation69_spill] sm:$0xff] }
 0x71b   :  { %5415 = vmatpush.msra.mxu3 %v17785_v58 }
 0x71c   :  { %v14877_v20 = vpop.f32.mrf.mxu1  ;;  %v14908_v47 = vadd.f32 %v14696_v24, %v5081_v62 }
 0x71d   :  { %7856 = vmatmul.msk.f32.gmra.mxu0 %vm3615_vm5, %v14458_v23  ;;  %5416 = vmatpush.msra.mxu3 %v17786_v15  ;;  %v4229_v23 = vadd.f32 %v14319_v21, %v13428_v30  ;;  %v5067_v30 = vadd.f32 %v14779_v1, %v4220_v22  ;;  %v18830_v1 = vld [vmem:[#allocation176_spill] sm:$0xff] }
 0x71e   :  { %v14888_v37 = vpop.f32.mrf.mxu2  ;;  %18826 = vst [vmem:[#allocation103_spill] sm:$0xff] %v14908_v47  ;;  %v4285_v62 = vadd.f32 %v14418_v9, %v18830_v1  ;;  %v4288_v9 = vadd.f32 %v14439_v3, %v18835_v11  ;;  %v4279_v3 = vadd.f32 %v14376_v2, %v18840_v17  ;;  %v14957_v11 = vld [vmem:[%s17563_s7 + $0x8] sm:$0xff]  ;;  %v18849_v17 = vld [vmem:[#allocation145_spill] sm:$0xff] }
 0x71f   :  { %5417 = vmatpush.msra.mxu3 %v17792_v56  ;;  %v14932_v22 = vadd.f32 %v14710_v25, %v5067_v30 }
 0x720   :  { %7857 = vmatmul.msk.f32.vlgmr.msra.gmra.mxu3 %vm2195_vm4, %v14902_v63 }
 0x721   :  { %v4698_v58 = vpop.f32.mrf.mxu3  ;;  %18833 = vst [vmem:[#allocation89_spill] sm:$0xff] %v14932_v22  ;;  %v17794_v2 = vmax.f32 %v14932_v22, 0.0 }
 0x722   :  { %v5088_v15 = vadd.f32 %v4698_v58, %v4229_v23  ;;  %v4754_v57 = vpop.f32.mrf.mxu0  ;;  %v4214_v58 = vadd.f32 %v18828_v19, %v13199_v28  ;;  %v17790_v28 = vmax.f32 %v14908_v47, 0.0 }
 0x723   :  { %v5082_v19 = vadd.f32 %v4754_v57, %v4285_v62  ;;  %v5075_v57 = vadd.f32 %v4751_v50, %v4282_v54  ;;  %v18844_v50 = vld [vmem:[#allocation95_spill] sm:$0xff] }
 0x724   :  { %v14911_v21 = vadd.f32 %v14692_v59, %v5088_v15  ;;  %v14913_v4 = vpop.f32.mrf.mxu1  ;;  %v4211_v15 = vadd.f32 %v18832_v26, %v18831_v41  ;;  %v5053_v23 = vadd.f32 %v14708_v39, %v4214_v58  ;;  %v18837_v41 = vld [vmem:[#allocation45_spill] sm:$0xff]  ;;  %v18838_v26 = vld [vmem:[#allocation158_spill] sm:$0xff]  ;;  %v14947_v58 = vadd.f32 %v14714_v60, %v5060_v10 }
 0x725   :  { %v4208_v39 = vadd.f32 %v18838_v26, %v18837_v41 }
 0x726   :  { %18827 = vst [vmem:[#allocation26_spill] sm:$0xff] %v14911_v21  ;;  %v17789_v61 = vmax.f32 %v14911_v21, 0.0  ;;  %v14926_v36 = vpop.f32.mrf.mxu2  ;;  %v5046_v30 = vadd.f32 %v14694_v13, %v4211_v15  ;;  %v18841_v13 = vld [vmem:[#allocation36_spill] sm:$0xff]  ;;  %v18842_v15 = vld [vmem:[#allocation161_spill] sm:$0xff]  ;;  %v14963_v26 = vadd.f32 %v14732_v6, %v5053_v23 }
 0x727   :  { %18839 = vst [vmem:[#allocation176_spill] sm:$0xff] %v14947_v58  ;;  %v4205_v10 = vadd.f32 %v18842_v15, %v18841_v13  ;;  %v5039_v41 = vadd.f32 %v14680_v12, %v4208_v39  ;;  %v14976_v12 = vadd.f32 %v14696_v24, %v5082_v19  ;;  %v18848_v39 = vld [vmem:[#allocation152_spill] sm:$0xff]  ;;  %v18850_v15 = vld [vmem:[#allocation97_spill] sm:$0xff] }
 0x728   :  { %5442 = vmatpush.msra.mxu2 %v17789_v61  ;;  %18843 = vst [vmem:[#allocation69_spill] sm:$0xff] %v14963_v26  ;;  %7858 = vmatmul.msk.f32.gmra.mxu3 %vm2195_vm4, %v14957_v11  ;;  %v4202_v13 = vadd.f32 %v18849_v17, %v18848_v39  ;;  %v14985_v56 = vadd.f32 %v14744_v52, %v5046_v30  ;;  %v18856_v30 = vld [vmem:[#allocation52_spill] sm:$0xff] }
 0x729   :  { %v14941_v1 = vpop.f32.mrf.mxu3  ;;  %18846 = vst [vmem:[#allocation155_spill] sm:$0xff] %v14976_v12  ;;  %v18941_v21 = vld [vmem:[#allocation180_spill] sm:$0xff] }
 0x72a   :  { %18836 = vst [vmem:[#allocation65_spill] sm:$0xff] %v14941_v1  ;;  %v4757_v61 = vpop.f32.mrf.mxu0  ;;  %5443 = vmatpush.msra.mxu2 %v17790_v28  ;;  %v18857_v1 = vld [vmem:[#allocation154_spill] sm:$0xff]  ;;  %v4332_v46 = vadd.f32 %v18942_v49, %v18941_v21  ;;  %v18948_v21 = vld [vmem:[#allocation88_spill] sm:$0xff] }
 0x72b   :  { %v5089_v62 = vadd.f32 %v4757_v61, %v4288_v9  ;;  %v18845_v61 = vld [vmem:[#allocation124_spill] sm:$0xff]  ;;  %v5068_v9 = vadd.f32 %v14829_v0, %v4279_v3  ;;  %18851 = vst [vmem:[#allocation147_spill] sm:$0xff] %v14985_v56  ;;  %v5025_v22 = vadd.f32 %v18857_v1, %v4202_v13  ;;  %v18864_v13 = vld [vmem:[#allocation81_spill] sm:$0xff] }
 0x72c   :  { %v14965_v28 = vpop.f32.mrf.mxu1  ;;  %5444 = vmatpush.msra.mxu2 %v17791_v43  ;;  %v4276_v54 = vadd.f32 %v18845_v61, %v18844_v50  ;;  %v5032_v43 = vadd.f32 %v18850_v15, %v4205_v10  ;;  %v17795_v50 = vmax.f32 %v14947_v58, 0.0  ;;  %v18852_v0 = vld [vmem:[#allocation172_spill] sm:$0xff]  ;;  %v18866_v58 = vld [vmem:[#allocation34_spill] sm:$0xff] }
 0x72d   :  { %v14979_v23 = vadd.f32 %v14692_v59, %v5089_v62  ;;  %v18853_v3 = vld [vmem:[#allocation128_spill] sm:$0xff]  ;;  %v14994_v62 = vadd.f32 %v14706_v38, %v5075_v57  ;;  %v18860_v57 = vld [vmem:[#allocation58_spill] sm:$0xff]  ;;  %v15012_v39 = vadd.f32 %v14710_v25, %v5068_v9 }
 0x72e   :  { %5445 = vmatpush.msra.mxu2 %v17794_v2  ;;  %v4273_v19 = vadd.f32 %v18853_v3, %v18852_v0  ;;  %v5061_v61 = vadd.f32 %v14782_v45, %v4276_v54  ;;  %v14997_v17 = vpop.f32.mrf.mxu2  ;;  %v18855_v10 = vld [vmem:[#allocation96_spill] sm:$0xff]  ;;  %v15003_v2 = vadd.f32 %v14756_v40, %v5039_v41  ;;  %v18859_v54 = vld [vmem:[#allocation113_spill] sm:$0xff]  ;;  %v15023_v7 = vadd.f32 %v14793_v18, %v5032_v43  ;;  %v18881_v43 = vld [vmem:[#allocation15_spill] sm:$0xff] }
 0x72f   :  { %18847 = vst [vmem:[#allocation16_spill] sm:$0xff] %v14979_v23  ;;  %v4199_v15 = vadd.f32 %v18856_v30, %v18855_v10  ;;  %v4270_v0 = vadd.f32 %v18860_v57, %v18859_v54  ;;  %v18862_v10 = vmax.f32 %v14979_v23, 0.0  ;;  %v18865_v30 = vld [vmem:[#allocation56_spill] sm:$0xff]  ;;  %v18871_v57 = vld [vmem:[#allocation125_spill] sm:$0xff] }
 0x730   :  { %18854 = vst [vmem:[#allocation45_spill] sm:$0xff] %v14994_v62  ;;  %5446 = vmatpush.msra.mxu2 %v17795_v50  ;;  %v5054_v3 = vadd.f32 %v14737_v14, %v4273_v19  ;;  %v4196_v50 = vadd.f32 %v18865_v30, %v18864_v13  ;;  %v18869_v14 = vmax.f32 %v14963_v26, 0.0  ;;  %v18870_v19 = vld [vmem:[#allocation8_spill] sm:$0xff]  ;;  %v18875_v13 = vld [vmem:[#allocation22_spill] sm:$0xff] }
 0x731   :  { %18858 = vst [vmem:[#allocation158_spill] sm:$0xff] %v15003_v2  ;;  %5480 = vmatpush.msrb.mxu3 %v18862_v10  ;;  %v15016_v1 = vpop.f32.mrf.mxu3  ;;  %v5018_v45 = vadd.f32 %v18866_v58, %v4199_v15  ;;  %v4267_v10 = vadd.f32 %v18871_v57, %v18870_v19  ;;  %v18872_v23 = vld [vmem:[#allocation164_spill] sm:$0xff]  ;;  %v18874_v58 = vmax.f32 %v14976_v12, 0.0  ;;  %v15042_v15 = vld [vmem:[%s17563_s7 + $0x10] sm:$0xff]  ;;  %v18887_v57 = vld [vmem:[#allocation10_spill] sm:$0xff] }
 0x732   :  { %18861 = vst [vmem:[#allocation20_spill] sm:$0xff] %v15012_v39  ;;  %v15025_v54 = vpop.f32.mrf.mxu0  ;;  %5447 = vmatpush.msra.mxu2 %v18869_v14  ;;  %v5047_v41 = vadd.f32 %v18872_v23, %v4270_v0  ;;  %v18876_v30 = vld [vmem:[#allocation60_spill] sm:$0xff]  ;;  %v15048_v23 = vadd.f32 %v14808_v8, %v5025_v22  ;;  %v18879_v0 = vmax.f32 %v14985_v56, 0.0  ;;  %7859 = vmatmul.msk.f32.gmra.mxu3 %vm2195_vm4, %v15042_v15  ;;  %v18884_v22 = vmax.f32 %v14994_v62, 0.0  ;;  %v18892_v62 = vld [vmem:[#allocation93_spill] sm:$0xff] }
 0x733   :  { %18863 = vst [vmem:[#allocation36_spill] sm:$0xff] %v15016_v1  ;;  %v15034_v1 = vadd.f32 %v14714_v60, %v5061_v61  ;;  %5481 = vmatpush.msrb.mxu3 %v18874_v58  ;;  %v4193_v14 = vadd.f32 %v18876_v30, %v18875_v13  ;;  %v18877_v9 = vld [vmem:[#allocation112_spill] sm:$0xff]  ;;  %v18885_v30 = vld [vmem:[#allocation85_spill] sm:$0xff]  ;;  %v15070_v47 = vadd.f32 %v14821_v53, %v5018_v45 }
 0x734   :  { %18867 = vst [vmem:[#allocation161_spill] sm:$0xff] %v15023_v7  ;;  %v5011_v19 = vadd.f32 %v18877_v9, %v4196_v50  ;;  %v15050_v61 = vpop.f32.mrf.mxu1  ;;  %5448 = vmatpush.msra.mxu2 %v18879_v0  ;;  %v18880_v58 = vld [vmem:[#allocation156_spill] sm:$0xff]  ;;  %v15061_v50 = vadd.f32 %v14732_v6, %v5054_v3  ;;  %v18890_v3 = vld [vmem:[#allocation185_spill] sm:$0xff]  ;;  %v15079_v9 = vadd.f32 %v14744_v52, %v5047_v41  ;;  %v18898_v41 = vld [vmem:[#allocation131_spill] sm:$0xff] }
 0x735   :  { %18868 = vst [vmem:[#allocation95_spill] sm:$0xff] %v15025_v54  ;;  %v4264_v12 = vadd.f32 %v18881_v43, %v18880_v58  ;;  %v18882_v54 = vld [vmem:[#allocation150_spill] sm:$0xff]  ;;  %5482 = vmatpush.msrb.mxu3 %v18884_v22  ;;  %v18886_v0 = vld [vmem:[#allocation64_spill] sm:$0xff]  ;;  %v5004_v26 = vadd.f32 %v18887_v57, %v4193_v14  ;;  %v18889_v43 = vmax.f32 %v15003_v2, 0.0  ;;  %v17807_v45 = vmax.f32 %v15034_v1, 0.0  ;;  %v18895_v57 = vld [vmem:[#allocation51_spill] sm:$0xff] }
 0x736   :  { %18873 = vst [vmem:[#allocation124_spill] sm:$0xff] %v15034_v1  ;;  %v5040_v13 = vadd.f32 %v18882_v54, %v4267_v10  ;;  %v4190_v56 = vadd.f32 %v18886_v0, %v18885_v30  ;;  %v17805_v54 = vmax.f32 %v15023_v7, 0.0  ;;  %v18891_v10 = vld [vmem:[#allocation139_spill] sm:$0xff]  ;;  %v18894_v30 = vmax.f32 %v15012_v39, 0.0  ;;  %v15083_v14 = vpop.f32.mrf.mxu2 }
 0x737   :  { %18878 = vst [vmem:[#allocation152_spill] sm:$0xff] %v15048_v23  ;;  %5449 = vmatpush.msra.mxu2 %v18889_v43  ;;  %v4261_v58 = vadd.f32 %v18891_v10, %v18890_v3  ;;  %v5033_v22 = vadd.f32 %v18892_v62, %v4264_v12  ;;  %v15088_v43 = vadd.f32 %v14848_v48, %v5011_v19  ;;  %v17808_v12 = vmax.f32 %v15048_v23, 0.0  ;;  %v18897_v62 = vld [vmem:[#allocation92_spill] sm:$0xff]  ;;  %v18899_v10 = vld [vmem:[#allocation166_spill] sm:$0xff]  ;;  %v18917_v2 = vld [vmem:[#allocation91_spill] sm:$0xff] }
 0x738   :  { %18883 = vst [vmem:[#allocation145_spill] sm:$0xff] %v15061_v50  ;;  %5483 = vmatpush.msrb.mxu3 %v18894_v30  ;;  %v4997_v0 = vadd.f32 %v18895_v57, %v4190_v56  ;;  %v4258_v3 = vadd.f32 %v18898_v41, %v18897_v62  ;;  %v15097_v30 = vadd.f32 %v14756_v40, %v5040_v13  ;;  %v17809_v19 = vmax.f32 %v15061_v50, 0.0  ;;  %v18904_v62 = vld [vmem:[#allocation77_spill] sm:$0xff]  ;;  %v18905_v13 = vld [vmem:[#allocation138_spill] sm:$0xff]  ;;  %v18916_v23 = vld [vmem:[#allocation44_spill] sm:$0xff] }
 0x739   :  { %18888 = vst [vmem:[#allocation97_spill] sm:$0xff] %v15070_v47  ;;  %5450 = vmatpush.msra.mxu2 %v17805_v54  ;;  %v5026_v39 = vadd.f32 %v18899_v10, %v4261_v58  ;;  %v15101_v56 = vpop.f32.mrf.mxu3  ;;  %v15105_v57 = vadd.f32 %v14859_v27, %v5004_v26  ;;  %v4255_v41 = vadd.f32 %v18905_v13, %v18904_v62  ;;  %v18906_v10 = vld [vmem:[#allocation6_spill] sm:$0xff]  ;;  %v18911_v13 = vld [vmem:[#allocation41_spill] sm:$0xff] }
 0x73a   :  { %18893 = vst [vmem:[#allocation172_spill] sm:$0xff] %v15079_v9  ;;  %5484 = vmatpush.msrb.mxu3 %v17807_v45  ;;  %v15107_v54 = vpop.f32.mrf.mxu0  ;;  %v5019_v1 = vadd.f32 %v18906_v10, %v4258_v3  ;;  %v15116_v45 = vadd.f32 %v14793_v18, %v5033_v22  ;;  %v18909_v3 = vmax.f32 %v15070_v47, 0.0  ;;  %v17815_v22 = vmax.f32 %v15088_v43, 0.0  ;;  %v18910_v62 = vld [vmem:[#allocation18_spill] sm:$0xff] }
 0x73b   :  { %18896 = vst [vmem:[#allocation128_spill] sm:$0xff] %v15088_v43  ;;  %5451 = vmatpush.msra.mxu2 %v17808_v12  ;;  %v15127_v12 = vadd.f32 %v14868_v34, %v4997_v0  ;;  %v4252_v10 = vadd.f32 %v18911_v13, %v18910_v62  ;;  %v15140_v50 = vadd.f32 %v14808_v8, %v5026_v39  ;;  %v18914_v0 = vmax.f32 %v15079_v9, 0.0  ;;  %v18915_v47 = vld [vmem:[#allocation98_spill] sm:$0xff] }
 0x73c   :  { %18900 = vst [vmem:[#allocation96_spill] sm:$0xff] %v15097_v30  ;;  %5485 = vmatpush.msrb.mxu3 %v17809_v19  ;;  %v15129_v58 = vpop.f32.mrf.mxu1  ;;  %v18912_v19 = vld [vmem:[#allocation101_spill] sm:$0xff]  ;;  %v4249_v7 = vadd.f32 %v18916_v23, %v18915_v47  ;;  %v18933_v9 = vld [vmem:[#allocation70_spill] sm:$0xff] }
 0x73d   :  { %18901 = vst [vmem:[#allocation52_spill] sm:$0xff] %v15101_v56  ;;  %5452 = vmatpush.msra.mxu2 %v18909_v3  ;;  %v5012_v26 = vadd.f32 %v18912_v19, %v4255_v41  ;;  %v17818_v56 = vmax.f32 %v15097_v30, 0.0  ;;  %v17820_v3 = vmax.f32 %v15105_v57, 0.0  ;;  %v5005_v62 = vadd.f32 %v18917_v2, %v4252_v10 }
 0x73e   :  { %18902 = vst [vmem:[#allocation154_spill] sm:$0xff] %v15105_v57  ;;  %5486 = vmatpush.msrb.mxu3 %v18914_v0  ;;  %v15152_v19 = vadd.f32 %v14821_v53, %v5019_v1  ;;  %v15156_v39 = vpop.f32.mrf.mxu2  ;;  %v17817_v41 = vmax.f32 %v15116_v45, 0.0  ;;  %v17819_v13 = vmax.f32 %v15127_v12, 0.0  ;;  %v18919_v0 = vld [vmem:[#allocation37_spill] sm:$0xff]  ;;  %v17816_v1 = vmax.f32 %v15140_v50, 0.0 }
 0x73f   :  { %18903 = vst [vmem:[#allocation113_spill] sm:$0xff] %v15107_v54  ;;  %v15124_v54 = vld [vmem:[%s17563_s7 + $0x18] sm:$0xff]  ;;  %5453 = vmatpush.msra.mxu2 %v17815_v22  ;;  %v4998_v22 = vadd.f32 %v18919_v0, %v4249_v7  ;;  %v15164_v47 = vadd.f32 %v14848_v48, %v5012_v26  ;;  %v15176_v10 = vadd.f32 %v14859_v27, %v5005_v62  ;;  %v15186_v26 = vld [vmem:[%s17563_s7 + $0x20] sm:$0xff]  ;;  %v15236_v57 = vld [vmem:[%s17563_s7 + $0x30] sm:$0xff] }
 0x740   :  { %18907 = vst [vmem:[#allocation58_spill] sm:$0xff] %v15116_v45  ;;  %7860 = vmatmul.msk.f32.gmra.mxu3 %vm2195_vm4, %v15124_v54  ;;  %v17822_v7 = vmax.f32 %v15152_v19, 0.0  ;;  %v18932_v45 = vld [vmem:[#allocation114_spill] sm:$0xff] }
 0x741   :  { %18908 = vst [vmem:[#allocation81_spill] sm:$0xff] %v15127_v12  ;;  %5487 = vmatpush.msrb.mxu3 %v17818_v56  ;;  %5454 = vmatpush.msra.mxu2 %v17820_v3  ;;  %v15168_v2 = vpop.f32.mrf.mxu3  ;;  %v15191_v62 = vadd.f32 %v14868_v34, %v4998_v22  ;;  %v17823_v56 = vmax.f32 %v15176_v10, 0.0 }
 0x742   :  { %18913 = vst [vmem:[#allocation56_spill] sm:$0xff] %v15140_v50  ;;  %v15171_v23 = vpop.f32.mrf.mxu0 }
 0x743   :  { %18918 = vst [vmem:[#allocation34_spill] sm:$0xff] %v15152_v19  ;;  %5488 = vmatpush.msrb.mxu3 %v17817_v41  ;;  %5455 = vmatpush.msra.mxu2 %v17819_v13  ;;  %v17828_v22 = vmax.f32 %v15191_v62, 0.0 }
 0x744   :  { %18920 = vst [vmem:[#allocation8_spill] sm:$0xff] %v15164_v47  ;;  %7864 = vmatmul.msk.f32.vlgmr.msra.gmra.mxu2 %vm2195_vm4, %v14902_v63  ;;  %v4810_v0 = vpop.f32.mrf.mxu1 }
 0x745   :  { %18921 = vst [vmem:[#allocation125_spill] sm:$0xff] %v15168_v2  ;;  %5489 = vmatpush.msrb.mxu3 %v17816_v1  ;;  %v17821_v1 = vmax.f32 %v15164_v47, 0.0  ;;  %v18928_v47 = vld [vmem:[#allocation120_spill] sm:$0xff] }
 0x746   :  { %18922 = vst [vmem:[#allocation164_spill] sm:$0xff] %v15171_v23  ;;  %v15198_v41 = vpop.f32.mrf.mxu2  ;;  %v18934_v23 = vld [vmem:[#allocation7_spill] sm:$0xff]  ;;  %v18937_v2 = vld [vmem:[#allocation68_spill] sm:$0xff] }
 0x747   :  { %18923 = vst [vmem:[#allocation22_spill] sm:$0xff] %v15176_v10  ;;  %5490 = vmatpush.msrb.mxu3 %v17822_v7  ;;  %v18927_v10 = vld [vmem:[#allocation78_spill] sm:$0xff]  ;;  %v4347_v12 = vadd.f32 %v18934_v23, %v18933_v9 }
 0x748   :  { %7861 = vmatmul.msk.f32.gmra.mxu3 %vm2195_vm4, %v15186_v26  ;;  %18924 = vst [vmem:[#allocation60_spill] sm:$0xff] %v15191_v62  ;;  %v4344_v19 = vadd.f32 %v18928_v47, %v18927_v10  ;;  %v18931_v62 = vld [vmem:[#allocation82_spill] sm:$0xff] }
 0x749   :  { %5491 = vmatpush.msrb.mxu3 %v17821_v1  ;;  %v15203_v13 = vpop.f32.mrf.mxu3  ;;  %v15215_v1 = vld [vmem:[%s17563_s7 + $0x28] sm:$0xff]  ;;  %v4341_v30 = vadd.f32 %v18932_v45, %v18931_v62  ;;  %v18935_v10 = vld [vmem:[#allocation134_spill] sm:$0xff] }
 0x74a   :  { %18925 = vst [vmem:[#allocation112_spill] sm:$0xff] %v15203_v13  ;;  %v15206_v3 = vpop.f32.mrf.mxu0  ;;  %v18938_v9 = vld [vmem:[#allocation50_spill] sm:$0xff] }
 0x74b   :  { %5492 = vmatpush.msrb.mxu3 %v17823_v56  ;;  %18926 = vst [vmem:[#allocation156_spill] sm:$0xff] %v15206_v3  ;;  %v5076_v45 = vadd.f32 %v4810_v0, %v4341_v30 }
 0x74c   :  { %7865 = vmatmul.msk.f32.gmra.mxu2 %vm2195_vm4, %v14957_v11  ;;  %v4813_v7 = vpop.f32.mrf.mxu1 }
 0x74d   :  { %5493 = vmatpush.msrb.mxu3 %v17828_v22  ;;  %v5083_v3 = vadd.f32 %v4813_v7, %v4344_v19  ;;  %v4335_v19 = vadd.f32 %v18938_v9, %v18937_v2  ;;  %v18951_v9 = vld [vmem:[#allocation32_spill] sm:$0xff] }
 0x74e   :  { %v15219_v56 = vpop.f32.mrf.mxu2 }
 0x74f   :  { %v15246_v7 = vadd.f32 %v14696_v24, %v5083_v3  ;;  %v18946_v3 = vld [vmem:[#allocation42_spill] sm:$0xff] }
 0x750   :  { %7862 = vmatmul.msk.f32.gmra.mxu3 %vm2195_vm4, %v15215_v1 }
 0x751   :  { %v15223_v50 = vpop.f32.mrf.mxu3  ;;  %18939 = vst [vmem:[#allocation85_spill] sm:$0xff] %v15246_v7  ;;  %v17838_v49 = vmax.f32 %v15246_v7, 0.0 }
 0x752   :  { %18929 = vst [vmem:[#allocation15_spill] sm:$0xff] %v15223_v50  ;;  %v15225_v22 = vpop.f32.mrf.mxu0 }
 0x753   :  { %18930 = vst [vmem:[#allocation150_spill] sm:$0xff] %v15225_v22  ;;  %v18936_v22 = vld [vmem:[#allocation126_spill] sm:$0xff] }
 0x754   :  { %7866 = vmatmul.msk.f32.gmra.mxu2 %vm2195_vm4, %v15042_v15  ;;  %v4816_v47 = vpop.f32.mrf.mxu1  ;;  %v4338_v43 = vadd.f32 %v18936_v22, %v18935_v10  ;;  %v5062_v22 = vadd.f32 %v15050_v61, %v4335_v19  ;;  %v18949_v61 = vld [vmem:[#allocation129_spill] sm:$0xff]  ;;  %v18952_v19 = vld [vmem:[#allocation122_spill] sm:$0xff] }
 0x755   :  { %v5090_v62 = vadd.f32 %v4816_v47, %v4347_v12  ;;  %v15257_v12 = vadd.f32 %v14706_v38, %v5076_v45  ;;  %v5055_v47 = vadd.f32 %v14965_v28, %v4332_v46  ;;  %v4326_v45 = vadd.f32 %v18949_v61, %v18948_v21  ;;  %v18955_v21 = vld [vmem:[#allocation137_spill] sm:$0xff] }
 0x756   :  { %v5069_v23 = vadd.f32 %v15129_v58, %v4338_v43  ;;  %v15251_v50 = vpop.f32.mrf.mxu2  ;;  %v18945_v58 = vld [vmem:[#allocation174_spill] sm:$0xff]  ;;  %v15281_v46 = vadd.f32 %v14714_v60, %v5062_v22 }
 0x757   :  { %v15249_v13 = vadd.f32 %v14692_v59, %v5090_v62  ;;  %18943 = vst [vmem:[#allocation10_spill] sm:$0xff] %v15257_v12  ;;  %v4329_v0 = vadd.f32 %v18946_v3, %v18945_v58  ;;  %v17840_v28 = vmax.f32 %v15257_v12, 0.0  ;;  %v5041_v58 = vadd.f32 %v14877_v20, %v4326_v45 }
 0x758   :  { %7863 = vmatmul.msk.f32.gmra.mxu3 %vm2195_vm4, %v15236_v57  ;;  %v15268_v10 = vadd.f32 %v14710_v25, %v5069_v23  ;;  %18950 = vst [vmem:[#allocation93_spill] sm:$0xff] %v15281_v46  ;;  %v4323_v23 = vadd.f32 %v18952_v19, %v18951_v9  ;;  %v15290_v3 = vadd.f32 %v14732_v6, %v5055_v47  ;;  %v17842_v47 = vmax.f32 %v15281_v46, 0.0  ;;  %v18958_v9 = vld [vmem:[#allocation66_spill] sm:$0xff]  ;;  %v18959_v19 = vld [vmem:[#allocation135_spill] sm:$0xff] }
 0x759   :  { %18940 = vst [vmem:[#allocation64_spill] sm:$0xff] %v15249_v13  ;;  %v17839_v30 = vmax.f32 %v15249_v13, 0.0  ;;  %v15260_v2 = vpop.f32.mrf.mxu3  ;;  %v5048_v62 = vadd.f32 %v14913_v4, %v4329_v0  ;;  %v18954_v0 = vld [vmem:[#allocation11_spill] sm:$0xff] }
 0x75a   :  { %v15262_v43 = vpop.f32.mrf.mxu0  ;;  %18947 = vst [vmem:[#allocation139_spill] sm:$0xff] %v15268_v10  ;;  %v17843_v22 = vmax.f32 %v15268_v10, 0.0  ;;  %v4320_v61 = vadd.f32 %v18955_v21, %v18954_v0  ;;  %v15312_v0 = vadd.f32 %v14756_v40, %v5041_v58 }
 0x75b   :  { %18944 = vst [vmem:[#allocation185_spill] sm:$0xff] %v15262_v43  ;;  %5518 = vmatpush.msrb.mxu1 %v17839_v30  ;;  %v15299_v30 = vadd.f32 %v14744_v52, %v5048_v62  ;;  %v18961_v62 = vld [vmem:[#allocation146_spill] sm:$0xff] }
 0x75c   :  { %7867 = vmatmul.msk.f32.gmra.mxu2 %vm2195_vm4, %v15124_v54  ;;  %18953 = vst [vmem:[#allocation51_spill] sm:$0xff] %v15290_v3  ;;  %v5027_v12 = vadd.f32 %v14795_v29, %v4320_v61  ;;  %v18964_v61 = vld [vmem:[#allocation149_spill] sm:$0xff] }
 0x75d   :  { %5519 = vmatpush.msrb.mxu1 %v17838_v49  ;;  %v5034_v49 = vadd.f32 %v14837_v31, %v4323_v23  ;;  %18956 = vst [vmem:[#allocation92_spill] sm:$0xff] %v15299_v30  ;;  %v17846_v31 = vmax.f32 %v15290_v3, 0.0  ;;  %v18962_v23 = vld [vmem:[#allocation54_spill] sm:$0xff]  ;;  %v17849_v58 = vmax.f32 %v15299_v30, 0.0 }
 0x75e   :  { %v4869_v4 = vpop.f32.mrf.mxu2  ;;  %18960 = vst [vmem:[#allocation166_spill] sm:$0xff] %v15312_v0  ;;  %v4314_v21 = vadd.f32 %v18962_v23, %v18961_v62  ;;  %v15334_v10 = vadd.f32 %v14808_v8, %v5027_v12  ;;  %v18969_v62 = vld [vmem:[#allocation23_spill] sm:$0xff] }
 0x75f   :  { %5520 = vmatpush.msrb.mxu1 %v17840_v28  ;;  %v4317_v28 = vadd.f32 %v18959_v19, %v18958_v9  ;;  %v15325_v29 = vadd.f32 %v14793_v18, %v5034_v49  ;;  %v18965_v19 = vld [vmem:[#allocation62_spill] sm:$0xff]  ;;  %v17851_v49 = vmax.f32 %v15312_v0, 0.0 }
 0x760   :  { %7871 = vmatmul.msk.f32.vlgmr.msrb.gmra.mxu3 %vm2195_vm4, %v14902_v63  ;;  %18967 = vst [vmem:[#allocation138_spill] sm:$0xff] %v15334_v10 }
 0x761   :  { %5521 = vmatpush.msrb.mxu1 %v17843_v22  ;;  %v15303_v20 = vpop.f32.mrf.mxu3  ;;  %v5020_v9 = vadd.f32 %v14747_v5, %v4317_v28  ;;  %18963 = vst [vmem:[#allocation77_spill] sm:$0xff] %v15325_v29  ;;  %v18966_v22 = vld [vmem:[#allocation159_spill] sm:$0xff]  ;;  %v17850_v12 = vmax.f32 %v15325_v29, 0.0  ;;  %v18980_v29 = vld [vmem:[#allocation130_spill] sm:$0xff] }
 0x762   :  { %v15306_v45 = vpop.f32.mrf.mxu0  ;;  %v5013_v46 = vadd.f32 %v18966_v22, %v4314_v21  ;;  %v18968_v28 = vld [vmem:[#allocation187_spill] sm:$0xff] }
 0x763   :  { %18957 = vst [vmem:[#allocation131_spill] sm:$0xff] %v15306_v45  ;;  %5522 = vmatpush.msrb.mxu1 %v17842_v47  ;;  %v4311_v47 = vadd.f32 %v18965_v19, %v18964_v61  ;;  %v4308_v23 = vadd.f32 %v18969_v62, %v18968_v28  ;;  %v15343_v7 = vadd.f32 %v14821_v53, %v5020_v9  ;;  %v18972_v61 = vld [vmem:[#allocation188_spill] sm:$0xff]  ;;  %v18975_v9 = vld [vmem:[#allocation118_spill] sm:$0xff] }
 0x764   :  { %7868 = vmatmul.msk.f32.gmra.mxu2 %vm2195_vm4, %v15186_v26 }
 0x765   :  { %5523 = vmatpush.msrb.mxu1 %v17846_v31  ;;  %v18970_v31 = vld [vmem:[#allocation162_spill] sm:$0xff]  ;;  %18971 = vst [vmem:[#allocation6_spill] sm:$0xff] %v15343_v7  ;;  %v4999_v19 = vadd.f32 %v18972_v61, %v4308_v23  ;;  %v18977_v23 = vld [vmem:[#allocation144_spill] sm:$0xff] }
 0x766   :  { %v4872_v5 = vpop.f32.mrf.mxu2  ;;  %v5006_v3 = vadd.f32 %v18970_v31, %v4311_v47  ;;  %v17856_v47 = vmax.f32 %v15334_v10, 0.0  ;;  %v18974_v31 = vld [vmem:[#allocation141_spill] sm:$0xff]  ;;  %v18978_v61 = vld [vmem:[#allocation170_spill] sm:$0xff] }
 0x767   :  { %5524 = vmatpush.msrb.mxu1 %v17849_v58  ;;  %v15354_v58 = vadd.f32 %v14848_v48, %v5013_v46  ;;  %v4403_v28 = vadd.f32 %v18975_v9, %v18974_v31  ;;  %v17858_v46 = vmax.f32 %v15343_v7, 0.0  ;;  %v15376_v31 = vadd.f32 %v14868_v34, %v4999_v19  ;;  %v18982_v10 = vld [vmem:[#allocation181_spill] sm:$0xff] }
 0x768   :  { %7872 = vmatmul.msk.f32.gmra.mxu3 %vm2195_vm4, %v14957_v11  ;;  %v15366_v62 = vadd.f32 %v14859_v27, %v5006_v3 }
 0x769   :  { %5525 = vmatpush.msrb.mxu1 %v17851_v49  ;;  %v15347_v22 = vpop.f32.mrf.mxu3  ;;  %18973 = vst [vmem:[#allocation18_spill] sm:$0xff] %v15354_v58  ;;  %v18979_v49 = vld [vmem:[#allocation67_spill] sm:$0xff]  ;;  %v5084_v30 = vadd.f32 %v4872_v5, %v4403_v28  ;;  %v17861_v9 = vmax.f32 %v15354_v58, 0.0  ;;  %v18984_v5 = vld [vmem:[#allocation182_spill] sm:$0xff] }
 0x76a   :  { %v15350_v21 = vpop.f32.mrf.mxu0  ;;  %18976 = vst [vmem:[#allocation41_spill] sm:$0xff] %v15366_v62  ;;  %v4406_v0 = vadd.f32 %v18980_v29, %v18979_v49  ;;  %v17860_v29 = vmax.f32 %v15366_v62, 0.0  ;;  %v18985_v49 = vld [vmem:[#allocation173_spill] sm:$0xff]  ;;  %v19031_v62 = vld [vmem:[#allocation184_spill] sm:$0xff] }
 0x76b   :  { %5526 = vmatpush.msrb.mxu1 %v17850_v12  ;;  %v4400_v12 = vadd.f32 %v18978_v61, %v18977_v23  ;;  %18981 = vst [vmem:[#allocation101_spill] sm:$0xff] %v15376_v31  ;;  %v4394_v19 = vadd.f32 %v18985_v49, %v18984_v5  ;;  %v15392_v61 = vadd.f32 %v14696_v24, %v5084_v30 }
 0x76c   :  { %7869 = vmatmul.msk.f32.gmra.mxu2 %vm2195_vm4, %v15215_v1 }
 0x76d   :  { %5527 = vmatpush.msrb.mxu1 %v17856_v47  ;;  %v18983_v47 = vld [vmem:[#allocation104_spill] sm:$0xff]  ;;  %v5077_v43 = vadd.f32 %v4869_v4, %v4400_v12  ;;  %v17859_v4 = vmax.f32 %v15376_v31, 0.0  ;;  %v18987_v12 = vld [vmem:[#allocation21_spill] sm:$0xff] }
 0x76e   :  { %v4875_v3 = vpop.f32.mrf.mxu2  ;;  %v4397_v13 = vadd.f32 %v18983_v47, %v18982_v10 }
 0x76f   :  { %5528 = vmatpush.msrb.mxu1 %v17858_v46  ;;  %v5091_v45 = vadd.f32 %v4875_v3, %v4406_v0  ;;  %v18986_v0 = vld [vmem:[#allocation86_spill] sm:$0xff]  ;;  %v18989_v3 = vld [vmem:[#allocation127_spill] sm:$0xff] }
 0x770   :  { %7873 = vmatmul.msk.f32.gmra.mxu3 %vm2195_vm4, %v15042_v15  ;;  %v5070_v28 = vadd.f32 %v15251_v50, %v4397_v13  ;;  %v4391_v47 = vadd.f32 %v18987_v12, %v18986_v0  ;;  %v5063_v50 = vadd.f32 %v15219_v56, %v4394_v19  ;;  %v15408_v13 = vadd.f32 %v14706_v38, %v5077_v43  ;;  %v18991_v19 = vld [vmem:[#allocation84_spill] sm:$0xff]  ;;  %v18992_v12 = vld [vmem:[#allocation43_spill] sm:$0xff] }
 0x771   :  { %5529 = vmatpush.msrb.mxu1 %v17861_v9  ;;  %v15385_v23 = vpop.f32.mrf.mxu3  ;;  %v15395_v46 = vadd.f32 %v14692_v59, %v5091_v45  ;;  %v18988_v45 = vld [vmem:[#allocation175_spill] sm:$0xff]  ;;  %v17872_v56 = vmax.f32 %v15392_v61, 0.0  ;;  %v18990_v43 = vmax.f32 %v14735_v55, 0.0  ;;  %v18994_v55 = vld [vmem:[#allocation28_spill] sm:$0xff] }
 0x772   :  { %v15397_v10 = vpop.f32.mrf.mxu0  ;;  %v4388_v5 = vadd.f32 %v18989_v3, %v18988_v45  ;;  %v5056_v49 = vadd.f32 %v15198_v41, %v4391_v47  ;;  %v15419_v0 = vadd.f32 %v14710_v25, %v5070_v28  ;;  %v15432_v41 = vadd.f32 %v14714_v60, %v5063_v50 }
 0x773   :  { %5530 = vmatpush.msrb.mxu1 %v17860_v29  ;;  %v17873_v30 = vmax.f32 %v15395_v46, 0.0  ;;  %v17871_v28 = vmax.f32 %v15408_v13, 0.0  ;;  %v18993_v47 = vmax.f32 %v14742_v32, 0.0  ;;  %v18996_v32 = vmax.f32 %v14752_v16, 0.0  ;;  %v19000_v16 = vld [vmem:[#allocation140_spill] sm:$0xff] }
 0x774   :  { %7870 = vmatmul.msk.f32.gmra.mxu2 %vm2195_vm4, %v15236_v57  ;;  %v5049_v45 = vadd.f32 %v15156_v39, %v4388_v5  ;;  %v15445_v39 = vadd.f32 %v14732_v6, %v5056_v49  ;;  %v17863_v5 = vmax.f32 %v15419_v0, 0.0  ;;  %v18999_v49 = vmax.f32 %v14764_v44, 0.0  ;;  %v19003_v44 = vld [vmem:[#allocation143_spill] sm:$0xff] }
 0x775   :  { %5531 = vmatpush.msrb.mxu1 %v17859_v4  ;;  %5556 = vmatpush.msrb.mxu2 %v17873_v30  ;;  %v4385_v4 = vadd.f32 %v18992_v12, %v18991_v19  ;;  %v18997_v12 = vld [vmem:[#allocation99_spill] sm:$0xff] }
 0x776   :  { %7878 = vmatmul.msk.f32.vlgmr.msrb.gmra.mxu1 %vm2195_vm4, %v14902_v63 }
 0x777   :  { %5698 = vmatpush.msra.mxu1 %v18990_v43  ;;  %5557 = vmatpush.msrb.mxu2 %v17872_v56  ;;  %v18995_v43 = vld [vmem:[#allocation17_spill] sm:$0xff]  ;;  %v5042_v19 = vadd.f32 %v15083_v14, %v4385_v4  ;;  %v15458_v14 = vadd.f32 %v14744_v52, %v5049_v45  ;;  %v17862_v4 = vmax.f32 %v15432_v41, 0.0  ;;  %v19002_v45 = vmax.f32 %v14775_v35, 0.0  ;;  %v19007_v35 = vld [vmem:[#allocation132_spill] sm:$0xff] }
 0x778   :  { %7874 = vmatmul.msk.f32.gmra.mxu3 %vm2195_vm4, %v15124_v54  ;;  %v4382_v29 = vadd.f32 %v18995_v43, %v18994_v55  ;;  %v19001_v43 = vld [vmem:[#allocation117_spill] sm:$0xff] }
 0x779   :  { %5699 = vmatpush.msra.mxu1 %v18993_v47  ;;  %v15439_v3 = vpop.f32.mrf.mxu3  ;;  %5558 = vmatpush.msrb.mxu2 %v17871_v28  ;;  %v18998_v47 = vld [vmem:[#allocation33_spill] sm:$0xff] }
 0x77a   :  { %v15447_v50 = vpop.f32.mrf.mxu0  ;;  %v4379_v9 = vadd.f32 %v18998_v47, %v18997_v12  ;;  %v5035_v55 = vadd.f32 %v14997_v17, %v4382_v29  ;;  %v15471_v17 = vadd.f32 %v14756_v40, %v5042_v19  ;;  %v17864_v29 = vmax.f32 %v15445_v39, 0.0  ;;  %v19004_v47 = vld [vmem:[#allocation9_spill] sm:$0xff] }
 0x77b   :  { %5700 = vmatpush.msra.mxu1 %v18996_v32  ;;  %5559 = vmatpush.msrb.mxu2 %v17863_v5  ;;  %v4376_v32 = vadd.f32 %v19001_v43, %v19000_v16  ;;  %v19005_v19 = vmax.f32 %v14788_v42, 0.0  ;;  %v19009_v42 = vld [vmem:[#allocation74_spill] sm:$0xff]  ;;  %v19028_v28 = vld [vmem:[#allocation133_spill] sm:$0xff] }
 0x77c   :  { %v5028_v12 = vadd.f32 %v14926_v36, %v4379_v9  ;;  %v15484_v36 = vadd.f32 %v14793_v18, %v5035_v55  ;;  %v17870_v9 = vmax.f32 %v15458_v14, 0.0  ;;  %v17869_v55 = vmax.f32 %v15471_v17, 0.0 }
 0x77d   :  { %5701 = vmatpush.msra.mxu1 %v18999_v49  ;;  %5560 = vmatpush.msrb.mxu2 %v17862_v4  ;;  %v4373_v49 = vadd.f32 %v19004_v47, %v19003_v44  ;;  %v5021_v16 = vadd.f32 %v14888_v37, %v4376_v32  ;;  %v19006_v4 = vld [vmem:[#allocation72_spill] sm:$0xff]  ;;  %v19008_v32 = vmax.f32 %v14801_v33, 0.0  ;;  %v19010_v47 = vld [vmem:[#allocation19_spill] sm:$0xff]  ;;  %v19014_v33 = vld [vmem:[#allocation30_spill] sm:$0xff] }
 0x77e   :  { %7879 = vmatmul.msk.f32.gmra.mxu1 %vm2195_vm4, %v14957_v11  ;;  %v15495_v44 = vadd.f32 %v14808_v8, %v5028_v12  ;;  %v17865_v12 = vmax.f32 %v15484_v36, 0.0 }
 0x77f   :  { %5702 = vmatpush.msra.mxu1 %v19002_v45  ;;  %5561 = vmatpush.msrb.mxu2 %v17864_v29  ;;  %v4370_v45 = vadd.f32 %v19007_v35, %v19006_v4  ;;  %v5014_v5 = vadd.f32 %v14856_v51, %v4373_v49  ;;  %v19011_v29 = vld [vmem:[#allocation186_spill] sm:$0xff]  ;;  %v15508_v51 = vadd.f32 %v14821_v53, %v5021_v16  ;;  %v19015_v16 = vld [vmem:[#allocation111_spill] sm:$0xff] }
 0x780   :  { %7875 = vmatmul.msk.f32.gmra.mxu3 %vm2195_vm4, %v15186_v26  ;;  %v19012_v49 = vld [vmem:[#allocation106_spill] sm:$0xff] }
 0x781   :  { %5703 = vmatpush.msra.mxu1 %v19005_v19  ;;  %v4928_v43 = vpop.f32.mrf.mxu3  ;;  %5562 = vmatpush.msrb.mxu2 %v17870_v9  ;;  %v4367_v19 = vadd.f32 %v19010_v47, %v19009_v42  ;;  %v5007_v4 = vadd.f32 %v19011_v29, %v4370_v45  ;;  %v19013_v35 = vmax.f32 %v19012_v49, 0.0  ;;  %v15519_v42 = vadd.f32 %v14848_v48, %v5014_v5  ;;  %v19027_v9 = vld [vmem:[#allocation48_spill] sm:$0xff] }
 0x782   :  { %v15497_v37 = vpop.f32.mrf.mxu0  ;;  %v17866_v29 = vmax.f32 %v15495_v44, 0.0  ;;  %v19016_v45 = vmax.f32 %v19015_v16, 0.0  ;;  %v17867_v5 = vmax.f32 %v15508_v51, 0.0  ;;  %v4465_v56 = vadd.f32 %v19028_v28, %v19027_v9  ;;  %v19034_v28 = vld [vmem:[#allocation26_spill] sm:$0xff] }
 0x783   :  { %5704 = vmatpush.msra.mxu1 %v19008_v32  ;;  %5563 = vmatpush.msrb.mxu2 %v17869_v55  ;;  %v5000_v32 = vadd.f32 %v19014_v33, %v4367_v19  ;;  %v15529_v47 = vadd.f32 %v14859_v27, %v5007_v4  ;;  %v19017_v19 = vld [vmem:[#allocation14_spill] sm:$0xff]  ;;  %v17868_v16 = vmax.f32 %v15519_v42, 0.0  ;;  %v19035_v9 = vmax.f32 %v19034_v28, 0.0 }
 0x784   :  { %v19018_v49 = vmax.f32 %v19017_v19, 0.0  ;;  %v19019_v4 = vld [vmem:[#allocation90_spill] sm:$0xff]  ;;  %v19021_v19 = vld [vmem:[#allocation100_spill] sm:$0xff] }
 0x785   :  { %5705 = vmatpush.msra.mxu1 %v19013_v35  ;;  %5564 = vmatpush.msrb.mxu2 %v17865_v12  ;;  %v15537_v33 = vadd.f32 %v14868_v34, %v5000_v32  ;;  %v19022_v32 = vmax.f32 %v19021_v19, 0.0  ;;  %v19029_v19 = vld [vmem:[#allocation165_spill] sm:$0xff] }
 0x786   :  { %7880 = vmatmul.msk.f32.gmra.mxu1 %vm2195_vm4, %v15042_v15 }
 0x787   :  { %5706 = vmatpush.msra.mxu1 %v19016_v45  ;;  %5565 = vmatpush.msrb.mxu2 %v17866_v29  ;;  %v19020_v45 = vmax.f32 %v19019_v4, 0.0  ;;  %v17876_v29 = vmax.f32 %v15529_v47, 0.0  ;;  %v19023_v4 = vld [vmem:[#allocation163_spill] sm:$0xff] }
 0x788   :  { %7876 = vmatmul.msk.f32.gmra.mxu3 %vm2195_vm4, %v15215_v1 }
 0x789   :  { %5707 = vmatpush.msra.mxu1 %v19018_v49  ;;  %v4931_v35 = vpop.f32.mrf.mxu3  ;;  %5566 = vmatpush.msrb.mxu2 %v17867_v5  ;;  %v17878_v49 = vmax.f32 %v15537_v33, 0.0 }
 0x78a   :  { %v4987_v12 = vpop.f32.mrf.mxu0 }
 0x78b   :  { %5708 = vmatpush.msra.mxu1 %v19020_v45  ;;  %5567 = vmatpush.msrb.mxu2 %v17868_v16  ;;  %v19024_v45 = vld [vmem:[#allocation110_spill] sm:$0xff]  ;;  %v19025_v16 = vld [vmem:[#allocation157_spill] sm:$0xff] }
 0x78c   :  { %v4462_v5 = vadd.f32 %v19024_v45, %v19023_v4  ;;  %v19026_v55 = vmax.f32 %v19025_v16, 0.0  ;;  %v19033_v16 = vmax.f32 %v15395_v46, 0.0  ;;  %v19036_v45 = vld [vmem:[#allocation71_spill] sm:$0xff]  ;;  %v19041_v46 = vld [vmem:[#allocation148_spill] sm:$0xff] }
 0x78d   :  { %5709 = vmatpush.msra.mxu1 %v19022_v32  ;;  %5568 = vmatpush.msrb.mxu2 %v17876_v29  ;;  %v19030_v32 = vld [vmem:[#allocation59_spill] sm:$0xff]  ;;  %v19032_v29 = vmax.f32 %v19031_v62, 0.0  ;;  %v19038_v62 = vmax.f32 %v15392_v61, 0.0 }
 0x78e   :  { %7881 = vmatmul.msk.f32.gmra.mxu1 %vm2195_vm4, %v15124_v54  ;;  %v4459_v30 = vadd.f32 %v19030_v32, %v19029_v19  ;;  %v5085_v31 = vadd.f32 %v4931_v35, %v4462_v5  ;;  %v19042_v35 = vld [vmem:[#allocation168_spill] sm:$0xff]  ;;  %v19046_v61 = vld [vmem:[#allocation35_spill] sm:$0xff] }
 0x78f   :  { %5710 = vmatpush.msra.mxu1 %v19026_v55  ;;  %5569 = vmatpush.msrb.mxu2 %v17878_v49  ;;  %v19037_v49 = vld [vmem:[#allocation57_spill] sm:$0xff] }
 0x790   :  { %7877 = vmatmul.msk.f32.gmra.mxu3 %vm2195_vm4, %v15236_v57  ;;  %7885 = vmatmul.msk.f32.vlgmr.msrb.gmra.mxu2 %vm2195_vm4, %v14902_v63  ;;  %v4456_v7 = vadd.f32 %v19037_v49, %v19036_v45  ;;  %v5078_v19 = vadd.f32 %v4928_v43, %v4459_v30  ;;  %v15587_v32 = vadd.f32 %v14696_v24, %v5085_v31  ;;  %v19043_v30 = vmax.f32 %v15408_v13, 0.0  ;;  %v19044_v43 = vld [vmem:[#allocation160_spill] sm:$0xff]  ;;  %v19049_v31 = vld [vmem:[#allocation107_spill] sm:$0xff]  ;;  %v19051_v13 = vld [vmem:[#allocation109_spill] sm:$0xff] }
 0x791   :  { %5711 = vmatpush.msra.mxu1 %v19032_v29  ;;  %v4934_v58 = vpop.f32.mrf.mxu3  ;;  %5736 = vmatpush.msra.mxu2 %v19035_v9  ;;  %v19039_v29 = vld [vmem:[#allocation103_spill] sm:$0xff] }
 0x792   :  { %v5092_v55 = vadd.f32 %v4934_v58, %v4465_v56  ;;  %v4990_v4 = vpop.f32.mrf.mxu0  ;;  %v19040_v63 = vmax.f32 %v19039_v29, 0.0  ;;  %v4453_v58 = vadd.f32 %v19042_v35, %v19041_v46  ;;  %v5071_v56 = vadd.f32 %v15439_v3, %v4456_v7  ;;  %v19048_v7 = vld [vmem:[#allocation75_spill] sm:$0xff]  ;;  %v19053_v46 = vld [vmem:[#allocation89_spill] sm:$0xff] }
 0x793   :  { %5850 = vmatpush.msrb.mxu1 %v19033_v16  ;;  %v19045_v16 = vmax.f32 %v19044_v43, 0.0  ;;  %v15598_v45 = vadd.f32 %v14706_v38, %v5078_v19  ;;  %v4447_v3 = vadd.f32 %v19049_v31, %v19048_v7  ;;  %v19054_v35 = vmax.f32 %v19053_v46, 0.0  ;;  %v19059_v7 = vld [vmem:[#allocation27_spill] sm:$0xff]  ;;  %v19060_v31 = vld [vmem:[#allocation13_spill] sm:$0xff] }
 0x794   :  { %v15577_v5 = vadd.f32 %v14692_v59, %v5092_v55  ;;  %5737 = vmatpush.msra.mxu2 %v19040_v63  ;;  %v19047_v55 = vld [vmem:[#allocation178_spill] sm:$0xff]  ;;  %v5064_v9 = vadd.f32 %v15385_v23, %v4453_v58  ;;  %v19052_v63 = vmax.f32 %v15419_v0, 0.0  ;;  %v19056_v23 = vld [vmem:[#allocation40_spill] sm:$0xff]  ;;  %v15614_v43 = vadd.f32 %v14710_v25, %v5071_v56 }
 0x795   :  { %5851 = vmatpush.msrb.mxu1 %v19038_v62  ;;  %v4450_v28 = vadd.f32 %v19047_v55, %v19046_v61  ;;  %v19050_v62 = vld [vmem:[#allocation151_spill] sm:$0xff]  ;;  %v5365_v0 = vmax.f32 %v15587_v32, 0.0  ;;  %v19058_v61 = vld [vmem:[#allocation29_spill] sm:$0xff]  ;;  %v5050_v46 = vadd.f32 %v15303_v20, %v4447_v3 }
 0x796   :  { %v5372_v49 = vmax.f32 %v15577_v5, 0.0  ;;  %5738 = vmatpush.msra.mxu2 %v19045_v16  ;;  %7882 = vmatmul.msk.f32.gmra.mxu1 %vm2195_vm4, %v15186_v26  ;;  %v4521_v29 = vadd.f32 %v19051_v13, %v19050_v62  ;;  %v19057_v16 = vld [vmem:[#allocation177_spill] sm:$0xff]  ;;  %v4518_v62 = vadd.f32 %v19060_v31, %v19059_v7  ;;  %v19068_v31 = vmax.f32 %v15445_v39, 0.0  ;;  %v19137_v32 = vld [vmem:[#allocation95_spill] sm:$0xff] }
 0x797   :  { %5852 = vmatpush.msrb.mxu1 %v19043_v30  ;;  %v19055_v30 = vld [vmem:[#allocation31_spill] sm:$0xff]  ;;  %v5057_v19 = vadd.f32 %v15347_v22, %v4450_v28  ;;  %v4441_v55 = vadd.f32 %v19058_v61, %v19057_v16  ;;  %v19061_v22 = vmax.f32 %v15432_v41, 0.0  ;;  %v19062_v28 = vld [vmem:[#allocation176_spill] sm:$0xff]  ;;  %v19066_v41 = vld [vmem:[#allocation142_spill] sm:$0xff] }
 0x798   :  { %5739 = vmatpush.msra.mxu2 %v19054_v35  ;;  %v4524_v58 = vadd.f32 %v19056_v23, %v19055_v30  ;;  %5594 = vmatpush.msra.mxu3 %v5372_v49  ;;  %v5086_v13 = vadd.f32 %v4990_v4, %v4521_v29  ;;  %v5358_v30 = vmax.f32 %v15598_v45, 0.0  ;;  %v19064_v23 = vld [vmem:[#allocation80_spill] sm:$0xff]  ;;  %v19065_v4 = vld [vmem:[#allocation123_spill] sm:$0xff]  ;;  %v5079_v7 = vadd.f32 %v4987_v12, %v4518_v62  ;;  %v19069_v20 = vld [vmem:[#allocation69_spill] sm:$0xff] }
 0x799   :  { %5853 = vmatpush.msrb.mxu1 %v19052_v63  ;;  %7886 = vmatmul.msk.f32.gmra.mxu2 %vm2195_vm4, %v14957_v11  ;;  %v19063_v63 = vmax.f32 %v19062_v28, 0.0  ;;  %v15631_v11 = vadd.f32 %v14714_v60, %v5064_v9  ;;  %v4444_v29 = vadd.f32 %v19065_v4, %v19064_v23  ;;  %v19067_v16 = vld [vmem:[#allocation115_spill] sm:$0xff]  ;;  %v19070_v3 = vmax.f32 %v19069_v20, 0.0  ;;  %v19071_v9 = vld [vmem:[#allocation136_spill] sm:$0xff] }
 0x79a   :  { %v4993_v56 = vpop.f32.mrf.mxu0  ;;  %5595 = vmatpush.msra.mxu3 %v5365_v0  ;;  %v4515_v61 = vadd.f32 %v19067_v16, %v19066_v41  ;;  %v5351_v12 = vmax.f32 %v15614_v43, 0.0  ;;  %v19073_v23 = vmax.f32 %v15458_v14, 0.0  ;;  %v15667_v16 = vadd.f32 %v14744_v52, %v5050_v46  ;;  %v19082_v20 = vld [vmem:[#allocation179_spill] sm:$0xff]  ;;  %v15884_v45 = vld [vmem:[%s17564_s8 + $0x8] sm:$0xff] }
 0x79b   :  { %5854 = vmatpush.msrb.mxu1 %v19061_v22  ;;  %5740 = vmatpush.msra.mxu2 %v19063_v63  ;;  %v5093_v35 = vadd.f32 %v4993_v56, %v4524_v58  ;;  %v19072_v58 = vld [vmem:[#allocation102_spill] sm:$0xff]  ;;  %v15647_v56 = vadd.f32 %v14732_v6, %v5057_v19  ;;  %v5043_v39 = vadd.f32 %v15260_v2, %v4444_v29  ;;  %v19074_v19 = vld [vmem:[#allocation147_spill] sm:$0xff]  ;;  %v19079_v46 = vmax.f32 %v15471_v17, 0.0 }
 0x79c   :  { %v4512_v22 = vadd.f32 %v19072_v58, %v19071_v9  ;;  %5596 = vmatpush.msra.mxu3 %v5358_v30  ;;  %v5072_v62 = vadd.f32 %v15497_v37, %v4515_v61  ;;  %v15658_v63 = vadd.f32 %v14696_v24, %v5086_v13  ;;  %v19075_v4 = vmax.f32 %v19074_v19, 0.0  ;;  %v19078_v2 = vld [vmem:[#allocation15_spill] sm:$0xff]  ;;  %v19080_v29 = vld [vmem:[#allocation158_spill] sm:$0xff] }
 0x79d   :  { %5855 = vmatpush.msrb.mxu1 %v19068_v31  ;;  %5741 = vmatpush.msra.mxu2 %v19070_v3  ;;  %v15650_v28 = vadd.f32 %v14692_v59, %v5093_v35  ;;  %v19076_v59 = vld [vmem:[#allocation183_spill] sm:$0xff]  ;;  %v19077_v35 = vld [vmem:[#allocation46_spill] sm:$0xff]  ;;  %v5344_v24 = vmax.f32 %v15631_v11, 0.0  ;;  %v5036_v14 = vadd.f32 %v19078_v2, %v4441_v55  ;;  %v15678_v13 = vadd.f32 %v14706_v38, %v5079_v7  ;;  %v19083_v3 = vld [vmem:[#allocation12_spill] sm:$0xff] }
 0x79e   :  { %v4438_v41 = vadd.f32 %v19077_v35, %v19076_v59  ;;  %7883 = vmatmul.msk.f32.gmra.mxu1 %vm2195_vm4, %v15215_v1  ;;  %5597 = vmatpush.msra.mxu3 %v5351_v12  ;;  %v5065_v37 = vadd.f32 %v15447_v50, %v4512_v22  ;;  %v19081_v61 = vmax.f32 %v19080_v29, 0.0  ;;  %v4426_v9 = vadd.f32 %v19083_v3, %v19082_v20  ;;  %v19084_v58 = vld [vmem:[#allocation79_spill] sm:$0xff]  ;;  %v19087_v59 = vld [vmem:[#allocation105_spill] sm:$0xff]  ;;  %v19088_v50 = vld [vmem:[#allocation112_spill] sm:$0xff] }
 0x79f   :  { %5856 = vmatpush.msrb.mxu1 %v19073_v23  ;;  %5742 = vmatpush.msra.mxu2 %v19075_v4  ;;  %v5373_v31 = vmax.f32 %v15650_v28, 0.0  ;;  %v19085_v23 = vld [vmem:[#allocation119_spill] sm:$0xff]  ;;  %v5337_v38 = vmax.f32 %v15647_v56, 0.0  ;;  %v15697_v7 = vadd.f32 %v14756_v40, %v5043_v39  ;;  %v15700_v22 = vadd.f32 %v14710_v25, %v5072_v62  ;;  %v19092_v20 = vld [vmem:[#allocation169_spill] sm:$0xff] }
 0x7a0   :  { %v4435_v19 = vadd.f32 %v19085_v23, %v19084_v58  ;;  %v19086_v4 = vld [vmem:[#allocation167_spill] sm:$0xff]  ;;  %5598 = vmatpush.msra.mxu3 %v5344_v24  ;;  %v5029_v17 = vadd.f32 %v19088_v50, %v4438_v41  ;;  %v19089_v35 = vmax.f32 %v15484_v36, 0.0  ;;  %v5366_v2 = vmax.f32 %v15658_v63, 0.0  ;;  %v19094_v58 = vld [vmem:[#allocation161_spill] sm:$0xff]  ;;  %v19098_v50 = vld [vmem:[#allocation38_spill] sm:$0xff] }
 0x7a1   :  { %5857 = vmatpush.msrb.mxu1 %v19079_v46  ;;  %5743 = vmatpush.msra.mxu2 %v19081_v61  ;;  %v4509_v55 = vadd.f32 %v19087_v59, %v19086_v4  ;;  %v19090_v46 = vld [vmem:[#allocation83_spill] sm:$0xff]  ;;  %v19095_v23 = vmax.f32 %v19094_v58, 0.0  ;;  %v5330_v25 = vmax.f32 %v15667_v16, 0.0  ;;  %v19096_v36 = vld [vmem:[#allocation125_spill] sm:$0xff]  ;;  %v15719_v4 = vadd.f32 %v14793_v18, %v5036_v14  ;;  %v8213_v16 = vld [vmem:[%s17563_s7 + $0x8] sm:$0xff] }
 0x7a2   :  { %5632 = vmatpush.msra.mxu0 %v5373_v31  ;;  %7887 = vmatmul.msk.f32.gmra.mxu2 %vm2195_vm4, %v15042_v15  ;;  %v19091_v29 = vld [vmem:[#allocation63_spill] sm:$0xff]  ;;  %v5022_v62 = vadd.f32 %v19096_v36, %v4435_v19  ;;  %v15722_v59 = vadd.f32 %v14714_v60, %v5065_v37  ;;  %v19104_v60 = vld [vmem:[#allocation52_spill] sm:$0xff]  ;;  %v5323_v36 = vmax.f32 %v15697_v7, 0.0  ;;  %v15929_v56 = vld [vmem:[%s17564_s8 + $0x10] sm:$0xff] }
 0x7a3   :  { %5858 = vmatpush.msrb.mxu1 %v19089_v35  ;;  %v4432_v61 = vadd.f32 %v19091_v29, %v19090_v46  ;;  %v19093_v3 = vld [vmem:[#allocation55_spill] sm:$0xff]  ;;  %v5058_v39 = vadd.f32 %v15397_v10, %v4509_v55  ;;  %5744 = vmatpush.msra.mxu2 %v19095_v23  ;;  %v19097_v10 = vmax.f32 %v15495_v44, 0.0  ;;  %v5359_v55 = vmax.f32 %v15678_v13, 0.0  ;;  %v19099_v35 = vld [vmem:[#allocation49_spill] sm:$0xff] }
 0x7a4   :  { %v4506_v41 = vadd.f32 %v19093_v3, %v19092_v20  ;;  %5599 = vmatpush.msra.mxu3 %v5337_v38  ;;  %5633 = vmatpush.msra.mxu0 %v5366_v2  ;;  %v4429_v46 = vadd.f32 %v19099_v35, %v19098_v50  ;;  %v19100_v29 = vld [vmem:[#allocation171_spill] sm:$0xff]  ;;  %v19101_v20 = vld [vmem:[#allocation25_spill] sm:$0xff]  ;;  %v19102_v3 = vld [vmem:[#allocation152_spill] sm:$0xff]  ;;  %v15740_v44 = vadd.f32 %v14808_v8, %v5029_v17  ;;  %v19105_v23 = vmax.f32 %v15508_v51, 0.0 }
 0x7a5   :  { %5859 = vmatpush.msrb.mxu1 %v19097_v10  ;;  %v4503_v19 = vadd.f32 %v19101_v20, %v19100_v29  ;;  %v19103_v58 = vmax.f32 %v19102_v3, 0.0  ;;  %v5015_v37 = vadd.f32 %v19104_v60, %v4432_v61  ;;  %v19107_v10 = vld [vmem:[#allocation39_spill] sm:$0xff]  ;;  %v15752_v61 = vadd.f32 %v14732_v6, %v5058_v39  ;;  %v19109_v17 = vld [vmem:[#allocation97_spill] sm:$0xff]  ;;  %v19111_v51 = vld [vmem:[#allocation36_spill] sm:$0xff] }
 0x7a6   :  { %v5051_v14 = vadd.f32 %v15350_v21, %v4506_v41  ;;  %5600 = vmatpush.msra.mxu3 %v5330_v25  ;;  %5634 = vmatpush.msra.mxu0 %v5359_v55  ;;  %v17880_v21 = vmax.f32 %v15700_v22, 0.0  ;;  %v19106_v41 = vld [vmem:[#allocation24_spill] sm:$0xff]  ;;  %v19108_v35 = vld [vmem:[#allocation131_spill] sm:$0xff]  ;;  %v19110_v20 = vmax.f32 %v19109_v17, 0.0  ;;  %v5008_v3 = vadd.f32 %v19111_v51, %v4429_v46  ;;  %v19113_v60 = vld [vmem:[#allocation121_spill] sm:$0xff] }
 0x7a7   :  { %5745 = vmatpush.msra.mxu2 %v19103_v58  ;;  %5860 = vmatpush.msrb.mxu1 %v19105_v23  ;;  %v4500_v50 = vadd.f32 %v19107_v10, %v19106_v41  ;;  %v5044_v29 = vadd.f32 %v19108_v35, %v4503_v19  ;;  %v15760_v58 = vadd.f32 %v14821_v53, %v5022_v62  ;;  %v5316_v6 = vmax.f32 %v15719_v4, 0.0  ;;  %v19112_v19 = vld [vmem:[#allocation73_spill] sm:$0xff]  ;;  %v19116_v35 = vld [vmem:[#allocation128_spill] sm:$0xff] }
 0x7a8   :  { %7884 = vmatmul.msk.f32.gmra.mxu1 %vm2195_vm4, %v15236_v57  ;;  %5601 = vmatpush.msra.mxu3 %v5323_v36  ;;  %v5345_v39 = vmax.f32 %v15722_v59, 0.0  ;;  %v4497_v23 = vadd.f32 %v19113_v60, %v19112_v19  ;;  %v19114_v41 = vld [vmem:[#allocation185_spill] sm:$0xff]  ;;  %v15772_v46 = vadd.f32 %v14744_v52, %v5051_v14  ;;  %v19115_v62 = vmax.f32 %v15519_v42, 0.0  ;;  %v19119_v14 = vld [vmem:[#allocation76_spill] sm:$0xff]  ;;  %v19121_v19 = vld [vmem:[#allocation150_spill] sm:$0xff] }
 0x7a9   :  { %5746 = vmatpush.msra.mxu2 %v19110_v20  ;;  %5635 = vmatpush.msra.mxu0 %v17880_v21  ;;  %v5037_v10 = vadd.f32 %v19114_v41, %v4500_v50  ;;  %v19117_v17 = vmax.f32 %v19116_v35, 0.0  ;;  %v19118_v20 = vld [vmem:[#allocation65_spill] sm:$0xff]  ;;  %v15780_v21 = vadd.f32 %v14848_v48, %v5015_v37  ;;  %v5309_v52 = vmax.f32 %v15740_v44, 0.0  ;;  %v19120_v50 = vld [vmem:[#allocation108_spill] sm:$0xff]  ;;  %v19123_v35 = vld [vmem:[#allocation154_spill] sm:$0xff] }
 0x7aa   :  { %5861 = vmatpush.msrb.mxu1 %v19115_v62  ;;  %v5001_v51 = vadd.f32 %v19118_v20, %v4426_v9  ;;  %5602 = vmatpush.msra.mxu3 %v5316_v6  ;;  %v4494_v42 = vadd.f32 %v19120_v50, %v19119_v14  ;;  %v5030_v60 = vadd.f32 %v19121_v19, %v4497_v23  ;;  %v19122_v9 = vmax.f32 %v15529_v47, 0.0  ;;  %v19126_v23 = vld [vmem:[#allocation53_spill] sm:$0xff]  ;;  %v19127_v20 = vld [vmem:[#allocation156_spill] sm:$0xff]  ;;  %v15969_v44 = vld [vmem:[%s17564_s8 + $0x18] sm:$0xff] }
 0x7ab   :  { %5747 = vmatpush.msra.mxu2 %v19117_v17  ;;  %5636 = vmatpush.msra.mxu0 %v5345_v39  ;;  %v15791_v41 = vadd.f32 %v14756_v40, %v5044_v29  ;;  %v17881_v37 = vmax.f32 %v15752_v61, 0.0  ;;  %v15799_v62 = vadd.f32 %v14859_v27, %v5008_v3  ;;  %v19124_v17 = vmax.f32 %v19123_v35, 0.0  ;;  %v19125_v29 = vld [vmem:[#allocation87_spill] sm:$0xff]  ;;  %v15822_v35 = vpop.f32.mrf.mxu3  ;;  %v19190_v63 = vld [vmem:[#allocation41_spill] sm:$0xff] }
 0x7ac   :  { %5862 = vmatpush.msrb.mxu1 %v19122_v9  ;;  %7888 = vmatmul.msk.f32.gmra.mxu2 %vm2195_vm4, %v15124_v54  ;;  %v5302_v40 = vmax.f32 %v15760_v58, 0.0  ;;  %v4491_v47 = vadd.f32 %v19126_v23, %v19125_v29  ;;  %v5023_v14 = vadd.f32 %v19127_v20, %v4494_v42  ;;  %v15810_v50 = vadd.f32 %v14793_v18, %v5037_v10  ;;  %v15820_v9 = vld [vmem:[%s17564_s8] sm:$0xff]  ;;  %v19129_v18 = vld [vmem:[#allocation81_spill] sm:$0xff]  ;;  %v19132_v29 = vld [vmem:[#allocation116_spill] sm:$0xff] }
 0x7ad   :  { %5748 = vmatpush.msra.mxu2 %v19124_v17  ;;  %5603 = vmatpush.msra.mxu3 %v5309_v52  ;;  %v19128_v3 = vmax.f32 %v15537_v33, 0.0  ;;  %v5331_v19 = vmax.f32 %v15772_v46, 0.0  ;;  %v15825_v42 = vadd.f32 %v14868_v34, %v5001_v51  ;;  %v19130_v10 = vmax.f32 %v19129_v18, 0.0  ;;  %v19131_v17 = vld [vmem:[#allocation153_spill] sm:$0xff]  ;;  %v19133_v20 = vld [vmem:[#allocation164_spill] sm:$0xff]  ;;  %v19162_v58 = vld [vmem:[#allocation58_spill] sm:$0xff] }
 0x7ae   :  { %5637 = vmatpush.msra.mxu0 %v17881_v37  ;;  %v5295_v33 = vmax.f32 %v15780_v21, 0.0  ;;  %v4488_v23 = vadd.f32 %v19132_v29, %v19131_v17  ;;  %v15836_v37 = vadd.f32 %v14808_v8, %v5030_v60  ;;  %v5324_v51 = vmax.f32 %v15791_v41, 0.0  ;;  %v19136_v60 = vld [vmem:[#allocation47_spill] sm:$0xff]  ;;  %v19166_v21 = vld [vmem:[#allocation56_spill] sm:$0xff] }
 0x7af   :  { %5863 = vmatpush.msrb.mxu1 %v19128_v3  ;;  %5749 = vmatpush.msra.mxu2 %v19130_v10  ;;  %v5016_v3 = vadd.f32 %v19133_v20, %v4491_v47  ;;  %v5288_v18 = vmax.f32 %v15799_v62, 0.0  ;;  %v19134_v47 = vld [vmem:[#allocation113_spill] sm:$0xff]  ;;  %v15850_v8 = vadd.f32 %v14821_v53, %v5023_v14  ;;  %v5317_v5 = vmax.f32 %v15810_v50, 0.0 }
 0x7b0   :  { %5604 = vmatpush.msra.mxu3 %v5302_v40  ;;  %5638 = vmatpush.msra.mxu0 %v5331_v19  ;;  %v5009_v10 = vadd.f32 %v19134_v47, %v4488_v23  ;;  %v5281_v29 = vmax.f32 %v15825_v42, 0.0  ;;  %v5310_v53 = vmax.f32 %v15836_v37, 0.0 }
 0x7b1   :  { %5888 = vmatpush.msrb.mxu2 %v5372_v49  ;;  %7906 = vmatmul.msk.f32.vlgmr.msra.gmra.mxu1 %vm2195_vm4, %v15820_v9  ;;  %v19135_v49 = vld [vmem:[#allocation94_spill] sm:$0xff]  ;;  %v15863_v23 = vadd.f32 %v14848_v48, %v5016_v3  ;;  %v5303_v48 = vmax.f32 %v15850_v8, 0.0  ;;  %v19140_v3 = vld [vmem:[#allocation155_spill] sm:$0xff] }
 0x7b2   :  { %5605 = vmatpush.msra.mxu3 %v5295_v33  ;;  %5639 = vmatpush.msra.mxu0 %v5324_v51  ;;  %v4485_v17 = vadd.f32 %v19136_v60, %v19135_v49  ;;  %v15874_v14 = vadd.f32 %v14859_v27, %v5009_v10  ;;  %v19138_v27 = vld [vmem:[#allocation16_spill] sm:$0xff]  ;;  %v19141_v47 = vmax.f32 %v19140_v3, 0.0  ;;  %v19142_v49 = vld [vmem:[#allocation45_spill] sm:$0xff] }
 0x7b3   :  { %5889 = vmatpush.msrb.mxu2 %v5365_v0  ;;  %v19139_v42 = vmax.f32 %v19138_v27, 0.0  ;;  %v5296_v43 = vmax.f32 %v15863_v23, 0.0  ;;  %v19152_v27 = vld [vmem:[#allocation85_spill] sm:$0xff] }
 0x7b4   :  { %5606 = vmatpush.msra.mxu3 %v5288_v18  ;;  %5640 = vmatpush.msra.mxu0 %v5317_v5  ;;  %v5002_v0 = vadd.f32 %v19137_v32, %v4485_v17  ;;  %v5289_v10 = vmax.f32 %v15874_v14, 0.0  ;;  %v19148_v17 = vld [vmem:[#allocation64_spill] sm:$0xff] }
 0x7b5   :  { %5890 = vmatpush.msrb.mxu2 %v5358_v30  ;;  %v8212_v30 = vld [vmem:[%s17563_s7] sm:$0xff]  ;;  %v19149_v32 = vmax.f32 %v19148_v17, 0.0 }
 0x7b6   :  { %7889 = vmatmul.msk.f32.gmra.mxu2 %vm2195_vm4, %v15186_v26  ;;  %5607 = vmatpush.msra.mxu3 %v5281_v29  ;;  %v15898_v20 = vadd.f32 %v14868_v34, %v5002_v0  ;;  %v19143_v34 = vmax.f32 %v19142_v49, 0.0 }
 0x7b7   :  { %5641 = vmatpush.msra.mxu0 %v5310_v53  ;;  %5891 = vmatpush.msrb.mxu2 %v5351_v12  ;;  %v15895_v12 = vpop.f32.mrf.mxu3 }
 0x7b8   :  { %7892 = vmatmul.msk.f32.vlgmr.msra.gmra.mxu3 %vm2195_vm4, %v8212_v30  ;;  %v5282_v11 = vmax.f32 %v15898_v20, 0.0 }
 0x7b9   :  { %5774 = vmatpush.msrb.mxu3 %v19139_v42  ;;  %5642 = vmatpush.msra.mxu0 %v5303_v48  ;;  %v19153_v42 = vmax.f32 %v19152_v27, 0.0  ;;  %v19176_v27 = vld [vmem:[#allocation166_spill] sm:$0xff] }
 0x7ba   :  { %5892 = vmatpush.msrb.mxu2 %v5344_v24  ;;  %7907 = vmatmul.msk.f32.gmra.mxu1 %vm2195_vm4, %v15884_v45  ;;  %v19144_v24 = vld [vmem:[#allocation20_spill] sm:$0xff] }
 0x7bb   :  { %5775 = vmatpush.msrb.mxu3 %v19141_v47  ;;  %5643 = vmatpush.msra.mxu0 %v5296_v43  ;;  %v19145_v60 = vmax.f32 %v19144_v24, 0.0  ;;  %v19156_v47 = vld [vmem:[#allocation10_spill] sm:$0xff] }
 0x7bc   :  { %5893 = vmatpush.msrb.mxu2 %v5337_v38  ;;  %v19146_v38 = vld [vmem:[#allocation124_spill] sm:$0xff]  ;;  %v19157_v4 = vmax.f32 %v19156_v47, 0.0 }
 0x7bd   :  { %5776 = vmatpush.msrb.mxu3 %v19143_v34  ;;  %5644 = vmatpush.msra.mxu0 %v5289_v10  ;;  %v19160_v34 = vld [vmem:[#allocation139_spill] sm:$0xff] }
 0x7be   :  { %5894 = vmatpush.msrb.mxu2 %v5330_v25  ;;  %v19147_v25 = vmax.f32 %v19146_v38, 0.0  ;;  %v19161_v24 = vmax.f32 %v19160_v34, 0.0  ;;  %v19168_v38 = vld [vmem:[#allocation51_spill] sm:$0xff] }
 0x7bf   :  { %7890 = vmatmul.msk.f32.gmra.mxu2 %vm2195_vm4, %v15215_v1  ;;  %5777 = vmatpush.msrb.mxu3 %v19145_v60  ;;  %v15944_v7 = vpop.f32.mrf.mxu3 }
 0x7c0   :  { %5645 = vmatpush.msra.mxu0 %v5282_v11  ;;  %5895 = vmatpush.msrb.mxu2 %v5323_v36  ;;  %v19150_v36 = vld [vmem:[#allocation145_spill] sm:$0xff] }
 0x7c1   :  { %7893 = vmatmul.msk.f32.gmra.mxu3 %vm2195_vm4, %v8213_v16  ;;  %7899 = vmatmul.msk.f32.vlgmr.msra.gmra.mxu0 %vm2195_vm4, %v8212_v30  ;;  %v19151_v0 = vmax.f32 %v19150_v36, 0.0  ;;  %v19154_v30 = vld [vmem:[#allocation172_spill] sm:$0xff] }
 0x7c2   :  { %5778 = vmatpush.msrb.mxu3 %v19147_v25  ;;  %5812 = vmatpush.msrb.mxu0 %v19149_v32  ;;  %v19155_v3 = vmax.f32 %v19154_v30, 0.0  ;;  %v19169_v25 = vmax.f32 %v19168_v38, 0.0  ;;  %v19172_v32 = vld [vmem:[#allocation92_spill] sm:$0xff]  ;;  %v8214_v30 = vld [vmem:[%s17563_s7 + $0x10] sm:$0xff] }
 0x7c3   :  { %5896 = vmatpush.msrb.mxu2 %v5316_v6  ;;  %7908 = vmatmul.msk.f32.gmra.mxu1 %vm2195_vm4, %v15929_v56  ;;  %v19158_v6 = vld [vmem:[#allocation96_spill] sm:$0xff]  ;;  %v19173_v36 = vmax.f32 %v19172_v32, 0.0 }
 0x7c4   :  { %5779 = vmatpush.msrb.mxu3 %v19151_v0  ;;  %5813 = vmatpush.msrb.mxu0 %v19153_v42  ;;  %v19159_v49 = vmax.f32 %v19158_v6, 0.0  ;;  %v19177_v42 = vmax.f32 %v19176_v27, 0.0  ;;  %v16036_v38 = vld [vmem:[%s17564_s8 + $0x28] sm:$0xff] }
 0x7c5   :  { %5897 = vmatpush.msrb.mxu2 %v5309_v52  ;;  %v19163_v52 = vmax.f32 %v19162_v58, 0.0 }
 0x7c6   :  { %5780 = vmatpush.msrb.mxu3 %v19155_v3  ;;  %5814 = vmatpush.msrb.mxu0 %v19157_v4  ;;  %v19178_v3 = vld [vmem:[#allocation22_spill] sm:$0xff]  ;;  %v19180_v4 = vld [vmem:[#allocation77_spill] sm:$0xff] }
 0x7c7   :  { %5898 = vmatpush.msrb.mxu2 %v5302_v40  ;;  %v19164_v40 = vld [vmem:[#allocation93_spill] sm:$0xff]  ;;  %v15994_v62 = vpop.f32.mrf.mxu2  ;;  %v19179_v47 = vmax.f32 %v19178_v3, 0.0  ;;  %v19181_v6 = vmax.f32 %v19180_v4, 0.0 }
 0x7c8   :  { %7891 = vmatmul.msk.f32.gmra.mxu2 %vm2195_vm4, %v15236_v57  ;;  %5781 = vmatpush.msrb.mxu3 %v19159_v49  ;;  %v19165_v60 = vmax.f32 %v19164_v40, 0.0  ;;  %v19182_v49 = vld [vmem:[#allocation60_spill] sm:$0xff] }
 0x7c9   :  { %5815 = vmatpush.msrb.mxu0 %v19161_v24  ;;  %5899 = vmatpush.msrb.mxu2 %v5295_v33  ;;  %v19167_v33 = vmax.f32 %v19166_v21, 0.0  ;;  %v19183_v34 = vmax.f32 %v19182_v49, 0.0  ;;  %v19184_v24 = vld [vmem:[#allocation138_spill] sm:$0xff] }
 0x7ca   :  { %7894 = vmatmul.msk.f32.gmra.mxu3 %vm2195_vm4, %v15042_v15  ;;  %7900 = vmatmul.msk.f32.gmra.mxu0 %vm2195_vm4, %v8213_v16  ;;  %v15986_v15 = vpop.f32.mrf.mxu3  ;;  %v19170_v16 = vld [vmem:[#allocation34_spill] sm:$0xff]  ;;  %v19185_v58 = vmax.f32 %v19184_v24, 0.0 }
 0x7cb   :  { %5782 = vmatpush.msrb.mxu3 %v19163_v52  ;;  %5816 = vmatpush.msrb.mxu0 %v19165_v60  ;;  %v19171_v17 = vmax.f32 %v19170_v16, 0.0  ;;  %v19186_v52 = vld [vmem:[#allocation6_spill] sm:$0xff] }
 0x7cc   :  { %5900 = vmatpush.msrb.mxu2 %v5288_v18  ;;  %7909 = vmatmul.msk.f32.gmra.mxu1 %vm2195_vm4, %v15969_v44  ;;  %v19174_v18 = vld [vmem:[#allocation8_spill] sm:$0xff]  ;;  %v19187_v40 = vmax.f32 %v19186_v52, 0.0  ;;  %v19188_v21 = vld [vmem:[#allocation18_spill] sm:$0xff] }
 0x7cd   :  { %5783 = vmatpush.msrb.mxu3 %v19167_v33  ;;  %5817 = vmatpush.msrb.mxu0 %v19169_v25  ;;  %v19175_v0 = vmax.f32 %v19174_v18, 0.0  ;;  %v19189_v33 = vmax.f32 %v19188_v21, 0.0  ;;  %v19193_v25 = vld [vmem:[#allocation101_spill] sm:$0xff] }
 0x7ce   :  { %5901 = vmatpush.msrb.mxu2 %v5281_v29  ;;  %v16003_v29 = vld [vmem:[%s17564_s8 + $0x20] sm:$0xff]  ;;  %v19194_v13 = vmax.f32 %v19193_v25, 0.0 }
 0x7cf   :  { %5784 = vmatpush.msrb.mxu3 %v19171_v17  ;;  %5818 = vmatpush.msrb.mxu0 %v19173_v36  ;;  %v16042_v28 = vpop.f32.mrf.mxu2 }
 0x7d0   :  { %7913 = vmatmul.msk.f32.vlgmr.msra.gmra.mxu2 %vm2195_vm4, %v15820_v9 }
 0x7d1   :  { %5785 = vmatpush.msrb.mxu3 %v19175_v0  ;;  %5819 = vmatpush.msrb.mxu0 %v19177_v42 }
 0x7d2   :  { %7895 = vmatmul.msk.f32.gmra.mxu3 %vm2195_vm4, %v15124_v54  ;;  %7901 = vmatmul.msk.f32.gmra.mxu0 %vm2195_vm4, %v8214_v30  ;;  %v16025_v60 = vpop.f32.mrf.mxu3 }
 0x7d3   :  { %5786 = vmatpush.msrb.mxu3 %v19179_v47  ;;  %5820 = vmatpush.msrb.mxu0 %v19181_v6 }
 0x7d4   :  { %7910 = vmatmul.msk.f32.gmra.mxu1 %vm2195_vm4, %v16003_v29 }
 0x7d5   :  { %5787 = vmatpush.msrb.mxu3 %v19183_v34  ;;  %5821 = vmatpush.msrb.mxu0 %v19185_v58 }
 0x7d7   :  { %5926 = vmatpush.msra.mxu3 %v5373_v31  ;;  %5822 = vmatpush.msrb.mxu0 %v19187_v40  ;;  %v19191_v31 = vmax.f32 %v19190_v63, 0.0  ;;  %v16077_v59 = vpop.f32.mrf.mxu2 }
 0x7d8   :  { %7914 = vmatmul.msk.f32.gmra.mxu2 %vm2195_vm4, %v15884_v45 }
 0x7d9   :  { %5927 = vmatpush.msra.mxu3 %v5366_v2  ;;  %5823 = vmatpush.msrb.mxu0 %v19189_v33  ;;  %v19192_v2 = vmax.f32 %v15700_v22, 0.0  ;;  %v16063_v22 = vld [vmem:[%s17564_s8 + $0x30] sm:$0xff]  ;;  %s8247_s8 = smov 120  }
 0x7da   :  { %7902 = vmatmul.msk.f32.gmra.mxu0 %vm2195_vm4, %v15124_v54  ;;  %7896 = vmatmul.msk.f32.gmra.mxu3 %vm2195_vm4, %v15186_v26  ;;  %v19195_v54 = vmax.f32 %v15752_v61, 0.0 }
 0x7db   :  { %5928 = vmatpush.msra.mxu3 %v5359_v55  ;;  %5824 = vmatpush.msrb.mxu0 %v19191_v31  ;;  %v16065_v55 = vpop.f32.mrf.mxu3 }
 0x7dc   :  { %7911 = vmatmul.msk.f32.gmra.mxu1 %vm2195_vm4, %v16036_v38 }
 0x7dd   :  { %5929 = vmatpush.msra.mxu3 %v19192_v2  ;;  %5825 = vmatpush.msrb.mxu0 %v19194_v13 }
 0x7df   :  { %5930 = vmatpush.msra.mxu3 %v5345_v39  ;;  %v16099_v61 = vpop.f32.mrf.mxu2 }
 0x7e0   :  { %7915 = vmatmul.msk.f32.gmra.mxu2 %vm2195_vm4, %v15929_v56 }
 0x7e1   :  { %5931 = vmatpush.msra.mxu3 %v19195_v54 }
 0x7e2   :  { %7903 = vmatmul.msk.f32.gmra.mxu0 %vm2195_vm4, %v15186_v26  ;;  %7897 = vmatmul.msk.f32.gmra.mxu3 %vm2195_vm4, %v15215_v1 }
 0x7e3   :  { %5932 = vmatpush.msra.mxu3 %v5331_v19  ;;  %v16091_v26 = vpop.f32.mrf.mxu3 }
 0x7e4   :  { %7912 = vmatmul.msk.f32.gmra.mxu1 %vm2195_vm4, %v16063_v22 }
 0x7e5   :  { %5933 = vmatpush.msra.mxu3 %v5324_v51 }
 0x7e7   :  { %5934 = vmatpush.msra.mxu3 %v5317_v5  ;;  %v16115_v39 = vpop.f32.mrf.mxu2 }
 0x7e8   :  { %7916 = vmatmul.msk.f32.gmra.mxu2 %vm2195_vm4, %v15969_v44 }
 0x7e9   :  { %5935 = vmatpush.msra.mxu3 %v5310_v53 }
 0x7ea   :  { %7904 = vmatmul.msk.f32.gmra.mxu0 %vm2195_vm4, %v15215_v1  ;;  %7898 = vmatmul.msk.f32.gmra.mxu3 %vm2195_vm4, %v15236_v57 }
 0x7eb   :  { %5936 = vmatpush.msra.mxu3 %v5303_v48  ;;  %v16111_v1 = vpop.f32.mrf.mxu3 }
 0x7ec   :  { %7934 = vmatmul.msk.f32.vlgmr.msrb.gmra.mxu1 %vm2195_vm4, %v15820_v9 }
 0x7ed   :  { %5937 = vmatpush.msra.mxu3 %v5296_v43 }
 0x7ef   :  { %5938 = vmatpush.msra.mxu3 %v5289_v10  ;;  %v16131_v41 = vpop.f32.mrf.mxu2 }
 0x7f0   :  { %7917 = vmatmul.msk.f32.gmra.mxu2 %vm2195_vm4, %v16003_v29 }
 0x7f1   :  { %5939 = vmatpush.msra.mxu3 %v5282_v11 }
 0x7f2   :  { %7905 = vmatmul.msk.f32.gmra.mxu0 %vm2195_vm4, %v15236_v57  ;;  %7920 = vmatmul.msk.f32.vlgmr.msrb.gmra.mxu3 %vm2195_vm4, %v15820_v9 }
 0x7f3   :  { %v16123_v57 = vpop.f32.mrf.mxu3  ;;  %v16127_v46 = vpop.f32.mrf.mxu1 }
 0x7f4   :  { %7935 = vmatmul.msk.f32.gmra.mxu1 %vm2195_vm4, %v15884_v45 }
 0x7f7   :  { %v16149_v19 = vpop.f32.mrf.mxu2 }
 0x7f8   :  { %7918 = vmatmul.msk.f32.gmra.mxu2 %vm2195_vm4, %v16036_v38 }
 0x7fa   :  { %7927 = vmatmul.msk.f32.vlgmr.msrb.gmra.mxu0 %vm2195_vm4, %v15820_v9  ;;  %7921 = vmatmul.msk.f32.gmra.mxu3 %vm2195_vm4, %v15884_v45 }
 0x7fb   :  { %v16139_v37 = vpop.f32.mrf.mxu3  ;;  %v16143_v50 = vpop.f32.mrf.mxu1 }
 0x7fc   :  { %7936 = vmatmul.msk.f32.gmra.mxu1 %vm2195_vm4, %v15929_v56 }
 0x800   :  { %7919 = vmatmul.msk.f32.gmra.mxu2 %vm2195_vm4, %v16063_v22 }
 0x802   :  { %7928 = vmatmul.msk.f32.gmra.mxu0 %vm2195_vm4, %v15884_v45  ;;  %7922 = vmatmul.msk.f32.gmra.mxu3 %vm2195_vm4, %v15929_v56 }
 0x803   :  { %v16157_v51 = vpop.f32.mrf.mxu3  ;;  %v16161_v8 = vpop.f32.mrf.mxu1 }
 0x804   :  { %7937 = vmatmul.msk.f32.gmra.mxu1 %vm2195_vm4, %v15969_v44 }
 0x808   :  { %7941 = vmatmul.msk.f32.vlgmr.msrb.gmra.mxu2 %vm2195_vm4, %v15820_v9 }
 0x80a   :  { %7929 = vmatmul.msk.f32.gmra.mxu0 %vm2195_vm4, %v15929_v56  ;;  %7923 = vmatmul.msk.f32.gmra.mxu3 %vm2195_vm4, %v15969_v44 }
 0x80b   :  { %v16173_v23 = vpop.f32.mrf.mxu3  ;;  %v16177_v14 = vpop.f32.mrf.mxu1 }
 0x80c   :  { %7938 = vmatmul.msk.f32.gmra.mxu1 %vm2195_vm4, %v16003_v29 }
 0x810   :  { %7942 = vmatmul.msk.f32.gmra.mxu2 %vm2195_vm4, %v15884_v45 }
 0x812   :  { %7930 = vmatmul.msk.f32.gmra.mxu0 %vm2195_vm4, %v15969_v44  ;;  %7924 = vmatmul.msk.f32.gmra.mxu3 %vm2195_vm4, %v16003_v29 }
 0x813   :  { %v16163_v5 = vpop.f32.mrf.mxu2  ;;  %v16187_v43 = vpop.f32.mrf.mxu3 }
 0x814   :  { %7939 = vmatmul.msk.f32.gmra.mxu1 %vm2195_vm4, %v16036_v38  ;;  %v16191_v20 = vpop.f32.mrf.mxu1 }
 0x818   :  { %7943 = vmatmul.msk.f32.gmra.mxu2 %vm2195_vm4, %v15929_v56 }
 0x81a   :  { %7931 = vmatmul.msk.f32.gmra.mxu0 %vm2195_vm4, %v16003_v29  ;;  %7925 = vmatmul.msk.f32.gmra.mxu3 %vm2195_vm4, %v16036_v38 }
 0x81b   :  { %v16201_v11 = vpop.f32.mrf.mxu3 }
 0x81c   :  { %7940 = vmatmul.msk.f32.gmra.mxu1 %vm2195_vm4, %v16063_v22  ;;  %v16175_v53 = vpop.f32.mrf.mxu2  ;;  %v16203_v16 = vpop.f32.mrf.mxu1 }
 0x81d   :  { %19196 = vst [vmem:[#allocation98_spill] sm:$0xff] %v16175_v53 }
 0x820   :  { %7944 = vmatmul.msk.f32.gmra.mxu2 %vm2195_vm4, %v15969_v44 }
 0x822   :  { %7932 = vmatmul.msk.f32.gmra.mxu0 %vm2195_vm4, %v16036_v38  ;;  %7926 = vmatmul.msk.f32.gmra.mxu3 %vm2195_vm4, %v16063_v22 }
 0x825   :  { %v16185_v48 = vpop.f32.mrf.mxu2  ;;  %v16215_v32 = vpop.f32.mrf.mxu1 }
 0x828   :  { %7945 = vmatmul.msk.f32.gmra.mxu2 %vm2195_vm4, %v16003_v29 }
 0x82a   :  { %7933 = vmatmul.msk.f32.gmra.mxu0 %vm2195_vm4, %v16063_v22  ;;  %7948 = vmatmul.msk.f32.vlgmr.msra.gmra.mxu3 %vm2195_vm4, %v15820_v9 }
 0x82e   :  { %v16225_v0 = vpop.f32.mrf.mxu1 }
 0x82f   :  { %v16199_v10 = vpop.f32.mrf.mxu2 }
 0x830   :  { %7946 = vmatmul.msk.f32.gmra.mxu2 %vm2195_vm4, %v16036_v38 }
 0x832   :  { %7949 = vmatmul.msk.f32.gmra.mxu3 %vm2195_vm4, %v15884_v45 }
 0x837   :  { %v16237_v3 = vpop.f32.mrf.mxu1 }
 0x838   :  { %7947 = vmatmul.msk.f32.gmra.mxu2 %vm2195_vm4, %v16063_v22 }
 0x839   :  { %v16209_v17 = vpop.f32.mrf.mxu2 }
 0x83a   :  { %7950 = vmatmul.msk.f32.gmra.mxu3 %vm2195_vm4, %v15929_v56 }
 0x83b   :  { %v16213_v9 = vpop.f32.mrf.mxu3 }
 0x83c   :  { %19197 = vst [vmem:[#allocation44_spill] sm:$0xff] %v16213_v9 }
 0x83e   :  { %v16217_v36 = vpop.f32.mrf.mxu0 }
 0x840   :  { %v16247_v6 = vpop.f32.mrf.mxu1 }
 0x842   :  { %v16219_v18 = vpop.f32.mrf.mxu2  ;;  %7951 = vmatmul.msk.f32.gmra.mxu3 %vm2195_vm4, %v15969_v44 }
 0x844   :  { %v16223_v45 = vpop.f32.mrf.mxu3 }
 0x845   :  { %19198 = vst [vmem:[#allocation91_spill] sm:$0xff] %v16223_v45 }
 0x847   :  { %v16227_v27 = vpop.f32.mrf.mxu0 }
 0x849   :  { %v16259_v58 = vpop.f32.mrf.mxu1 }
 0x84a   :  { %7952 = vmatmul.msk.f32.gmra.mxu3 %vm2195_vm4, %v16003_v29 }
 0x84b   :  { %v16231_v56 = vpop.f32.mrf.mxu2 }
 0x84d   :  { %v16233_v42 = vpop.f32.mrf.mxu3 }
 0x84e   :  { %19199 = vst [vmem:[#allocation37_spill] sm:$0xff] %v16233_v42 }
 0x84f   :  { %v16235_v30 = vpop.f32.mrf.mxu0 }
 0x852   :  { %7953 = vmatmul.msk.f32.gmra.mxu3 %vm2195_vm4, %v16036_v38  ;;  %v5725_v38 = vpop.f32.mrf.mxu1 }
 0x853   :  { %v16241_v44 = vpop.f32.mrf.mxu2  ;;  %v16272_v2 = vmax.f32 %v16025_v60, %v5725_v38 }
 0x855   :  { %v16243_v47 = vpop.f32.mrf.mxu3  ;;  %19201 = vst [vmem:[#allocation120_spill] sm:$0xff] %v16272_v2 }
 0x857   :  { %v16245_v4 = vpop.f32.mrf.mxu0 }
 0x85a   :  { %7954 = vmatmul.msk.f32.gmra.mxu3 %vm2195_vm4, %v16063_v22  ;;  %v5728_v45 = vpop.f32.mrf.mxu1 }
 0x85b   :  { %v16251_v29 = vpop.f32.mrf.mxu2  ;;  %v16281_v9 = vmax.f32 %v16065_v55, %v5728_v45 }
 0x85d   :  { %v16253_v49 = vpop.f32.mrf.mxu3  ;;  %19203 = vst [vmem:[#allocation114_spill] sm:$0xff] %v16281_v9 }
 0x85e   :  { %19200 = vst [vmem:[#allocation78_spill] sm:$0xff] %v16253_v49 }
 0x85f   :  { %v16255_v34 = vpop.f32.mrf.mxu0 }
 0x862   :  { %v5731_v45 = vpop.f32.mrf.mxu1 }
 0x863   :  { %v16257_v24 = vpop.f32.mrf.mxu2 }
 0x865   :  { %v16261_v52 = vpop.f32.mrf.mxu3 }
 0x867   :  { %v16263_v40 = vpop.f32.mrf.mxu0 }
 0x86b   :  { %v16265_v21 = vpop.f32.mrf.mxu2 }
 0x86d   :  { %v16267_v33 = vpop.f32.mrf.mxu3 }
 0x86f   :  { %v16269_v63 = vpop.f32.mrf.mxu0 }
 0x873   :  { %v5763_v31 = vpop.f32.mrf.mxu2 }
 0x874   :  { %v16275_v25 = vmax.f32 %v16115_v39, %v5763_v31 }
 0x875   :  { %v5789_v54 = vpop.f32.mrf.mxu3 }
 0x876   :  { %19202 = vst [vmem:[#allocation82_spill] sm:$0xff] %v16275_v25  ;;  %v8082_v13 = vpack.i.bf16 %v16275_v25, %v16272_v2 }
 0x877   :  { %v5827_v22 = vpop.f32.mrf.mxu0 }
 0x878   :  { %8083 = vrot.lane.b32.xlu2 %v8082_v13, %s8245_s28 }
 0x87b   :  { %v5766_v42 = vpop.f32.mrf.mxu2 }
 0x87c   :  { %v16284_v53 = vmax.f32 %v16131_v41, %v5766_v42 }
 0x87d   :  { %v5792_v39 = vpop.f32.mrf.mxu3 }
 0x87e   :  { %19204 = vst [vmem:[#allocation70_spill] sm:$0xff] %v16284_v53  ;;  %v8087_v60 = vpack.i.bf16 %v16284_v53, %v16281_v9  ;;  %v16304_v9 = vmax.f32 %v16091_v26, %v5731_v45 }
 0x87f   :  { %v5830_v38 = vpop.f32.mrf.mxu0 }
 0x880   :  { %8088 = vrot.lane.b32.xlu0 %v8087_v60, %s8245_s28 }
 0x883   :  { %v5769_v31 = vpop.f32.mrf.mxu2 }
 0x884   :  { %v16301_v42 = vmax.f32 %v16149_v19, %v5769_v31  ;;  %v16328_v31 = vpop.f32.mrf.mxu1 }
 0x885   :  { %v5795_v25 = vpop.f32.mrf.mxu3 }
 0x886   :  { %v16290_v13 = vmax.f32 %v16139_v37, %v5795_v25 }
 0x887   :  { %v5833_v2 = vpop.f32.mrf.mxu0 }
 0x888   :  { %v16293_v49 = vmax.f32 %v16161_v8, %v5833_v2  ;;  %v8097_v2 = vpack.i.bf16 %v16301_v42, %v16304_v9 }
 0x88a   :  { %19205 = vst [vmem:[#allocation7_spill] sm:$0xff] %v16293_v49  ;;  %v8092_v55 = vpack.i.bf16 %v16293_v49, %v16290_v13 }
 0x88b   :  { %v16297_v41 = vpop.f32.mrf.mxu2 }
 0x88c   :  { %8093 = vrot.lane.b32.xlu1 %v8092_v55, %s8245_s28 }
 0x88d   :  { %v5798_v60 = vpop.f32.mrf.mxu3 }
 0x88e   :  { %v16307_v37 = vmax.f32 %v16157_v51, %v5798_v60  ;;  %v16334_v60 = vmax.f32 %v16143_v50, %v5830_v38  ;;  %v16351_v50 = vpop.f32.mrf.mxu1  ;;  %v16362_v38 = vmax.f32 %v15944_v7, %v16247_v6 }
 0x88f   :  { %v5836_v53 = vpop.f32.mrf.mxu0 }
 0x890   :  { %v16310_v8 = vmax.f32 %v16177_v14, %v5836_v53 }
 0x892   :  { %v8102_v25 = vpack.i.bf16 %v16310_v8, %v16307_v37 }
 0x893   :  { %v16316_v55 = vpop.f32.mrf.mxu2 }
 0x894   :  { %8098 = vrot.lane.b32.xlu1 %v8097_v2, %s8245_s28  ;;  %8103 = vrot.lane.b32.xlu2 %v8102_v25, %s8245_s28 }
 0x895   :  { %v5801_v26 = vpop.f32.mrf.mxu3 }
 0x896   :  { %v16321_v51 = vmax.f32 %v16173_v23, %v5801_v26  ;;  %v16337_v23 = vmax.f32 %v16123_v57, %v5792_v39  ;;  %v16355_v57 = vmax.f32 %v16077_v59, %v16257_v24  ;;  %v5871_v6 = vpop.f32.mrf.mxu1 }
 0x897   :  { %v5839_v19 = vpop.f32.mrf.mxu0 }
 0x898   :  { %v16324_v53 = vmax.f32 %v16191_v20, %v5839_v19  ;;  %v8112_v19 = vpack.i.bf16 %v16334_v60, %v16337_v23  ;;  %v8137_v59 = vpack.i.bf16 %v16355_v57, %v16362_v38 }
 0x89a   :  { %v8107_v14 = vpack.i.bf16 %v16324_v53, %v16321_v51 }
 0x89b   :  { %v16330_v45 = vpop.f32.mrf.mxu2 }
 0x89c   :  { %8108 = vrot.lane.b32.xlu0 %v8107_v14, %s8245_s28 }
 0x89d   :  { %v5804_v2 = vpop.f32.mrf.mxu3 }
 0x89e   :  { %v16340_v20 = vmax.f32 %v16187_v43, %v5804_v2  ;;  %v16358_v43 = vmax.f32 %v16127_v46, %v5827_v22  ;;  %v16365_v2 = vmax.f32 %v16111_v1, %v5789_v54  ;;  %v16384_v1 = vmax.f32 %v15994_v62, %v16241_v44 }
 0x89f   :  { %v5842_v25 = vpop.f32.mrf.mxu0  ;;  %v16392_v54 = vmax.f32 %v15822_v35, %v16225_v0  ;;  %v16396_v22 = vmax.f32 %v15986_v15, %v16259_v58  ;;  %v16406_v35 = vmax.f32 %v16042_v28, %v16251_v29  ;;  %v16410_v15 = vmax.f32 %v15895_v12, %v16237_v3  ;;  %v5874_v0 = vpop.f32.mrf.mxu1 }
 0x8a0   :  { %v16343_v26 = vmax.f32 %v16203_v16, %v5842_v25  ;;  %v8132_v46 = vpack.i.bf16 %v16358_v43, %v16365_v2 }
 0x8a1   :  { %v8142_v58 = vpack.i.bf16 %v16406_v35, %v16410_v15 }
 0x8a2   :  { %v8117_v14 = vpack.i.bf16 %v16343_v26, %v16340_v20 }
 0x8a3   :  { %v5912_v49 = vpop.f32.mrf.mxu2 }
 0x8a4   :  { %8113 = vrot.lane.b32.xlu0 %v8112_v19, %s8245_s28  ;;  %8118 = vrot.lane.b32.xlu2 %v8117_v14, %s8245_s28  ;;  %v8147_v14 = vpack.i.bf16 %v16384_v1, %v16392_v54 }
 0x8a5   :  { %v5807_v16 = vpop.f32.mrf.mxu3 }
 0x8a6   :  { %v16368_v25 = vmax.f32 %v16201_v11, %v5807_v16  ;;  %v16415_v16 = vmax.f32 %v16199_v10, %v5874_v0 }
 0x8a7   :  { %v5845_v39 = vpop.f32.mrf.mxu0 }
 0x8a8   :  { %v16371_v19 = vmax.f32 %v16215_v32, %v5845_v39  ;;  %v16388_v32 = vmax.f32 %v16099_v61, %v16265_v21 }
 0x8aa   :  { %v8122_v24 = vpack.i.bf16 %v16371_v19, %v16368_v25  ;;  %v8127_v62 = vpack.i.bf16 %v16388_v32, %v16396_v22 }
 0x8ab   :  { %v5915_v7 = vpop.f32.mrf.mxu2 }
 0x8ac   :  { %8138 = vrot.lane.b32.xlu0 %v8137_v59, %s8245_s28  ;;  %8133 = vrot.lane.b32.xlu2 %v8132_v46, %s8245_s28  ;;  %v16434_v59 = vmax.f32 %v16185_v48, %v5871_v6 }
 0x8ad   :  { %8123 = vrot.lane.b32.xlu1 %v8122_v24, %s8245_s28  ;;  %v5941_v11 = vpop.f32.mrf.mxu3  ;;  %v5877_v24 = vpop.f32.mrf.mxu1 }
 0x8ae   :  { %19206 = vst [vmem:[#allocation134_spill] sm:$0xff] %v16434_v59 }
 0x8b3   :  { %v5918_v44 = vpop.f32.mrf.mxu2 }
 0x8b4   :  { %8148 = vrot.lane.b32.xlu2 %v8147_v14, %s8245_s28  ;;  %v16424_v12 = vmax.f32 %v16261_v52, %v5918_v44  ;;  %v16443_v14 = vmax.f32 %v16209_v17, %v5877_v24  ;;  %v19216_v24 = vld [vmem:[#allocation91_spill] sm:$0xff] }
 0x8b5   :  { %8128 = vrot.lane.b32.xlu1 %v8127_v62, %s8245_s28  ;;  %v5944_v61 = vpop.f32.mrf.mxu3  ;;  %v5880_v6 = vpop.f32.mrf.mxu1 }
 0x8b6   :  { %v16455_v0 = vmax.f32 %v16219_v18, %v5880_v6  ;;  %v16470_v18 = vmax.f32 %v16227_v27, %v5944_v61  ;;  %v19209_v27 = vld [vmem:[#allocation78_spill] sm:$0xff] }
 0x8b7   :  { %v16489_v61 = vmax.f32 %v19209_v27, %v5915_v7 }
 0x8bb   :  { %v5921_v21 = vpop.f32.mrf.mxu2 }
 0x8bc   :  { %v16418_v39 = vmax.f32 %v16267_v33, %v5921_v21 }
 0x8bd   :  { %8143 = vrot.lane.b32.xlu1 %v8142_v58, %s8245_s28  ;;  %v5947_v29 = vpop.f32.mrf.mxu3  ;;  %v16458_v58 = vmax.f32 %v16243_v47, %v5912_v49  ;;  %v16474_v47 = vmax.f32 %v16163_v5, %v16328_v31  ;;  %v19210_v5 = vld [vmem:[#allocation98_spill] sm:$0xff] }
 0x8be   :  { %v8157_v28 = vpack.i.bf16 %v16418_v39, %v16415_v16  ;;  %v16427_v3 = vmax.f32 %v16235_v30, %v5947_v29 }
 0x8bf   :  { %19208 = vst [vmem:[#allocation68_spill] sm:$0xff] %v16474_v47 }
 0x8c0   :  { %8158 = vrot.lane.b32.xlu0 %v8157_v28, %s8245_s28  ;;  %v8152_v10 = vpack.i.bf16 %v16427_v3, %v16424_v12  ;;  %v8187_v28 = vpack.i.bf16 %v16474_v47, %v16470_v18 }
 0x8c2   :  { %8153 = vrot.lane.b32.xlu2 %v8152_v10, %s8245_s28 }
 0x8c5   :  { %v5950_v33 = vpop.f32.mrf.mxu3 }
 0x8c6   :  { %v16437_v46 = vmax.f32 %v16245_v4, %v5950_v33  ;;  %v16452_v4 = vmax.f32 %v16217_v36, %v5941_v11  ;;  %v5883_v36 = vpop.f32.mrf.mxu1  ;;  %v19214_v33 = vld [vmem:[#allocation37_spill] sm:$0xff] }
 0x8c7   :  { %v16477_v49 = vmax.f32 %v16231_v56, %v5883_v36  ;;  %v16493_v56 = vmax.f32 %v19210_v5, %v16351_v50  ;;  %v16506_v7 = vmax.f32 %v19214_v33, %v16330_v45  ;;  %v16510_v50 = vmax.f32 %v19216_v24, %v16316_v55  ;;  %v19220_v24 = vld [vmem:[#allocation120_spill] sm:$0xff] }
 0x8c8   :  { %v8162_v52 = vpack.i.bf16 %v16434_v59, %v16437_v46  ;;  %19207 = vst [vmem:[#allocation126_spill] sm:$0xff] %v16452_v4 }
 0x8c9   :  { %19211 = vst [vmem:[#allocation50_spill] sm:$0xff] %v16493_v56  ;;  %v8182_v10 = vpack.i.bf16 %v16489_v61, %v16493_v56 }
 0x8ca   :  { %8163 = vrot.lane.b32.xlu1 %v8162_v52, %s8245_s28  ;;  %19215 = vst [vmem:[#allocation61_spill] sm:$0xff] %v16506_v7 }
 0x8cb   :  { %19217 = vst [vmem:[#allocation174_spill] sm:$0xff] %v16510_v50 }
 0x8cd   :  { %v5953_v30 = vpop.f32.mrf.mxu3 }
 0x8ce   :  { %v16446_v62 = vmax.f32 %v16255_v34, %v5953_v30  ;;  %v8192_v34 = vpack.i.bf16 %v16452_v4, %v16458_v58 }
 0x8d0   :  { %v8167_v48 = vpack.i.bf16 %v16446_v62, %v16443_v14 }
 0x8d2   :  { %8168 = vrot.lane.b32.xlu2 %v8167_v48, %s8245_s28  ;;  %v16519_v48 = vpop.permute.xlu2 %8083 }
 0x8d3   :  { %v8086_v55 = vunpack.i.h.bf16 %v16519_v48 }
 0x8d5   :  { %v5956_v44 = vpop.f32.mrf.mxu3 }
 0x8d6   :  { %v16461_v17 = vmax.f32 %v16263_v40, %v5956_v44 }
 0x8d8   :  { %v8172_v21 = vpack.i.bf16 %v16461_v17, %v16455_v0 }
 0x8da   :  { %8193 = vrot.lane.b32.xlu2 %v8192_v34, %s8245_s28  ;;  %8173 = vrot.lane.b32.xlu1 %v8172_v21, %s8245_s28  ;;  %v17890_v34 = vunpack.i.l.bf16 %v16519_v48 }
 0x8dc   :  { %v6148_v5 = vsel %vm3458_vm7, %v17890_v34, %v8086_v55 }
 0x8dd   :  { %v5959_v11 = vpop.f32.mrf.mxu3 }
 0x8de   :  { %v16480_v40 = vmax.f32 %v16269_v63, %v5959_v11  ;;  %v19212_v63 = vld [vmem:[#allocation44_spill] sm:$0xff]  ;;  %v19218_v11 = vld [vmem:[#allocation5_spill] sm:$0xff] }
 0x8df   :  { %v16497_v31 = vmax.f32 %v19212_v63, %v16297_v41  ;;  %v8197_v41 = vpack.i.bf16 %v16510_v50, %v16506_v7  ;;  %v19219_v63 = vld [vmem:[#allocation114_spill] sm:$0xff]  ;;  %vm6705_vm9 = vcmp.lt.s32.totalorder %v19218_v11, 124  ;;  %vm6762_vm10 = vcmp.lt.s32.totalorder %v19218_v11, 120 }
 0x8e0   :  { %v8177_v29 = vpack.i.bf16 %v16480_v40, %v16477_v49  ;;  %vm6819_vm11 = vcmp.lt.s32.totalorder %v19218_v11, 116  ;;  %vm6876_vm12 = vcmp.lt.s32.totalorder %v19218_v11, 112  ;;  %vm6933_vm13 = vcmp.lt.s32.totalorder %v19218_v11, 108 }
 0x8e1   :  { %19213 = vst [vmem:[#allocation180_spill] sm:$0xff] %v16497_v31  ;;  %vm6990_vm14 = vcmp.lt.s32.totalorder %v19218_v11, 104 }
 0x8e2   :  { %8188 = vrot.lane.b32.xlu1 %v8187_v28, %s8245_s28  ;;  %8178 = vrot.lane.b32.xlu0 %v8177_v29, %s8245_s28 }
 0x8ea   :  { %6081 = vrot.lane.b32.xlu1 %v16497_v31, %s8245_s28  ;;  %8183 = vrot.lane.b32.xlu0 %v8182_v10, %s8245_s28 }
 0x8ee   :  { %v16543_v33 = vpop.permute.xlu2 %8103 }
 0x8f2   :  { %8198 = vrot.lane.b32.xlu0 %v8197_v41, %s8245_s28  ;;  %v16517_v30 = vpop.permute.xlu0 %8088  ;;  %v6186_v41 = vmax.f32 %v19220_v24, %v6148_v5  ;;  %s8248_s28 = smov 116  }
 0x8f3   :  { %v8091_v6 = vunpack.i.h.bf16 %v16517_v30  ;;  %v17889_v45 = vunpack.i.l.bf16 %v16517_v30 }
 0x8f5   :  { %v6149_v29 = vsel %vm3458_vm7, %v17889_v45, %v8091_v6 }
 0x8f6   :  { %v6193_v10 = vmax.f32 %v19219_v63, %v6149_v29 }
 0x8fe   :  { %v16515_v52 = vpop.permute.xlu1 %8093  ;;  %v16548_v31 = vpop.permute.xlu2 %8118 }
 0x8ff   :  { %v19221_v50 = vunpack.i.h.bf16 %v16548_v31 }
 0x906   :  { %v16523_v44 = vpop.permute.xlu1 %8098 }
 0x907   :  { %v8101_v21 = vunpack.i.h.bf16 %v16523_v44  ;;  %v17887_v36 = vunpack.i.l.bf16 %v16523_v44 }
 0x909   :  { %v6150_v28 = vsel %vm3458_vm7, %v17887_v36, %v8101_v21 }
 0x90a   :  { %v6200_v27 = vmax.f32 %v16304_v9, %v6150_v28  ;;  %v8120_v28 = vunpack.i.l.bf16 %v16548_v31 }
 0x90c   :  { %6273 = vmatpush.msra.mxu0 %v6200_v27  ;;  %v16556_v27 = vpop.permute.xlu2 %8133  ;;  %v6142_v29 = vsel %vm3458_vm7, %v8091_v6, %v8120_v28  ;;  %v6135_v56 = vsel %vm3458_vm7, %v8120_v28, %v19221_v50  ;;  %v19223_v50 = vld [vmem:[#allocation70_spill] sm:$0xff] }
 0x90d   :  { %v6194_v28 = vmax.f32 %v19223_v50, %v6142_v29 }
 0x90e   :  { %6274 = vmatpush.msra.mxu0 %v6193_v10  ;;  %v16546_v36 = vpop.permute.xlu0 %8108 }
 0x90f   :  { %v8110_v63 = vunpack.i.l.bf16 %v16546_v36  ;;  %v19222_v4 = vunpack.i.h.bf16 %v16546_v36 }
 0x910   :  { %6275 = vmatpush.msra.mxu0 %v6186_v41  ;;  %v8105_v41 = vunpack.i.l.bf16 %v16543_v33 }
 0x916   :  { %v16550_v45 = vpop.permute.xlu0 %8113 }
 0x91e   :  { %v16576_v7 = vpop.permute.xlu0 %8138 }
 0x91f   :  { %v16554_v34 = vpop.permute.xlu1 %8123 }
 0x920   :  { %v17896_v5 = vunpack.i.h.bf16 %v16554_v34  ;;  %v8125_v10 = vunpack.i.l.bf16 %v16554_v34 }
 0x922   :  { %v6136_v9 = vsel %vm3458_vm7, %v8125_v10, %v17896_v5  ;;  %v6143_v47 = vsel %vm3458_vm7, %v8101_v21, %v8125_v10  ;;  %v6141_v5 = vsel %vm3458_vm7, %v8086_v55, %v8110_v63  ;;  %v6134_v21 = vsel %vm3458_vm7, %v8110_v63, %v19222_v4 }
 0x923   :  { %v6201_v24 = vmax.f32 %v16301_v42, %v6143_v47  ;;  %v6202_v59 = vmax.f32 %v16368_v25, %v6136_v9  ;;  %v8095_v10 = vunpack.i.l.bf16 %v16515_v52  ;;  %v6195_v42 = vmax.f32 %v16340_v20, %v6135_v56 }
 0x924   :  { %v8141_v25 = vunpack.i.h.bf16 %v16576_v7  ;;  %v19224_v55 = vunpack.i.h.bf16 %v16543_v33  ;;  %v8115_v63 = vunpack.i.l.bf16 %v16550_v45  ;;  %v6188_v20 = vmax.f32 %v16321_v51, %v6134_v21 }
 0x925   :  { %6332 = vmatpush.msra.mxu1 %v6201_v24  ;;  %6391 = vmatpush.msra.mxu2 %v6202_v59  ;;  %v19225_v59 = vld [vmem:[#allocation82_spill] sm:$0xff]  ;;  %v17900_v56 = vunpack.i.h.bf16 %v16556_v27  ;;  %v8135_v24 = vunpack.i.l.bf16 %v16556_v27  ;;  %v19226_v47 = vunpack.i.h.bf16 %v16515_v52 }
 0x926   :  { %v6133_v9 = vsel %vm3458_vm7, %v8105_v41, %v19224_v55  ;;  %v6187_v29 = vmax.f32 %v19225_v59, %v6141_v5  ;;  %v16611_v5 = vpop.permute.xlu2 %8148 }
 0x927   :  { %v16598_v6 = vpop.permute.xlu1 %8128  ;;  %6333 = vmatpush.msra.mxu1 %v6194_v28  ;;  %6392 = vmatpush.msra.mxu2 %v6195_v42  ;;  %v6181_v4 = vmax.f32 %v16307_v37, %v6133_v9  ;;  %v6132_v28 = vsel %vm3458_vm7, %v8095_v10, %v19226_v47  ;;  %v19227_v42 = vunpack.i.l.bf16 %v16576_v7  ;;  %v6139_v9 = vsel %vm3458_vm7, %v8141_v25, %v8095_v10 }
 0x928   :  { %v8131_v50 = vunpack.i.h.bf16 %v16598_v6  ;;  %v8130_v55 = vunpack.i.l.bf16 %v16598_v6  ;;  %v17899_v10 = vunpack.i.l.bf16 %v16611_v5 }
 0x929   :  { %6334 = vmatpush.msra.mxu1 %v6187_v29  ;;  %6393 = vmatpush.msra.mxu2 %v6188_v20  ;;  %v6146_v37 = vsel %vm3458_vm7, %v19227_v42, %v8141_v25  ;;  %v19228_v29 = vunpack.i.h.bf16 %v16550_v45  ;;  %v8151_v42 = vunpack.i.h.bf16 %v16611_v5 }
 0x92a   :  { %v6147_v51 = vsel %vm3458_vm7, %v8130_v55, %v8131_v50  ;;  %v6140_v21 = vsel %vm3458_vm7, %v8131_v50, %v8105_v41  ;;  %v6174_v41 = vmax.f32 %v16290_v13, %v6132_v28  ;;  %v6130_v50 = vsel %vm3458_vm7, %v8135_v24, %v17900_v56 }
 0x92b   :  { %6394 = vmatpush.msra.mxu2 %v6181_v4  ;;  %v6179_v47 = vmax.f32 %v16396_v22, %v6147_v51  ;;  %v6180_v59 = vmax.f32 %v16388_v32, %v6140_v21  ;;  %v6131_v20 = vsel %vm3458_vm7, %v8115_v63, %v19228_v29  ;;  %v6172_v32 = vmax.f32 %v16362_v38, %v6146_v37 }
 0x92c   :  { %v6173_v22 = vmax.f32 %v16355_v57, %v6139_v9  ;;  %v6167_v25 = vmax.f32 %v16337_v23, %v6131_v20  ;;  %v6160_v51 = vmax.f32 %v16365_v2, %v6130_v50  ;;  %v6144_v38 = vsel %vm3458_vm7, %v17899_v10, %v8151_v42  ;;  %v16661_v2 = vld [vmem:[%s17565_s9] sm:$0xff] }
 0x92d   :  { %6276 = vmatpush.msra.mxu0 %v6179_v47  ;;  %6335 = vmatpush.msra.mxu1 %v6180_v59  ;;  %v6137_v21 = vsel %vm3458_vm7, %v8151_v42, %v8135_v24  ;;  %v16702_v24 = vld [vmem:[%s17565_s9 + $0x18] sm:$0xff]  ;;  %v16718_v50 = vld [vmem:[%s17565_s9 + $0x20] sm:$0xff]  ;;  %v19231_v10 = vunpack.i.l.bf16 %v16517_v30 }
 0x92e   :  { %6395 = vmatpush.msra.mxu2 %v6174_v41  ;;  %v6159_v47 = vmax.f32 %v16384_v1, %v6137_v21  ;;  %v16687_v1 = vld [vmem:[%s17565_s9 + $0x10] sm:$0xff] }
 0x92f   :  { %v16641_v4 = vpop.permute.xlu1 %8143  ;;  %6277 = vmatpush.msra.mxu0 %v6172_v32  ;;  %6336 = vmatpush.msra.mxu1 %v6173_v22 }
 0x930   :  { %v8146_v13 = vunpack.i.h.bf16 %v16641_v4  ;;  %v17901_v28 = vunpack.i.l.bf16 %v16641_v4  ;;  %6396 = vmatpush.msra.mxu2 %v6167_v25  ;;  %v19229_v25 = vunpack.i.l.bf16 %v16576_v7 }
 0x932   :  { %6397 = vmatpush.msra.mxu2 %v6160_v51  ;;  %v6145_v23 = vsel %vm3458_vm7, %v17901_v28, %v8146_v13  ;;  %v6138_v57 = vsel %vm3458_vm7, %v8146_v13, %v8115_v63  ;;  %v6158_v63 = vmax.f32 %v16392_v54, %v6144_v38  ;;  %v16691_v54 = vpop.permute.xlu2 %8153  ;;  %v16708_v29 = vpop.permute.xlu0 %8158  ;;  %v19232_v28 = vunpack.i.l.bf16 %v16523_v44 }
 0x933   :  { %v6165_v37 = vmax.f32 %v16410_v15, %v6145_v23  ;;  %v6166_v9 = vmax.f32 %v16406_v35, %v6138_v57  ;;  %7983 = vmatmul.msk.f32.vlgmr.msra.gmra.mxu2 %vm6221_vm8, %v16661_v2  ;;  %v16676_v35 = vld [vmem:[%s17565_s9 + $0x8] sm:$0xff]  ;;  %v17898_v41 = vunpack.i.h.bf16 %v16691_v54  ;;  %v8155_v22 = vunpack.i.l.bf16 %v16691_v54 }
 0x934   :  { %v8161_v23 = vunpack.i.h.bf16 %v16708_v29  ;;  %v8160_v57 = vunpack.i.l.bf16 %v16708_v29 }
 0x935   :  { %6278 = vmatpush.msra.mxu0 %v6165_v37  ;;  %6337 = vmatpush.msra.mxu1 %v6166_v9  ;;  %v16729_v13 = vsel %vm3458_vm7, %v17898_v41, %v19229_v25 }
 0x937   :  { %6279 = vmatpush.msra.mxu0 %v6158_v63  ;;  %6338 = vmatpush.msra.mxu1 %v6159_v47 }
 0x938   :  { %7955 = vmatmul.msk.f32.vlgmr.msra.gmra.mxu0 %vm6221_vm8, %v16661_v2  ;;  %7969 = vmatmul.msk.f32.vlgmr.msra.gmra.mxu1 %vm6221_vm8, %v16661_v2 }
 0x93a   :  { %v16706_v59 = vpop.permute.xlu2 %8168 }
 0x93b   :  { %7984 = vmatmul.msk.f32.gmra.mxu2 %vm6221_vm8, %v16676_v35  ;;  %v8171_v51 = vunpack.i.h.bf16 %v16706_v59  ;;  %v8170_v38 = vunpack.i.l.bf16 %v16706_v59 }
 0x93c   :  { %v16693_v15 = vpop.permute.xlu1 %8163 }
 0x93d   :  { %v8166_v37 = vunpack.i.h.bf16 %v16693_v15  ;;  %v8165_v9 = vunpack.i.l.bf16 %v16693_v15 }
 0x940   :  { %7956 = vmatmul.msk.f32.gmra.mxu0 %vm6221_vm8, %v16676_v35  ;;  %7970 = vmatmul.msk.f32.gmra.mxu1 %vm6221_vm8, %v16676_v35 }
 0x942   :  { %v16737_v47 = vpop.permute.xlu2 %8193 }
 0x943   :  { %7985 = vmatmul.msk.f32.gmra.mxu2 %vm6221_vm8, %v16687_v1 }
 0x948   :  { %7957 = vmatmul.msk.f32.gmra.mxu0 %vm6221_vm8, %v16687_v1  ;;  %7971 = vmatmul.msk.f32.gmra.mxu1 %vm6221_vm8, %v16687_v1 }
 0x94b   :  { %7986 = vmatmul.msk.f32.gmra.mxu2 %vm6221_vm8, %v16702_v24 }
 0x94c   :  { %v8174_v20 = vpop.permute.xlu1 %8173 }
 0x94d   :  { %v8176_v42 = vunpack.i.h.bf16 %v8174_v20  ;;  %v8175_v32 = vunpack.i.l.bf16 %v8174_v20  ;;  %v19230_v20 = vunpack.i.h.bf16 %v16548_v31 }
 0x94f   :  { %v6128_v25 = vsel %vm3458_vm7, %v19230_v20, %v8175_v32  ;;  %v6121_v41 = vsel %vm3458_vm7, %v8175_v32, %v8155_v22  ;;  %v6114_v29 = vsel %vm3458_vm7, %v8155_v22, %v8176_v42  ;;  %v6156_v56 = vsel %vm3458_vm7, %v8176_v42, %v19231_v10 }
 0x950   :  { %7958 = vmatmul.msk.f32.gmra.mxu0 %vm6221_vm8, %v16702_v24  ;;  %7972 = vmatmul.msk.f32.gmra.mxu1 %vm6221_vm8, %v16702_v24  ;;  %v19233_v32 = vunpack.i.h.bf16 %v16554_v34 }
 0x953   :  { %7987 = vmatmul.msk.f32.gmra.mxu2 %vm6221_vm8, %v16718_v50 }
 0x954   :  { %v8179_v21 = vpop.permute.xlu0 %8178  ;;  %v16772_v34 = vpop.permute.xlu1 %8188 }
 0x955   :  { %v8181_v7 = vunpack.i.h.bf16 %v8179_v21  ;;  %v8180_v63 = vunpack.i.l.bf16 %v8179_v21 }
 0x957   :  { %v6115_v21 = vsel %vm3458_vm7, %v8161_v23, %v8181_v7  ;;  %v6157_v31 = vsel %vm3458_vm7, %v8181_v7, %v19232_v28  ;;  %v6122_v20 = vsel %vm3458_vm7, %v8180_v63, %v8161_v23  ;;  %v6129_v22 = vsel %vm3458_vm7, %v19233_v32, %v8180_v63 }
 0x958   :  { %7959 = vmatmul.msk.f32.gmra.mxu0 %vm6221_vm8, %v16718_v50  ;;  %v6205_v30 = vmax.f32 %v16418_v39, %v6115_v21  ;;  %v6206_v10 = vmax.f32 %v16480_v40, %v6157_v31  ;;  %v6203_v44 = vmax.f32 %v16371_v19, %v6129_v22  ;;  %v6204_v42 = vmax.f32 %v16477_v49, %v6122_v20  ;;  %v19238_v20 = vld [vmem:[#allocation7_spill] sm:$0xff] }
 0x959   :  { %7973 = vmatmul.msk.f32.gmra.mxu1 %vm6221_vm8, %v16718_v50  ;;  %v8195_v28 = vunpack.i.l.bf16 %v16737_v47  ;;  %v19234_v23 = vunpack.i.h.bf16 %v16546_v36  ;;  %v19235_v39 = vunpack.i.l.bf16 %v16519_v48  ;;  %v19236_v49 = vunpack.i.h.bf16 %v16543_v33 }
 0x95a   :  { %6450 = vmatpush.msrb.mxu3 %v6203_v44  ;;  %6509 = vmatpush.msrb.mxu0 %v6204_v42  ;;  %v6196_v63 = vmax.f32 %v16343_v26, %v6128_v25  ;;  %v6197_v36 = vmax.f32 %v16455_v0, %v6121_v41  ;;  %v6154_v48 = vsel %vm3458_vm7, %v8165_v9, %v8130_v55  ;;  %v19237_v31 = vunpack.i.h.bf16 %v16515_v52 }
 0x95b   :  { %v6127_v7 = vsel %vm3458_vm7, %v19234_v23, %v8170_v38  ;;  %v6155_v19 = vsel %vm3458_vm7, %v8171_v51, %v19235_v39  ;;  %v6126_v40 = vsel %vm3458_vm7, %v19236_v49, %v8160_v57  ;;  %6568 = vmatpush.msrb.mxu1 %v6205_v30  ;;  %6627 = vmatpush.msrb.mxu2 %v6206_v10  ;;  %v8190_v0 = vunpack.i.l.bf16 %v16772_v34 }
 0x95c   :  { %v6198_v21 = vmax.f32 %v16424_v12, %v6114_v29  ;;  %v6199_v33 = vmax.f32 %v16461_v17, %v6156_v56  ;;  %v6125_v26 = vsel %vm3458_vm7, %v19237_v31, %v8166_v37  ;;  %v8184_v41 = vpop.permute.xlu0 %8183  ;;  %6451 = vmatpush.msrb.mxu3 %v6196_v63  ;;  %6510 = vmatpush.msrb.mxu0 %v6197_v36  ;;  %v16808_v12 = vld [vmem:[%s17565_s9 + $0x28] sm:$0xff]  ;;  %v8191_v52 = vunpack.i.h.bf16 %v16772_v34  ;;  %v19247_v36 = vld [vmem:[#allocation50_spill] sm:$0xff] }
 0x95d   :  { %v6189_v6 = vmax.f32 %v16324_v53, %v6127_v7  ;;  %v6192_v55 = vmax.f32 %v16446_v62, %v6155_v19  ;;  %v6182_v17 = vmax.f32 %v16310_v8, %v6126_v40  ;;  %v8186_v56 = vunpack.i.h.bf16 %v8184_v41  ;;  %7988 = vmatmul.msk.f32.gmra.mxu2 %vm6221_vm8, %v16808_v12  ;;  %v6082_v7 = vpop.permute.xlu1 %6081  ;;  %v19245_v19 = vld [vmem:[#allocation134_spill] sm:$0xff]  ;;  %v19246_v40 = vld [vmem:[#allocation61_spill] sm:$0xff]  ;;  %v19249_v31 = vld [vmem:[#allocation68_spill] sm:$0xff] }
 0x95e   :  { %v8185_v25 = vunpack.i.l.bf16 %v8184_v41  ;;  %6569 = vmatpush.msrb.mxu1 %v6198_v21  ;;  %6628 = vmatpush.msrb.mxu2 %v6199_v33  ;;  %v6119_v29 = vsel %vm3458_vm7, %v8160_v57, %v8195_v28  ;;  %v8196_v53 = vunpack.i.h.bf16 %v16737_v47  ;;  %v6185_v62 = vmax.f32 %v16437_v46, %v6154_v48  ;;  %v19248_v21 = vld [vmem:[#allocation174_spill] sm:$0xff] }
 0x95f   :  { %6452 = vmatpush.msrb.mxu3 %v6189_v6  ;;  %v6175_v32 = vmax.f32 %v19238_v20, %v6125_v26  ;;  %v6112_v22 = vsel %vm3458_vm7, %v8195_v28, %v8165_v9  ;;  %v6120_v8 = vsel %vm3458_vm7, %v8170_v38, %v8186_v56  ;;  %v6113_v46 = vsel %vm3458_vm7, %v8186_v56, %v8171_v51  ;;  %v19243_v28 = vld [vmem:[#allocation126_spill] sm:$0xff]  ;;  %v19250_v26 = vld [vmem:[#allocation180_spill] sm:$0xff]  ;;  %v16912_v6 = vld [vmem:[%s17565_s9 + $0x40] sm:$0xff] }
 0x960   :  { %6629 = vmatpush.msrb.mxu2 %v6192_v55  ;;  %7960 = vmatmul.msk.f32.gmra.mxu0 %vm6221_vm8, %v16808_v12  ;;  %v19239_v57 = vunpack.i.h.bf16 %v16550_v45  ;;  %v6190_v47 = vmax.f32 %v16443_v14, %v6120_v8  ;;  %v6191_v30 = vmax.f32 %v16489_v61, %v6113_v46  ;;  %v19240_v10 = vunpack.i.l.bf16 %v16641_v4  ;;  %v16925_v55 = vld [vmem:[%s17565_s9 + $0x48] sm:$0xff]  ;;  %v16964_v56 = vld [vmem:[%s17565_s9 + $0x60] sm:$0xff] }
 0x961   :  { %6453 = vmatpush.msrb.mxu3 %v6182_v17  ;;  %7974 = vmatmul.msk.f32.gmra.mxu1 %vm6221_vm8, %v16808_v12  ;;  %v6178_v45 = vmax.f32 %v16427_v3, %v16729_v13  ;;  %v19241_v51 = vunpack.i.h.bf16 %v16556_v27  ;;  %v6183_v4 = vmax.f32 %v16415_v16, %v6119_v29  ;;  %v19242_v38 = vunpack.i.l.bf16 %v16611_v5  ;;  %v16938_v17 = vld [vmem:[%s17565_s9 + $0x50] sm:$0xff] }
 0x962   :  { %v6124_v9 = vsel %vm3458_vm7, %v19239_v57, %v8185_v25  ;;  %v6152_v59 = vsel %vm3458_vm7, %v8190_v0, %v19240_v10  ;;  %6630 = vmatpush.msrb.mxu2 %v6185_v62  ;;  %6511 = vmatpush.msrb.mxu0 %v6190_v47  ;;  %v6184_v3 = vmax.f32 %v16458_v58, %v6112_v22  ;;  %v19244_v58 = vunpack.i.h.bf16 %v16691_v54 }
 0x963   :  { %v6123_v14 = vsel %vm3458_vm7, %v19241_v51, %v8191_v52  ;;  %6454 = vmatpush.msrb.mxu3 %v6175_v32  ;;  %v6168_v61 = vmax.f32 %v16334_v60, %v6124_v9  ;;  %v6151_v44 = vsel %vm3458_vm7, %v8196_v53, %v19242_v38  ;;  %6570 = vmatpush.msrb.mxu1 %v6191_v30  ;;  %v16861_v60 = vld [vmem:[%s17565_s9 + $0x30] sm:$0xff] }
 0x964   :  { %6631 = vmatpush.msrb.mxu2 %v6178_v45  ;;  %v6171_v27 = vmax.f32 %v16470_v18, %v6152_v59  ;;  %v8199_v13 = vpop.permute.xlu0 %8198  ;;  %6512 = vmatpush.msrb.mxu0 %v6183_v4  ;;  %v6161_v42 = vmax.f32 %v16358_v43, %v6123_v14  ;;  %v6164_v23 = vmax.f32 %v19243_v28, %v6151_v44 }
 0x965   :  { %6455 = vmatpush.msrb.mxu3 %v6168_v61  ;;  %v8201_v16 = vunpack.i.h.bf16 %v8199_v13  ;;  %v8200_v5 = vunpack.i.l.bf16 %v8199_v13  ;;  %6571 = vmatpush.msrb.mxu1 %v6184_v3  ;;  %v6109_v54 = vsel %vm3458_vm7, %v6082_v7, %v8196_v53 }
 0x966   :  { %6632 = vmatpush.msrb.mxu2 %v6171_v27  ;;  %v6163_v41 = vmax.f32 %v19250_v26, %v6109_v54 }
 0x967   :  { %6456 = vmatpush.msrb.mxu3 %v6161_v42  ;;  %7989 = vmatmul.msk.f32.gmra.mxu2 %vm6221_vm8, %v16861_v60  ;;  %v6118_v43 = vsel %vm3458_vm7, %v8166_v37, %v8200_v5  ;;  %v6111_v18 = vsel %vm3458_vm7, %v8200_v5, %v19244_v58  ;;  %v6117_v39 = vsel %vm3458_vm7, %v8185_v25, %v8201_v16  ;;  %v16977_v25 = vld [vmem:[%s17565_s9 + $0x68] sm:$0xff] }
 0x968   :  { %6633 = vmatpush.msrb.mxu2 %v6164_v23  ;;  %7961 = vmatmul.msk.f32.gmra.mxu0 %vm6221_vm8, %v16861_v60  ;;  %v6176_v49 = vmax.f32 %v19245_v19, %v6118_v43  ;;  %v6177_v63 = vmax.f32 %v19246_v40, %v6111_v18  ;;  %v6110_v15 = vsel %vm3458_vm7, %v8201_v16, %v8190_v0  ;;  %v16899_v0 = vld [vmem:[%s17565_s9 + $0x38] sm:$0xff] }
 0x969   :  { %7997 = vmatmul.msk.f32.vlgmr.msrb.gmra.mxu3 %vm6221_vm8, %v16661_v2  ;;  %v6116_v37 = vsel %vm3458_vm7, %v8191_v52, %v6082_v7  ;;  %7975 = vmatmul.msk.f32.gmra.mxu1 %vm6221_vm8, %v16861_v60  ;;  %v6169_v48 = vmax.f32 %v19247_v36, %v6117_v39  ;;  %v6170_v33 = vmax.f32 %v19248_v21, %v6110_v15  ;;  %v16951_v52 = vld [vmem:[%s17565_s9 + $0x58] sm:$0xff]  ;;  %s8246_s9 = smov 124  }
 0x96a   :  { %6513 = vmatpush.msrb.mxu0 %v6176_v49  ;;  %6572 = vmatpush.msrb.mxu1 %v6177_v63  ;;  %v6162_v34 = vmax.f32 %v19249_v31, %v6116_v37 }
 0x96c   :  { %6514 = vmatpush.msrb.mxu0 %v6169_v48  ;;  %6573 = vmatpush.msrb.mxu1 %v6170_v33 }
 0x96e   :  { %6515 = vmatpush.msrb.mxu0 %v6162_v34  ;;  %6574 = vmatpush.msrb.mxu1 %v6163_v41 }
 0x96f   :  { %7990 = vmatmul.msk.f32.gmra.mxu2 %vm6221_vm8, %v16899_v0 }
 0x970   :  { %7962 = vmatmul.msk.f32.gmra.mxu0 %vm6221_vm8, %v16899_v0 }
 0x971   :  { %7998 = vmatmul.msk.f32.gmra.mxu3 %vm6221_vm8, %v16676_v35  ;;  %7976 = vmatmul.msk.f32.gmra.mxu1 %vm6221_vm8, %v16899_v0 }
 0x977   :  { %7991 = vmatmul.msk.f32.gmra.mxu2 %vm6221_vm8, %v16912_v6 }
 0x978   :  { %7963 = vmatmul.msk.f32.gmra.mxu0 %vm6221_vm8, %v16912_v6 }
 0x979   :  { %7999 = vmatmul.msk.f32.gmra.mxu3 %vm6221_vm8, %v16687_v1  ;;  %7977 = vmatmul.msk.f32.gmra.mxu1 %vm6221_vm8, %v16912_v6 }
 0x97f   :  { %7992 = vmatmul.msk.f32.gmra.mxu2 %vm6221_vm8, %v16925_v55 }
 0x980   :  { %7964 = vmatmul.msk.f32.gmra.mxu0 %vm6221_vm8, %v16925_v55 }
 0x981   :  { %8000 = vmatmul.msk.f32.gmra.mxu3 %vm6221_vm8, %v16702_v24  ;;  %7978 = vmatmul.msk.f32.gmra.mxu1 %vm6221_vm8, %v16925_v55 }
 0x987   :  { %7993 = vmatmul.msk.f32.gmra.mxu2 %vm6221_vm8, %v16938_v17 }
 0x988   :  { %7965 = vmatmul.msk.f32.gmra.mxu0 %vm6221_vm8, %v16938_v17 }
 0x989   :  { %8001 = vmatmul.msk.f32.gmra.mxu3 %vm6221_vm8, %v16718_v50  ;;  %7979 = vmatmul.msk.f32.gmra.mxu1 %vm6221_vm8, %v16938_v17 }
 0x98f   :  { %7994 = vmatmul.msk.f32.gmra.mxu2 %vm6221_vm8, %v16951_v52 }
 0x990   :  { %7966 = vmatmul.msk.f32.gmra.mxu0 %vm6221_vm8, %v16951_v52 }
 0x991   :  { %8002 = vmatmul.msk.f32.gmra.mxu3 %vm6221_vm8, %v16808_v12  ;;  %7980 = vmatmul.msk.f32.gmra.mxu1 %vm6221_vm8, %v16951_v52 }
 0x997   :  { %7995 = vmatmul.msk.f32.gmra.mxu2 %vm6221_vm8, %v16964_v56 }
 0x998   :  { %7967 = vmatmul.msk.f32.gmra.mxu0 %vm6221_vm8, %v16964_v56 }
 0x999   :  { %8003 = vmatmul.msk.f32.gmra.mxu3 %vm6221_vm8, %v16861_v60  ;;  %7981 = vmatmul.msk.f32.gmra.mxu1 %vm6221_vm8, %v16964_v56 }
 0x99f   :  { %7996 = vmatmul.msk.f32.gmra.mxu2 %vm6221_vm8, %v16977_v25 }
 0x9a0   :  { %7968 = vmatmul.msk.f32.gmra.mxu0 %vm6221_vm8, %v16977_v25 }
 0x9a1   :  { %8004 = vmatmul.msk.f32.gmra.mxu3 %vm6221_vm8, %v16899_v0  ;;  %7982 = vmatmul.msk.f32.gmra.mxu1 %vm6221_vm8, %v16977_v25 }
 0x9a7   :  { %8039 = vmatmul.msk.f32.vlgmr.msrb.gmra.mxu2 %vm6221_vm8, %v16661_v2 }
 0x9a8   :  { %8011 = vmatmul.msk.f32.vlgmr.msrb.gmra.mxu0 %vm6221_vm8, %v16661_v2 }
 0x9a9   :  { %8005 = vmatmul.msk.f32.gmra.mxu3 %vm6221_vm8, %v16912_v6  ;;  %8025 = vmatmul.msk.f32.vlgmr.msrb.gmra.mxu1 %vm6221_vm8, %v16661_v2 }
 0x9af   :  { %8040 = vmatmul.msk.f32.gmra.mxu2 %vm6221_vm8, %v16676_v35 }
 0x9b0   :  { %8012 = vmatmul.msk.f32.gmra.mxu0 %vm6221_vm8, %v16676_v35 }
 0x9b1   :  { %8006 = vmatmul.msk.f32.gmra.mxu3 %vm6221_vm8, %v16925_v55  ;;  %8026 = vmatmul.msk.f32.gmra.mxu1 %vm6221_vm8, %v16676_v35 }
 0x9b5   :  { %v17003_v29 = vpop.f32.mrf.mxu0  ;;  %v17021_v35 = vpop.f32.mrf.mxu1 }
 0x9b6   :  { %v17015_v53 = vpop.f32.mrf.mxu2 }
 0x9b7   :  { %8041 = vmatmul.msk.f32.gmra.mxu2 %vm6221_vm8, %v16687_v1 }
 0x9b8   :  { %8013 = vmatmul.msk.f32.gmra.mxu0 %vm6221_vm8, %v16687_v1 }
 0x9b9   :  { %8007 = vmatmul.msk.f32.gmra.mxu3 %vm6221_vm8, %v16938_v17  ;;  %8027 = vmatmul.msk.f32.gmra.mxu1 %vm6221_vm8, %v16687_v1 }
 0x9bd   :  { %v17013_v2 = vpop.f32.mrf.mxu0  ;;  %v17038_v20 = vpop.f32.mrf.mxu1 }
 0x9be   :  { %v17034_v1 = vpop.f32.mrf.mxu2 }
 0x9bf   :  { %8042 = vmatmul.msk.f32.gmra.mxu2 %vm6221_vm8, %v16702_v24 }
 0x9c0   :  { %8014 = vmatmul.msk.f32.gmra.mxu0 %vm6221_vm8, %v16702_v24 }
 0x9c1   :  { %8008 = vmatmul.msk.f32.gmra.mxu3 %vm6221_vm8, %v16951_v52  ;;  %8028 = vmatmul.msk.f32.gmra.mxu1 %vm6221_vm8, %v16702_v24 }
 0x9c5   :  { %v6287_v62 = vpop.f32.mrf.mxu0 }
 0x9c6   :  { %6677 = vrot.lane.b32.xlu2 %v6287_v62, %s8246_s9  ;;  %v6405_v32 = vpop.f32.mrf.mxu2 }
 0x9c7   :  { %8043 = vmatmul.msk.f32.gmra.mxu2 %vm6221_vm8, %v16718_v50 }
 0x9c8   :  { %8015 = vmatmul.msk.f32.gmra.mxu0 %vm6221_vm8, %v16718_v50 }
 0x9c9   :  { %8009 = vmatmul.msk.f32.gmra.mxu3 %vm6221_vm8, %v16964_v56  ;;  %8029 = vmatmul.msk.f32.gmra.mxu1 %vm6221_vm8, %v16718_v50  ;;  %v6346_v50 = vpop.f32.mrf.mxu1 }
 0x9cd   :  { %v6290_v24 = vpop.f32.mrf.mxu0 }
 0x9ce   :  { %6679 = vrot.lane.b32.xlu0 %v6290_v24, %s8246_s9 }
 0x9cf   :  { %8044 = vmatmul.msk.f32.gmra.mxu2 %vm6221_vm8, %v16808_v12 }
 0x9d0   :  { %8016 = vmatmul.msk.f32.gmra.mxu0 %vm6221_vm8, %v16808_v12 }
 0x9d1   :  { %8010 = vmatmul.msk.f32.gmra.mxu3 %vm6221_vm8, %v16977_v25  ;;  %8030 = vmatmul.msk.f32.gmra.mxu1 %vm6221_vm8, %v16808_v12  ;;  %v6349_v46 = vpop.f32.mrf.mxu1  ;;  %v6408_v12 = vpop.f32.mrf.mxu2 }
 0x9d5   :  { %v6293_v22 = vpop.f32.mrf.mxu0 }
 0x9d6   :  { %6734 = vrot.lane.b32.xlu1 %v6293_v22, %s8247_s8 }
 0x9d7   :  { %8045 = vmatmul.msk.f32.gmra.mxu2 %vm6221_vm8, %v16861_v60 }
 0x9d8   :  { %8017 = vmatmul.msk.f32.gmra.mxu0 %vm6221_vm8, %v16861_v60 }
 0x9d9   :  { %8031 = vmatmul.msk.f32.gmra.mxu1 %vm6221_vm8, %v16861_v60  ;;  %v6352_v9 = vpop.f32.mrf.mxu1  ;;  %v6411_v47 = vpop.f32.mrf.mxu2 }
 0x9dd   :  { %v6296_v8 = vpop.f32.mrf.mxu0 }
 0x9de   :  { %6681 = vrot.lane.b32.xlu1 %v6346_v50, %s8246_s9  ;;  %6736 = vrot.lane.b32.xlu2 %v6296_v8, %s8247_s8 }
 0x9df   :  { %8046 = vmatmul.msk.f32.gmra.mxu2 %vm6221_vm8, %v16899_v0 }
 0x9e0   :  { %8018 = vmatmul.msk.f32.gmra.mxu0 %vm6221_vm8, %v16899_v0 }
 0x9e1   :  { %8032 = vmatmul.msk.f32.gmra.mxu1 %vm6221_vm8, %v16899_v0  ;;  %v6355_v59 = vpop.f32.mrf.mxu1  ;;  %v6414_v45 = vpop.f32.mrf.mxu2 }
 0x9e5   :  { %v6299_v57 = vpop.f32.mrf.mxu0 }
 0x9e6   :  { %6791 = vrot.lane.b32.xlu0 %v6299_v57, %s8248_s28 }
 0x9e7   :  { %8047 = vmatmul.msk.f32.gmra.mxu2 %vm6221_vm8, %v16912_v6 }
 0x9e8   :  { %8019 = vmatmul.msk.f32.gmra.mxu0 %vm6221_vm8, %v16912_v6 }
 0x9e9   :  { %8033 = vmatmul.msk.f32.gmra.mxu1 %vm6221_vm8, %v16912_v6  ;;  %v6358_v61 = vpop.f32.mrf.mxu1 }
 0x9ea   :  { %v6417_v4 = vpop.f32.mrf.mxu2 }
 0x9ec   :  { %v17071_v30 = vpop.f32.mrf.mxu3 }
 0x9ed   :  { %v6302_v10 = vpop.f32.mrf.mxu0 }
 0x9ee   :  { %6793 = vrot.lane.b32.xlu1 %v6302_v10, %s8248_s28  ;;  %6685 = vrot.lane.b32.xlu0 %v6405_v32, %s8246_s9 }
 0x9ef   :  { %8048 = vmatmul.msk.f32.gmra.mxu2 %vm6221_vm8, %v16925_v55 }
 0x9f0   :  { %8020 = vmatmul.msk.f32.gmra.mxu0 %vm6221_vm8, %v16925_v55 }
 0x9f1   :  { %8034 = vmatmul.msk.f32.gmra.mxu1 %vm6221_vm8, %v16925_v55  ;;  %v6361_v3 = vpop.f32.mrf.mxu1 }
 0x9f2   :  { %v6420_v27 = vpop.f32.mrf.mxu2 }
 0x9f4   :  { %v17081_v51 = vpop.f32.mrf.mxu3 }
 0x9f5   :  { %v6305_v14 = vpop.f32.mrf.mxu0 }
 0x9f6   :  { %6687 = vrot.lane.b32.xlu1 %v6408_v12, %s8246_s9 }
 0x9f7   :  { %8049 = vmatmul.msk.f32.gmra.mxu2 %vm6221_vm8, %v16938_v17 }
 0x9f8   :  { %8021 = vmatmul.msk.f32.gmra.mxu0 %vm6221_vm8, %v16938_v17 }
 0x9f9   :  { %8035 = vmatmul.msk.f32.gmra.mxu1 %vm6221_vm8, %v16938_v17  ;;  %v6364_v60 = vpop.f32.mrf.mxu1 }
 0x9fa   :  { %v6423_v16 = vpop.f32.mrf.mxu2 }
 0x9fc   :  { %v6464_v38 = vpop.f32.mrf.mxu3 }
 0x9fd   :  { %6689 = vrot.lane.b32.xlu2 %v6464_v38, %s8246_s9  ;;  %v6308_v44 = vpop.f32.mrf.mxu0 }
 0x9ff   :  { %8050 = vmatmul.msk.f32.gmra.mxu2 %vm6221_vm8, %v16951_v52 }
 0xa00   :  { %8022 = vmatmul.msk.f32.gmra.mxu0 %vm6221_vm8, %v16951_v52 }
 0xa01   :  { %8036 = vmatmul.msk.f32.gmra.mxu1 %vm6221_vm8, %v16951_v52  ;;  %v6367_v23 = vpop.f32.mrf.mxu1 }
 0xa02   :  { %v6426_v7 = vpop.f32.mrf.mxu2 }
 0xa04   :  { %v6467_v13 = vpop.f32.mrf.mxu3 }
 0xa05   :  { %6683 = vrot.lane.b32.xlu2 %v6349_v46, %s8246_s9  ;;  %6691 = vrot.lane.b32.xlu0 %v6467_v13, %s8246_s9  ;;  %v6311_v42 = vpop.f32.mrf.mxu0 }
 0xa07   :  { %8051 = vmatmul.msk.f32.gmra.mxu2 %vm6221_vm8, %v16964_v56 }
 0xa08   :  { %8023 = vmatmul.msk.f32.gmra.mxu0 %vm6221_vm8, %v16964_v56 }
 0xa09   :  { %8037 = vmatmul.msk.f32.gmra.mxu1 %vm6221_vm8, %v16964_v56  ;;  %v6370_v18 = vpop.f32.mrf.mxu1 }
 0xa0a   :  { %v6429_v39 = vpop.f32.mrf.mxu2 }
 0xa0c   :  { %v6470_v5 = vpop.f32.mrf.mxu3 }
 0xa0d   :  { %6848 = vrot.lane.b32.xlu2 %v6305_v14, %s8249_s14  ;;  %6738 = vrot.lane.b32.xlu0 %v6352_v9, %s8247_s8  ;;  %v6314_v28 = vpop.f32.mrf.mxu0 }
 0xa0e   :  { %6746 = vrot.lane.b32.xlu1 %v6470_v5, %s8247_s8 }
 0xa0f   :  { %8052 = vmatmul.msk.f32.gmra.mxu2 %vm6221_vm8, %v16977_v25 }
 0xa10   :  { %8024 = vmatmul.msk.f32.gmra.mxu0 %vm6221_vm8, %v16977_v25 }
 0xa11   :  { %8038 = vmatmul.msk.f32.gmra.mxu1 %vm6221_vm8, %v16977_v25  ;;  %v6373_v40 = vpop.f32.mrf.mxu1 }
 0xa12   :  { %v6432_v63 = vpop.f32.mrf.mxu2 }
 0xa14   :  { %v6473_v58 = vpop.f32.mrf.mxu3 }
 0xa15   :  { %6742 = vrot.lane.b32.xlu2 %v6411_v47, %s8247_s8  ;;  %6850 = vrot.lane.b32.xlu0 %v6308_v44, %s8249_s14  ;;  %v6317_v43 = vpop.f32.mrf.mxu0 }
 0xa16   :  { %6740 = vrot.lane.b32.xlu1 %v6355_v59, %s8247_s8 }
 0xa19   :  { %v6376_v37 = vpop.f32.mrf.mxu1 }
 0xa1a   :  { %v6435_v36 = vpop.f32.mrf.mxu2 }
 0xa1c   :  { %v6476_v49 = vpop.f32.mrf.mxu3 }
 0xa1d   :  { %6744 = vrot.lane.b32.xlu0 %v6414_v45, %s8247_s8  ;;  %6748 = vrot.lane.b32.xlu2 %v6473_v58, %s8247_s8  ;;  %v6320_v19 = vpop.f32.mrf.mxu0 }
 0xa1e   :  { %6905 = vrot.lane.b32.xlu1 %v6311_v42, %s8250_s15 }
 0xa20   :  { %v17143_v17 = vpop.permute.xlu2 %6677 }
 0xa21   :  { %v6379_v33 = vpop.f32.mrf.mxu1 }
 0xa22   :  { %v6438_v31 = vpop.f32.mrf.mxu2 }
 0xa24   :  { %v6479_v54 = vpop.f32.mrf.mxu3 }
 0xa25   :  { %6795 = vrot.lane.b32.xlu2 %v6358_v61, %s8248_s28  ;;  %6803 = vrot.lane.b32.xlu0 %v6476_v49, %s8248_s28  ;;  %v17123_v15 = vpop.f32.mrf.mxu0 }
 0xa26   :  { %6799 = vrot.lane.b32.xlu1 %v6417_v4, %s8248_s28 }
 0xa29   :  { %v17136_v41 = vpop.f32.mrf.mxu1 }
 0xa2a   :  { %v17138_v0 = vpop.f32.mrf.mxu2 }
 0xa2c   :  { %v6482_v48 = vpop.f32.mrf.mxu3 }
 0xa2d   :  { %6907 = vrot.lane.b32.xlu2 %v6314_v28, %s8250_s15  ;;  %6797 = vrot.lane.b32.xlu0 %v6361_v3, %s8248_s28  ;;  %v17128_v21 = vpop.f32.mrf.mxu0 }
 0xa2e   :  { %6805 = vrot.lane.b32.xlu1 %v6479_v54, %s8248_s28 }
 0xa31   :  { %v17145_v52 = vpop.f32.mrf.mxu1 }
 0xa32   :  { %v17147_v56 = vpop.f32.mrf.mxu2 }
 0xa34   :  { %v6485_v34 = vpop.f32.mrf.mxu3 }
 0xa35   :  { %6801 = vrot.lane.b32.xlu2 %v6420_v27, %s8248_s28  ;;  %6962 = vrot.lane.b32.xlu0 %v6317_v43, %s8251_s16  ;;  %v6523_v26 = vpop.f32.mrf.mxu0 }
 0xa36   :  { %6852 = vrot.lane.b32.xlu1 %v6364_v60, %s8249_s14 }
 0xa38   :  { %v17154_v62 = vpop.permute.xlu2 %6736 }
 0xa39   :  { %v6582_v50 = vpop.f32.mrf.mxu1 }
 0xa3a   :  { %v6641_v8 = vpop.f32.mrf.mxu2 }
 0xa3c   :  { %v6488_v6 = vpop.f32.mrf.mxu3 }
 0xa3d   :  { %6856 = vrot.lane.b32.xlu0 %v6423_v16, %s8249_s14  ;;  %6860 = vrot.lane.b32.xlu2 %v6482_v48, %s8249_s14  ;;  %v6526_v55 = vpop.f32.mrf.mxu0 }
 0xa3e   :  { %6964 = vrot.lane.b32.xlu1 %v6320_v19, %s8251_s16 }
 0xa40   :  { %v17156_v24 = vpop.permute.xlu0 %6679 }
 0xa41   :  { %v6585_v10 = vpop.f32.mrf.mxu1 }
 0xa42   :  { %v6644_v59 = vpop.f32.mrf.mxu2 }
 0xa44   :  { %v6491_v32 = vpop.f32.mrf.mxu3 }
 0xa45   :  { %6854 = vrot.lane.b32.xlu2 %v6367_v23, %s8249_s14  ;;  %6862 = vrot.lane.b32.xlu0 %v6485_v34, %s8249_s14  ;;  %v6529_v22 = vpop.f32.mrf.mxu0 }
 0xa46   :  { %6858 = vrot.lane.b32.xlu1 %v6426_v7, %s8249_s14 }
 0xa48   :  { %v17151_v25 = vpop.permute.xlu1 %6734 }
 0xa49   :  { %v6588_v44 = vpop.f32.mrf.mxu1 }
 0xa4a   :  { %v6647_v13 = vpop.f32.mrf.mxu2 }
 0xa4c   :  { %v6494_v9 = vpop.f32.mrf.mxu3 }
 0xa4d   :  { %6913 = vrot.lane.b32.xlu2 %v6429_v39, %s8250_s15  ;;  %6909 = vrot.lane.b32.xlu0 %v6370_v18, %s8250_s15  ;;  %v6532_v47 = vpop.f32.mrf.mxu0 }
 0xa4e   :  { %6917 = vrot.lane.b32.xlu1 %v6488_v6, %s8250_s15 }
 0xa50   :  { %v6682_v12 = vpop.permute.xlu1 %6681 }
 0xa51   :  { %v6591_v28 = vpop.f32.mrf.mxu1  ;;  %v6716_v39 = vsel %vm6705_vm9, %v17143_v17, %v6682_v12 }
 0xa52   :  { %v6650_v23 = vpop.f32.mrf.mxu2 }
 0xa54   :  { %v6497_v60 = vpop.f32.mrf.mxu3 }
 0xa55   :  { %6915 = vrot.lane.b32.xlu0 %v6432_v63, %s8250_s15  ;;  %6919 = vrot.lane.b32.xlu2 %v6491_v32, %s8250_s15  ;;  %v6535_v38 = vpop.f32.mrf.mxu0 }
 0xa56   :  { %6911 = vrot.lane.b32.xlu1 %v6373_v40, %s8250_s15  ;;  %v6720_v40 = vadd.f32 %v6716_v39, %v17003_v29 }
 0xa57   :  { %v17161_v46 = vpop.permute.xlu2 %6689 }
 0xa58   :  { %v17163_v57 = vpop.permute.xlu0 %6791 }
 0xa59   :  { %v6594_v18 = vpop.f32.mrf.mxu1 }
 0xa5a   :  { %v17193_v19 = vpop.f32.mrf.mxu2 }
 0xa5d   :  { %6966 = vrot.lane.b32.xlu2 %v6376_v37, %s8251_s16  ;;  %6974 = vrot.lane.b32.xlu0 %v6494_v9, %s8251_s16  ;;  %v6538_v16 = vpop.f32.mrf.mxu0 }
 0xa5e   :  { %6693 = vrot.lane.b32.xlu1 %v6523_v26, %s8246_s9 }
 0xa5f   :  { %v6684_v45 = vpop.permute.xlu2 %6683 }
 0xa60   :  { %v17169_v14 = vpop.permute.xlu1 %6793  ;;  %v6686_v61 = vpop.permute.xlu0 %6685 }
 0xa61   :  { %v6714_v4 = vsel %vm6705_vm9, %v6682_v12, %v6686_v61  ;;  %v6712_v49 = vsel %vm6705_vm9, %v6686_v61, %v17161_v46  ;;  %v6597_v32 = vpop.f32.mrf.mxu1 }
 0xa62   :  { %v6721_v63 = vadd.f32 %v6714_v4, %v17021_v35 }
 0xa65   :  { %6968 = vrot.lane.b32.xlu0 %v6379_v33, %s8251_s16  ;;  %6695 = vrot.lane.b32.xlu2 %v6526_v55, %s8246_s9  ;;  %v6541_v58 = vpop.f32.mrf.mxu0 }
 0xa66   :  { %6970 = vrot.lane.b32.xlu1 %v6435_v36, %s8251_s16  ;;  %v6722_v36 = vadd.f32 %v6712_v49, %v17015_v53 }
 0xa67   :  { %v17176_v3 = vpop.permute.xlu2 %6848 }
 0xa68   :  { %v6688_v27 = vpop.permute.xlu1 %6687 }
 0xa69   :  { %v6715_v42 = vsel %vm6705_vm9, %v6684_v45, %v6688_v27  ;;  %v6600_v4 = vpop.f32.mrf.mxu1 }
 0xa6d   :  { %6972 = vrot.lane.b32.xlu2 %v6438_v31, %s8251_s16  ;;  %6750 = vrot.lane.b32.xlu0 %v6529_v22, %s8247_s8  ;;  %v6544_v6 = vpop.f32.mrf.mxu0  ;;  %v6717_v22 = vsel %vm6705_vm9, %v17156_v24, %v6684_v45 }
 0xa6e   :  { %6976 = vrot.lane.b32.xlu1 %v6497_v60, %s8251_s16  ;;  %v6727_v9 = vadd.f32 %v6717_v22, %v17013_v2  ;;  %v6728_v2 = vadd.f32 %v6715_v42, %v17038_v20 }
 0xa6f   :  { %v6743_v5 = vpop.permute.xlu2 %6742 }
 0xa75   :  { %6697 = vrot.lane.b32.xlu0 %v6582_v50, %s8246_s9  ;;  %6807 = vrot.lane.b32.xlu2 %v6535_v38, %s8248_s28  ;;  %v6656_v50 = vpop.f32.mrf.mxu2 }
 0xa76   :  { %6752 = vrot.lane.b32.xlu1 %v6532_v47, %s8247_s8 }
 0xa77   :  { %v17186_v7 = vpop.permute.xlu0 %6691  ;;  %v17188_v43 = vpop.permute.xlu2 %6748 }
 0xa78   :  { %v6713_v45 = vsel %vm6705_vm9, %v6688_v27, %v17186_v7 }
 0xa79   :  { %v6729_v38 = vadd.f32 %v6713_v45, %v17034_v1 }
 0xa7d   :  { %6701 = vrot.lane.b32.xlu2 %v6641_v8, %s8246_s9  ;;  %6809 = vrot.lane.b32.xlu0 %v6538_v16, %s8248_s28 }
 0xa7e   :  { %6699 = vrot.lane.b32.xlu1 %v6585_v10, %s8246_s9 }
 0xa7f   :  { %v6739_v54 = vpop.permute.xlu0 %6738  ;;  %v6796_v37 = vpop.permute.xlu2 %6795 }
 0xa80   :  { %v6771_v48 = vsel %vm6762_vm10, %v6739_v54, %v6743_v5  ;;  %v6773_v33 = vsel %vm6762_vm10, %v17151_v25, %v6739_v54  ;;  %v17211_v31 = vpop.permute.xlu1 %6746  ;;  %v6830_v53 = vsel %vm6819_vm11, %v17163_v57, %v6796_v37 }
 0xa81   :  { %v6777_v34 = vadd.f32 %v6773_v33, %v6720_v40  ;;  %v6778_v26 = vadd.f32 %v6771_v48, %v6721_v63  ;;  %v6769_v29 = vsel %vm6762_vm10, %v6743_v5, %v17211_v31 }
 0xa82   :  { %v6779_v35 = vadd.f32 %v6769_v29, %v6722_v36 }
 0xa83   :  { %v17219_v55 = vadd.f32 %v6830_v53, %v6777_v34 }
 0xa85   :  { %6754 = vrot.lane.b32.xlu2 %v6588_v44, %s8247_s8  ;;  %6703 = vrot.lane.b32.xlu0 %v6644_v59, %s8246_s9  ;;  %v6547_v59 = vpop.f32.mrf.mxu0 }
 0xa86   :  { %6864 = vrot.lane.b32.xlu1 %v6541_v58, %s8249_s14 }
 0xa87   :  { %v17227_v8 = vpop.permute.xlu0 %6850  ;;  %v17229_v12 = vpop.permute.xlu2 %6907 }
 0xa88   :  { %v6741_v47 = vpop.permute.xlu1 %6740 }
 0xa89   :  { %v6774_v10 = vsel %vm6762_vm10, %v17154_v62, %v6741_v47 }
 0xa8a   :  { %v6784_v61 = vadd.f32 %v6774_v10, %v6727_v9 }
 0xa8d   :  { %6756 = vrot.lane.b32.xlu0 %v6591_v28, %s8247_s8  ;;  %6866 = vrot.lane.b32.xlu2 %v6544_v6, %s8249_s14  ;;  %v6659_v28 = vpop.f32.mrf.mxu2  ;;  %v6550_v1 = vpop.f32.mrf.mxu0 }
 0xa8e   :  { %6758 = vrot.lane.b32.xlu1 %v6647_v13, %s8247_s8 }
 0xa8f   :  { %v6745_v44 = vpop.permute.xlu0 %6744  ;;  %v6802_v60 = vpop.permute.xlu2 %6801 }
 0xa90   :  { %v6770_v16 = vsel %vm6762_vm10, %v6745_v44, %v17188_v43  ;;  %v6772_v27 = vsel %vm6762_vm10, %v6741_v47, %v6745_v44  ;;  %v17248_v5 = vpop.permute.xlu1 %6905 }
 0xa91   :  { %v6785_v58 = vadd.f32 %v6772_v27, %v6728_v2  ;;  %v6786_v39 = vadd.f32 %v6770_v16, %v6729_v38 }
 0xa95   :  { %6760 = vrot.lane.b32.xlu2 %v6650_v23, %s8247_s8  ;;  %6921 = vrot.lane.b32.xlu0 %v6547_v59, %s8250_s15  ;;  %v6603_v23 = vpop.f32.mrf.mxu1  ;;  %v6662_v36 = vpop.f32.mrf.mxu2 }
 0xa96   :  { %6811 = vrot.lane.b32.xlu1 %v6594_v18, %s8248_s28 }
 0xa97   :  { %v17253_v20 = vpop.permute.xlu0 %6803  ;;  %v17255_v13 = vpop.permute.xlu2 %6860 }
 0xa98   :  { %v6800_v42 = vpop.permute.xlu1 %6799 }
 0xa99   :  { %v6828_v49 = vsel %vm6819_vm11, %v6796_v37, %v6800_v42  ;;  %v6826_v40 = vsel %vm6819_vm11, %v6800_v42, %v17253_v20 }
 0xa9a   :  { %v6835_v63 = vadd.f32 %v6828_v49, %v6778_v26  ;;  %v6836_v54 = vadd.f32 %v6826_v40, %v6779_v35  ;;  %v6553_v26 = vpop.f32.mrf.mxu0 }
 0xa9d   :  { %6813 = vrot.lane.b32.xlu2 %v6597_v32, %s8248_s28  ;;  %6815 = vrot.lane.b32.xlu0 %v17193_v19, %s8248_s28  ;;  %v6606_v22 = vpop.f32.mrf.mxu1  ;;  %v6665_v9 = vpop.f32.mrf.mxu2 }
 0xa9e   :  { %6923 = vrot.lane.b32.xlu1 %v6550_v1, %s8250_s15 }
 0xa9f   :  { %v6798_v18 = vpop.permute.xlu0 %6797  ;;  %v6855_v48 = vpop.permute.xlu2 %6854 }
 0xaa0   :  { %v6829_v37 = vsel %vm6819_vm11, %v6798_v18, %v6802_v60  ;;  %v6831_v33 = vsel %vm6819_vm11, %v17169_v14, %v6798_v18  ;;  %v17272_v34 = vpop.permute.xlu1 %6805  ;;  %v6888_v6 = vsel %vm6876_vm12, %v17227_v8, %v6855_v48 }
 0xaa1   :  { %v6841_v29 = vadd.f32 %v6831_v33, %v6784_v61  ;;  %v6842_v35 = vadd.f32 %v6829_v37, %v6785_v58  ;;  %v6827_v19 = vsel %vm6819_vm11, %v6802_v60, %v17272_v34 }
 0xaa2   :  { %v6843_v53 = vadd.f32 %v6827_v19, %v6786_v39  ;;  %v6556_v2 = vpop.f32.mrf.mxu0 }
 0xaa3   :  { %v17280_v32 = vadd.f32 %v6888_v6, %v6841_v29 }
 0xaa5   :  { %6868 = vrot.lane.b32.xlu0 %v6600_v4, %s8249_s14  ;;  %6978 = vrot.lane.b32.xlu2 %v6553_v26, %s8251_s16  ;;  %v6609_v4 = vpop.f32.mrf.mxu1  ;;  %v6668_v38 = vpop.f32.mrf.mxu2 }
 0xaa6   :  { %6817 = vrot.lane.b32.xlu1 %v6656_v50, %s8248_s28 }
 0xaa7   :  { %v17285_v47 = vpop.permute.xlu0 %6962  ;;  %v6914_v10 = vpop.permute.xlu2 %6913 }
 0xaa8   :  { %v6853_v61 = vpop.permute.xlu1 %6852 }
 0xaa9   :  { %v6887_v45 = vsel %vm6876_vm12, %v17176_v3, %v6853_v61 }
 0xaaa   :  { %v6891_v59 = vadd.f32 %v6887_v45, %v17219_v55 }
 0xaad   :  { %6872 = vrot.lane.b32.xlu2 %v6659_v28, %s8249_s14  ;;  %6980 = vrot.lane.b32.xlu0 %v6556_v2, %s8251_s16  ;;  %v6612_v42 = vpop.f32.mrf.mxu1 }
 0xaae   :  { %6870 = vrot.lane.b32.xlu1 %v6603_v23, %s8249_s14 }
 0xaaf   :  { %v6857_v50 = vpop.permute.xlu0 %6856  ;;  %v17294_v44 = vpop.permute.xlu2 %6919 }
 0xab0   :  { %v6883_v60 = vsel %vm6876_vm12, %v6857_v50, %v17255_v13  ;;  %v6885_v16 = vsel %vm6876_vm12, %v6853_v61, %v6857_v50  ;;  %v17301_v55 = vpop.permute.xlu1 %6964 }
 0xab1   :  { %v6892_v27 = vadd.f32 %v6885_v16, %v6835_v63  ;;  %v6893_v28 = vadd.f32 %v6883_v60, %v6836_v54  ;;  %v6671_v63 = vpop.f32.mrf.mxu2  ;;  %v7019_v16 = vld [vmem:[%s17566_s10] sm:$0xff] }
 0xab5   :  { %6925 = vrot.lane.b32.xlu2 %v6606_v22, %s8250_s15  ;;  %6874 = vrot.lane.b32.xlu0 %v6662_v36, %s8249_s14  ;;  %v6615_v6 = vpop.f32.mrf.mxu1 }
 0xab6   :  { %6929 = vrot.lane.b32.xlu1 %v6665_v9, %s8250_s15 }
 0xab7   :  { %v17306_v58 = vpop.permute.xlu0 %6862  ;;  %v6967_v39 = vpop.permute.xlu2 %6966 }
 0xab8   :  { %v6859_v1 = vpop.permute.xlu1 %6858  ;;  %v7001_v19 = vsel %vm6990_vm14, %v17285_v47, %v6967_v39 }
 0xab9   :  { %v6886_v49 = vsel %vm6876_vm12, %v6855_v48, %v6859_v1  ;;  %v6884_v40 = vsel %vm6876_vm12, %v6859_v1, %v17306_v58  ;;  %v6674_v9 = vpop.f32.mrf.mxu2 }
 0xaba   :  { %v6899_v54 = vadd.f32 %v6886_v49, %v6842_v35  ;;  %v6900_v23 = vadd.f32 %v6884_v40, %v6843_v53 }
 0xabd   :  { %6931 = vrot.lane.b32.xlu2 %v6668_v38, %s8250_s15  ;;  %6927 = vrot.lane.b32.xlu0 %v6609_v4, %s8250_s15 }
 0xabe   :  { %6982 = vrot.lane.b32.xlu1 %v6612_v42, %s8251_s16 }
 0xabf   :  { %v6910_v36 = vpop.permute.xlu0 %6909  ;;  %v17318_v18 = vpop.permute.xlu2 %6695 }
 0xac0   :  { %v6942_v48 = vsel %vm6933_vm13, %v6910_v36, %v6914_v10  ;;  %v6944_v37 = vsel %vm6933_vm13, %v17248_v5, %v6910_v36  ;;  %v17325_v33 = vpop.permute.xlu1 %6917 }
 0xac1   :  { %v6948_v26 = vadd.f32 %v6944_v37, %v6891_v59  ;;  %v6949_v29 = vadd.f32 %v6942_v48, %v6892_v27  ;;  %v6940_v35 = vsel %vm6933_vm13, %v6914_v10, %v17325_v33  ;;  %v7020_v27 = vld [vmem:[%s17566_s10 + $0x8] sm:$0x3]  ;;  %s8252_s10 = smov [#allocation2]  }
 0xac2   :  { %v6950_v53 = vadd.f32 %v6940_v35, %v6893_v28  ;;  %s7063_s18 = sshll.u32 %s8252_s10, 4  ;;  %s7064_s18 = int_to_ptr.vmem [resolvable:$true] %s7063_s18 }
 0xac3   :  { %v17333_v22 = vadd.f32 %v7001_v19, %v6948_v26 }
 0xac5   :  { %6984 = vrot.lane.b32.xlu2 %v6615_v6, %s8251_s16  ;;  %6986 = vrot.lane.b32.xlu0 %v6671_v63, %s8251_s16 }
 0xac6   :  { %6988 = vrot.lane.b32.xlu1 %v6674_v9, %s8251_s16 }
 0xac7   :  { %v6916_v61 = vpop.permute.xlu0 %6915  ;;  %v6973_v45 = vpop.permute.xlu2 %6972 }
 0xac8   :  { %v6941_v10 = vsel %vm6933_vm13, %v6916_v61, %v17294_v44  ;;  %v6912_v59 = vpop.permute.xlu1 %6911 }
 0xac9   :  { %v6957_v2 = vadd.f32 %v6941_v10, %v6900_v23  ;;  %v6943_v4 = vsel %vm6933_vm13, %v6912_v59, %v6916_v61  ;;  %v6945_v38 = vsel %vm6933_vm13, %v17229_v12, %v6912_v59 }
 0xaca   :  { %v6955_v50 = vadd.f32 %v6945_v38, %v17280_v32  ;;  %v6956_v60 = vadd.f32 %v6943_v4, %v6899_v54 }
 0xacd   :  { %7023 = vperm.xlu2 %8079, %v7019_v16   ;;  %7028 = vperm.xlu0 %8080, %v7020_v27  }
 0xacf   :  { %v17353_v28 = vpop.permute.xlu0 %6974  ;;  %v17355_v1 = vpop.permute.xlu2 %6807 }
 0xad0   :  { %v6694_v42 = vpop.permute.xlu1 %6693  ;;  %v6824_v32 = vsel %vm6819_vm11, %v17253_v20, %v17355_v1 }
 0xad1   :  { %v6710_v19 = vsel %vm6705_vm9, %v17161_v46, %v6694_v42 }
 0xad2   :  { %v6723_v6 = vadd.f32 %v6710_v19, %v17071_v30  ;;  %v6711_v30 = vsel %vm6705_vm9, %v17186_v7, %v17318_v18 }
 0xad7   :  { %v6969_v49 = vpop.permute.xlu0 %6968  ;;  %v17361_v40 = vpop.permute.xlu2 %6701 }
 0xad8   :  { %v7000_v63 = vsel %vm6990_vm14, %v6969_v49, %v6973_v45  ;;  %v7002_v54 = vsel %vm6990_vm14, %v17301_v55, %v6969_v49  ;;  %v6971_v23 = vpop.permute.xlu1 %6970 }
 0xad9   :  { %v17368_v36 = vadd.f32 %v7002_v54, %v6955_v50  ;;  %v17370_v48 = vadd.f32 %v7000_v63, %v6956_v60  ;;  %v6997_v37 = vsel %vm6990_vm14, %v6971_v23, %v17353_v28  ;;  %v6999_v20 = vsel %vm6990_vm14, %v6967_v39, %v6971_v23 }
 0xada   :  { %v17377_v26 = vadd.f32 %v6999_v20, %v6949_v29  ;;  %v17379_v35 = vadd.f32 %v6997_v37, %v6950_v53 }
 0xadf   :  { %v6751_v9 = vpop.permute.xlu0 %6750  ;;  %v6755_v61 = vpop.permute.xlu2 %6754 }
 0xae0   :  { %v17385_v10 = vpop.permute.xlu1 %6976  ;;  %v6767_v59 = vsel %vm6762_vm10, %v17211_v31, %v6751_v9  ;;  %v6765_v39 = vsel %vm6762_vm10, %v6751_v9, %v6755_v61  ;;  %v6730_v31 = vadd.f32 %v6711_v30, %v17081_v51 }
 0xae1   :  { %v6998_v29 = vsel %vm6990_vm14, %v6973_v45, %v17385_v10  ;;  %v6780_v53 = vadd.f32 %v6767_v59, %v6723_v6 }
 0xae2   :  { %v17395_v4 = vadd.f32 %v6998_v29, %v6957_v2 }
 0xae3   :  { %v6837_v46 = vadd.f32 %v6824_v32, %v6780_v53 }
 0xae7   :  { %v6698_v38 = vpop.permute.xlu0 %6697  ;;  %v17401_v50 = vpop.permute.xlu2 %6866 }
 0xae8   :  { %v6706_v60 = vsel %vm6705_vm9, %v6698_v38, %v17361_v40  ;;  %v6708_v45 = vsel %vm6705_vm9, %v6694_v42, %v6698_v38  ;;  %v6753_v2 = vpop.permute.xlu1 %6752  ;;  %v6882_v16 = vsel %vm6876_vm12, %v17306_v58, %v17401_v50 }
 0xae9   :  { %v6724_v7 = vadd.f32 %v6708_v45, %v17123_v15  ;;  %v6768_v27 = vsel %vm6762_vm10, %v17188_v43, %v6753_v2 }
 0xaea   :  { %v6787_v51 = vadd.f32 %v6768_v27, %v6730_v31 }
 0xaeb   :  { %v6781_v32 = vadd.f32 %v6765_v39, %v6724_v7 }
 0xaef   :  { %v6810_v49 = vpop.permute.xlu0 %6809  ;;  %v6761_v63 = vpop.permute.xlu2 %6760 }
 0xaf0   :  { %v6700_v54 = vpop.permute.xlu1 %6699  ;;  %v6825_v42 = vsel %vm6819_vm11, %v17272_v34, %v6810_v49 }
 0xaf1   :  { %v6709_v23 = vsel %vm6705_vm9, %v17318_v18, %v6700_v54  ;;  %v6844_v58 = vadd.f32 %v6825_v42, %v6787_v51  ;;  %v6776_v18 = vsel %vm6762_vm10, %v6761_v63, %v17154_v62 }
 0xaf2   :  { %v6731_v39 = vadd.f32 %v6709_v23, %v17128_v21 }
 0xaf3   :  { %v6901_v37 = vadd.f32 %v6882_v16, %v6844_v58 }
 0xaf7   :  { %v6704_v15 = vpop.permute.xlu0 %6703  ;;  %v6814_v20 = vpop.permute.xlu2 %6813 }
 0xaf8   :  { %v6707_v43 = vsel %vm6705_vm9, %v6700_v54, %v6704_v15  ;;  %v6719_v19 = vsel %vm6705_vm9, %v6704_v15, %v17156_v24  ;;  %v6865_v6 = vpop.permute.xlu1 %6864  ;;  %v6823_v9 = vsel %vm6819_vm11, %v6810_v49, %v6814_v20  ;;  %v6725_v24 = vadd.f32 %v6706_v60, %v17136_v41 }
 0xaf9   :  { %v6733_v34 = vadd.f32 %v6719_v19, %v17147_v56  ;;  %v6732_v29 = vadd.f32 %v6707_v43, %v17145_v52  ;;  %v6881_v52 = vsel %vm6876_vm12, %v17255_v13, %v6865_v6 }
 0xafa   :  { %v6894_v27 = vadd.f32 %v6881_v52, %v6837_v46 }
 0xafb   :  { %v17434_v59 = vadd.f32 %v6776_v18, %v6733_v34 }
 0xaff   :  { %v6757_v53 = vpop.permute.xlu0 %6756  ;;  %v17438_v30 = vpop.permute.xlu2 %6978 }
 0xb00   :  { %v6764_v38 = vsel %vm6762_vm10, %v6757_v53, %v6761_v63  ;;  %v6766_v56 = vsel %vm6762_vm10, %v6753_v2, %v6757_v53  ;;  %v6759_v31 = vpop.permute.xlu1 %6758 }
 0xb01   :  { %v6788_v45 = vadd.f32 %v6766_v56, %v6731_v39  ;;  %v6789_v62 = vadd.f32 %v6764_v38, %v6732_v29  ;;  %v6763_v16 = vsel %vm6762_vm10, %v6755_v61, %v6759_v31  ;;  %v6995_v61 = vsel %vm6990_vm14, %v17353_v28, %v17438_v30 }
 0xb02   :  { %v6782_v21 = vadd.f32 %v6763_v16, %v6725_v24 }
 0xb03   :  { %v6845_v7 = vadd.f32 %v6823_v9, %v6788_v45 }
 0xb07   :  { %v6922_v41 = vpop.permute.xlu0 %6921  ;;  %v6873_v60 = vpop.permute.xlu2 %6872 }
 0xb08   :  { %v6812_v51 = vpop.permute.xlu1 %6811  ;;  %v6938_v2 = vsel %vm6933_vm13, %v17325_v33, %v6922_v41 }
 0xb09   :  { %v6822_v49 = vsel %vm6819_vm11, %v17355_v1, %v6812_v51  ;;  %v6951_v63 = vadd.f32 %v6938_v2, %v6894_v27 }
 0xb0a   :  { %v6838_v54 = vadd.f32 %v6822_v49, %v6781_v32 }
 0xb0b   :  { %v7008_v13 = vadd.f32 %v6995_v61, %v6951_v63 }
 0xb0f   :  { %v6816_v46 = vpop.permute.xlu0 %6815  ;;  %v6926_v42 = vpop.permute.xlu2 %6925 }
 0xb10   :  { %v6924_v23 = vpop.permute.xlu1 %6923  ;;  %v6936_v16 = vsel %vm6933_vm13, %v6922_v41, %v6926_v42  ;;  %v6889_v41 = vsel %vm6876_vm12, %v6873_v60, %v17176_v3 }
 0xb11   :  { %v6939_v1 = vsel %vm6933_vm13, %v17294_v44, %v6924_v23 }
 0xb12   :  { %v6958_v9 = vadd.f32 %v6939_v1, %v6901_v37 }
 0xb17   :  { %v6869_v58 = vpop.permute.xlu0 %6868  ;;  %v17460_v15 = vpop.permute.xlu2 %6931 }
 0xb18   :  { %v6818_v43 = vpop.permute.xlu1 %6817  ;;  %v6879_v45 = vsel %vm6876_vm12, %v6865_v6, %v6869_v58 }
 0xb19   :  { %v6821_v33 = vsel %vm6819_vm11, %v6814_v20, %v6818_v43 }
 0xb1a   :  { %v17464_v19 = vadd.f32 %v6821_v33, %v6789_v62  ;;  %v6775_v62 = vsel %vm6762_vm10, %v6759_v31, %v17151_v25  ;;  %v6877_v31 = vsel %vm6876_vm12, %v6869_v58, %v6873_v60 }
 0xb1f   :  { %v17469_v28 = vpop.permute.xlu2 %6984  ;;  %v17471_v32 = vpop.permute.xlu0 %6980 }
 0xb20   :  { %v6871_v34 = vpop.permute.xlu1 %6870  ;;  %v6996_v18 = vsel %vm6990_vm14, %v17385_v10, %v17471_v32 }
 0xb21   :  { %v6880_v20 = vsel %vm6876_vm12, %v17401_v50, %v6871_v34  ;;  %v17480_v39 = vadd.f32 %v6996_v18, %v6958_v9  ;;  %v6718_v50 = vsel %vm6705_vm9, %v17361_v40, %v17143_v17  ;;  %v6820_v40 = vsel %vm6819_vm11, %v6812_v51, %v6816_v46 }
 0xb22   :  { %v6902_v29 = vadd.f32 %v6880_v20, %v6845_v7 }
 0xb27   :  { %v7024_v53 = vpop.permute.xlu2 %7023  ;;  %v6875_v44 = vpop.permute.xlu0 %6874 }
 0xb28   :  { %v6930_v37 = vpop.permute.xlu1 %6929  ;;  %v7031_v24 = vadd.f32 %v7024_v53, %v17333_v22  ;;  %v7032_v38 = vadd.f32 %v7024_v53, %v17377_v26  ;;  %v7033_v56 = vadd.f32 %v7024_v53, %v17379_v35  ;;  %v7034_v10 = vadd.f32 %v7024_v53, %v7008_v13 }
 0xb29   :  { %v6895_v22 = vadd.f32 %v6879_v45, %v6838_v54  ;;  %v6726_v26 = vadd.f32 %v6718_v50, %v17138_v0  ;;  %v6832_v35 = vsel %vm6819_vm11, %v6816_v46, %v17163_v57  ;;  %v6839_v57 = vadd.f32 %v6820_v40, %v6782_v21 }
 0xb2a   :  { %7045 = vst [vmem:[#allocation2] sm:$0xff] %v7031_v24  ;;  %v6934_v2 = vsel %vm6933_vm13, %v6926_v42, %v6930_v37  ;;  %v6946_v51 = vsel %vm6933_vm13, %v6930_v37, %v17248_v5  ;;  %v6890_v3 = vsel %vm6876_vm12, %v6875_v44, %v17227_v8 }
 0xb2b   :  { %7046 = vst [vmem:[#allocation2 + $0x8] sm:$0xff] %v7032_v38  ;;  %v6783_v6 = vadd.f32 %v6775_v62, %v6726_v26  ;;  %v6952_v52 = vadd.f32 %v6936_v16, %v6895_v22  ;;  %v6896_v63 = vadd.f32 %v6877_v31, %v6839_v57 }
 0xb2c   :  { %7047 = vst [vmem:[#allocation2 + $0x10] sm:$0xff] %v7033_v56 }
 0xb2d   :  { %7048 = vst [vmem:[#allocation2 + $0x18] sm:$0xff] %v7034_v10  ;;  %v6840_v25 = vadd.f32 %v6832_v35, %v6783_v6  ;;  %v6953_v21 = vadd.f32 %v6934_v2, %v6896_v63 }
 0xb2f   :  { %v6928_v17 = vpop.permute.xlu0 %6927  ;;  %v6897_v61 = vadd.f32 %v6889_v41, %v6840_v25 }
 0xb30   :  { %v6983_v7 = vpop.permute.xlu1 %6982  ;;  %v6935_v18 = vsel %vm6933_vm13, %v6928_v17, %v17460_v15 }
 0xb31   :  { %v6993_v0 = vsel %vm6990_vm14, %v17438_v30, %v6983_v7  ;;  %v6833_v30 = vsel %vm6819_vm11, %v6818_v43, %v17169_v14  ;;  %v6954_v54 = vadd.f32 %v6946_v51, %v6897_v61  ;;  %v6937_v14 = vsel %vm6933_vm13, %v6924_v23, %v6928_v17 }
 0xb32   :  { %v7009_v27 = vadd.f32 %v6993_v0, %v6952_v52  ;;  %v6847_v46 = vadd.f32 %v6833_v30, %v17434_v59  ;;  %v6878_v43 = vsel %vm6876_vm12, %v6871_v34, %v6875_v44  ;;  %v6959_v20 = vadd.f32 %v6937_v14, %v6902_v29 }
 0xb33   :  { %v6947_v59 = vsel %vm6933_vm13, %v17460_v15, %v17229_v12  ;;  %v6994_v34 = vsel %vm6990_vm14, %v17471_v32, %v17469_v28 }
 0xb34   :  { %v7035_v49 = vadd.f32 %v7024_v53, %v7009_v27  ;;  %v6904_v33 = vadd.f32 %v6890_v3, %v6847_v46  ;;  %v7016_v37 = vadd.f32 %v6994_v34, %v6959_v20 }
 0xb36   :  { %7049 = vst [vmem:[#allocation2 + $0x20] sm:$0xff] %v7035_v49  ;;  %v6961_v29 = vadd.f32 %v6947_v59, %v6904_v33 }
 0xb37   :  { %v6987_v13 = vpop.permute.xlu0 %6986 }
 0xb38   :  { %v6991_v60 = vsel %vm6990_vm14, %v6983_v7, %v6987_v13  ;;  %v7003_v5 = vsel %vm6990_vm14, %v6987_v13, %v17285_v47  ;;  %v6989_v1 = vpop.permute.xlu1 %6988  ;;  %v6903_v47 = vadd.f32 %v6878_v43, %v17464_v19 }
 0xb39   :  { %v7010_v42 = vadd.f32 %v6991_v60, %v6953_v21  ;;  %v7011_v58 = vadd.f32 %v7003_v5, %v6954_v54  ;;  %v6992_v23 = vsel %vm6990_vm14, %v17469_v28, %v6989_v1  ;;  %v7004_v19 = vsel %vm6990_vm14, %v6989_v1, %v17301_v55 }
 0xb3a   :  { %v7018_v45 = vadd.f32 %v7004_v19, %v6961_v29 }
 0xb3b   :  { %v7036_v8 = vadd.f32 %v7024_v53, %v7010_v42  ;;  %v7037_v9 = vadd.f32 %v7024_v53, %v7011_v58  ;;  %v6960_v53 = vadd.f32 %v6935_v18, %v6903_v47 }
 0xb3d   :  { %7050 = vst [vmem:[#allocation2 + $0x28] sm:$0xff] %v7036_v8  ;;  %v7017_v38 = vadd.f32 %v6992_v23, %v6960_v53 }
 0xb3e   :  { %7051 = vst [vmem:[#allocation2 + $0x30] sm:$0xff] %v7037_v9 }
 0xb3f   :  { %v7029_v44 = vpop.permute.xlu0 %7028 }
 0xb40   :  { %v7038_v12 = vadd.f32 %v7029_v44, %v17368_v36  ;;  %v7039_v15 = vadd.f32 %v7029_v44, %v17370_v48  ;;  %v7040_v24 = vadd.f32 %v7029_v44, %v17395_v4  ;;  %v7041_v56 = vadd.f32 %v7029_v44, %v17480_v39 }
 0xb41   :  { %v7042_v10 = vadd.f32 %v7029_v44, %v7016_v37  ;;  %v7043_v11 = vadd.f32 %v7029_v44, %v7017_v38  ;;  %v7044_v55 = vadd.f32 %v7029_v44, %v7018_v45 }
 0xb42   :  { %7052 = vst [vmem:[#allocation2 + $0x38] sm:$0x3] %v7038_v12 }
 0xb43   :  { %7053 = vst [vmem:[#allocation2 + $0x40] sm:$0x3] %v7039_v15 }
 0xb44   :  { %7054 = vst [vmem:[#allocation2 + $0x48] sm:$0x3] %v7040_v24 }
 0xb45   :  { %7055 = vst [vmem:[#allocation2 + $0x50] sm:$0x3] %v7041_v56 }
 0xb46   :  { %7056 = vst [vmem:[#allocation2 + $0x58] sm:$0x3] %v7042_v10 }
 0xb47   :  { %7057 = vst [vmem:[#allocation2 + $0x60] sm:$0x3] %v7043_v11 }
 0xb48   :  { %7058 = vst [vmem:[#allocation2 + $0x68] sm:$0x3] %v7044_v55 }
 0xb49   :  { %7071 = dma.vmem_to_hbm [thread:$0]  %s7064_s18, 1792, %s7066_s13, [#allocation3], %s8253_s20, %s8253_s20, %s8254_s21  }
 0xb4a   :  { %8239 = dma.done.wait [#allocation3], 1792  }
 0xb4b   :  { %8240 = vsyncadd [#allocation3], 4294965504 }
 0xb4c   :  { %7076 = vsyncpa [#allocation3], 1 }

</bundles_post_ra>
